<compile_context>
chip_gen: v7x
topology: tpu7x:2x2x1
jax: 0.10.0
libtpu: 0.0.40
codegen_flags: <defaults>
</compile_context>

<pallas_src>
import functools

import jax
import jax.numpy as jnp
from jax.experimental import pallas as pl
from jax.experimental.pallas import tpu as pltpu

BN_EPS = 1e-5
KS = 3          # conv kernel size
STRIDE = 2      # conv stride


# ------------------------------------------------------------------ geometry

def _layer_dims(B, H, W, chans):
    """Static per-layer geometry: (H, W, Ho, Wo, Cin, Cout)."""
    dims = []
    h, w = H, W
    for i in range(len(chans) - 1):
        ho = (h - KS) // STRIDE + 1
        wo = (w - KS) // STRIDE + 1
        dims.append((h, w, ho, wo, chans[i], chans[i + 1]))
        h, w = ho, wo
    return dims, (h, w)


# ------------------------------------------------------------------ BN helper

def _bn_relu(y, gamma, beta):
    """Training-mode BatchNorm2d (biased batch variance) + ReLU, all in f32.

    Single data pass: pivot-shifted sum / sum-of-squares.  Shifting by row 0
    makes this numerically equivalent to the centered two-pass variance (and any
    per-channel constant such as the conv bias cancels automatically).
    """
    m = y.shape[0]
    d = y - y[0:1, :]                              # pivot shift (row 0)
    s = jnp.sum(d, axis=0, keepdims=True)          # sum
    q = jnp.sum(d * d, axis=0, keepdims=True)      # sum of squares
    mean_d = s * (1.0 / m)
    var = q * (1.0 / m) - mean_d * mean_d          # biased var (PyTorch train mode)
    h = (d - mean_d) * jax.lax.rsqrt(var + BN_EPS) * gamma + beta
    return jnp.maximum(h, 0.0)                     # ReLU


# ------------------------------------------------------------------ fused kernel

def _fused_net_kernel(x1_ref,
                      w1, g1, b1, w2, g2, b2, w3, g3, b3, w4, g4, b4,
                      fcw, fcb,
                      o_ref,
                      p2, y2, o2, p3, y3, o3, p4, y4, o4,
                      *, B, dims, matmul_dtype):
    def mm(lhs, rhs_ref):
        # MXU matmul; operands optionally bf16 (v6e/v7x fast path), f32 accumulate.
        return jnp.dot(lhs.astype(matmul_dtype), rhs_ref[...].astype(matmul_dtype),
                       preferred_element_type=jnp.float32)

    # ---- layer 1: stride-2 im2col patches come from the wrapper -> ONE matmul.
    a = _bn_relu(mm(x1_ref[...], w1), g1[...], b1[...])          # (B*15*15, 16)

    weights = [(w2, g2, b2), (w3, g3, b3), (w4, g4, b4)]
    scratches = [(p2, y2, o2), (p3, y3, o3), (p4, y4, o4)]

    for (H, W, Ho, Wo, Cin, Cout), (w_ref, g_ref, be_ref), (p_scr, y_scr, o_scr) in zip(
            dims[1:], weights, scratches):
        # Rows of the stride-1 shifted-window ("full conv") view kept in bounds.
        L = B * H * W - (KS - 1) * W - (KS - 1)

        # 1) Pack the 9 shifted contiguous windows of the previous activation
        #    into one (L, 9*Cin) im2col operand in VMEM scratch.
        for kh in range(KS):
            for kw in range(KS):
                t = kh * KS + kw
                p_scr[:, t * Cin:(t + 1) * Cin] = a[kh * W + kw: kh * W + kw + L, :]

        # 2) ONE matmul per layer, K = 9*Cin.
        y_scr[...] = mm(p_scr[...], w_ref)                        # (L, Cout)

        # 3) Stride-2 spatial subsampling via per-output-row strided loads
        #    (no selection matmul, no gathers).  Only valid output rows are
        #    kept, so BN statistics run over exactly N*Ho*Wo samples.
        for b in range(B):
            for ho in range(Ho):
                src = b * H * W + (STRIDE * ho) * W
                dst = (b * Ho + ho) * Wo
                if Wo == 1:
                    o_scr[pl.ds(dst, 1), :] = y_scr[pl.ds(src, 1), :]
                else:
                    o_scr[pl.ds(dst, Wo), :] = y_scr[pl.ds(src, Wo, stride=STRIDE), :]

        # 4) BatchNorm (train-mode batch stats, single pass) + ReLU.
        a = _bn_relu(o_scr[...], g_ref[...], be_ref[...])         # (B*Ho*Wo, Cout)

    # ---- fused fully-connected head: (B, 128) @ (128, 10) + bias.
    o_ref[...] = mm(a, fcw) + fcb[...]


# ------------------------------------------------------------------ wrapper

def net_forward(params, x, *, matmul_dtype=jnp.float32):
    """x: (B, 3, 32, 32) NCHW (PyTorch convention). Returns (B, 10) logits.

    Set matmul_dtype=jnp.bfloat16 on v6e/v7x for the fast MXU path at scale
    (loosen the comparison tolerance accordingly); BN math stays in f32.
    """
    B, C, H, W = x.shape
    chans = [C, 16, 32, 64, 128]
    dims, (hf, wf) = _layer_dims(B, H, W, chans)
    assert (hf, wf) == (1, 1), "expected 1x1 spatial after the four stride-2 convs"

    H1, W1, Ho1, Wo1, Cin1, _ = dims[0]

    # Layer-1 stride-2 im2col at the JAX level (NCHW -> NHWC patches).  Only a
    # (B*Ho1*Wo1, 9*Cin1) = (450, 27) f32 slab (~48 KB) ever reaches the kernel.
    xh = jnp.transpose(x, (0, 2, 3, 1)).astype(jnp.float32)
    taps = [xh[:, kh:kh + STRIDE * (Ho1 - 1) + 1:STRIDE,
               kw:kw + STRIDE * (Wo1 - 1) + 1:STRIDE, :]
            for kh in range(KS) for kw in range(KS)]
    x_patches = jnp.concatenate(taps, axis=-1).reshape(B * Ho1 * Wo1, KS * KS * Cin1)

    inputs = [x_patches]
    for i, (hh, ww, ho, wo, cin, cout) in enumerate(dims):
        w_conv, _bias = params["conv"][i]      # conv bias cancels in train-mode BN
        gamma, beta = params["bn"][i]
        # (Cout, Cin, kh, kw) -> rows indexed by (kh*3 + kw)*Cin + ci, cols = Cout.
        w_mat = w_conv.transpose(2, 3, 1, 0).reshape(KS * KS * cin, cout)
        inputs += [w_mat.astype(jnp.float32),
                   gamma.reshape(1, cout).astype(jnp.float32),
                   beta.reshape(1, cout).astype(jnp.float32)]
    inputs += [params["fc_w"].T.astype(jnp.float32),             # (128, 10)
               params["fc_b"].reshape(1, -1).astype(jnp.float32)]

    # Per-layer VMEM scratch for layers 2-4: patch matrix, full-conv output,
    # stride-2 subsampled pre-BN output.  Total < 0.5 MiB.
    scratch = []
    for (hh, ww, ho, wo, cin, cout) in dims[1:]:
        L = B * hh * ww - (KS - 1) * ww - (KS - 1)
        scratch += [pltpu.VMEM((L, KS * KS * cin), jnp.float32),  # patches
                    pltpu.VMEM((L, cout), jnp.float32),           # full-conv out
                    pltpu.VMEM((B * ho * wo, cout), jnp.float32)] # subsampled out

    vmem_spec = pl.BlockSpec(memory_space=pltpu.MemorySpace.VMEM)
    kernel = functools.partial(_fused_net_kernel, B=B, dims=tuple(dims),
                               matmul_dtype=matmul_dtype)

    return pl.pallas_call(
        kernel,
        out_shape=jax.ShapeDtypeStruct((B, 10), jnp.float32),
        in_specs=[vmem_spec] * len(inputs),
        out_specs=vmem_spec,
        scratch_shapes=scratch,
        # Modest limit: v7x has only 64 MiB VMEM per TensorCore; this kernel
        # needs well under 1 MiB.
        compiler_params=pltpu.CompilerParams(vmem_limit_bytes=16 * 1024 * 1024),
    )(*inputs)


# ------------------------------------------------------------------ params

def init_params(key):
    """Deterministic parameter init matching the PyTorch module's shapes."""
    chans = [(3, 16), (16, 32), (32, 64), (64, 128)]
    params = {"conv": [], "bn": []}
    for cin, cout in chans:
        key, kw, kb = jax.random.split(key, 3)
        fan_in = cin * KS * KS
        bound = 1.0 / jnp.sqrt(fan_in)
        w = jax.random.uniform(kw, (cout, cin, KS, KS), jnp.float32, -bound, bound)
        b = jax.random.uniform(kb, (cout,), jnp.float32, -bound, bound)
        params["conv"].append((w, b))
        params["bn"].append((jnp.ones((cout,), jnp.float32),     # gamma
                             jnp.zeros((cout,), jnp.float32)))   # beta
    key, kw, kb = jax.random.split(key, 3)
    bound = 1.0 / jnp.sqrt(128.0)
    params["fc_w"] = jax.random.uniform(kw, (10, 128), jnp.float32, -bound, bound)
    params["fc_b"] = jax.random.uniform(kb, (10,), jnp.float32, -bound, bound)
    return params


# ------------------------------------------------------------------ reference

def net_forward_ref(params, x):
    """Pure-JAX reference matching the PyTorch module (conv bias included)."""
    out = x
    for (w, b), (gamma, beta) in zip(params["conv"], params["bn"]):
        y = jax.lax.conv_general_dilated(
            out, w, window_strides=(STRIDE, STRIDE), padding="VALID",
            dimension_numbers=("NCHW", "OIHW", "NCHW"),
        ) + b[None, :, None, None]
        mean = jnp.mean(y, axis=(0, 2, 3), keepdims=True)
        var = jnp.mean(jnp.square(y - mean), axis=(0, 2, 3), keepdims=True)
        y = (y - mean) * jax.lax.rsqrt(var + BN_EPS)
        y = y * gamma[None, :, None, None] + beta[None, :, None, None]
        out = jnp.maximum(y, 0.0)
    out = out.reshape(out.shape[0], -1)
    return out @ params["fc_w"].T + params["fc_b"][None, :]


# ------------------------------------------------------------------ main

if __name__ == "__main__":
    key = jax.random.PRNGKey(0)
    key, kx = jax.random.split(key)
    # batch=2, 3x32x32 -> four stride-2 3x3 convs -> 128x1x1 -> fc -> 10 logits
    x = jax.random.normal(kx, (2, 3, 32, 32), jnp.float32)
    params = init_params(key)

    out = jax.block_until_ready(net_forward(params, x))
    ref = net_forward_ref(params, x)

    assert out.shape == (2, 10), out.shape
    assert jnp.allclose(out, ref, rtol=1e-3, atol=1e-3), (
        float(jnp.max(jnp.abs(out - ref)))
    )
    print("KERNEL_OK")
</pallas_src>

<mosaic_0001>
module attributes {stable_mosaic.version = 11 : i64} {
  func.func @_fused_net_kernel(%arg0: memref<450x27xf32, #tpu.memory_space<vmem>>, %arg1: memref<27x16xf32, #tpu.memory_space<vmem>>, %arg2: memref<1x16xf32, #tpu.memory_space<vmem>>, %arg3: memref<1x16xf32, #tpu.memory_space<vmem>>, %arg4: memref<144x32xf32, #tpu.memory_space<vmem>>, %arg5: memref<1x32xf32, #tpu.memory_space<vmem>>, %arg6: memref<1x32xf32, #tpu.memory_space<vmem>>, %arg7: memref<288x64xf32, #tpu.memory_space<vmem>>, %arg8: memref<1x64xf32, #tpu.memory_space<vmem>>, %arg9: memref<1x64xf32, #tpu.memory_space<vmem>>, %arg10: memref<576x128xf32, #tpu.memory_space<vmem>>, %arg11: memref<1x128xf32, #tpu.memory_space<vmem>>, %arg12: memref<1x128xf32, #tpu.memory_space<vmem>>, %arg13: memref<128x10xf32, #tpu.memory_space<vmem>>, %arg14: memref<1x10xf32, #tpu.memory_space<vmem>>, %arg15: memref<2x10xf32, #tpu.memory_space<vmem>>, %arg16: memref<418x144xf32, #tpu.memory_space<vmem>>, %arg17: memref<418x32xf32, #tpu.memory_space<vmem>>, %arg18: memref<98x32xf32, #tpu.memory_space<vmem>>, %arg19: memref<82x288xf32, #tpu.memory_space<vmem>>, %arg20: memref<82x64xf32, #tpu.memory_space<vmem>>, %arg21: memref<18x64xf32, #tpu.memory_space<vmem>>, %arg22: memref<10x576xf32, #tpu.memory_space<vmem>>, %arg23: memref<10x128xf32, #tpu.memory_space<vmem>>, %arg24: memref<2x128xf32, #tpu.memory_space<vmem>>) attributes {dimension_semantics = [], scalar_prefetch = 0 : i64, scratch_operands = 9 : i64, tpu.core_type = #tpu.core_type<tc>} {
    %c0 = arith.constant 0 : index
    %c0_0 = arith.constant 0 : index
    %0 = vector.load %arg0[%c0, %c0_0] : memref<450x27xf32, #tpu.memory_space<vmem>>, vector<450x27xf32>
    %c0_1 = arith.constant 0 : index
    %c0_2 = arith.constant 0 : index
    %1 = vector.load %arg1[%c0_1, %c0_2] : memref<27x16xf32, #tpu.memory_space<vmem>>, vector<27x16xf32>
    %cst = arith.constant dense<0.000000e+00> : vector<450x16xf32>
    %2 = tpu.matmul %0, %1, %cst {dimension_numbers = #tpu.dot_dimension_numbers<[1], [0], [0], [1], [0, 0, 1, 1], [], []>} : vector<450x27xf32>, vector<27x16xf32>, vector<450x16xf32> -> vector<450x16xf32>
    %c0_3 = arith.constant 0 : index
    %c0_4 = arith.constant 0 : index
    %3 = vector.load %arg2[%c0_3, %c0_4] : memref<1x16xf32, #tpu.memory_space<vmem>>, vector<1x16xf32>
    %c0_5 = arith.constant 0 : index
    %c0_6 = arith.constant 0 : index
    %4 = vector.load %arg3[%c0_5, %c0_6] : memref<1x16xf32, #tpu.memory_space<vmem>>, vector<1x16xf32>
    %5 = vector.extract_strided_slice %2 {offsets = [0, 0], sizes = [1, 16], strides = [1, 1]} : vector<450x16xf32> to vector<1x16xf32>
    %6 = vector.broadcast %5 : vector<1x16xf32> to vector<450x16xf32>
    %7 = arith.subf %2, %6 : vector<450x16xf32>
    %cst_7 = arith.constant dense<0.000000e+00> : vector<16xf32>
    %8 = vector.multi_reduction <add>, %7, %cst_7 [0] : vector<450x16xf32> to vector<16xf32>
    %9 = vector.shape_cast %8 : vector<16xf32> to vector<1x16xf32>
    %10 = arith.mulf %7, %7 : vector<450x16xf32>
    %cst_8 = arith.constant dense<0.000000e+00> : vector<16xf32>
    %11 = vector.multi_reduction <add>, %10, %cst_8 [0] : vector<450x16xf32> to vector<16xf32>
    %12 = vector.shape_cast %11 : vector<16xf32> to vector<1x16xf32>
    %cst_9 = arith.constant 0.00222222228 : f32
    %13 = vector.broadcast %cst_9 : f32 to vector<1x16xf32>
    %14 = arith.mulf %9, %13 : vector<1x16xf32>
    %cst_10 = arith.constant 0.00222222228 : f32
    %15 = vector.broadcast %cst_10 : f32 to vector<1x16xf32>
    %16 = arith.mulf %12, %15 : vector<1x16xf32>
    %17 = arith.mulf %14, %14 : vector<1x16xf32>
    %18 = arith.subf %16, %17 : vector<1x16xf32>
    %19 = vector.broadcast %14 : vector<1x16xf32> to vector<450x16xf32>
    %20 = arith.subf %7, %19 : vector<450x16xf32>
    %cst_11 = arith.constant 9.99999974E-6 : f32
    %21 = vector.broadcast %cst_11 : f32 to vector<1x16xf32>
    %22 = arith.addf %18, %21 : vector<1x16xf32>
    %23 = math.rsqrt %22 : vector<1x16xf32>
    %24 = vector.broadcast %23 : vector<1x16xf32> to vector<450x16xf32>
    %25 = arith.mulf %20, %24 : vector<450x16xf32>
    %26 = vector.broadcast %3 : vector<1x16xf32> to vector<450x16xf32>
    %27 = arith.mulf %25, %26 : vector<450x16xf32>
    %28 = vector.broadcast %4 : vector<1x16xf32> to vector<450x16xf32>
    %29 = arith.addf %27, %28 : vector<450x16xf32>
    %cst_12 = arith.constant 0.000000e+00 : f32
    %30 = vector.broadcast %cst_12 : f32 to vector<450x16xf32>
    %31 = arith.maximumf %29, %30 : vector<450x16xf32>
    %32 = vector.extract_strided_slice %31 {offsets = [0, 0], sizes = [418, 16], strides = [1, 1]} : vector<450x16xf32> to vector<418x16xf32>
    %c0_13 = arith.constant 0 : index
    %c0_14 = arith.constant 0 : index
    %33 = vector.load %arg16[%c0_13, %c0_14] : memref<418x144xf32, #tpu.memory_space<vmem>>, vector<418x16xf32>
    tpu.vector_store %arg16[%c0_13, %c0_14], %32 {strides = array<i32>} : memref<418x144xf32, #tpu.memory_space<vmem>>, vector<418x16xf32>,
    %34 = vector.extract_strided_slice %31 {offsets = [1, 0], sizes = [418, 16], strides = [1, 1]} : vector<450x16xf32> to vector<418x16xf32>
    %c0_15 = arith.constant 0 : index
    %c16 = arith.constant 16 : index
    %35 = vector.load %arg16[%c0_15, %c16] : memref<418x144xf32, #tpu.memory_space<vmem>>, vector<418x16xf32>
    tpu.vector_store %arg16[%c0_15, %c16], %34 {strides = array<i32>} : memref<418x144xf32, #tpu.memory_space<vmem>>, vector<418x16xf32>,
    %36 = vector.extract_strided_slice %31 {offsets = [2, 0], sizes = [418, 16], strides = [1, 1]} : vector<450x16xf32> to vector<418x16xf32>
    %c0_16 = arith.constant 0 : index
    %c32 = arith.constant 32 : index
    %37 = vector.load %arg16[%c0_16, %c32] : memref<418x144xf32, #tpu.memory_space<vmem>>, vector<418x16xf32>
    tpu.vector_store %arg16[%c0_16, %c32], %36 {strides = array<i32>} : memref<418x144xf32, #tpu.memory_space<vmem>>, vector<418x16xf32>,
    %38 = vector.extract_strided_slice %31 {offsets = [15, 0], sizes = [418, 16], strides = [1, 1]} : vector<450x16xf32> to vector<418x16xf32>
    %c0_17 = arith.constant 0 : index
    %c48 = arith.constant 48 : index
    %39 = vector.load %arg16[%c0_17, %c48] : memref<418x144xf32, #tpu.memory_space<vmem>>, vector<418x16xf32>
    tpu.vector_store %arg16[%c0_17, %c48], %38 {strides = array<i32>} : memref<418x144xf32, #tpu.memory_space<vmem>>, vector<418x16xf32>,
    %40 = vector.extract_strided_slice %31 {offsets = [16, 0], sizes = [418, 16], strides = [1, 1]} : vector<450x16xf32> to vector<418x16xf32>
    %c0_18 = arith.constant 0 : index
    %c64 = arith.constant 64 : index
    %41 = vector.load %arg16[%c0_18, %c64] : memref<418x144xf32, #tpu.memory_space<vmem>>, vector<418x16xf32>
    tpu.vector_store %arg16[%c0_18, %c64], %40 {strides = array<i32>} : memref<418x144xf32, #tpu.memory_space<vmem>>, vector<418x16xf32>,
    %42 = vector.extract_strided_slice %31 {offsets = [17, 0], sizes = [418, 16], strides = [1, 1]} : vector<450x16xf32> to vector<418x16xf32>
    %c0_19 = arith.constant 0 : index
    %c80 = arith.constant 80 : index
    %43 = vector.load %arg16[%c0_19, %c80] : memref<418x144xf32, #tpu.memory_space<vmem>>, vector<418x16xf32>
    tpu.vector_store %arg16[%c0_19, %c80], %42 {strides = array<i32>} : memref<418x144xf32, #tpu.memory_space<vmem>>, vector<418x16xf32>,
    %44 = vector.extract_strided_slice %31 {offsets = [30, 0], sizes = [418, 16], strides = [1, 1]} : vector<450x16xf32> to vector<418x16xf32>
    %c0_20 = arith.constant 0 : index
    %c96 = arith.constant 96 : index
    %45 = vector.load %arg16[%c0_20, %c96] : memref<418x144xf32, #tpu.memory_space<vmem>>, vector<418x16xf32>
    tpu.vector_store %arg16[%c0_20, %c96], %44 {strides = array<i32>} : memref<418x144xf32, #tpu.memory_space<vmem>>, vector<418x16xf32>,
    %46 = vector.extract_strided_slice %31 {offsets = [31, 0], sizes = [418, 16], strides = [1, 1]} : vector<450x16xf32> to vector<418x16xf32>
    %c0_21 = arith.constant 0 : index
    %c112 = arith.constant 112 : index
    %47 = vector.load %arg16[%c0_21, %c112] : memref<418x144xf32, #tpu.memory_space<vmem>>, vector<418x16xf32>
    tpu.vector_store %arg16[%c0_21, %c112], %46 {strides = array<i32>} : memref<418x144xf32, #tpu.memory_space<vmem>>, vector<418x16xf32>,
    %48 = vector.extract_strided_slice %31 {offsets = [32, 0], sizes = [418, 16], strides = [1, 1]} : vector<450x16xf32> to vector<418x16xf32>
    %c0_22 = arith.constant 0 : index
    %c128 = arith.constant 128 : index
    %49 = vector.load %arg16[%c0_22, %c128] : memref<418x144xf32, #tpu.memory_space<vmem>>, vector<418x16xf32>
    tpu.vector_store %arg16[%c0_22, %c128], %48 {strides = array<i32>} : memref<418x144xf32, #tpu.memory_space<vmem>>, vector<418x16xf32>,
    %c0_23 = arith.constant 0 : index
    %c0_24 = arith.constant 0 : index
    %50 = vector.load %arg16[%c0_23, %c0_24] : memref<418x144xf32, #tpu.memory_space<vmem>>, vector<418x144xf32>
    %c0_25 = arith.constant 0 : index
    %c0_26 = arith.constant 0 : index
    %51 = vector.load %arg4[%c0_25, %c0_26] : memref<144x32xf32, #tpu.memory_space<vmem>>, vector<144x32xf32>
    %cst_27 = arith.constant dense<0.000000e+00> : vector<418x32xf32>
    %52 = tpu.matmul %50, %51, %cst_27 {dimension_numbers = #tpu.dot_dimension_numbers<[1], [0], [0], [1], [0, 0, 1, 1], [], []>} : vector<418x144xf32>, vector<144x32xf32>, vector<418x32xf32> -> vector<418x32xf32>
    %c0_28 = arith.constant 0 : index
    %c0_29 = arith.constant 0 : index
    %53 = vector.load %arg17[%c0_28, %c0_29] : memref<418x32xf32, #tpu.memory_space<vmem>>, vector<418x32xf32>
    tpu.vector_store %arg17[%c0_28, %c0_29], %52 {strides = array<i32>} : memref<418x32xf32, #tpu.memory_space<vmem>>, vector<418x32xf32>,
    %c0_30 = arith.constant 0 : index
    %c0_31 = arith.constant 0 : index
    %54 = tpu.strided_load %arg17[%c0_30, %c0_31] {strides = array<i32: 2, 1>} : memref<418x32xf32, #tpu.memory_space<vmem>>, vector<7x32xf32>
    %c0_32 = arith.constant 0 : index
    %c0_33 = arith.constant 0 : index
    %55 = vector.load %arg18[%c0_32, %c0_33] : memref<98x32xf32, #tpu.memory_space<vmem>>, vector<7x32xf32>
    tpu.vector_store %arg18[%c0_32, %c0_33], %54 {strides = array<i32>} : memref<98x32xf32, #tpu.memory_space<vmem>>, vector<7x32xf32>,
    %c30 = arith.constant 30 : index
    %c0_34 = arith.constant 0 : index
    %56 = tpu.strided_load %arg17[%c30, %c0_34] {strides = array<i32: 2, 1>} : memref<418x32xf32, #tpu.memory_space<vmem>>, vector<7x32xf32>
    %c7 = arith.constant 7 : index
    %c0_35 = arith.constant 0 : index
    %57 = vector.load %arg18[%c7, %c0_35] : memref<98x32xf32, #tpu.memory_space<vmem>>, vector<7x32xf32>
    tpu.vector_store %arg18[%c7, %c0_35], %56 {strides = array<i32>} : memref<98x32xf32, #tpu.memory_space<vmem>>, vector<7x32xf32>,
    %c60 = arith.constant 60 : index
    %c0_36 = arith.constant 0 : index
    %58 = tpu.strided_load %arg17[%c60, %c0_36] {strides = array<i32: 2, 1>} : memref<418x32xf32, #tpu.memory_space<vmem>>, vector<7x32xf32>
    %c14 = arith.constant 14 : index
    %c0_37 = arith.constant 0 : index
    %59 = vector.load %arg18[%c14, %c0_37] : memref<98x32xf32, #tpu.memory_space<vmem>>, vector<7x32xf32>
    tpu.vector_store %arg18[%c14, %c0_37], %58 {strides = array<i32>} : memref<98x32xf32, #tpu.memory_space<vmem>>, vector<7x32xf32>,
    %c90 = arith.constant 90 : index
    %c0_38 = arith.constant 0 : index
    %60 = tpu.strided_load %arg17[%c90, %c0_38] {strides = array<i32: 2, 1>} : memref<418x32xf32, #tpu.memory_space<vmem>>, vector<7x32xf32>
    %c21 = arith.constant 21 : index
    %c0_39 = arith.constant 0 : index
    %61 = vector.load %arg18[%c21, %c0_39] : memref<98x32xf32, #tpu.memory_space<vmem>>, vector<7x32xf32>
    tpu.vector_store %arg18[%c21, %c0_39], %60 {strides = array<i32>} : memref<98x32xf32, #tpu.memory_space<vmem>>, vector<7x32xf32>,
    %c120 = arith.constant 120 : index
    %c0_40 = arith.constant 0 : index
    %62 = tpu.strided_load %arg17[%c120, %c0_40] {strides = array<i32: 2, 1>} : memref<418x32xf32, #tpu.memory_space<vmem>>, vector<7x32xf32>
    %c28 = arith.constant 28 : index
    %c0_41 = arith.constant 0 : index
    %63 = vector.load %arg18[%c28, %c0_41] : memref<98x32xf32, #tpu.memory_space<vmem>>, vector<7x32xf32>
    tpu.vector_store %arg18[%c28, %c0_41], %62 {strides = array<i32>} : memref<98x32xf32, #tpu.memory_space<vmem>>, vector<7x32xf32>,
    %c150 = arith.constant 150 : index
    %c0_42 = arith.constant 0 : index
    %64 = tpu.strided_load %arg17[%c150, %c0_42] {strides = array<i32: 2, 1>} : memref<418x32xf32, #tpu.memory_space<vmem>>, vector<7x32xf32>
    %c35 = arith.constant 35 : index
    %c0_43 = arith.constant 0 : index
    %65 = vector.load %arg18[%c35, %c0_43] : memref<98x32xf32, #tpu.memory_space<vmem>>, vector<7x32xf32>
    tpu.vector_store %arg18[%c35, %c0_43], %64 {strides = array<i32>} : memref<98x32xf32, #tpu.memory_space<vmem>>, vector<7x32xf32>,
    %c180 = arith.constant 180 : index
    %c0_44 = arith.constant 0 : index
    %66 = tpu.strided_load %arg17[%c180, %c0_44] {strides = array<i32: 2, 1>} : memref<418x32xf32, #tpu.memory_space<vmem>>, vector<7x32xf32>
    %c42 = arith.constant 42 : index
    %c0_45 = arith.constant 0 : index
    %67 = vector.load %arg18[%c42, %c0_45] : memref<98x32xf32, #tpu.memory_space<vmem>>, vector<7x32xf32>
    tpu.vector_store %arg18[%c42, %c0_45], %66 {strides = array<i32>} : memref<98x32xf32, #tpu.memory_space<vmem>>, vector<7x32xf32>,
    %c225 = arith.constant 225 : index
    %c0_46 = arith.constant 0 : index
    %68 = tpu.strided_load %arg17[%c225, %c0_46] {strides = array<i32: 2, 1>} : memref<418x32xf32, #tpu.memory_space<vmem>>, vector<7x32xf32>
    %c49 = arith.constant 49 : index
    %c0_47 = arith.constant 0 : index
    %69 = vector.load %arg18[%c49, %c0_47] : memref<98x32xf32, #tpu.memory_space<vmem>>, vector<7x32xf32>
    tpu.vector_store %arg18[%c49, %c0_47], %68 {strides = array<i32>} : memref<98x32xf32, #tpu.memory_space<vmem>>, vector<7x32xf32>,
    %c255 = arith.constant 255 : index
    %c0_48 = arith.constant 0 : index
    %70 = tpu.strided_load %arg17[%c255, %c0_48] {strides = array<i32: 2, 1>} : memref<418x32xf32, #tpu.memory_space<vmem>>, vector<7x32xf32>
    %c56 = arith.constant 56 : index
    %c0_49 = arith.constant 0 : index
    %71 = vector.load %arg18[%c56, %c0_49] : memref<98x32xf32, #tpu.memory_space<vmem>>, vector<7x32xf32>
    tpu.vector_store %arg18[%c56, %c0_49], %70 {strides = array<i32>} : memref<98x32xf32, #tpu.memory_space<vmem>>, vector<7x32xf32>,
    %c285 = arith.constant 285 : index
    %c0_50 = arith.constant 0 : index
    %72 = tpu.strided_load %arg17[%c285, %c0_50] {strides = array<i32: 2, 1>} : memref<418x32xf32, #tpu.memory_space<vmem>>, vector<7x32xf32>
    %c63 = arith.constant 63 : index
    %c0_51 = arith.constant 0 : index
    %73 = vector.load %arg18[%c63, %c0_51] : memref<98x32xf32, #tpu.memory_space<vmem>>, vector<7x32xf32>
    tpu.vector_store %arg18[%c63, %c0_51], %72 {strides = array<i32>} : memref<98x32xf32, #tpu.memory_space<vmem>>, vector<7x32xf32>,
    %c315 = arith.constant 315 : index
    %c0_52 = arith.constant 0 : index
    %74 = tpu.strided_load %arg17[%c315, %c0_52] {strides = array<i32: 2, 1>} : memref<418x32xf32, #tpu.memory_space<vmem>>, vector<7x32xf32>
    %c70 = arith.constant 70 : index
    %c0_53 = arith.constant 0 : index
    %75 = vector.load %arg18[%c70, %c0_53] : memref<98x32xf32, #tpu.memory_space<vmem>>, vector<7x32xf32>
    tpu.vector_store %arg18[%c70, %c0_53], %74 {strides = array<i32>} : memref<98x32xf32, #tpu.memory_space<vmem>>, vector<7x32xf32>,
    %c345 = arith.constant 345 : index
    %c0_54 = arith.constant 0 : index
    %76 = tpu.strided_load %arg17[%c345, %c0_54] {strides = array<i32: 2, 1>} : memref<418x32xf32, #tpu.memory_space<vmem>>, vector<7x32xf32>
    %c77 = arith.constant 77 : index
    %c0_55 = arith.constant 0 : index
    %77 = vector.load %arg18[%c77, %c0_55] : memref<98x32xf32, #tpu.memory_space<vmem>>, vector<7x32xf32>
    tpu.vector_store %arg18[%c77, %c0_55], %76 {strides = array<i32>} : memref<98x32xf32, #tpu.memory_space<vmem>>, vector<7x32xf32>,
    %c375 = arith.constant 375 : index
    %c0_56 = arith.constant 0 : index
    %78 = tpu.strided_load %arg17[%c375, %c0_56] {strides = array<i32: 2, 1>} : memref<418x32xf32, #tpu.memory_space<vmem>>, vector<7x32xf32>
    %c84 = arith.constant 84 : index
    %c0_57 = arith.constant 0 : index
    %79 = vector.load %arg18[%c84, %c0_57] : memref<98x32xf32, #tpu.memory_space<vmem>>, vector<7x32xf32>
    tpu.vector_store %arg18[%c84, %c0_57], %78 {strides = array<i32>} : memref<98x32xf32, #tpu.memory_space<vmem>>, vector<7x32xf32>,
    %c405 = arith.constant 405 : index
    %c0_58 = arith.constant 0 : index
    %80 = tpu.strided_load %arg17[%c405, %c0_58] {strides = array<i32: 2, 1>} : memref<418x32xf32, #tpu.memory_space<vmem>>, vector<7x32xf32>
    %c91 = arith.constant 91 : index
    %c0_59 = arith.constant 0 : index
    %81 = vector.load %arg18[%c91, %c0_59] : memref<98x32xf32, #tpu.memory_space<vmem>>, vector<7x32xf32>
    tpu.vector_store %arg18[%c91, %c0_59], %80 {strides = array<i32>} : memref<98x32xf32, #tpu.memory_space<vmem>>, vector<7x32xf32>,
    %c0_60 = arith.constant 0 : index
    %c0_61 = arith.constant 0 : index
    %82 = vector.load %arg18[%c0_60, %c0_61] : memref<98x32xf32, #tpu.memory_space<vmem>>, vector<98x32xf32>
    %c0_62 = arith.constant 0 : index
    %c0_63 = arith.constant 0 : index
    %83 = vector.load %arg5[%c0_62, %c0_63] : memref<1x32xf32, #tpu.memory_space<vmem>>, vector<1x32xf32>
    %c0_64 = arith.constant 0 : index
    %c0_65 = arith.constant 0 : index
    %84 = vector.load %arg6[%c0_64, %c0_65] : memref<1x32xf32, #tpu.memory_space<vmem>>, vector<1x32xf32>
    %85 = vector.extract_strided_slice %82 {offsets = [0, 0], sizes = [1, 32], strides = [1, 1]} : vector<98x32xf32> to vector<1x32xf32>
    %86 = vector.broadcast %85 : vector<1x32xf32> to vector<98x32xf32>
    %87 = arith.subf %82, %86 : vector<98x32xf32>
    %cst_66 = arith.constant dense<0.000000e+00> : vector<32xf32>
    %88 = vector.multi_reduction <add>, %87, %cst_66 [0] : vector<98x32xf32> to vector<32xf32>
    %89 = vector.shape_cast %88 : vector<32xf32> to vector<1x32xf32>
    %90 = arith.mulf %87, %87 : vector<98x32xf32>
    %cst_67 = arith.constant dense<0.000000e+00> : vector<32xf32>
    %91 = vector.multi_reduction <add>, %90, %cst_67 [0] : vector<98x32xf32> to vector<32xf32>
    %92 = vector.shape_cast %91 : vector<32xf32> to vector<1x32xf32>
    %cst_68 = arith.constant 0.0102040814 : f32
    %93 = vector.broadcast %cst_68 : f32 to vector<1x32xf32>
    %94 = arith.mulf %89, %93 : vector<1x32xf32>
    %cst_69 = arith.constant 0.0102040814 : f32
    %95 = vector.broadcast %cst_69 : f32 to vector<1x32xf32>
    %96 = arith.mulf %92, %95 : vector<1x32xf32>
    %97 = arith.mulf %94, %94 : vector<1x32xf32>
    %98 = arith.subf %96, %97 : vector<1x32xf32>
    %99 = vector.broadcast %94 : vector<1x32xf32> to vector<98x32xf32>
    %100 = arith.subf %87, %99 : vector<98x32xf32>
    %cst_70 = arith.constant 9.99999974E-6 : f32
    %101 = vector.broadcast %cst_70 : f32 to vector<1x32xf32>
    %102 = arith.addf %98, %101 : vector<1x32xf32>
    %103 = math.rsqrt %102 : vector<1x32xf32>
    %104 = vector.broadcast %103 : vector<1x32xf32> to vector<98x32xf32>
    %105 = arith.mulf %100, %104 : vector<98x32xf32>
    %106 = vector.broadcast %83 : vector<1x32xf32> to vector<98x32xf32>
    %107 = arith.mulf %105, %106 : vector<98x32xf32>
    %108 = vector.broadcast %84 : vector<1x32xf32> to vector<98x32xf32>
    %109 = arith.addf %107, %108 : vector<98x32xf32>
    %cst_71 = arith.constant 0.000000e+00 : f32
    %110 = vector.broadcast %cst_71 : f32 to vector<98x32xf32>
    %111 = arith.maximumf %109, %110 : vector<98x32xf32>
    %112 = vector.extract_strided_slice %111 {offsets = [0, 0], sizes = [82, 32], strides = [1, 1]} : vector<98x32xf32> to vector<82x32xf32>
    %c0_72 = arith.constant 0 : index
    %c0_73 = arith.constant 0 : index
    %113 = vector.load %arg19[%c0_72, %c0_73] : memref<82x288xf32, #tpu.memory_space<vmem>>, vector<82x32xf32>
    tpu.vector_store %arg19[%c0_72, %c0_73], %112 {strides = array<i32>} : memref<82x288xf32, #tpu.memory_space<vmem>>, vector<82x32xf32>,
    %114 = vector.extract_strided_slice %111 {offsets = [1, 0], sizes = [82, 32], strides = [1, 1]} : vector<98x32xf32> to vector<82x32xf32>
    %c0_74 = arith.constant 0 : index
    %c32_75 = arith.constant 32 : index
    %115 = vector.load %arg19[%c0_74, %c32_75] : memref<82x288xf32, #tpu.memory_space<vmem>>, vector<82x32xf32>
    tpu.vector_store %arg19[%c0_74, %c32_75], %114 {strides = array<i32>} : memref<82x288xf32, #tpu.memory_space<vmem>>, vector<82x32xf32>,
    %116 = vector.extract_strided_slice %111 {offsets = [2, 0], sizes = [82, 32], strides = [1, 1]} : vector<98x32xf32> to vector<82x32xf32>
    %c0_76 = arith.constant 0 : index
    %c64_77 = arith.constant 64 : index
    %117 = vector.load %arg19[%c0_76, %c64_77] : memref<82x288xf32, #tpu.memory_space<vmem>>, vector<82x32xf32>
    tpu.vector_store %arg19[%c0_76, %c64_77], %116 {strides = array<i32>} : memref<82x288xf32, #tpu.memory_space<vmem>>, vector<82x32xf32>,
    %118 = vector.extract_strided_slice %111 {offsets = [7, 0], sizes = [82, 32], strides = [1, 1]} : vector<98x32xf32> to vector<82x32xf32>
    %c0_78 = arith.constant 0 : index
    %c96_79 = arith.constant 96 : index
    %119 = vector.load %arg19[%c0_78, %c96_79] : memref<82x288xf32, #tpu.memory_space<vmem>>, vector<82x32xf32>
    tpu.vector_store %arg19[%c0_78, %c96_79], %118 {strides = array<i32>} : memref<82x288xf32, #tpu.memory_space<vmem>>, vector<82x32xf32>,
    %120 = vector.extract_strided_slice %111 {offsets = [8, 0], sizes = [82, 32], strides = [1, 1]} : vector<98x32xf32> to vector<82x32xf32>
    %c0_80 = arith.constant 0 : index
    %c128_81 = arith.constant 128 : index
    %121 = vector.load %arg19[%c0_80, %c128_81] : memref<82x288xf32, #tpu.memory_space<vmem>>, vector<82x32xf32>
    tpu.vector_store %arg19[%c0_80, %c128_81], %120 {strides = array<i32>} : memref<82x288xf32, #tpu.memory_space<vmem>>, vector<82x32xf32>,
    %122 = vector.extract_strided_slice %111 {offsets = [9, 0], sizes = [82, 32], strides = [1, 1]} : vector<98x32xf32> to vector<82x32xf32>
    %c0_82 = arith.constant 0 : index
    %c160 = arith.constant 160 : index
    %123 = vector.load %arg19[%c0_82, %c160] : memref<82x288xf32, #tpu.memory_space<vmem>>, vector<82x32xf32>
    tpu.vector_store %arg19[%c0_82, %c160], %122 {strides = array<i32>} : memref<82x288xf32, #tpu.memory_space<vmem>>, vector<82x32xf32>,
    %124 = vector.extract_strided_slice %111 {offsets = [14, 0], sizes = [82, 32], strides = [1, 1]} : vector<98x32xf32> to vector<82x32xf32>
    %c0_83 = arith.constant 0 : index
    %c192 = arith.constant 192 : index
    %125 = vector.load %arg19[%c0_83, %c192] : memref<82x288xf32, #tpu.memory_space<vmem>>, vector<82x32xf32>
    tpu.vector_store %arg19[%c0_83, %c192], %124 {strides = array<i32>} : memref<82x288xf32, #tpu.memory_space<vmem>>, vector<82x32xf32>,
    %126 = vector.extract_strided_slice %111 {offsets = [15, 0], sizes = [82, 32], strides = [1, 1]} : vector<98x32xf32> to vector<82x32xf32>
    %c0_84 = arith.constant 0 : index
    %c224 = arith.constant 224 : index
    %127 = vector.load %arg19[%c0_84, %c224] : memref<82x288xf32, #tpu.memory_space<vmem>>, vector<82x32xf32>
    tpu.vector_store %arg19[%c0_84, %c224], %126 {strides = array<i32>} : memref<82x288xf32, #tpu.memory_space<vmem>>, vector<82x32xf32>,
    %128 = vector.extract_strided_slice %111 {offsets = [16, 0], sizes = [82, 32], strides = [1, 1]} : vector<98x32xf32> to vector<82x32xf32>
    %c0_85 = arith.constant 0 : index
    %c256 = arith.constant 256 : index
    %129 = vector.load %arg19[%c0_85, %c256] : memref<82x288xf32, #tpu.memory_space<vmem>>, vector<82x32xf32>
    tpu.vector_store %arg19[%c0_85, %c256], %128 {strides = array<i32>} : memref<82x288xf32, #tpu.memory_space<vmem>>, vector<82x32xf32>,
    %c0_86 = arith.constant 0 : index
    %c0_87 = arith.constant 0 : index
    %130 = vector.load %arg19[%c0_86, %c0_87] : memref<82x288xf32, #tpu.memory_space<vmem>>, vector<82x288xf32>
    %c0_88 = arith.constant 0 : index
    %c0_89 = arith.constant 0 : index
    %131 = vector.load %arg7[%c0_88, %c0_89] : memref<288x64xf32, #tpu.memory_space<vmem>>, vector<288x64xf32>
    %cst_90 = arith.constant dense<0.000000e+00> : vector<82x64xf32>
    %132 = tpu.matmul %130, %131, %cst_90 {dimension_numbers = #tpu.dot_dimension_numbers<[1], [0], [0], [1], [0, 0, 1, 1], [], []>} : vector<82x288xf32>, vector<288x64xf32>, vector<82x64xf32> -> vector<82x64xf32>
    %c0_91 = arith.constant 0 : index
    %c0_92 = arith.constant 0 : index
    %133 = vector.load %arg20[%c0_91, %c0_92] : memref<82x64xf32, #tpu.memory_space<vmem>>, vector<82x64xf32>
    tpu.vector_store %arg20[%c0_91, %c0_92], %132 {strides = array<i32>} : memref<82x64xf32, #tpu.memory_space<vmem>>, vector<82x64xf32>,
    %c0_93 = arith.constant 0 : index
    %c0_94 = arith.constant 0 : index
    %134 = tpu.strided_load %arg20[%c0_93, %c0_94] {strides = array<i32: 2, 1>} : memref<82x64xf32, #tpu.memory_space<vmem>>, vector<3x64xf32>
    %c0_95 = arith.constant 0 : index
    %c0_96 = arith.constant 0 : index
    %135 = vector.load %arg21[%c0_95, %c0_96] : memref<18x64xf32, #tpu.memory_space<vmem>>, vector<3x64xf32>
    tpu.vector_store %arg21[%c0_95, %c0_96], %134 {strides = array<i32>} : memref<18x64xf32, #tpu.memory_space<vmem>>, vector<3x64xf32>,
    %c14_97 = arith.constant 14 : index
    %c0_98 = arith.constant 0 : index
    %136 = tpu.strided_load %arg20[%c14_97, %c0_98] {strides = array<i32: 2, 1>} : memref<82x64xf32, #tpu.memory_space<vmem>>, vector<3x64xf32>
    %c3 = arith.constant 3 : index
    %c0_99 = arith.constant 0 : index
    %137 = vector.load %arg21[%c3, %c0_99] : memref<18x64xf32, #tpu.memory_space<vmem>>, vector<3x64xf32>
    tpu.vector_store %arg21[%c3, %c0_99], %136 {strides = array<i32>} : memref<18x64xf32, #tpu.memory_space<vmem>>, vector<3x64xf32>,
    %c28_100 = arith.constant 28 : index
    %c0_101 = arith.constant 0 : index
    %138 = tpu.strided_load %arg20[%c28_100, %c0_101] {strides = array<i32: 2, 1>} : memref<82x64xf32, #tpu.memory_space<vmem>>, vector<3x64xf32>
    %c6 = arith.constant 6 : index
    %c0_102 = arith.constant 0 : index
    %139 = vector.load %arg21[%c6, %c0_102] : memref<18x64xf32, #tpu.memory_space<vmem>>, vector<3x64xf32>
    tpu.vector_store %arg21[%c6, %c0_102], %138 {strides = array<i32>} : memref<18x64xf32, #tpu.memory_space<vmem>>, vector<3x64xf32>,
    %c49_103 = arith.constant 49 : index
    %c0_104 = arith.constant 0 : index
    %140 = tpu.strided_load %arg20[%c49_103, %c0_104] {strides = array<i32: 2, 1>} : memref<82x64xf32, #tpu.memory_space<vmem>>, vector<3x64xf32>
    %c9 = arith.constant 9 : index
    %c0_105 = arith.constant 0 : index
    %141 = vector.load %arg21[%c9, %c0_105] : memref<18x64xf32, #tpu.memory_space<vmem>>, vector<3x64xf32>
    tpu.vector_store %arg21[%c9, %c0_105], %140 {strides = array<i32>} : memref<18x64xf32, #tpu.memory_space<vmem>>, vector<3x64xf32>,
    %c63_106 = arith.constant 63 : index
    %c0_107 = arith.constant 0 : index
    %142 = tpu.strided_load %arg20[%c63_106, %c0_107] {strides = array<i32: 2, 1>} : memref<82x64xf32, #tpu.memory_space<vmem>>, vector<3x64xf32>
    %c12 = arith.constant 12 : index
    %c0_108 = arith.constant 0 : index
    %143 = vector.load %arg21[%c12, %c0_108] : memref<18x64xf32, #tpu.memory_space<vmem>>, vector<3x64xf32>
    tpu.vector_store %arg21[%c12, %c0_108], %142 {strides = array<i32>} : memref<18x64xf32, #tpu.memory_space<vmem>>, vector<3x64xf32>,
    %c77_109 = arith.constant 77 : index
    %c0_110 = arith.constant 0 : index
    %144 = tpu.strided_load %arg20[%c77_109, %c0_110] {strides = array<i32: 2, 1>} : memref<82x64xf32, #tpu.memory_space<vmem>>, vector<3x64xf32>
    %c15 = arith.constant 15 : index
    %c0_111 = arith.constant 0 : index
    %145 = vector.load %arg21[%c15, %c0_111] : memref<18x64xf32, #tpu.memory_space<vmem>>, vector<3x64xf32>
    tpu.vector_store %arg21[%c15, %c0_111], %144 {strides = array<i32>} : memref<18x64xf32, #tpu.memory_space<vmem>>, vector<3x64xf32>,
    %c0_112 = arith.constant 0 : index
    %c0_113 = arith.constant 0 : index
    %146 = vector.load %arg21[%c0_112, %c0_113] : memref<18x64xf32, #tpu.memory_space<vmem>>, vector<18x64xf32>
    %c0_114 = arith.constant 0 : index
    %c0_115 = arith.constant 0 : index
    %147 = vector.load %arg8[%c0_114, %c0_115] : memref<1x64xf32, #tpu.memory_space<vmem>>, vector<1x64xf32>
    %c0_116 = arith.constant 0 : index
    %c0_117 = arith.constant 0 : index
    %148 = vector.load %arg9[%c0_116, %c0_117] : memref<1x64xf32, #tpu.memory_space<vmem>>, vector<1x64xf32>
    %149 = vector.extract_strided_slice %146 {offsets = [0, 0], sizes = [1, 64], strides = [1, 1]} : vector<18x64xf32> to vector<1x64xf32>
    %150 = vector.broadcast %149 : vector<1x64xf32> to vector<18x64xf32>
    %151 = arith.subf %146, %150 : vector<18x64xf32>
    %cst_118 = arith.constant dense<0.000000e+00> : vector<64xf32>
    %152 = vector.multi_reduction <add>, %151, %cst_118 [0] : vector<18x64xf32> to vector<64xf32>
    %153 = vector.shape_cast %152 : vector<64xf32> to vector<1x64xf32>
    %154 = arith.mulf %151, %151 : vector<18x64xf32>
    %cst_119 = arith.constant dense<0.000000e+00> : vector<64xf32>
    %155 = vector.multi_reduction <add>, %154, %cst_119 [0] : vector<18x64xf32> to vector<64xf32>
    %156 = vector.shape_cast %155 : vector<64xf32> to vector<1x64xf32>
    %cst_120 = arith.constant 0.055555556 : f32
    %157 = vector.broadcast %cst_120 : f32 to vector<1x64xf32>
    %158 = arith.mulf %153, %157 : vector<1x64xf32>
    %cst_121 = arith.constant 0.055555556 : f32
    %159 = vector.broadcast %cst_121 : f32 to vector<1x64xf32>
    %160 = arith.mulf %156, %159 : vector<1x64xf32>
    %161 = arith.mulf %158, %158 : vector<1x64xf32>
    %162 = arith.subf %160, %161 : vector<1x64xf32>
    %163 = vector.broadcast %158 : vector<1x64xf32> to vector<18x64xf32>
    %164 = arith.subf %151, %163 : vector<18x64xf32>
    %cst_122 = arith.constant 9.99999974E-6 : f32
    %165 = vector.broadcast %cst_122 : f32 to vector<1x64xf32>
    %166 = arith.addf %162, %165 : vector<1x64xf32>
    %167 = math.rsqrt %166 : vector<1x64xf32>
    %168 = vector.broadcast %167 : vector<1x64xf32> to vector<18x64xf32>
    %169 = arith.mulf %164, %168 : vector<18x64xf32>
    %170 = vector.broadcast %147 : vector<1x64xf32> to vector<18x64xf32>
    %171 = arith.mulf %169, %170 : vector<18x64xf32>
    %172 = vector.broadcast %148 : vector<1x64xf32> to vector<18x64xf32>
    %173 = arith.addf %171, %172 : vector<18x64xf32>
    %cst_123 = arith.constant 0.000000e+00 : f32
    %174 = vector.broadcast %cst_123 : f32 to vector<18x64xf32>
    %175 = arith.maximumf %173, %174 : vector<18x64xf32>
    %176 = vector.extract_strided_slice %175 {offsets = [0, 0], sizes = [10, 64], strides = [1, 1]} : vector<18x64xf32> to vector<10x64xf32>
    %c0_124 = arith.constant 0 : index
    %c0_125 = arith.constant 0 : index
    %177 = vector.load %arg22[%c0_124, %c0_125] : memref<10x576xf32, #tpu.memory_space<vmem>>, vector<10x64xf32>
    tpu.vector_store %arg22[%c0_124, %c0_125], %176 {strides = array<i32>} : memref<10x576xf32, #tpu.memory_space<vmem>>, vector<10x64xf32>,
    %178 = vector.extract_strided_slice %175 {offsets = [1, 0], sizes = [10, 64], strides = [1, 1]} : vector<18x64xf32> to vector<10x64xf32>
    %c0_126 = arith.constant 0 : index
    %c64_127 = arith.constant 64 : index
    %179 = vector.load %arg22[%c0_126, %c64_127] : memref<10x576xf32, #tpu.memory_space<vmem>>, vector<10x64xf32>
    tpu.vector_store %arg22[%c0_126, %c64_127], %178 {strides = array<i32>} : memref<10x576xf32, #tpu.memory_space<vmem>>, vector<10x64xf32>,
    %180 = vector.extract_strided_slice %175 {offsets = [2, 0], sizes = [10, 64], strides = [1, 1]} : vector<18x64xf32> to vector<10x64xf32>
    %c0_128 = arith.constant 0 : index
    %c128_129 = arith.constant 128 : index
    %181 = vector.load %arg22[%c0_128, %c128_129] : memref<10x576xf32, #tpu.memory_space<vmem>>, vector<10x64xf32>
    tpu.vector_store %arg22[%c0_128, %c128_129], %180 {strides = array<i32>} : memref<10x576xf32, #tpu.memory_space<vmem>>, vector<10x64xf32>,
    %182 = vector.extract_strided_slice %175 {offsets = [3, 0], sizes = [10, 64], strides = [1, 1]} : vector<18x64xf32> to vector<10x64xf32>
    %c0_130 = arith.constant 0 : index
    %c192_131 = arith.constant 192 : index
    %183 = vector.load %arg22[%c0_130, %c192_131] : memref<10x576xf32, #tpu.memory_space<vmem>>, vector<10x64xf32>
    tpu.vector_store %arg22[%c0_130, %c192_131], %182 {strides = array<i32>} : memref<10x576xf32, #tpu.memory_space<vmem>>, vector<10x64xf32>,
    %184 = vector.extract_strided_slice %175 {offsets = [4, 0], sizes = [10, 64], strides = [1, 1]} : vector<18x64xf32> to vector<10x64xf32>
    %c0_132 = arith.constant 0 : index
    %c256_133 = arith.constant 256 : index
    %185 = vector.load %arg22[%c0_132, %c256_133] : memref<10x576xf32, #tpu.memory_space<vmem>>, vector<10x64xf32>
    tpu.vector_store %arg22[%c0_132, %c256_133], %184 {strides = array<i32>} : memref<10x576xf32, #tpu.memory_space<vmem>>, vector<10x64xf32>,
    %186 = vector.extract_strided_slice %175 {offsets = [5, 0], sizes = [10, 64], strides = [1, 1]} : vector<18x64xf32> to vector<10x64xf32>
    %c0_134 = arith.constant 0 : index
    %c320 = arith.constant 320 : index
    %187 = vector.load %arg22[%c0_134, %c320] : memref<10x576xf32, #tpu.memory_space<vmem>>, vector<10x64xf32>
    tpu.vector_store %arg22[%c0_134, %c320], %186 {strides = array<i32>} : memref<10x576xf32, #tpu.memory_space<vmem>>, vector<10x64xf32>,
    %188 = vector.extract_strided_slice %175 {offsets = [6, 0], sizes = [10, 64], strides = [1, 1]} : vector<18x64xf32> to vector<10x64xf32>
    %c0_135 = arith.constant 0 : index
    %c384 = arith.constant 384 : index
    %189 = vector.load %arg22[%c0_135, %c384] : memref<10x576xf32, #tpu.memory_space<vmem>>, vector<10x64xf32>
    tpu.vector_store %arg22[%c0_135, %c384], %188 {strides = array<i32>} : memref<10x576xf32, #tpu.memory_space<vmem>>, vector<10x64xf32>,
    %190 = vector.extract_strided_slice %175 {offsets = [7, 0], sizes = [10, 64], strides = [1, 1]} : vector<18x64xf32> to vector<10x64xf32>
    %c0_136 = arith.constant 0 : index
    %c448 = arith.constant 448 : index
    %191 = vector.load %arg22[%c0_136, %c448] : memref<10x576xf32, #tpu.memory_space<vmem>>, vector<10x64xf32>
    tpu.vector_store %arg22[%c0_136, %c448], %190 {strides = array<i32>} : memref<10x576xf32, #tpu.memory_space<vmem>>, vector<10x64xf32>,
    %192 = vector.extract_strided_slice %175 {offsets = [8, 0], sizes = [10, 64], strides = [1, 1]} : vector<18x64xf32> to vector<10x64xf32>
    %c0_137 = arith.constant 0 : index
    %c512 = arith.constant 512 : index
    %193 = vector.load %arg22[%c0_137, %c512] : memref<10x576xf32, #tpu.memory_space<vmem>>, vector<10x64xf32>
    tpu.vector_store %arg22[%c0_137, %c512], %192 {strides = array<i32>} : memref<10x576xf32, #tpu.memory_space<vmem>>, vector<10x64xf32>,
    %c0_138 = arith.constant 0 : index
    %c0_139 = arith.constant 0 : index
    %194 = vector.load %arg22[%c0_138, %c0_139] : memref<10x576xf32, #tpu.memory_space<vmem>>, vector<10x576xf32>
    %c0_140 = arith.constant 0 : index
    %c0_141 = arith.constant 0 : index
    %195 = vector.load %arg10[%c0_140, %c0_141] : memref<576x128xf32, #tpu.memory_space<vmem>>, vector<576x128xf32>
    %cst_142 = arith.constant dense<0.000000e+00> : vector<10x128xf32>
    %196 = tpu.matmul %194, %195, %cst_142 {dimension_numbers = #tpu.dot_dimension_numbers<[1], [0], [0], [1], [0, 0, 1, 1], [], []>} : vector<10x576xf32>, vector<576x128xf32>, vector<10x128xf32> -> vector<10x128xf32>
    %c0_143 = arith.constant 0 : index
    %c0_144 = arith.constant 0 : index
    %197 = vector.load %arg23[%c0_143, %c0_144] : memref<10x128xf32, #tpu.memory_space<vmem>>, vector<10x128xf32>
    tpu.vector_store %arg23[%c0_143, %c0_144], %196 {strides = array<i32>} : memref<10x128xf32, #tpu.memory_space<vmem>>, vector<10x128xf32>,
    %c0_145 = arith.constant 0 : index
    %c0_146 = arith.constant 0 : index
    %198 = vector.load %arg23[%c0_145, %c0_146] : memref<10x128xf32, #tpu.memory_space<vmem>>, vector<1x128xf32>
    %c0_147 = arith.constant 0 : index
    %c0_148 = arith.constant 0 : index
    %199 = vector.load %arg24[%c0_147, %c0_148] : memref<2x128xf32, #tpu.memory_space<vmem>>, vector<1x128xf32>
    tpu.vector_store %arg24[%c0_147, %c0_148], %198 {strides = array<i32>} : memref<2x128xf32, #tpu.memory_space<vmem>>, vector<1x128xf32>,
    %c9_149 = arith.constant 9 : index
    %c0_150 = arith.constant 0 : index
    %200 = vector.load %arg23[%c9_149, %c0_150] : memref<10x128xf32, #tpu.memory_space<vmem>>, vector<1x128xf32>
    %c1 = arith.constant 1 : index
    %c0_151 = arith.constant 0 : index
    %201 = vector.load %arg24[%c1, %c0_151] : memref<2x128xf32, #tpu.memory_space<vmem>>, vector<1x128xf32>
    tpu.vector_store %arg24[%c1, %c0_151], %200 {strides = array<i32>} : memref<2x128xf32, #tpu.memory_space<vmem>>, vector<1x128xf32>,
    %c0_152 = arith.constant 0 : index
    %c0_153 = arith.constant 0 : index
    %202 = vector.load %arg24[%c0_152, %c0_153] : memref<2x128xf32, #tpu.memory_space<vmem>>, vector<2x128xf32>
    %c0_154 = arith.constant 0 : index
    %c0_155 = arith.constant 0 : index
    %203 = vector.load %arg11[%c0_154, %c0_155] : memref<1x128xf32, #tpu.memory_space<vmem>>, vector<1x128xf32>
    %c0_156 = arith.constant 0 : index
    %c0_157 = arith.constant 0 : index
    %204 = vector.load %arg12[%c0_156, %c0_157] : memref<1x128xf32, #tpu.memory_space<vmem>>, vector<1x128xf32>
    %205 = vector.extract_strided_slice %202 {offsets = [0, 0], sizes = [1, 128], strides = [1, 1]} : vector<2x128xf32> to vector<1x128xf32>
    %206 = vector.broadcast %205 : vector<1x128xf32> to vector<2x128xf32>
    %207 = arith.subf %202, %206 : vector<2x128xf32>
    %cst_158 = arith.constant dense<0.000000e+00> : vector<128xf32>
    %208 = vector.multi_reduction <add>, %207, %cst_158 [0] : vector<2x128xf32> to vector<128xf32>
    %209 = vector.shape_cast %208 : vector<128xf32> to vector<1x128xf32>
    %210 = arith.mulf %207, %207 : vector<2x128xf32>
    %cst_159 = arith.constant dense<0.000000e+00> : vector<128xf32>
    %211 = vector.multi_reduction <add>, %210, %cst_159 [0] : vector<2x128xf32> to vector<128xf32>
    %212 = vector.shape_cast %211 : vector<128xf32> to vector<1x128xf32>
    %cst_160 = arith.constant 5.000000e-01 : f32
    %213 = vector.broadcast %cst_160 : f32 to vector<1x128xf32>
    %214 = arith.mulf %209, %213 : vector<1x128xf32>
    %cst_161 = arith.constant 5.000000e-01 : f32
    %215 = vector.broadcast %cst_161 : f32 to vector<1x128xf32>
    %216 = arith.mulf %212, %215 : vector<1x128xf32>
    %217 = arith.mulf %214, %214 : vector<1x128xf32>
    %218 = arith.subf %216, %217 : vector<1x128xf32>
    %219 = vector.broadcast %214 : vector<1x128xf32> to vector<2x128xf32>
    %220 = arith.subf %207, %219 : vector<2x128xf32>
    %cst_162 = arith.constant 9.99999974E-6 : f32
    %221 = vector.broadcast %cst_162 : f32 to vector<1x128xf32>
    %222 = arith.addf %218, %221 : vector<1x128xf32>
    %223 = math.rsqrt %222 : vector<1x128xf32>
    %224 = vector.broadcast %223 : vector<1x128xf32> to vector<2x128xf32>
    %225 = arith.mulf %220, %224 : vector<2x128xf32>
    %226 = vector.broadcast %203 : vector<1x128xf32> to vector<2x128xf32>
    %227 = arith.mulf %225, %226 : vector<2x128xf32>
    %228 = vector.broadcast %204 : vector<1x128xf32> to vector<2x128xf32>
    %229 = arith.addf %227, %228 : vector<2x128xf32>
    %cst_163 = arith.constant 0.000000e+00 : f32
    %230 = vector.broadcast %cst_163 : f32 to vector<2x128xf32>
    %231 = arith.maximumf %229, %230 : vector<2x128xf32>
    %c0_164 = arith.constant 0 : index
    %c0_165 = arith.constant 0 : index
    %232 = vector.load %arg13[%c0_164, %c0_165] : memref<128x10xf32, #tpu.memory_space<vmem>>, vector<128x10xf32>
    %cst_166 = arith.constant dense<0.000000e+00> : vector<2x10xf32>
    %233 = tpu.matmul %231, %232, %cst_166 {dimension_numbers = #tpu.dot_dimension_numbers<[1], [0], [0], [1], [0, 0, 1, 1], [], []>} : vector<2x128xf32>, vector<128x10xf32>, vector<2x10xf32> -> vector<2x10xf32>
    %c0_167 = arith.constant 0 : index
    %c0_168 = arith.constant 0 : index
    %234 = vector.load %arg14[%c0_167, %c0_168] : memref<1x10xf32, #tpu.memory_space<vmem>>, vector<1x10xf32>
    %235 = vector.broadcast %234 : vector<1x10xf32> to vector<2x10xf32>
    %236 = arith.addf %233, %235 : vector<2x10xf32>
    %c0_169 = arith.constant 0 : index
    %c0_170 = arith.constant 0 : index
    %237 = vector.load %arg15[%c0_169, %c0_170] : memref<2x10xf32, #tpu.memory_space<vmem>>, vector<2x10xf32>
    tpu.vector_store %arg15[%c0_169, %c0_170], %236 {strides = array<i32>} : memref<2x10xf32, #tpu.memory_space<vmem>>, vector<2x10xf32>,
    return
  }
}

</mosaic_0001>

<bundles_post_ra>
// kernel: tpu_custom_call.1
= control target key start
LH: loop header
LB: loop body
LE: loop exit
PB: predicated region body
PF: predicated region fallthrough
CT: control target
= control target key end

     0   :  { %vm284_vm0 = vcmask 1042432   ;;  %v11271_v3 = vmov 0.0|0.0   ;;  %vm6513_vm1 = vmmov 0   ;;  %v11269_v6 = vmov 0.0   ;;  %s11253_s0 = inlined_call_operand.vmem [shape: f32[450,27], index: 0, kind: input, shape index: {}]   ;;  %s11254_s1 = inlined_call_operand.vmem [shape: f32[27,16], index: 1, kind: input, shape index: {}]   ;;  %s11255_s2 = inlined_call_operand.vmem [shape: f32[1,16], index: 2, kind: input, shape index: {}]   ;;  %s11256_s3 = inlined_call_operand.vmem [shape: f32[1,16], index: 3, kind: input, shape index: {}]   ;;  %s11257_s4 = inlined_call_operand.vmem [shape: f32[144,32], index: 4, kind: input, shape index: {}]   ;;  %s11258_s5 = inlined_call_operand.vmem [shape: f32[1,32], index: 5, kind: input, shape index: {}]   ;;  %s11259_s6 = inlined_call_operand.vmem [shape: f32[1,32], index: 6, kind: input, shape index: {}]   ;;  %s11260_s7 = inlined_call_operand.vmem [shape: f32[288,64], index: 7, kind: input, shape index: {}]   ;;  %s11261_s8 = inlined_call_operand.vmem [shape: f32[1,64], index: 8, kind: input, shape index: {}]   ;;  %s11262_s9 = inlined_call_operand.vmem [shape: f32[1,64], index: 9, kind: input, shape index: {}]   ;;  %s11263_s10 = inlined_call_operand.vmem [shape: f32[576,128], index: 10, kind: input, shape index: {}]   ;;  %s11264_s11 = inlined_call_operand.vmem [shape: f32[1,128], index: 11, kind: input, shape index: {}]   ;;  %s11265_s12 = inlined_call_operand.vmem [shape: f32[1,128], index: 12, kind: input, shape index: {}]   ;;  %s11266_s13 = inlined_call_operand.vmem [shape: f32[128,10], index: 13, kind: input, shape index: {}]   ;;  %s11267_s14 = inlined_call_operand.vmem [shape: f32[1,10], index: 14, kind: input, shape index: {}]   ;;  %s11268_s15 = inlined_call_operand.hbm [shape: f32[2,10], index: 15, kind: output, shape index: {}]  }
   0x1   :  { %v108_v0 = vld [vmem:[%s11254_s1] sm:$0xff]  ;;  %v109_v1 = vld [vmem:[%s11254_s1 + $0x8] sm:$0xff]  ;;  %v110_v2 = vld [vmem:[%s11254_s1 + $0x10] sm:$0xff]  ;;  %6291 = vmatprep.subr.bf16.mxu0 %v11271_v3  ;;  %6298 = vmatprep.subr.bf16.mxu1 %v11271_v3  ;;  %vm6515_vm2 = vmmov 1   ;;  %vm112_vm4 = vcmask 220160  }
   0x2   :  { %v6292_v4 = vpack.c.bf16 %v109_v1, %v108_v0  ;;  %v111_v5 = vld [vmem:[%s11254_s1 + $0x18] sm:$0x7]  ;;  %6025 = vmatprep.mubr.msk.f32.mxu0 %vm6513_vm1, %v11269_v6  ;;  %vm6296_vm3 = vmpackc.low %vm284_vm0, %vm6515_vm2  ;;  %v51_v8 = vld [vmem:[%s11253_s0] sm:$0xff] }
   0x3   :  { %v6295_v7 = vpack.c.bf16 %v111_v5, %v110_v2  ;;  %v52_v9 = vld [vmem:[%s11253_s0 + $0x8] sm:$0xff] }
   0x4   :  { %6293 = vmatpush3.bf16.msra.mxu0 %v6292_v4 }
   0x5   :  { %6294 = vmatprep.subr.bf16.mxu0 %v11271_v3 }
   0x8   :  { %6297 = vmatpush3.bf16.msk.msra.mxu0 %vm6296_vm3, %v6295_v7 }
   0xb   :  { %6026 = vmatmul.mubr.msk.f32.vlgmr.msra.gmra.mrb[0].mxu0 %vm112_vm4, %v51_v8 }
   0xc   :  { %6028 = vmatprep.mubr.msk.f32.mxu0 %vm6513_vm1, %v11269_v6 }
   0xd   :  { %20 = vsyncpa [#allocation12], 0  ;;  %v53_v10 = vld [vmem:[%s11253_s0 + $0x10] sm:$0xff]  ;;  %v54_v11 = vld [vmem:[%s11253_s0 + $0x18] sm:$0xff]  ;;  %vm701_vm5 = vcmask 130048   ;;  %vm813_vm6 = vcmask 123904  }
   0xe   :  { %v55_v12 = vld [vmem:[%s11253_s0 + $0x20] sm:$0xff]  ;;  %v56_v13 = vld [vmem:[%s11253_s0 + $0x28] sm:$0xff]  ;;  %v57_v14 = vld [vmem:[%s11253_s0 + $0x30] sm:$0xff]  ;;  %s6516_s29 = smov 64   ;;  %vm2049_vm7 = vcmask 1040384   ;;  %vm1407_vm8 = vcmask 1046528  }
   0xf   :  { %6029 = vmatmul.mubr.msk.f32.gmra.mrb[2].mxu0 %vm112_vm4, %v52_v9  ;;  %v58_v15 = vld [vmem:[%s11253_s0 + $0x38] sm:$0xff]  ;;  %v59_v16 = vld [vmem:[%s11253_s0 + $0x40] sm:$0xff]  ;;  %v60_v17 = vld [vmem:[%s11253_s0 + $0x48] sm:$0xff]  ;;  %vm1727_vm9 = vcmask 1045504   ;;  %vm2804_vm10 = vcmask 1041408   ;;  %s6517_s22 = smov 16  }
  0x10   :  { %6031 = vmatprep.mubr.msk.f32.mxu0 %vm6513_vm1, %v11269_v6  ;;  %v61_v18 = vld [vmem:[%s11253_s0 + $0x50] sm:$0xff]  ;;  %v62_v19 = vld [vmem:[%s11253_s0 + $0x58] sm:$0xff]  ;;  %v63_v20 = vld [vmem:[%s11253_s0 + $0x60] sm:$0xff]  ;;  %s6518_s27 = smov 32   ;;  %s6519_s30 = smov 48   ;;  %vm1672_vm11 = vcmask 261248  }
  0x11   :  { %v64_v21 = vld [vmem:[%s11253_s0 + $0x68] sm:$0xff]  ;;  %v65_v22 = vld [vmem:[%s11253_s0 + $0x70] sm:$0xff]  ;;  %v66_v23 = vld [vmem:[%s11253_s0 + $0x78] sm:$0xff]  ;;  %s6520_s20 = smov 80   ;;  %s6521_s21 = smov 96   ;;  %vm1992_vm12 = vcmask 392448  }
  0x12   :  { %v67_v24 = vld [vmem:[%s11253_s0 + $0x80] sm:$0xff]  ;;  %v68_v25 = vld [vmem:[%s11253_s0 + $0x88] sm:$0xff]  ;;  %v69_v26 = vld [vmem:[%s11253_s0 + $0x90] sm:$0xff]  ;;  %s6522_s23 = smov 112   ;;  %vm2316_vm13 = vcmask 523648   ;;  %vm2530_vm14 = vcmask 654848  }
  0x13   :  { %6032 = vmatmul.mubr.msk.f32.gmra.mrb[4].mxu0 %vm112_vm4, %v53_v10  ;;  %v70_v27 = vld [vmem:[%s11253_s0 + $0x98] sm:$0xff]  ;;  %v71_v28 = vld [vmem:[%s11253_s0 + $0xa0] sm:$0xff]  ;;  %v72_v29 = vld [vmem:[%s11253_s0 + $0xa8] sm:$0xff]  ;;  %vm2748_vm15 = vcmask 786048   ;;  %vm3069_vm2 = vcmask 917248   ;;  %vm3288_vm3 = vcmask 1048448  }
  0x14   :  { %6034 = vmatprep.mubr.msk.f32.mxu0 %vm6513_vm1, %v11269_v6  ;;  %v73_v30 = vld [vmem:[%s11253_s0 + $0xb0] sm:$0xff]  ;;  %v74_v31 = vld [vmem:[%s11253_s0 + $0xb8] sm:$0xff]  ;;  %v75_v32 = vld [vmem:[%s11253_s0 + $0xc0] sm:$0xff]  ;;  %s6523_s1 = smov [#allocation11]  }
  0x15   :  { %v76_v33 = vld [vmem:[%s11253_s0 + $0xc8] sm:$0xff]  ;;  %v77_v34 = vld [vmem:[%s11253_s0 + $0xd0] sm:$0xff]  ;;  %v78_v35 = vld [vmem:[%s11253_s0 + $0xd8] sm:$0xff] }
  0x16   :  { %v79_v36 = vld [vmem:[%s11253_s0 + $0xe0] sm:$0xff]  ;;  %v80_v37 = vld [vmem:[%s11253_s0 + $0xe8] sm:$0xff]  ;;  %v81_v38 = vld [vmem:[%s11253_s0 + $0xf0] sm:$0xff] }
  0x17   :  { %6035 = vmatmul.mubr.msk.f32.gmra.mrb[6].mxu0 %vm112_vm4, %v54_v11  ;;  %v82_v39 = vld [vmem:[%s11253_s0 + $0xf8] sm:$0xff]  ;;  %v83_v40 = vld [vmem:[%s11253_s0 + $0x100] sm:$0xff]  ;;  %v84_v41 = vld [vmem:[%s11253_s0 + $0x108] sm:$0xff] }
  0x18   :  { %6037 = vmatprep.mubr.msk.f32.mxu0 %vm6513_vm1, %v11269_v6  ;;  %v85_v42 = vld [vmem:[%s11253_s0 + $0x110] sm:$0xff]  ;;  %v86_v43 = vld [vmem:[%s11253_s0 + $0x118] sm:$0xff]  ;;  %v87_v44 = vld [vmem:[%s11253_s0 + $0x120] sm:$0xff] }
  0x19   :  { %v88_v45 = vld [vmem:[%s11253_s0 + $0x128] sm:$0xff]  ;;  %v89_v46 = vld [vmem:[%s11253_s0 + $0x130] sm:$0xff]  ;;  %v90_v47 = vld [vmem:[%s11253_s0 + $0x138] sm:$0xff] }
  0x1a   :  { %v91_v48 = vld [vmem:[%s11253_s0 + $0x140] sm:$0xff]  ;;  %v92_v49 = vld [vmem:[%s11253_s0 + $0x148] sm:$0xff]  ;;  %v93_v50 = vld [vmem:[%s11253_s0 + $0x150] sm:$0xff] }
  0x1b   :  { %6038 = vmatmul.mubr.msk.f32.gmra.mrb[8].mxu0 %vm112_vm4, %v55_v12  ;;  %v94_v51 = vld [vmem:[%s11253_s0 + $0x158] sm:$0xff]  ;;  %v95_v52 = vld [vmem:[%s11253_s0 + $0x160] sm:$0xff]  ;;  %v96_v53 = vld [vmem:[%s11253_s0 + $0x168] sm:$0xff] }
  0x1c   :  { %6040 = vmatprep.mubr.msk.f32.mxu0 %vm6513_vm1, %v11269_v6  ;;  %v97_v54 = vld [vmem:[%s11253_s0 + $0x170] sm:$0xff]  ;;  %v98_v55 = vld [vmem:[%s11253_s0 + $0x178] sm:$0xff]  ;;  %v99_v56 = vld [vmem:[%s11253_s0 + $0x180] sm:$0xff] }
  0x1d   :  { %v100_v57 = vld [vmem:[%s11253_s0 + $0x188] sm:$0xff]  ;;  %v101_v58 = vld [vmem:[%s11253_s0 + $0x190] sm:$0xff]  ;;  %v102_v59 = vld [vmem:[%s11253_s0 + $0x198] sm:$0xff] }
  0x1e   :  { %v103_v60 = vld [vmem:[%s11253_s0 + $0x1a0] sm:$0xff]  ;;  %v104_v61 = vld [vmem:[%s11253_s0 + $0x1a8] sm:$0xff]  ;;  %v105_v0 = vld [vmem:[%s11253_s0 + $0x1b0] sm:$0xff] }
  0x1f   :  { %6041 = vmatmul.mubr.msk.f32.gmra.mrb[10].mxu0 %vm112_vm4, %v56_v13  ;;  %v106_v4 = vld [vmem:[%s11253_s0 + $0x1b8] sm:$0xff]  ;;  %v107_v8 = vld [vmem:[%s11253_s0 + $0x1c0] sm:$0x3] }
  0x20   :  { %6043 = vmatprep.mubr.msk.f32.mxu0 %vm6513_vm1, %v11269_v6 }
  0x23   :  { %6044 = vmatmul.mubr.msk.f32.gmra.mrb[12].mxu0 %vm112_vm4, %v57_v14 }
  0x24   :  { %6046 = vmatprep.mubr.msk.f32.mxu0 %vm6513_vm1, %v11269_v6 }
  0x27   :  { %6047 = vmatmul.mubr.msk.f32.gmra.mrb[14].mxu0 %vm112_vm4, %v58_v15 }
  0x28   :  { %6049 = vmatprep.mubr.msk.f32.mxu0 %vm6513_vm1, %v11269_v6 }
  0x2b   :  { %6050 = vmatmul.mubr.msk.f32.gmra.mrb[16].mxu0 %vm112_vm4, %v59_v16 }
  0x2c   :  { %6052 = vmatprep.mubr.msk.f32.mxu0 %vm6513_vm1, %v11269_v6 }
  0x2f   :  { %6053 = vmatmul.mubr.msk.f32.gmra.mrb[18].mxu0 %vm112_vm4, %v60_v17 }
  0x30   :  { %6055 = vmatprep.mubr.msk.f32.mxu0 %vm6513_vm1, %v11269_v6 }
  0x33   :  { %6056 = vmatmul.mubr.msk.f32.gmra.mrb[20].mxu0 %vm112_vm4, %v61_v18 }
  0x34   :  { %6058 = vmatprep.mubr.msk.f32.mxu0 %vm6513_vm1, %v11269_v6 }
  0x37   :  { %6059 = vmatmul.mubr.msk.f32.gmra.mrb[22].mxu0 %vm112_vm4, %v62_v19 }
  0x38   :  { %6061 = vmatprep.mubr.msk.f32.mxu0 %vm6513_vm1, %v11269_v6 }
  0x3b   :  { %6062 = vmatmul.mubr.msk.f32.gmra.mrb[24].mxu0 %vm112_vm4, %v63_v20 }
  0x3c   :  { %6064 = vmatprep.mubr.msk.f32.mxu0 %vm6513_vm1, %v11269_v6 }
  0x3f   :  { %6065 = vmatmul.mubr.msk.f32.gmra.mrb[26].mxu0 %vm112_vm4, %v64_v21 }
  0x40   :  { %6067 = vmatprep.mubr.msk.f32.mxu0 %vm6513_vm1, %v11269_v6 }
  0x43   :  { %6068 = vmatmul.mubr.msk.f32.gmra.mrb[28].mxu0 %vm112_vm4, %v65_v22 }
  0x44   :  { %6070 = vmatprep.mubr.msk.f32.mxu0 %vm6513_vm1, %v11269_v6 }
  0x47   :  { %6071 = vmatmul.mubr.msk.f32.gmra.mrb[30].mxu0 %vm112_vm4, %v66_v23 }
  0x48   :  { %6073 = vmatprep.mubr.msk.f32.mxu0 %vm6513_vm1, %v11269_v6 }
  0x4b   :  { %6074 = vmatmul.mubr.msk.f32.gmra.mrb[32].mxu0 %vm112_vm4, %v67_v24 }
  0x4c   :  { %6076 = vmatprep.mubr.msk.f32.mxu0 %vm6513_vm1, %v11269_v6 }
  0x4f   :  { %6077 = vmatmul.mubr.msk.f32.gmra.mrb[34].mxu0 %vm112_vm4, %v68_v25 }
  0x50   :  { %6079 = vmatprep.mubr.msk.f32.mxu0 %vm6513_vm1, %v11269_v6 }
  0x53   :  { %6080 = vmatmul.mubr.msk.f32.gmra.mrb[36].mxu0 %vm112_vm4, %v69_v26 }
  0x54   :  { %6082 = vmatprep.mubr.msk.f32.mxu0 %vm6513_vm1, %v11269_v6 }
  0x57   :  { %6083 = vmatmul.mubr.msk.f32.gmra.mrb[38].mxu0 %vm112_vm4, %v70_v27 }
  0x58   :  { %6085 = vmatprep.mubr.msk.f32.mxu0 %vm6513_vm1, %v11269_v6 }
  0x5b   :  { %6086 = vmatmul.mubr.msk.f32.gmra.mrb[40].mxu0 %vm112_vm4, %v71_v28 }
  0x5c   :  { %6088 = vmatprep.mubr.msk.f32.mxu0 %vm6513_vm1, %v11269_v6 }
  0x5f   :  { %6089 = vmatmul.mubr.msk.f32.gmra.mrb[42].mxu0 %vm112_vm4, %v72_v29 }
  0x60   :  { %6091 = vmatprep.mubr.msk.f32.mxu0 %vm6513_vm1, %v11269_v6 }
  0x63   :  { %6092 = vmatmul.mubr.msk.f32.gmra.mrb[44].mxu0 %vm112_vm4, %v73_v30 }
  0x64   :  { %6094 = vmatprep.mubr.msk.f32.mxu0 %vm6513_vm1, %v11269_v6 }
  0x67   :  { %6095 = vmatmul.mubr.msk.f32.gmra.mrb[46].mxu0 %vm112_vm4, %v74_v31 }
  0x68   :  { %6097 = vmatprep.mubr.msk.f32.mxu0 %vm6513_vm1, %v11269_v6 }
  0x6b   :  { %6098 = vmatmul.mubr.msk.f32.gmra.mrb[48].mxu0 %vm112_vm4, %v75_v32 }
  0x6c   :  { %6100 = vmatprep.mubr.msk.f32.mxu0 %vm6513_vm1, %v11269_v6 }
  0x6f   :  { %6101 = vmatmul.mubr.msk.f32.gmra.mrb[50].mxu0 %vm112_vm4, %v76_v33 }
  0x70   :  { %6103 = vmatprep.mubr.msk.f32.mxu0 %vm6513_vm1, %v11269_v6 }
  0x73   :  { %6104 = vmatmul.mubr.msk.f32.gmra.mrb[52].mxu0 %vm112_vm4, %v77_v34 }
  0x74   :  { %6106 = vmatprep.mubr.msk.f32.mxu0 %vm6513_vm1, %v11269_v6 }
  0x77   :  { %6107 = vmatmul.mubr.msk.f32.gmra.mrb[54].mxu0 %vm112_vm4, %v78_v35 }
  0x78   :  { %6109 = vmatprep.mubr.msk.f32.mxu0 %vm6513_vm1, %v11269_v6 }
  0x7b   :  { %6110 = vmatmul.mubr.msk.f32.gmra.mrb[56].mxu0 %vm112_vm4, %v79_v36 }
  0x7c   :  { %6112 = vmatprep.mubr.msk.f32.mxu0 %vm6513_vm1, %v11269_v6 }
  0x7f   :  { %6113 = vmatmul.mubr.msk.f32.gmra.mrb[58].mxu0 %vm112_vm4, %v80_v37 }
  0x80   :  { %6115 = vmatprep.mubr.msk.f32.mxu0 %vm6513_vm1, %v11269_v6 }
  0x83   :  { %6116 = vmatmul.mubr.msk.f32.gmra.mrb[60].mxu0 %vm112_vm4, %v81_v38 }
  0x84   :  { %6118 = vmatprep.mubr.msk.f32.mxu0 %vm6513_vm1, %v11269_v6 }
  0x87   :  { %6119 = vmatmul.mubr.msk.f32.gmra.mrb[62].mxu0 %vm112_vm4, %v82_v39 }
  0x88   :  { %6121 = vmatprep.mubr.msk.f32.mxu0 %vm6513_vm1, %v11269_v6 }
  0x8b   :  { %6122 = vmatmul.mubr.msk.f32.gmra.mrb[64].mxu0 %vm112_vm4, %v83_v40 }
  0x8c   :  { %6124 = vmatprep.mubr.msk.f32.mxu0 %vm6513_vm1, %v11269_v6 }
  0x8f   :  { %6125 = vmatmul.mubr.msk.f32.gmra.mrb[66].mxu0 %vm112_vm4, %v84_v41 }
  0x90   :  { %6127 = vmatprep.mubr.msk.f32.mxu0 %vm6513_vm1, %v11269_v6 }
  0x93   :  { %6128 = vmatmul.mubr.msk.f32.gmra.mrb[68].mxu0 %vm112_vm4, %v85_v42 }
  0x94   :  { %6130 = vmatprep.mubr.msk.f32.mxu0 %vm6513_vm1, %v11269_v6 }
  0x97   :  { %6131 = vmatmul.mubr.msk.f32.gmra.mrb[70].mxu0 %vm112_vm4, %v86_v43  ;;  %v640_v43 = vlaneseq }
  0x98   :  { %6133 = vmatprep.mubr.msk.f32.mxu0 %vm6513_vm1, %v11269_v6 }
  0x9b   :  { %6134 = vmatmul.mubr.msk.f32.gmra.mrb[72].mxu0 %vm112_vm4, %v87_v44 }
  0x9c   :  { %6136 = vmatprep.mubr.msk.f32.mxu0 %vm6513_vm1, %v11269_v6 }
  0x9f   :  { %6137 = vmatmul.mubr.msk.f32.gmra.mrb[74].mxu0 %vm112_vm4, %v88_v45 }
  0xa0   :  { %6139 = vmatprep.mubr.msk.f32.mxu0 %vm6513_vm1, %v11269_v6 }
  0xa3   :  { %6140 = vmatmul.mubr.msk.f32.gmra.mrb[76].mxu0 %vm112_vm4, %v89_v46  ;;  %v641_v46 = vshrl.u32 %v640_v43, 7 }
  0xa4   :  { %6142 = vmatprep.mubr.msk.f32.mxu0 %vm6513_vm1, %v11269_v6 }
  0xa7   :  { %6143 = vmatmul.mubr.msk.f32.gmra.mrb[78].mxu0 %vm112_vm4, %v90_v47 }
  0xa8   :  { %6145 = vmatprep.mubr.msk.f32.mxu0 %vm6513_vm1, %v11269_v6 }
  0xab   :  { %6146 = vmatmul.mubr.msk.f32.gmra.mrb[80].mxu0 %vm112_vm4, %v91_v48 }
  0xac   :  { %6148 = vmatprep.mubr.msk.f32.mxu0 %vm6513_vm1, %v11269_v6 }
  0xaf   :  { %6149 = vmatmul.mubr.msk.f32.gmra.mrb[82].mxu0 %vm112_vm4, %v92_v49  ;;  %v6996_v49 = vsub.s32 0, %v641_v46 }
  0xb0   :  { %6151 = vmatprep.mubr.msk.f32.mxu0 %vm6513_vm1, %v11269_v6 }
  0xb1   :  { %11386 = vst [vmem:[#allocation14_spill] sm:$0xff] %v6996_v49 }
  0xb3   :  { %6152 = vmatmul.mubr.msk.f32.gmra.mrb[84].mxu0 %vm112_vm4, %v93_v50 }
  0xb4   :  { %6154 = vmatprep.mubr.msk.f32.mxu0 %vm6513_vm1, %v11269_v6 }
  0xb7   :  { %6155 = vmatmul.mubr.msk.f32.gmra.mrb[86].mxu0 %vm112_vm4, %v94_v51 }
  0xb8   :  { %6157 = vmatprep.mubr.msk.f32.mxu0 %vm6513_vm1, %v11269_v6 }
  0xbb   :  { %6158 = vmatmul.mubr.msk.f32.gmra.mrb[88].mxu0 %vm112_vm4, %v95_v52 }
  0xbc   :  { %6160 = vmatprep.mubr.msk.f32.mxu0 %vm6513_vm1, %v11269_v6 }
  0xbf   :  { %6161 = vmatmul.mubr.msk.f32.gmra.mrb[90].mxu0 %vm112_vm4, %v96_v53 }
  0xc0   :  { %6163 = vmatprep.mubr.msk.f32.mxu0 %vm6513_vm1, %v11269_v6 }
  0xc3   :  { %6164 = vmatmul.mubr.msk.f32.gmra.mrb[92].mxu0 %vm112_vm4, %v97_v54 }
  0xc4   :  { %6166 = vmatprep.mubr.msk.f32.mxu0 %vm6513_vm1, %v11269_v6 }
  0xc7   :  { %6167 = vmatmul.mubr.msk.f32.gmra.mrb[94].mxu0 %vm112_vm4, %v98_v55 }
  0xc8   :  { %6169 = vmatprep.mubr.msk.f32.mxu0 %vm6513_vm1, %v11269_v6 }
  0xcb   :  { %6170 = vmatmul.mubr.msk.f32.gmra.mrb[96].mxu0 %vm112_vm4, %v99_v56 }
  0xcc   :  { %6172 = vmatprep.mubr.msk.f32.mxu0 %vm6513_vm1, %v11269_v6 }
  0xcf   :  { %6173 = vmatmul.mubr.msk.f32.gmra.mrb[98].mxu0 %vm112_vm4, %v100_v57 }
  0xd0   :  { %6175 = vmatprep.mubr.msk.f32.mxu0 %vm6513_vm1, %v11269_v6 }
  0xd3   :  { %6176 = vmatmul.mubr.msk.f32.gmra.mrb[100].mxu0 %vm112_vm4, %v101_v58 }
  0xd4   :  { %6178 = vmatprep.mubr.msk.f32.mxu0 %vm6513_vm1, %v11269_v6 }
  0xd7   :  { %6179 = vmatmul.mubr.msk.f32.gmra.mrb[102].mxu0 %vm112_vm4, %v102_v59 }
  0xd8   :  { %6181 = vmatprep.mubr.msk.f32.mxu0 %vm6513_vm1, %v11269_v6 }
  0xdb   :  { %6182 = vmatmul.mubr.msk.f32.gmra.mrb[104].mxu0 %vm112_vm4, %v103_v60 }
  0xdc   :  { %6184 = vmatprep.mubr.msk.f32.mxu0 %vm6513_vm1, %v11269_v6 }
  0xde   :  { %v6943_v62 = vpop.f32.mrb[0].mxu0 }
  0xdf   :  { %v6027_v63 = vpop.f32.mrb[1].mxu0  ;;  %6185 = vmatmul.mubr.msk.f32.gmra.mrb[106].mxu0 %vm112_vm4, %v104_v61  ;;  %v7002_v52 = vrot.slane %v6943_v62, %v6996_v49 }
  0xe0   :  { %6187 = vmatprep.mubr.msk.f32.mxu0 %vm6513_vm1, %v11269_v6 }
  0xe1   :  { %v7011_v56 = vsub.f32 %v6943_v62, %v7002_v52 }
  0xe2   :  { %v359_v1 = vpop.f32.mrb[2].mxu0 }
  0xe3   :  { %v6030_v2 = vpop.f32.mrb[3].mxu0  ;;  %6188 = vmatmul.mubr.msk.f32.gmra.mrb[108].mxu0 %vm112_vm4, %v105_v0  ;;  %v7007_v55 = vsub.f32 %v359_v1, %v7002_v52  ;;  %v822_v63 = vmul.f32 %v7011_v56, %v7011_v56 }
  0xe4   :  { %6190 = vmatprep.mubr.msk.f32.mxu0 %vm6513_vm1, %v11269_v6 }
  0xe5   :  { %v823_v60 = vmul.f32 %v7007_v55, %v7007_v55  ;;  %v703_v62 = vsel %vm701_vm5, %v7007_v55, 0.0 }
  0xe6   :  { %v364_v5 = vpop.f32.mrb[4].mxu0 }
  0xe7   :  { %v6033_v7 = vpop.f32.mrb[5].mxu0  ;;  %6191 = vmatmul.mubr.msk.f32.gmra.mrb[110].mxu0 %vm112_vm4, %v106_v4  ;;  %v7016_v58 = vsub.f32 %v364_v5, %v7002_v52  ;;  %v702_v5 = vsel %vm701_vm5, %v7011_v56, 0.0 }
  0xe8   :  { %6193 = vmatprep.mubr.msk.f32.mxu0 %vm6513_vm1, %v11269_v6  ;;  %v880_v7 = vsel %vm701_vm5, %v823_v60, 0.0 }
  0xe9   :  { %v824_v1 = vmul.f32 %v7016_v58, %v7016_v58 }
  0xea   :  { %v369_v9 = vpop.f32.mrb[6].mxu0 }
  0xeb   :  { %v6036_v10 = vpop.f32.mrb[7].mxu0  ;;  %6194 = vmatmul.mubr.msk.f32.gmra.mrb[112].mxu0 %vm112_vm4, %v107_v8  ;;  %v7021_v61 = vsub.f32 %v369_v9, %v7002_v52  ;;  %v705_v8 = vsel %vm701_vm5, %v7016_v58, 0.0  ;;  %vm4009_vm4 = vcmask 261120  }
  0xed   :  { %v825_v9 = vmul.f32 %v7021_v61, %v7021_v61 }
  0xee   :  { %v374_v11 = vpop.f32.mrb[8].mxu0 }
  0xef   :  { %v6039_v12 = vpop.f32.mrb[9].mxu0  ;;  %v7032_v2 = vsub.f32 %v374_v11, %v7002_v52 }
  0xf0   :  { %v879_v12 = vsel %vm701_vm5, %v822_v63, 0.0 }
  0xf2   :  { %v379_v13 = vpop.f32.mrb[10].mxu0 }
  0xf3   :  { %v6042_v14 = vpop.f32.mrb[11].mxu0  ;;  %v7042_v10 = vsub.f32 %v379_v13, %v7002_v52  ;;  %v881_v13 = vadd.f32 %v880_v7, %v879_v12 }
  0xf4   :  { %v704_v14 = vadd.f32 %v703_v62, %v702_v5 }
  0xf6   :  { %v6964_v15 = vpop.f32.mrb[12].mxu0 }
  0xf7   :  { %v6045_v16 = vpop.f32.mrb[13].mxu0 }
  0xf8   :  { %v882_v16 = vsel %vm701_vm5, %v824_v1, 0.0 }
  0xfa   :  { %v6966_v17 = vpop.f32.mrb[14].mxu0 }
  0xfb   :  { %v6048_v18 = vpop.f32.mrb[15].mxu0 }
  0xfc   :  { %v707_v18 = vsel %vm701_vm5, %v7021_v61, 0.0 }
  0xfe   :  { %v6968_v19 = vpop.f32.mrb[16].mxu0 }
  0xff   :  { %v6051_v20 = vpop.f32.mrb[17].mxu0 }
 0x100   :  { %v826_v20 = vmul.f32 %v7032_v2, %v7032_v2 }
 0x102   :  { %v6970_v21 = vpop.f32.mrb[18].mxu0 }
 0x103   :  { %v6054_v22 = vpop.f32.mrb[19].mxu0  ;;  %v7083_v60 = vsub.f32 %v6970_v21, %v7002_v52 }
 0x104   :  { %v7054_v22 = vsub.f32 %v6964_v15, %v7002_v52  ;;  %v886_v15 = vsel %vm701_vm5, %v826_v20, 0.0 }
 0x106   :  { %v6972_v23 = vpop.f32.mrb[20].mxu0  ;;  %v828_v43 = vmul.f32 %v7054_v22, %v7054_v22 }
 0x107   :  { %v6057_v24 = vpop.f32.mrb[21].mxu0  ;;  %v7094_v7 = vsub.f32 %v6972_v23, %v7002_v52 }
 0x10a   :  { %v6974_v25 = vpop.f32.mrb[22].mxu0 }
 0x10b   :  { %v6060_v26 = vpop.f32.mrb[23].mxu0 }
 0x10c   :  { %v706_v26 = vadd.f32 %v705_v8, %v704_v14 }
 0x10e   :  { %v6976_v27 = vpop.f32.mrb[24].mxu0 }
 0x10f   :  { %v6063_v28 = vpop.f32.mrb[25].mxu0 }
 0x110   :  { %v884_v28 = vsel %vm701_vm5, %v825_v9, 0.0 }
 0x112   :  { %v6978_v29 = vpop.f32.mrb[26].mxu0 }
 0x113   :  { %v6066_v30 = vpop.f32.mrb[27].mxu0 }
 0x114   :  { %v709_v30 = vsel %vm701_vm5, %v7032_v2, 0.0 }
 0x116   :  { %v6980_v31 = vpop.f32.mrb[28].mxu0 }
 0x117   :  { %v6069_v32 = vpop.f32.mrb[29].mxu0 }
 0x118   :  { %v827_v32 = vmul.f32 %v7042_v10, %v7042_v10 }
 0x11a   :  { %v6982_v33 = vpop.f32.mrb[30].mxu0 }
 0x11b   :  { %v6072_v34 = vpop.f32.mrb[31].mxu0 }
 0x11c   :  { %v7063_v34 = vsub.f32 %v6966_v17, %v7002_v52 }
 0x11e   :  { %v6984_v35 = vpop.f32.mrb[32].mxu0 }
 0x11f   :  { %v6075_v36 = vpop.f32.mrb[33].mxu0 }
 0x120   :  { %v883_v36 = vadd.f32 %v882_v16, %v881_v13  ;;  %v831_v16 = vmul.f32 %v7083_v60, %v7083_v60 }
 0x122   :  { %v6986_v37 = vpop.f32.mrb[34].mxu0 }
 0x123   :  { %v6078_v38 = vpop.f32.mrb[35].mxu0 }
 0x124   :  { %v708_v38 = vadd.f32 %v707_v18, %v706_v26  ;;  %v7103_v18 = vsub.f32 %v6974_v25, %v7002_v52  ;;  %v719_v26 = vsel %vm701_vm5, %v7083_v60, 0.0 }
 0x126   :  { %v6988_v39 = vpop.f32.mrb[36].mxu0  ;;  %v710_v17 = vadd.f32 %v709_v30, %v708_v38  ;;  %v7114_v30 = vsub.f32 %v6976_v27, %v7002_v52  ;;  %v896_v38 = vsel %vm701_vm5, %v831_v16, 0.0 }
 0x127   :  { %v6081_v40 = vpop.f32.mrb[37].mxu0 }
 0x12a   :  { %v6990_v41 = vpop.f32.mrb[38].mxu0 }
 0x12b   :  { %v6084_v42 = vpop.f32.mrb[39].mxu0 }
 0x12c   :  { %v711_v42 = vsel %vm701_vm5, %v7042_v10, 0.0 }
 0x12d   :  { %v712_v62 = vadd.f32 %v711_v42, %v710_v17  ;;  %v833_v42 = vmul.f32 %v7103_v18, %v7103_v18 }
 0x12e   :  { %v6992_v44 = vpop.f32.mrb[40].mxu0 }
 0x12f   :  { %v6087_v45 = vpop.f32.mrb[41].mxu0 }
 0x130   :  { %v7074_v45 = vsub.f32 %v6968_v19, %v7002_v52  ;;  %v890_v19 = vsel %vm701_vm5, %v828_v43, 0.0  ;;  %v7123_v43 = vsub.f32 %v6978_v29, %v7002_v52 }
 0x132   :  { %v6994_v47 = vpop.f32.mrb[42].mxu0  ;;  %v830_v5 = vmul.f32 %v7074_v45, %v7074_v45  ;;  %v717_v14 = vsel %vm701_vm5, %v7074_v45, 0.0 }
 0x133   :  { %v6090_v48 = vpop.f32.mrb[43].mxu0 }
 0x134   :  { %v885_v48 = vadd.f32 %v884_v28, %v883_v36  ;;  %v894_v23 = vsel %vm701_vm5, %v830_v5, 0.0  ;;  %v832_v28 = vmul.f32 %v7094_v7, %v7094_v7  ;;  %v835_v5 = vmul.f32 %v7123_v43, %v7123_v43 }
 0x136   :  { %v6998_v50 = vpop.f32.mrb[44].mxu0  ;;  %v887_v63 = vadd.f32 %v886_v15, %v885_v48  ;;  %v721_v15 = vsel %vm701_vm5, %v7094_v7, 0.0  ;;  %v898_v27 = vsel %vm701_vm5, %v832_v28, 0.0 }
 0x137   :  { %v6093_v51 = vpop.f32.mrb[45].mxu0 }
 0x138   :  { %v888_v51 = vsel %vm701_vm5, %v827_v32, 0.0 }
 0x139   :  { %v889_v9 = vadd.f32 %v888_v51, %v887_v63  ;;  %v723_v51 = vsel %vm701_vm5, %v7103_v18, 0.0 }
 0x13a   :  { %v7004_v53 = vpop.f32.mrb[46].mxu0 }
 0x13b   :  { %v6096_v54 = vpop.f32.mrb[47].mxu0  ;;  %v891_v20 = vadd.f32 %v890_v19, %v889_v9  ;;  %v900_v19 = vsel %vm701_vm5, %v833_v42, 0.0 }
 0x13c   :  { %v713_v54 = vsel %vm701_vm5, %v7054_v22, 0.0 }
 0x13d   :  { %v714_v21 = vadd.f32 %v713_v54, %v712_v62  ;;  %v834_v54 = vmul.f32 %v7114_v30, %v7114_v30 }
 0x13e   :  { %v7013_v57 = vpop.f32.mrb[48].mxu0 }
 0x13f   :  { %v6099_v59 = vpop.f32.mrb[49].mxu0 }
 0x140   :  { %v829_v59 = vmul.f32 %v7063_v34, %v7063_v34 }
 0x142   :  { %v7025_v0 = vpop.f32.mrb[50].mxu0  ;;  %v892_v12 = vsel %vm701_vm5, %v829_v59, 0.0  ;;  %v7134_v59 = vsub.f32 %v6980_v31, %v7002_v52  ;;  %v902_v31 = vsel %vm701_vm5, %v834_v54, 0.0 }
 0x143   :  { %v6102_v4 = vpop.f32.mrb[51].mxu0  ;;  %v893_v36 = vadd.f32 %v892_v12, %v891_v20  ;;  %v7154_v20 = vsub.f32 %v6984_v35, %v7002_v52 }
 0x144   :  { %v715_v4 = vsel %vm701_vm5, %v7063_v34, 0.0  ;;  %v836_v16 = vmul.f32 %v7134_v59, %v7134_v59  ;;  %v729_v28 = vsel %vm701_vm5, %v7134_v59, 0.0 }
 0x146   :  { %v7045_v11 = vpop.f32.mrb[52].mxu0  ;;  %v906_v35 = vsel %vm701_vm5, %v836_v16, 0.0 }
 0x147   :  { %v6105_v24 = vpop.f32.mrb[53].mxu0 }
 0x148   :  { %v716_v24 = vadd.f32 %v715_v4, %v714_v21  ;;  %v725_v4 = vsel %vm701_vm5, %v7114_v30, 0.0 }
 0x14a   :  { %v7065_v40 = vpop.f32.mrb[54].mxu0  ;;  %v718_v25 = vadd.f32 %v717_v14, %v716_v24  ;;  %v727_v14 = vsel %vm701_vm5, %v7123_v43, 0.0 }
 0x14b   :  { %v6108_v46 = vpop.f32.mrb[55].mxu0 }
 0x14c   :  { %v895_v46 = vadd.f32 %v894_v23, %v893_v36  ;;  %v720_v48 = vadd.f32 %v719_v26, %v718_v25  ;;  %v904_v26 = vsel %vm701_vm5, %v835_v5, 0.0  ;;  %v7163_v36 = vsub.f32 %v6986_v37, %v7002_v52 }
 0x14e   :  { %v7085_v1 = vpop.f32.mrb[56].mxu0  ;;  %v897_v62 = vadd.f32 %v896_v38, %v895_v46  ;;  %v722_v29 = vadd.f32 %v721_v15, %v720_v48  ;;  %v838_v46 = vmul.f32 %v7154_v20, %v7154_v20  ;;  %v7174_v48 = vsub.f32 %v6988_v39, %v7002_v52 }
 0x14f   :  { %v6111_v8 = vpop.f32.mrb[57].mxu0 }
 0x150   :  { %v7143_v8 = vsub.f32 %v6982_v33, %v7002_v52  ;;  %v899_v9 = vadd.f32 %v898_v27, %v897_v62  ;;  %v724_v21 = vadd.f32 %v723_v51, %v722_v29  ;;  %v839_v62 = vmul.f32 %v7163_v36, %v7163_v36 }
 0x151   :  { %v7183_v29 = vsub.f32 %v6990_v41, %v7002_v52  ;;  %v910_v39 = vsel %vm701_vm5, %v838_v46, 0.0 }
 0x152   :  { %v7105_v13 = vpop.f32.mrb[58].mxu0  ;;  %v901_v23 = vadd.f32 %v900_v19, %v899_v9  ;;  %v726_v33 = vadd.f32 %v725_v4, %v724_v21  ;;  %v731_v42 = vsel %vm701_vm5, %v7143_v8, 0.0  ;;  %v735_v9 = vsel %vm701_vm5, %v7163_v36, 0.0 }
 0x153   :  { %v6114_v32 = vpop.f32.mrb[59].mxu0  ;;  %v840_v21 = vmul.f32 %v7174_v48, %v7174_v48 }
 0x154   :  { %v837_v32 = vmul.f32 %v7143_v8, %v7143_v8  ;;  %v903_v25 = vadd.f32 %v902_v31, %v901_v23  ;;  %v728_v38 = vadd.f32 %v727_v14, %v726_v33  ;;  %v7194_v31 = vsub.f32 %v6992_v44, %v7002_v52 }
 0x155   :  { %v737_v23 = vsel %vm701_vm5, %v7174_v48, 0.0  ;;  %v841_v33 = vmul.f32 %v7183_v29, %v7183_v29  ;;  %v914_v44 = vsel %vm701_vm5, %v840_v21, 0.0  ;;  %v7234_v21 = vsub.f32 %v7013_v57, %v7002_v52 }
 0x156   :  { %v7125_v17 = vpop.f32.mrb[60].mxu0  ;;  %v905_v51 = vadd.f32 %v904_v26, %v903_v25  ;;  %v730_v37 = vadd.f32 %v729_v28, %v728_v38  ;;  %v908_v54 = vsel %vm701_vm5, %v837_v32, 0.0  ;;  %v7203_v26 = vsub.f32 %v6994_v47, %v7002_v52 }
 0x157   :  { %v6117_v63 = vpop.f32.mrb[61].mxu0  ;;  %v739_v38 = vsel %vm701_vm5, %v7183_v29, 0.0 }
 0x158   :  { %v733_v63 = vsel %vm701_vm5, %v7154_v20, 0.0  ;;  %v907_v19 = vadd.f32 %v906_v35, %v905_v51  ;;  %v732_v4 = vadd.f32 %v731_v42, %v730_v37  ;;  %v842_v35 = vmul.f32 %v7194_v31, %v7194_v31 }
 0x159   :  { %v7214_v42 = vsub.f32 %v6998_v50, %v7002_v52  ;;  %v916_v51 = vsel %vm701_vm5, %v841_v33, 0.0  ;;  %v741_v37 = vsel %vm701_vm5, %v7194_v31, 0.0  ;;  %v7243_v33 = vsub.f32 %v7025_v0, %v7002_v52 }
 0x15a   :  { %v7145_v12 = vpop.f32.mrb[62].mxu0  ;;  %v909_v16 = vadd.f32 %v908_v54, %v907_v19  ;;  %v734_v41 = vadd.f32 %v733_v63, %v732_v4  ;;  %v843_v54 = vmul.f32 %v7203_v26, %v7203_v26  ;;  %v7223_v63 = vsub.f32 %v7004_v53, %v7002_v52 }
 0x15b   :  { %v6120_v24 = vpop.f32.mrb[63].mxu0  ;;  %v918_v50 = vsel %vm701_vm5, %v842_v35, 0.0  ;;  %v846_v35 = vmul.f32 %v7234_v21, %v7234_v21 }
 0x15c   :  { %v912_v24 = vsel %vm701_vm5, %v839_v62, 0.0  ;;  %v911_v28 = vadd.f32 %v910_v39, %v909_v16  ;;  %v736_v32 = vadd.f32 %v735_v9, %v734_v41  ;;  %v743_v39 = vsel %vm701_vm5, %v7203_v26, 0.0 }
 0x15d   :  { %v844_v9 = vmul.f32 %v7214_v42, %v7214_v42  ;;  %v920_v41 = vsel %vm701_vm5, %v843_v54, 0.0  ;;  %v847_v54 = vmul.f32 %v7243_v33, %v7243_v33 }
 0x15e   :  { %v7165_v15 = vpop.f32.mrb[64].mxu0  ;;  %v738_v47 = vadd.f32 %v737_v23, %v736_v32  ;;  %v845_v23 = vmul.f32 %v7223_v63, %v7223_v63 }
 0x15f   :  { %v6123_v27 = vpop.f32.mrb[65].mxu0  ;;  %v922_v57 = vsel %vm701_vm5, %v844_v9, 0.0  ;;  %v751_v9 = vsel %vm701_vm5, %v7243_v33, 0.0 }
 0x160   :  { %v913_v27 = vadd.f32 %v912_v24, %v911_v28  ;;  %v740_v19 = vadd.f32 %v739_v38, %v738_v47  ;;  %v745_v24 = vsel %vm701_vm5, %v7214_v42, 0.0  ;;  %v747_v38 = vsel %vm701_vm5, %v7223_v63, 0.0 }
 0x162   :  { %v7185_v5 = vpop.f32.mrb[66].mxu0  ;;  %v915_v62 = vadd.f32 %v914_v44, %v913_v27  ;;  %v742_v53 = vadd.f32 %v741_v37, %v740_v19  ;;  %v749_v37 = vsel %vm701_vm5, %v7234_v21, 0.0 }
 0x163   :  { %v6126_v14 = vpop.f32.mrb[67].mxu0 }
 0x164   :  { %v917_v16 = vadd.f32 %v916_v51, %v915_v62  ;;  %v744_v32 = vadd.f32 %v743_v39, %v742_v53  ;;  %v924_v51 = vsel %vm701_vm5, %v845_v23, 0.0  ;;  %v7263_v62 = vsub.f32 %v7065_v40, %v7002_v52 }
 0x166   :  { %v7205_v25 = vpop.f32.mrb[68].mxu0  ;;  %v919_v28 = vadd.f32 %v918_v50, %v917_v16  ;;  %v746_v0 = vadd.f32 %v745_v24, %v744_v32  ;;  %v7274_v16 = vsub.f32 %v7085_v1, %v7002_v52  ;;  %v928_v24 = vsel %vm701_vm5, %v847_v54, 0.0 }
 0x167   :  { %v6129_v46 = vpop.f32.mrb[69].mxu0  ;;  %v7283_v32 = vsub.f32 %v7105_v13, %v7002_v52 }
 0x168   :  { %v7254_v46 = vsub.f32 %v7045_v11, %v7002_v52  ;;  %v921_v47 = vadd.f32 %v920_v41, %v919_v28  ;;  %v748_v50 = vadd.f32 %v747_v38, %v746_v0  ;;  %v926_v11 = vsel %vm701_vm5, %v846_v35, 0.0 }
 0x169   :  { %v849_v28 = vmul.f32 %v7263_v62, %v7263_v62  ;;  %v7292_v0 = vsub.f32 %v7125_v17, %v7002_v52 }
 0x16a   :  { %v7225_v4 = vpop.f32.mrb[70].mxu0  ;;  %v923_v19 = vadd.f32 %v922_v57, %v921_v47  ;;  %v750_v40 = vadd.f32 %v749_v37, %v748_v50  ;;  %v753_v23 = vsel %vm701_vm5, %v7254_v46, 0.0  ;;  %v850_v47 = vmul.f32 %v7274_v16, %v7274_v16 }
 0x16b   :  { %v6132_v14 = vpop.f32.mrb[71].mxu0  ;;  %v932_v13 = vsel %vm701_vm5, %v849_v28, 0.0  ;;  %v851_v50 = vmul.f32 %v7283_v32, %v7283_v32 }
 0x16c   :  { %v848_v14 = vmul.f32 %v7254_v46, %v7254_v46  ;;  %v925_v41 = vadd.f32 %v924_v51, %v923_v19  ;;  %v752_v38 = vadd.f32 %v751_v9, %v750_v40  ;;  %v757_v19 = vsel %vm701_vm5, %v7274_v16, 0.0 }
 0x16d   :  { %v934_v17 = vsel %vm701_vm5, %v850_v47, 0.0  ;;  %v852_v40 = vmul.f32 %v7292_v0, %v7292_v0 }
 0x16e   :  { %v7245_v44 = vpop.f32.mrb[72].mxu0  ;;  %v927_v57 = vadd.f32 %v926_v11, %v925_v41  ;;  %v930_v1 = vsel %vm701_vm5, %v848_v14, 0.0  ;;  %v754_v54 = vadd.f32 %v753_v23, %v752_v38  ;;  %v7301_v11 = vsub.f32 %v7145_v12, %v7002_v52 }
 0x16f   :  { %v6135_v27 = vpop.f32.mrb[73].mxu0  ;;  %v759_v41 = vsel %vm701_vm5, %v7283_v32, 0.0  ;;  %v936_v12 = vsel %vm701_vm5, %v851_v50, 0.0  ;;  %v761_v38 = vsel %vm701_vm5, %v7292_v0, 0.0 }
 0x170   :  { %v755_v27 = vsel %vm701_vm5, %v7263_v62, 0.0  ;;  %v929_v37 = vadd.f32 %v928_v24, %v927_v57  ;;  %v7310_v24 = vsub.f32 %v7165_v15, %v7002_v52  ;;  %v938_v15 = vsel %vm701_vm5, %v852_v40, 0.0 }
 0x171   :  { %v756_v14 = vadd.f32 %v755_v27, %v754_v54  ;;  %v7319_v27 = vsub.f32 %v7185_v5, %v7002_v52  ;;  %v763_v54 = vsel %vm701_vm5, %v7301_v11, 0.0  ;;  %v7337_v40 = vsub.f32 %v7225_v4, %v7002_v52 }
 0x172   :  { %v7265_v39 = vpop.f32.mrb[74].mxu0  ;;  %v931_v9 = vadd.f32 %v930_v1, %v929_v37  ;;  %v853_v1 = vmul.f32 %v7301_v11, %v7301_v11 }
 0x173   :  { %v6138_v53 = vpop.f32.mrb[75].mxu0  ;;  %v758_v57 = vadd.f32 %v757_v19, %v756_v14  ;;  %v7328_v19 = vsub.f32 %v7205_v25, %v7002_v52 }
 0x174   :  { %v933_v28 = vadd.f32 %v932_v13, %v931_v9  ;;  %v854_v13 = vmul.f32 %v7310_v24, %v7310_v24  ;;  %v940_v5 = vsel %vm701_vm5, %v853_v1, 0.0  ;;  %v7346_v1 = vsub.f32 %v7245_v44, %v7002_v52 }
 0x176   :  { %v544_v35 = vpop.f32.mrb[76].mxu0  ;;  %v935_v47 = vadd.f32 %v934_v17, %v933_v28  ;;  %v765_v17 = vsel %vm701_vm5, %v7310_v24, 0.0  ;;  %v942_v25 = vsel %vm701_vm5, %v854_v13, 0.0  ;;  %v7355_v13 = vsub.f32 %v7265_v39, %v7002_v52 }
 0x177   :  { %v6141_v51 = vpop.f32.mrb[77].mxu0 }
 0x178   :  { %v760_v51 = vadd.f32 %v759_v41, %v758_v57  ;;  %v937_v9 = vadd.f32 %v936_v12, %v935_v47  ;;  %v855_v41 = vmul.f32 %v7319_v27, %v7319_v27  ;;  %v767_v12 = vsel %vm701_vm5, %v7319_v27, 0.0 }
 0x17a   :  { %v549_v53 = vpop.f32.mrb[78].mxu0  ;;  %v762_v14 = vadd.f32 %v761_v38, %v760_v51  ;;  %v856_v38 = vmul.f32 %v7328_v19, %v7328_v19  ;;  %v944_v4 = vsel %vm701_vm5, %v855_v41, 0.0  ;;  %v7363_v41 = vsub.f32 %v544_v35, %v7002_v52 }
 0x17b   :  { %v6144_v23 = vpop.f32.mrb[79].mxu0 }
 0x17c   :  { %v939_v23 = vadd.f32 %v938_v15, %v937_v9  ;;  %v764_v28 = vadd.f32 %v763_v54, %v762_v14  ;;  %v769_v15 = vsel %vm701_vm5, %v7328_v19, 0.0  ;;  %v857_v54 = vmul.f32 %v7337_v40, %v7337_v40 }
 0x17d   :  { %v946_v44 = vsel %vm701_vm5, %v856_v38, 0.0  ;;  %v7371_v38 = vsub.f32 %v549_v53, %v7002_v52 }
 0x17e   :  { %v554_v37 = vpop.f32.mrb[80].mxu0  ;;  %v941_v51 = vadd.f32 %v940_v5, %v939_v23  ;;  %v771_v5 = vsel %vm701_vm5, %v7337_v40, 0.0  ;;  %v948_v39 = vsel %vm701_vm5, %v857_v54, 0.0 }
 0x17f   :  { %v6147_v50 = vpop.f32.mrb[81].mxu0  ;;  %11387 = vst [vmem:[#allocation15_spill] sm:$0xff] %v7371_v38  ;;  %v7379_v54 = vsub.f32 %v554_v37, %v7002_v52 }
 0x180   :  { %v766_v50 = vadd.f32 %v765_v17, %v764_v28  ;;  %v943_v9 = vadd.f32 %v942_v25, %v941_v51  ;;  %v858_v17 = vmul.f32 %v7346_v1, %v7346_v1  ;;  %v773_v25 = vsel %vm701_vm5, %v7346_v1, 0.0 }
 0x182   :  { %v559_v57 = vpop.f32.mrb[82].mxu0  ;;  %v768_v14 = vadd.f32 %v767_v12, %v766_v50  ;;  %v945_v28 = vadd.f32 %v944_v4, %v943_v9  ;;  %v859_v12 = vmul.f32 %v7355_v13, %v7355_v13  ;;  %v950_v35 = vsel %vm701_vm5, %v858_v17, 0.0 }
 0x183   :  { %v6150_v47 = vpop.f32.mrb[83].mxu0  ;;  %v775_v4 = vsel %vm701_vm5, %v7355_v13, 0.0  ;;  %v7387_v17 = vsub.f32 %v559_v57, %v7002_v52 }
 0x184   :  { %v770_v47 = vadd.f32 %v769_v15, %v768_v14  ;;  %v947_v51 = vadd.f32 %v946_v44, %v945_v28  ;;  %v860_v15 = vmul.f32 %v7363_v41, %v7363_v41  ;;  %v952_v53 = vsel %vm701_vm5, %v859_v12, 0.0 }
 0x185   :  { %v777_v44 = vsel %vm701_vm5, %v7363_v41, 0.0  ;;  %11388 = vst [vmem:[#allocation16_spill] sm:$0xff] %v7387_v17 }
 0x186   :  { %v564_v6 = vpop.f32.mrb[84].mxu0  ;;  %v772_v50 = vadd.f32 %v771_v5, %v770_v47  ;;  %v949_v14 = vadd.f32 %v948_v39, %v947_v51  ;;  %v861_v5 = vmul.f32 %v7371_v38, %v7371_v38  ;;  %v954_v37 = vsel %vm701_vm5, %v860_v15, 0.0 }
 0x187   :  { %v6153_v23 = vpop.f32.mrb[85].mxu0  ;;  %v779_v39 = vsel %vm701_vm5, %v7371_v38, 0.0  ;;  %v7395_v12 = vsub.f32 %v564_v6, %v7002_v52 }
 0x188   :  { %v774_v23 = vadd.f32 %v773_v25, %v772_v50  ;;  %v951_v28 = vadd.f32 %v950_v35, %v949_v14  ;;  %v862_v25 = vmul.f32 %v7379_v54, %v7379_v54  ;;  %v956_v57 = vsel %vm701_vm5, %v861_v5, 0.0 }
 0x189   :  { %11389 = vst [vmem:[#allocation17_spill] sm:$0xff] %v7395_v12  ;;  %v781_v35 = vsel %vm701_vm5, %v7379_v54, 0.0 }
 0x18a   :  { %v569_v3 = vpop.f32.mrb[86].mxu0  ;;  %v776_v47 = vadd.f32 %v775_v4, %v774_v23  ;;  %v953_v50 = vadd.f32 %v952_v53, %v951_v28  ;;  %v863_v4 = vmul.f32 %v7387_v17, %v7387_v17  ;;  %v958_v6 = vsel %vm701_vm5, %v862_v25, 0.0 }
 0x18b   :  { %v6156_v9 = vpop.f32.mrb[87].mxu0  ;;  %v7403_v15 = vsub.f32 %v569_v3, %v7002_v52  ;;  %v783_v53 = vsel %vm701_vm5, %v7387_v17, 0.0 }
 0x18c   :  { %v778_v9 = vadd.f32 %v777_v44, %v776_v47  ;;  %v955_v14 = vadd.f32 %v954_v37, %v953_v50  ;;  %v864_v44 = vmul.f32 %v7395_v12, %v7395_v12  ;;  %v960_v3 = vsel %vm701_vm5, %v863_v4, 0.0 }
 0x18d   :  { %11390 = vst [vmem:[#allocation18_spill] sm:$0xff] %v7403_v15  ;;  %v785_v37 = vsel %vm701_vm5, %v7395_v12, 0.0 }
 0x18e   :  { %v574_v49 = vpop.f32.mrb[88].mxu0  ;;  %v780_v23 = vadd.f32 %v779_v39, %v778_v9  ;;  %v957_v47 = vadd.f32 %v956_v57, %v955_v14  ;;  %v865_v39 = vmul.f32 %v7403_v15, %v7403_v15  ;;  %v787_v57 = vsel %vm701_vm5, %v7403_v15, 0.0 }
 0x18f   :  { %v6159_v51 = vpop.f32.mrb[89].mxu0  ;;  %v7411_v5 = vsub.f32 %v574_v49, %v7002_v52  ;;  %v962_v49 = vsel %vm701_vm5, %v864_v44, 0.0 }
 0x190   :  { %v782_v51 = vadd.f32 %v781_v35, %v780_v23  ;;  %v959_v50 = vadd.f32 %v958_v6, %v957_v47 }
 0x191   :  { %11391 = vst [vmem:[#allocation19_spill] sm:$0xff] %v7411_v5  ;;  %v866_v35 = vmul.f32 %v7411_v5, %v7411_v5  ;;  %v789_v6 = vsel %vm701_vm5, %v7411_v5, 0.0 }
 0x192   :  { %v579_v38 = vpop.f32.mrb[90].mxu0  ;;  %v784_v9 = vadd.f32 %v783_v53, %v782_v51  ;;  %v961_v23 = vadd.f32 %v960_v3, %v959_v50 }
 0x193   :  { %v6162_v28 = vpop.f32.mrb[91].mxu0  ;;  %v7419_v25 = vsub.f32 %v579_v38, %v7002_v52  ;;  %v964_v38 = vsel %vm701_vm5, %v865_v39, 0.0  ;;  %v966_v15 = vsel %vm701_vm5, %v866_v35, 0.0 }
 0x194   :  { %v786_v28 = vadd.f32 %v785_v37, %v784_v9  ;;  %v963_v44 = vadd.f32 %v962_v49, %v961_v23 }
 0x195   :  { %11392 = vst [vmem:[#allocation20_spill] sm:$0xff] %v7419_v25  ;;  %v867_v53 = vmul.f32 %v7419_v25, %v7419_v25 }
 0x196   :  { %v584_v17 = vpop.f32.mrb[92].mxu0  ;;  %v788_v47 = vadd.f32 %v787_v57, %v786_v28  ;;  %v965_v50 = vadd.f32 %v964_v38, %v963_v44 }
 0x197   :  { %v7427_v4 = vsub.f32 %v584_v17, %v7002_v52  ;;  %v6165_v14 = vpop.f32.mrb[93].mxu0  ;;  %v791_v17 = vsel %vm701_vm5, %v7419_v25, 0.0 }
 0x198   :  { %v790_v9 = vadd.f32 %v789_v6, %v788_v47  ;;  %v968_v14 = vsel %vm701_vm5, %v867_v53, 0.0  ;;  %v967_v35 = vadd.f32 %v966_v15, %v965_v50 }
 0x199   :  { %11393 = vst [vmem:[#allocation21_spill] sm:$0xff] %v7427_v4  ;;  %v868_v3 = vmul.f32 %v7427_v4, %v7427_v4  ;;  %v793_v49 = vsel %vm701_vm5, %v7427_v4, 0.0 }
 0x19a   :  { %v589_v51 = vpop.f32.mrb[94].mxu0  ;;  %v792_v23 = vadd.f32 %v791_v17, %v790_v9  ;;  %v969_v6 = vadd.f32 %v968_v14, %v967_v35 }
 0x19b   :  { %v7440_v37 = vsub.f32 %v589_v51, %v7002_v52  ;;  %v6168_v39 = vpop.f32.mrb[95].mxu0  ;;  %v970_v25 = vsel %vm701_vm5, %v868_v3, 0.0 }
 0x19c   :  { %v794_v53 = vadd.f32 %v793_v49, %v792_v23  ;;  %v971_v17 = vadd.f32 %v970_v25, %v969_v6 }
 0x19d   :  { %11394 = vst [vmem:[#allocation22_spill] sm:$0xff] %v7440_v37  ;;  %v869_v57 = vmul.f32 %v7440_v37, %v7440_v37  ;;  %v795_v51 = vsel %vm701_vm5, %v7440_v37, 0.0 }
 0x19e   :  { %v594_v28 = vpop.f32.mrb[96].mxu0  ;;  %v796_v50 = vadd.f32 %v795_v51, %v794_v53 }
 0x19f   :  { %v7451_v39 = vsub.f32 %v594_v28, %v7002_v52  ;;  %v6171_v38 = vpop.f32.mrb[97].mxu0  ;;  %v972_v44 = vsel %vm701_vm5, %v869_v57, 0.0 }
 0x1a0   :  { %v973_v38 = vadd.f32 %v972_v44, %v971_v17 }
 0x1a1   :  { %v797_v47 = vsel %vm701_vm5, %v7451_v39, 0.0  ;;  %v870_v15 = vmul.f32 %v7451_v39, %v7451_v39 }
 0x1a2   :  { %v599_v3 = vpop.f32.mrb[98].mxu0  ;;  %v798_v14 = vadd.f32 %v797_v47, %v796_v50 }
 0x1a3   :  { %v974_v9 = vsel %vm701_vm5, %v870_v15, 0.0  ;;  %v7460_v37 = vsub.f32 %v599_v3, %v7002_v52  ;;  %v6174_v28 = vpop.f32.mrb[99].mxu0 }
 0x1a4   :  { %v975_v35 = vadd.f32 %v974_v9, %v973_v38 }
 0x1a5   :  { %v799_v49 = vsel %vm701_vm5, %v7460_v37, 0.0  ;;  %v871_v57 = vmul.f32 %v7460_v37, %v7460_v37 }
 0x1a6   :  { %v800_v23 = vadd.f32 %v799_v49, %v798_v14  ;;  %v604_v4 = vpop.f32.mrb[100].mxu0 }
 0x1a7   :  { %v976_v25 = vsel %vm701_vm5, %v871_v57, 0.0  ;;  %v7468_v51 = vsub.f32 %v604_v4, %v7002_v52  ;;  %v6177_v6 = vpop.f32.mrb[101].mxu0 }
 0x1a8   :  { %v977_v53 = vadd.f32 %v976_v25, %v975_v35 }
 0x1a9   :  { %11395 = vst [vmem:[#allocation23_spill] sm:$0xff] %v7468_v51  ;;  %v801_v44 = vsel %vm701_vm5, %v7468_v51, 0.0  ;;  %v872_v47 = vmul.f32 %v7468_v51, %v7468_v51 }
 0x1aa   :  { %v802_v15 = vadd.f32 %v801_v44, %v800_v23  ;;  %v609_v17 = vpop.f32.mrb[102].mxu0 }
 0x1ab   :  { %v978_v50 = vsel %vm701_vm5, %v872_v47, 0.0  ;;  %v7476_v3 = vsub.f32 %v609_v17, %v7002_v52  ;;  %v6180_v9 = vpop.f32.mrb[103].mxu0 }
 0x1ac   :  { %v979_v28 = vadd.f32 %v978_v50, %v977_v53 }
 0x1ad   :  { %11396 = vst [vmem:[#allocation24_spill] sm:$0xff] %v7476_v3  ;;  %v803_v4 = vsel %vm701_vm5, %v7476_v3, 0.0  ;;  %v873_v38 = vmul.f32 %v7476_v3, %v7476_v3 }
 0x1ae   :  { %v804_v14 = vadd.f32 %v803_v4, %v802_v15  ;;  %v614_v49 = vpop.f32.mrb[104].mxu0 }
 0x1af   :  { %v980_v57 = vsel %vm701_vm5, %v873_v38, 0.0  ;;  %v7484_v35 = vsub.f32 %v614_v49, %v7002_v52  ;;  %v6183_v23 = vpop.f32.mrb[105].mxu0 }
 0x1b0   :  { %v981_v25 = vadd.f32 %v980_v57, %v979_v28 }
 0x1b1   :  { %11397 = vst [vmem:[#allocation25_spill] sm:$0xff] %v7484_v35  ;;  %v805_v6 = vsel %vm701_vm5, %v7484_v35, 0.0  ;;  %v874_v53 = vmul.f32 %v7484_v35, %v7484_v35 }
 0x1b2   :  { %v806_v44 = vadd.f32 %v805_v6, %v804_v14  ;;  %v619_v47 = vpop.f32.mrb[106].mxu0 }
 0x1b3   :  { %v982_v17 = vsel %vm701_vm5, %v874_v53, 0.0  ;;  %v7492_v15 = vsub.f32 %v619_v47, %v7002_v52  ;;  %v6186_v50 = vpop.f32.mrb[107].mxu0 }
 0x1b4   :  { %v983_v9 = vadd.f32 %v982_v17, %v981_v25 }
 0x1b5   :  { %11398 = vst [vmem:[#allocation26_spill] sm:$0xff] %v7492_v15  ;;  %v807_v4 = vsel %vm701_vm5, %v7492_v15, 0.0  ;;  %v875_v28 = vmul.f32 %v7492_v15, %v7492_v15 }
 0x1b6   :  { %v808_v38 = vadd.f32 %v807_v4, %v806_v44  ;;  %v624_v49 = vpop.f32.mrb[108].mxu0 }
 0x1b7   :  { %v984_v57 = vsel %vm701_vm5, %v875_v28, 0.0  ;;  %v7500_v14 = vsub.f32 %v624_v49, %v7002_v52  ;;  %v6189_v23 = vpop.f32.mrb[109].mxu0 }
 0x1b8   :  { %v985_v6 = vadd.f32 %v984_v57, %v983_v9 }
 0x1b9   :  { %11399 = vst [vmem:[#allocation27_spill] sm:$0xff] %v7500_v14  ;;  %v809_v53 = vsel %vm701_vm5, %v7500_v14, 0.0  ;;  %v876_v25 = vmul.f32 %v7500_v14, %v7500_v14 }
 0x1ba   :  { %v810_v47 = vadd.f32 %v809_v53, %v808_v38  ;;  %v629_v17 = vpop.f32.mrb[110].mxu0 }
 0x1bb   :  { %v986_v50 = vsel %vm701_vm5, %v876_v25, 0.0  ;;  %v7508_v44 = vsub.f32 %v629_v17, %v7002_v52  ;;  %v6192_v4 = vpop.f32.mrb[111].mxu0 }
 0x1bc   :  { %v987_v28 = vadd.f32 %v986_v50, %v985_v6 }
 0x1bd   :  { %11400 = vst [vmem:[#allocation28_spill] sm:$0xff] %v7508_v44  ;;  %v811_v49 = vsel %vm701_vm5, %v7508_v44, 0.0  ;;  %v877_v9 = vmul.f32 %v7508_v44, %v7508_v44 }
 0x1be   :  { %v812_v57 = vadd.f32 %v811_v49, %v810_v47  ;;  %v634_v23 = vpop.f32.mrb[112].mxu0 }
 0x1bf   :  { %v988_v5 = vsel %vm701_vm5, %v877_v9, 0.0  ;;  %v7516_v38 = vsub.f32 %v634_v23, %v7002_v52  ;;  %v6195_v53 = vpop.f32.mrb[113].mxu0 }
 0x1c0   :  { %v989_v25 = vadd.f32 %v988_v5, %v987_v28 }
 0x1c1   :  { %v814_v17 = vsel %vm813_vm6, %v7516_v38, 0.0  ;;  %v878_v6 = vmul.f32 %v7516_v38, %v7516_v38 }
 0x1c2   :  { %v815_v50 = vadd.f32 %v814_v17, %v812_v57 }
 0x1c3   :  { %v990_v4 = vsel %vm813_vm6, %v878_v6, 0.0 }
 0x1c4   :  { %v816_v44 = vrot.slane %v815_v50, 4  ;;  %v991_v47 = vadd.f32 %v990_v4, %v989_v25 }
 0x1c6   :  { %v817_v49 = vadd.f32 %v816_v44, %v815_v50  ;;  %v992_v14 = vrot.slane %v991_v47, 4 }
 0x1c8   :  { %v818_v12 = vrot.slane %v817_v49, 2  ;;  %v993_v9 = vadd.f32 %v992_v14, %v991_v47 }
 0x1ca   :  { %v819_v15 = vadd.f32 %v818_v12, %v817_v49  ;;  %v994_v52 = vrot.slane %v993_v9, 2 }
 0x1cc   :  { %v820_v23 = vrot.slane %v819_v15, 1  ;;  %v995_v53 = vadd.f32 %v994_v52, %v993_v9  ;;  %v7638_v52 = vld [vmem:[%s11255_s2] ss:$0 sm:$0xff] }
 0x1ce   :  { %v821_v5 = vadd.f32 %v820_v23, %v819_v15  ;;  %v996_v28 = vrot.slane %v995_v53, 1  ;;  %v11412_v23 = vld [vmem:[#allocation19_spill] sm:$0xff] }
 0x1d0   :  { %v997_v35 = vadd.f32 %v996_v28, %v995_v53  ;;  %v7523_v3 = vmul.f32 0.0022222223, %v821_v5  ;;  %v11407_v53 = vld [vmem:[#allocation17_spill] sm:$0xff]  ;;  %v11408_v28 = vld [vmem:[#allocation18_spill] sm:$0xff] }
 0x1d2   :  { %v999_v51 = vmul.f32 0.0022222223, %v997_v35  ;;  %v1000_v57 = vmul.f32 %v7523_v3, %v7523_v3  ;;  %v1058_v25 = vsub.f32 %v7516_v38, %v7523_v3  ;;  %v1002_v14 = vsub.f32 %v7011_v56, %v7523_v3 }
 0x1d3   :  { %v1003_v12 = vsub.f32 %v7007_v55, %v7523_v3  ;;  %v1004_v15 = vsub.f32 %v7016_v58, %v7523_v3  ;;  %v1005_v17 = vsub.f32 %v7021_v61, %v7523_v3  ;;  %v1006_v35 = vsub.f32 %v7032_v2, %v7523_v3 }
 0x1d4   :  { %v1001_v44 = vsub.f32 %v999_v51, %v1000_v57  ;;  %v1007_v6 = vsub.f32 %v7042_v10, %v7523_v3  ;;  %v1008_v51 = vsub.f32 %v7054_v22, %v7523_v3  ;;  %v1009_v56 = vsub.f32 %v7063_v34, %v7523_v3 }
 0x1d5   :  { %v1010_v55 = vsub.f32 %v7074_v45, %v7523_v3  ;;  %v1011_v58 = vsub.f32 %v7083_v60, %v7523_v3  ;;  %v1012_v61 = vsub.f32 %v7094_v7, %v7523_v3  ;;  %v1013_v2 = vsub.f32 %v7103_v18, %v7523_v3 }
 0x1d6   :  { %v1059_v38 = vadd.f32 1e-05, %v1001_v44  ;;  %v1014_v10 = vsub.f32 %v7114_v30, %v7523_v3  ;;  %v1015_v22 = vsub.f32 %v7123_v43, %v7523_v3  ;;  %v1016_v34 = vsub.f32 %v7134_v59, %v7523_v3 }
 0x1d7   :  { %v1017_v45 = vsub.f32 %v7143_v8, %v7523_v3  ;;  %v1018_v60 = vsub.f32 %v7154_v20, %v7523_v3  ;;  %v1019_v7 = vsub.f32 %v7163_v36, %v7523_v3  ;;  %v1020_v18 = vsub.f32 %v7174_v48, %v7523_v3 }
 0x1d8   :  { %6479 = vrsqrt.f32 %v1059_v38  ;;  %v1021_v30 = vsub.f32 %v7183_v29, %v7523_v3  ;;  %v1022_v43 = vsub.f32 %v7194_v31, %v7523_v3  ;;  %v1023_v59 = vsub.f32 %v7203_v26, %v7523_v3  ;;  %v11415_v38 = vld [vmem:[#allocation22_spill] sm:$0xff] }
 0x1d9   :  { %v1024_v8 = vsub.f32 %v7214_v42, %v7523_v3  ;;  %v1025_v20 = vsub.f32 %v7223_v63, %v7523_v3  ;;  %v1026_v36 = vsub.f32 %v7234_v21, %v7523_v3  ;;  %v1027_v48 = vsub.f32 %v7243_v33, %v7523_v3 }
 0x1da   :  { %v1028_v29 = vsub.f32 %v7254_v46, %v7523_v3  ;;  %v1029_v31 = vsub.f32 %v7263_v62, %v7523_v3  ;;  %v1030_v26 = vsub.f32 %v7274_v16, %v7523_v3  ;;  %v1031_v42 = vsub.f32 %v7283_v32, %v7523_v3 }
 0x1db   :  { %v1032_v63 = vsub.f32 %v7292_v0, %v7523_v3  ;;  %v1033_v21 = vsub.f32 %v7301_v11, %v7523_v3  ;;  %v1034_v33 = vsub.f32 %v7310_v24, %v7523_v3  ;;  %v1035_v46 = vsub.f32 %v7319_v27, %v7523_v3  ;;  %v11401_v24 = vld [vmem:[#allocation15_spill] sm:$0xff] }
 0x1dc   :  { %v1036_v62 = vsub.f32 %v7328_v19, %v7523_v3  ;;  %v1037_v16 = vsub.f32 %v7337_v40, %v7523_v3  ;;  %v1038_v32 = vsub.f32 %v7346_v1, %v7523_v3  ;;  %v1039_v0 = vsub.f32 %v7355_v13, %v7523_v3  ;;  %v11402_v19 = vld [vmem:[#allocation16_spill] sm:$0xff]  ;;  %11411 = vst [vmem:[#allocation15_spill] sm:$0xff] %v7638_v52 }
 0x1dd   :  { %v1040_v11 = vsub.f32 %v7363_v41, %v7523_v3  ;;  %v1041_v50 = vsub.f32 %v11401_v24, %v7523_v3  ;;  %v1042_v27 = vsub.f32 %v7379_v54, %v7523_v3  ;;  %v1043_v4 = vsub.f32 %v11402_v19, %v7523_v3 }
 0x1de   :  { %v1044_v5 = vsub.f32 %v11407_v53, %v7523_v3  ;;  %v1045_v57 = vsub.f32 %v11408_v28, %v7523_v3  ;;  %v1046_v49 = vsub.f32 %v11412_v23, %v7523_v3  ;;  %v11413_v53 = vld [vmem:[#allocation20_spill] sm:$0xff]  ;;  %v11414_v28 = vld [vmem:[#allocation21_spill] sm:$0xff]  ;;  %v1049_v44 = vsub.f32 %v11415_v38, %v7523_v3 }
 0x1df   :  { %v1047_v1 = vsub.f32 %v11413_v53, %v7523_v3  ;;  %v1048_v40 = vsub.f32 %v11414_v28, %v7523_v3 }
 0x1e2   :  { %v7633_v47 = vpop.eup %6479 }
 0x1e3   :  { %v1117_v19 = vmul.f32 %v7633_v47, %v1058_v25  ;;  %v1061_v24 = vmul.f32 %v7633_v47, %v1002_v14  ;;  %v1062_v54 = vmul.f32 %v7633_v47, %v1003_v12  ;;  %v1063_v9 = vmul.f32 %v7633_v47, %v1004_v15 }
 0x1e4   :  { %v1064_v41 = vmul.f32 %v7633_v47, %v1005_v17  ;;  %v1065_v23 = vmul.f32 %v7633_v47, %v1006_v35  ;;  %v1066_v53 = vmul.f32 %v7633_v47, %v1007_v6  ;;  %v1067_v13 = vmul.f32 %v7633_v47, %v1008_v51 }
 0x1e5   :  { %v7657_v28 = vmul.f32 %v7638_v52, %v1117_v19  ;;  %v1068_v38 = vmul.f32 %v7633_v47, %v1009_v56  ;;  %v1069_v25 = vmul.f32 %v7633_v47, %v1010_v55  ;;  %v1070_v14 = vmul.f32 %v7633_v47, %v1011_v58 }
 0x1e6   :  { %v1071_v12 = vmul.f32 %v7633_v47, %v1012_v61  ;;  %v1072_v15 = vmul.f32 %v7633_v47, %v1013_v2  ;;  %v1073_v17 = vmul.f32 %v7633_v47, %v1014_v10  ;;  %v1074_v35 = vmul.f32 %v7633_v47, %v1015_v22 }
 0x1e7   :  { %11416 = vst [vmem:[#allocation16_spill] sm:$0xff] %v7657_v28  ;;  %v1075_v6 = vmul.f32 %v7633_v47, %v1016_v34  ;;  %v1076_v51 = vmul.f32 %v7633_v47, %v1017_v45  ;;  %v1077_v19 = vmul.f32 %v7633_v47, %v1018_v60  ;;  %v1078_v56 = vmul.f32 %v7633_v47, %v1019_v7  ;;  %v11426_v28 = vld [vmem:[#allocation26_spill] sm:$0xff] }
 0x1e8   :  { %v1079_v55 = vmul.f32 %v7633_v47, %v1020_v18  ;;  %v1080_v58 = vmul.f32 %v7633_v47, %v1021_v30  ;;  %v1081_v61 = vmul.f32 %v7633_v47, %v1022_v43  ;;  %v1082_v2 = vmul.f32 %v7633_v47, %v1023_v59 }
 0x1e9   :  { %v1083_v10 = vmul.f32 %v7633_v47, %v1024_v8  ;;  %v1084_v22 = vmul.f32 %v7633_v47, %v1025_v20  ;;  %v1085_v34 = vmul.f32 %v7633_v47, %v1026_v36  ;;  %v1086_v45 = vmul.f32 %v7633_v47, %v1027_v48 }
 0x1ea   :  { %v1087_v60 = vmul.f32 %v7633_v47, %v1028_v29  ;;  %v1088_v7 = vmul.f32 %v7633_v47, %v1029_v31  ;;  %v1089_v18 = vmul.f32 %v7633_v47, %v1030_v26  ;;  %v1090_v30 = vmul.f32 %v7633_v47, %v1031_v42 }
 0x1eb   :  { %v1091_v43 = vmul.f32 %v7633_v47, %v1032_v63  ;;  %v1092_v59 = vmul.f32 %v7633_v47, %v1033_v21  ;;  %v1093_v8 = vmul.f32 %v7633_v47, %v1034_v33  ;;  %v1094_v20 = vmul.f32 %v7633_v47, %v1035_v46 }
 0x1ec   :  { %v1095_v36 = vmul.f32 %v7633_v47, %v1036_v62  ;;  %v1096_v48 = vmul.f32 %v7633_v47, %v1037_v16  ;;  %v1097_v29 = vmul.f32 %v7633_v47, %v1038_v32  ;;  %v1098_v31 = vmul.f32 %v7633_v47, %v1039_v0 }
 0x1ed   :  { %v1099_v26 = vmul.f32 %v7633_v47, %v1040_v11  ;;  %v1100_v42 = vmul.f32 %v7633_v47, %v1041_v50  ;;  %v1101_v63 = vmul.f32 %v7633_v47, %v1042_v27  ;;  %v1102_v21 = vmul.f32 %v7633_v47, %v1043_v4 }
 0x1ee   :  { %v1103_v33 = vmul.f32 %v7633_v47, %v1044_v5  ;;  %v1104_v46 = vmul.f32 %v7633_v47, %v1045_v57  ;;  %v1105_v62 = vmul.f32 %v7633_v47, %v1046_v49  ;;  %v1106_v16 = vmul.f32 %v7633_v47, %v1047_v1  ;;  %v7711_v49 = vld [vmem:[%s11256_s3] ss:$0 sm:$0xff]  ;;  %v11420_v1 = vld [vmem:[#allocation23_spill] sm:$0xff]  ;;  %v11422_v57 = vld [vmem:[#allocation24_spill] sm:$0xff] }
 0x1ef   :  { %v1107_v32 = vmul.f32 %v7633_v47, %v1048_v40  ;;  %v1108_v0 = vmul.f32 %v7633_v47, %v1049_v44  ;;  %v11417_v11 = vsub.f32 %v7451_v39, %v7523_v3  ;;  %v11418_v27 = vsub.f32 %v7460_v37, %v7523_v3  ;;  %11419 = vst [vmem:[#allocation17_spill] sm:$0xff] %v7711_v49 }
 0x1f0   :  { %v11421_v40 = vsub.f32 %v11420_v1, %v7523_v3  ;;  %v11423_v39 = vsub.f32 %v11422_v57, %v7523_v3  ;;  %v11427_v52 = vsub.f32 %v11426_v28, %v7523_v3  ;;  %v11428_v1 = vld [vmem:[#allocation27_spill] sm:$0xff] }
 0x1f1   :  { %v1109_v50 = vmul.f32 %v7633_v47, %v11417_v11  ;;  %v1110_v4 = vmul.f32 %v7633_v47, %v11418_v27  ;;  %v11424_v11 = vld [vmem:[#allocation25_spill] sm:$0xff]  ;;  %v11432_v28 = vld [vmem:[#allocation15_spill] sm:$0xff] }
 0x1f2   :  { %v1111_v5 = vmul.f32 %v7633_v47, %v11421_v40  ;;  %v1112_v44 = vmul.f32 %v7633_v47, %v11423_v39  ;;  %v11425_v37 = vsub.f32 %v11424_v11, %v7523_v3  ;;  %v1114_v49 = vmul.f32 %v7633_v47, %v11427_v52  ;;  %v11430_v39 = vld [vmem:[#allocation28_spill] sm:$0xff] }
 0x1f3   :  { %v11429_v40 = vsub.f32 %v11428_v1, %v7523_v3  ;;  %v11431_v11 = vsub.f32 %v11430_v39, %v7523_v3  ;;  %v1127_v52 = vmul.f32 %v11432_v28, %v1064_v41  ;;  %v7739_v1 = vmul.f32 %v11432_v28, %v1061_v24 }
 0x1f4   :  { %v1113_v27 = vmul.f32 %v7633_v47, %v11425_v37  ;;  %v1126_v3 = vmul.f32 %v11432_v28, %v1063_v9  ;;  %v1128_v39 = vmul.f32 %v11432_v28, %v1065_v23  ;;  %v1130_v24 = vmul.f32 %v11432_v28, %v1067_v13 }
 0x1f5   :  { %v1115_v57 = vmul.f32 %v7633_v47, %v11429_v40  ;;  %v1116_v37 = vmul.f32 %v7633_v47, %v11431_v11  ;;  %11433 = vst [vmem:[#allocation18_spill] sm:$0xff] %v7739_v1  ;;  %v1125_v40 = vmul.f32 %v11432_v28, %v1062_v54  ;;  %v1129_v11 = vmul.f32 %v11432_v28, %v1066_v53 }
 0x1f6   :  { %v11434_v47 = vld [vmem:[#allocation17_spill] sm:$0xff]  ;;  %v1131_v1 = vmul.f32 %v11432_v28, %v1068_v38  ;;  %v1132_v54 = vmul.f32 %v11432_v28, %v1069_v25  ;;  %v1133_v9 = vmul.f32 %v11432_v28, %v1070_v14  ;;  %v1134_v23 = vmul.f32 %v11432_v28, %v1071_v12 }
 0x1f7   :  { %v1190_v41 = vadd.f32 %v11434_v47, %v1127_v52  ;;  %v1135_v53 = vmul.f32 %v11432_v28, %v1072_v15  ;;  %v1136_v47 = vmul.f32 %v11432_v28, %v1073_v17  ;;  %v1137_v13 = vmul.f32 %v11432_v28, %v1074_v35 }
 0x1f8   :  { %v1138_v38 = vmul.f32 %v11432_v28, %v1075_v6  ;;  %v1139_v25 = vmul.f32 %v11432_v28, %v1076_v51  ;;  %v1140_v14 = vmul.f32 %v11432_v28, %v1077_v19  ;;  %v1141_v12 = vmul.f32 %v11432_v28, %v1078_v56 }
 0x1f9   :  { %v7753_v52 = vmax.f32 %v1190_v41, 0.0  ;;  %v1142_v15 = vmul.f32 %v11432_v28, %v1079_v55  ;;  %v1143_v17 = vmul.f32 %v11432_v28, %v1080_v58  ;;  %v1144_v41 = vmul.f32 %v11432_v28, %v1081_v61 }
 0x1fa   :  { %v1145_v35 = vmul.f32 %v11432_v28, %v1082_v2  ;;  %v1146_v6 = vmul.f32 %v11432_v28, %v1083_v10  ;;  %v1147_v51 = vmul.f32 %v11432_v28, %v1084_v22  ;;  %v1148_v19 = vmul.f32 %v11432_v28, %v1085_v34 }
 0x1fb   :  { %11435 = vst [vmem:[#allocation19_spill] sm:$0xff] %v7753_v52  ;;  %2373 = vrot.lane.b32.xlu0 %v7753_v52, %s6516_s29  ;;  %1304 = vst.msk [vmem:[#allocation2 + $0x30] sm:$0xff] %vm701_vm5, %v7753_v52  ;;  %v1149_v56 = vmul.f32 %v11432_v28, %v1086_v45  ;;  %v1150_v55 = vmul.f32 %v11432_v28, %v1087_v60  ;;  %v1151_v58 = vmul.f32 %v11432_v28, %v1088_v7 }
 0x1fc   :  { %v1152_v61 = vmul.f32 %v11432_v28, %v1089_v18  ;;  %v1153_v2 = vmul.f32 %v11432_v28, %v1090_v30  ;;  %v1154_v10 = vmul.f32 %v11432_v28, %v1091_v43  ;;  %v1155_v22 = vmul.f32 %v11432_v28, %v1092_v59 }
 0x1fd   :  { %v1156_v52 = vmul.f32 %v11432_v28, %v1093_v8  ;;  %v1157_v34 = vmul.f32 %v11432_v28, %v1094_v20  ;;  %v1158_v45 = vmul.f32 %v11432_v28, %v1095_v36  ;;  %v1159_v60 = vmul.f32 %v11432_v28, %v1096_v48 }
 0x1fe   :  { %v1160_v7 = vmul.f32 %v11432_v28, %v1097_v29  ;;  %v1161_v18 = vmul.f32 %v11432_v28, %v1098_v31  ;;  %v1162_v30 = vmul.f32 %v11432_v28, %v1099_v26  ;;  %v1163_v43 = vmul.f32 %v11432_v28, %v1100_v42 }
 0x1ff   :  { %v1164_v59 = vmul.f32 %v11432_v28, %v1101_v63  ;;  %v1165_v8 = vmul.f32 %v11432_v28, %v1102_v21  ;;  %v1166_v20 = vmul.f32 %v11432_v28, %v1103_v33  ;;  %v1167_v36 = vmul.f32 %v11432_v28, %v1104_v46 }
 0x200   :  { %v1168_v48 = vmul.f32 %v11432_v28, %v1105_v62  ;;  %v1169_v29 = vmul.f32 %v11432_v28, %v1106_v16  ;;  %v1170_v31 = vmul.f32 %v11432_v28, %v1107_v32  ;;  %v1171_v26 = vmul.f32 %v11432_v28, %v1108_v0  ;;  %v11436_v0 = vld [vmem:[#allocation17_spill] sm:$0xff] }
 0x201   :  { %v1172_v42 = vmul.f32 %v11432_v28, %v1109_v50  ;;  %v1173_v63 = vmul.f32 %v11432_v28, %v1110_v4  ;;  %v1174_v21 = vmul.f32 %v11432_v28, %v1111_v5  ;;  %v1175_v33 = vmul.f32 %v11432_v28, %v1112_v44 }
 0x202   :  { %v1176_v46 = vmul.f32 %v11432_v28, %v1113_v27  ;;  %v1177_v62 = vmul.f32 %v11432_v28, %v1114_v49  ;;  %v1178_v16 = vmul.f32 %v11432_v28, %v1115_v57  ;;  %v1179_v32 = vmul.f32 %v11432_v28, %v1116_v37 }
 0x203   :  { %v1189_v50 = vadd.f32 %v11436_v0, %v1126_v3  ;;  %v1188_v4 = vadd.f32 %v11436_v0, %v1125_v40  ;;  %v1191_v5 = vadd.f32 %v11436_v0, %v1128_v39  ;;  %v1192_v44 = vadd.f32 %v11436_v0, %v1129_v11 }
 0x204   :  { %v1193_v27 = vadd.f32 %v11436_v0, %v1130_v24  ;;  %v1194_v49 = vadd.f32 %v11436_v0, %v1131_v1  ;;  %v1195_v57 = vadd.f32 %v11436_v0, %v1132_v54  ;;  %v1196_v28 = vadd.f32 %v11436_v0, %v1133_v9 }
 0x205   :  { %v7810_v37 = vmax.f32 %v1189_v50, 0.0  ;;  %v1197_v3 = vadd.f32 %v11436_v0, %v1134_v23  ;;  %v1198_v40 = vadd.f32 %v11436_v0, %v1135_v53  ;;  %v1199_v39 = vadd.f32 %v11436_v0, %v1136_v47 }
 0x206   :  { %v1200_v11 = vadd.f32 %v11436_v0, %v1137_v13  ;;  %v1201_v24 = vadd.f32 %v11436_v0, %v1138_v38  ;;  %v1202_v1 = vadd.f32 %v11436_v0, %v1139_v25  ;;  %v7819_v54 = vadd.f32 %v11436_v0, %v1140_v14 }
 0x207   :  { %2371 = vrot.lane.b32.xlu1 %v7810_v37, %s6516_s29  ;;  %v7824_v9 = vadd.f32 %v11436_v0, %v1141_v12  ;;  %v7827_v23 = vadd.f32 %v11436_v0, %v1142_v15  ;;  %v7830_v47 = vadd.f32 %v11436_v0, %v1143_v17  ;;  %v7833_v53 = vadd.f32 %v11436_v0, %v1144_v41 }
 0x208   :  { %1303 = vst.msk [vmem:[#allocation2 + $0x20] sm:$0xff] %vm701_vm5, %v7810_v37  ;;  %v7838_v13 = vadd.f32 %v11436_v0, %v1145_v35  ;;  %v7841_v38 = vadd.f32 %v11436_v0, %v1146_v6  ;;  %v7844_v25 = vadd.f32 %v11436_v0, %v1147_v51  ;;  %v7847_v14 = vadd.f32 %v11436_v0, %v1148_v19 }
 0x209   :  { %v7850_v12 = vadd.f32 %v11436_v0, %v1149_v56  ;;  %v7853_v15 = vadd.f32 %v11436_v0, %v1150_v55  ;;  %v7856_v17 = vadd.f32 %v11436_v0, %v1151_v58  ;;  %v7859_v41 = vadd.f32 %v11436_v0, %v1152_v61 }
 0x20a   :  { %v7862_v35 = vadd.f32 %v11436_v0, %v1153_v2  ;;  %v7865_v6 = vadd.f32 %v11436_v0, %v1154_v10  ;;  %v7868_v51 = vadd.f32 %v11436_v0, %v1155_v22  ;;  %v7871_v19 = vadd.f32 %v11436_v0, %v1156_v52 }
 0x20b   :  { %v7874_v56 = vadd.f32 %v11436_v0, %v1157_v34  ;;  %v7877_v55 = vadd.f32 %v11436_v0, %v1158_v45  ;;  %v7880_v58 = vadd.f32 %v11436_v0, %v1159_v60  ;;  %v7883_v61 = vadd.f32 %v11436_v0, %v1160_v7 }
 0x20c   :  { %v7886_v2 = vadd.f32 %v11436_v0, %v1161_v18  ;;  %v7889_v10 = vadd.f32 %v11436_v0, %v1162_v30  ;;  %v7892_v52 = vadd.f32 %v11436_v0, %v1163_v43  ;;  %v7895_v22 = vadd.f32 %v11436_v0, %v1164_v59 }
 0x20d   :  { %v7898_v34 = vadd.f32 %v11436_v0, %v1165_v8  ;;  %v7901_v45 = vadd.f32 %v11436_v0, %v1166_v20  ;;  %v7904_v60 = vadd.f32 %v11436_v0, %v1167_v36  ;;  %v7907_v7 = vadd.f32 %v11436_v0, %v1168_v48 }
 0x20e   :  { %v7910_v18 = vadd.f32 %v11436_v0, %v1169_v29  ;;  %v7913_v30 = vadd.f32 %v11436_v0, %v1170_v31  ;;  %v7916_v43 = vadd.f32 %v11436_v0, %v1171_v26  ;;  %v7919_v59 = vadd.f32 %v11436_v0, %v1172_v42 }
 0x20f   :  { %v7922_v8 = vadd.f32 %v11436_v0, %v1173_v63  ;;  %v7925_v20 = vadd.f32 %v11436_v0, %v1174_v21  ;;  %v7928_v36 = vadd.f32 %v11436_v0, %v1175_v33  ;;  %v7931_v48 = vadd.f32 %v11436_v0, %v1176_v46 }
 0x210   :  { %v7934_v29 = vadd.f32 %v11436_v0, %v1177_v62  ;;  %v7937_v31 = vadd.f32 %v11436_v0, %v1178_v16  ;;  %v7940_v26 = vadd.f32 %v11436_v0, %v1179_v32  ;;  %v7942_v42 = vmax.f32 %v1192_v44, 0.0 }
 0x211   :  { %v7944_v63 = vmax.f32 %v1188_v4, 0.0  ;;  %v7946_v21 = vmax.f32 %v1191_v5, 0.0  ;;  %v7948_v33 = vmax.f32 %v1193_v27, 0.0  ;;  %v7950_v50 = vmax.f32 %v1194_v49, 0.0 }
 0x212   :  { %2377 = vrot.lane.b32.xlu0 %v7942_v42, %s6516_s29  ;;  %v7954_v46 = vmax.f32 %v1195_v57, 0.0  ;;  %v7956_v62 = vmax.f32 %v1196_v28, 0.0  ;;  %v7958_v16 = vmax.f32 %v1197_v3, 0.0  ;;  %v7960_v32 = vmax.f32 %v1198_v40, 0.0  ;;  %1306 = vst.msk [vmem:[#allocation2 + $0x50] sm:$0xff] %vm701_vm5, %v7942_v42  ;;  %3344 = vst.msk [vmem:[#allocation2 + $0x18] sm:$0xff] %vm701_vm5, %v7942_v42 }
 0x213   :  { %v7966_v4 = vmax.f32 %v1199_v39, 0.0  ;;  %v7968_v5 = vmax.f32 %v1200_v11, 0.0  ;;  %v7970_v44 = vmax.f32 %v1201_v24, 0.0  ;;  %v7972_v27 = vmax.f32 %v1202_v1, 0.0  ;;  %2375 = vrot.lane.b32.xlu1 %v7946_v21, %s6516_s29  ;;  %1302 = vst.msk [vmem:[#allocation2 + $0x10] sm:$0xff] %vm701_vm5, %v7944_v63  ;;  %1305 = vst.msk [vmem:[#allocation2 + $0x40] sm:$0xff] %vm701_vm5, %v7946_v21 }
 0x214   :  { %1307 = vst.msk [vmem:[#allocation2 + $0x60] sm:$0xff] %vm701_vm5, %v7948_v33  ;;  %1308 = vst.msk [vmem:[#allocation2 + $0x70] sm:$0xff] %vm701_vm5, %v7950_v50  ;;  %v7991_v49 = vmax.f32 %v7819_v54, 0.0  ;;  %v7994_v57 = vmax.f32 %v7824_v9, 0.0  ;;  %v7997_v28 = vmax.f32 %v7827_v23, 0.0  ;;  %v8000_v3 = vmax.f32 %v7830_v47, 0.0 }
 0x215   :  { %3343 = vst.msk [vmem:[#allocation2 + $0x8] sm:$0xff] %vm701_vm5, %v7946_v21  ;;  %3345 = vst.msk [vmem:[#allocation2 + $0x28] sm:$0xff] %vm701_vm5, %v7948_v33  ;;  %v8019_v40 = vmax.f32 %v7833_v53, 0.0  ;;  %v8022_v39 = vmax.f32 %v7838_v13, 0.0  ;;  %v8025_v11 = vmax.f32 %v7841_v38, 0.0  ;;  %v8028_v24 = vmax.f32 %v7844_v25, 0.0 }
 0x216   :  { %3346 = vst.msk [vmem:[#allocation2 + $0x38] sm:$0xff] %vm701_vm5, %v7950_v50  ;;  %1309 = vst.msk [vmem:[#allocation2 + $0x80] sm:$0xff] %vm701_vm5, %v7954_v46  ;;  %v8047_v1 = vmax.f32 %v7847_v14, 0.0  ;;  %v8050_v54 = vmax.f32 %v7850_v12, 0.0  ;;  %v8053_v9 = vmax.f32 %v7853_v15, 0.0  ;;  %v8056_v23 = vmax.f32 %v7856_v17, 0.0  ;;  %2381 = vrot.lane.b32.xlu0 %v7950_v50, %s6516_s29 }
 0x217   :  { %1310 = vst.msk [vmem:[#allocation2 + $0x90] sm:$0xff] %vm701_vm5, %v7956_v62  ;;  %1311 = vst.msk [vmem:[#allocation2 + $0xa0] sm:$0xff] %vm701_vm5, %v7958_v16  ;;  %v8077_v47 = vmax.f32 %v7859_v41, 0.0  ;;  %v8080_v53 = vmax.f32 %v7862_v35, 0.0  ;;  %v8083_v13 = vmax.f32 %v7865_v6, 0.0  ;;  %v8086_v38 = vmax.f32 %v7868_v51, 0.0  ;;  %2379 = vrot.lane.b32.xlu1 %v7948_v33, %s6516_s29 }
 0x218   :  { %1312 = vst.msk [vmem:[#allocation2 + $0xb0] sm:$0xff] %vm701_vm5, %v7960_v32  ;;  %3347 = vst.msk [vmem:[#allocation2 + $0x48] sm:$0xff] %vm701_vm5, %v7954_v46  ;;  %v8107_v25 = vmax.f32 %v7871_v19, 0.0  ;;  %v8110_v14 = vmax.f32 %v7874_v56, 0.0  ;;  %v8113_v12 = vmax.f32 %v7877_v55, 0.0  ;;  %v8116_v15 = vmax.f32 %v7880_v58, 0.0 }
 0x219   :  { %3348 = vst.msk [vmem:[#allocation2 + $0x58] sm:$0xff] %vm701_vm5, %v7956_v62  ;;  %3349 = vst.msk [vmem:[#allocation2 + $0x68] sm:$0xff] %vm701_vm5, %v7958_v16  ;;  %v8135_v17 = vmax.f32 %v7883_v61, 0.0  ;;  %v8138_v41 = vmax.f32 %v7886_v2, 0.0  ;;  %v8141_v35 = vmax.f32 %v7889_v10, 0.0  ;;  %v8144_v6 = vmax.f32 %v7892_v52, 0.0 }
 0x21a   :  { %3350 = vst.msk [vmem:[#allocation2 + $0x78] sm:$0xff] %vm701_vm5, %v7960_v32  ;;  %1313 = vst.msk [vmem:[#allocation2 + $0xc0] sm:$0xff] %vm701_vm5, %v7966_v4  ;;  %v8163_v51 = vmax.f32 %v7895_v22, 0.0  ;;  %v8166_v19 = vmax.f32 %v7898_v34, 0.0  ;;  %v8169_v56 = vmax.f32 %v7901_v45, 0.0  ;;  %v8172_v55 = vmax.f32 %v7904_v60, 0.0  ;;  %2385 = vrot.lane.b32.xlu0 %v7956_v62, %s6516_s29 }
 0x21b   :  { %1314 = vst.msk [vmem:[#allocation2 + $0xd0] sm:$0xff] %vm701_vm5, %v7968_v5  ;;  %1315 = vst.msk [vmem:[#allocation2 + $0xe0] sm:$0xff] %vm701_vm5, %v7970_v44  ;;  %v8193_v61 = vmax.f32 %v7907_v7, 0.0  ;;  %v8196_v2 = vmax.f32 %v7910_v18, 0.0  ;;  %v8199_v10 = vmax.f32 %v7913_v30, 0.0  ;;  %v8202_v52 = vmax.f32 %v7916_v43, 0.0  ;;  %2383 = vrot.lane.b32.xlu1 %v7954_v46, %s6516_s29 }
 0x21c   :  { %1316 = vst.msk [vmem:[#allocation2 + $0xf0] sm:$0xff] %vm701_vm5, %v7972_v27  ;;  %3351 = vst.msk [vmem:[#allocation2 + $0x88] sm:$0xff] %vm701_vm5, %v7966_v4  ;;  %v3397_v58 = vld [vmem:[#allocation2 + $0x8] sm:$0xff]  ;;  %v8224_v22 = vmax.f32 %v7919_v59, 0.0  ;;  %v8227_v34 = vmax.f32 %v7922_v8, 0.0  ;;  %v8230_v45 = vmax.f32 %v7925_v20, 0.0 }
 0x21d   :  { %3352 = vst.msk [vmem:[#allocation2 + $0x98] sm:$0xff] %vm701_vm5, %v7968_v5  ;;  %3353 = vst.msk [vmem:[#allocation2 + $0xa8] sm:$0xff] %vm701_vm5, %v7970_v44  ;;  %5700 = vmatprep.mubr.msk.f32.mxu1 %vm701_vm5, %v3397_v58  ;;  %v8233_v60 = vmax.f32 %v7928_v36, 0.0  ;;  %v8252_v7 = vmax.f32 %v7931_v48, 0.0  ;;  %v8255_v18 = vmax.f32 %v7934_v29, 0.0  ;;  %v8258_v30 = vmax.f32 %v7937_v31, 0.0 }
 0x21e   :  { %3354 = vst.msk [vmem:[#allocation2 + $0xb8] sm:$0xff] %vm701_vm5, %v7972_v27  ;;  %1317 = vst.msk [vmem:[#allocation2 + $0x100] sm:$0xff] %vm701_vm5, %v7991_v49  ;;  %v8261_v43 = vmax.f32 %v7940_v26, 0.0  ;;  %2389 = vrot.lane.b32.xlu0 %v7960_v32, %s6516_s29  ;;  %v11465_v59 = vld [vmem:[#allocation18_spill] sm:$0xff]  ;;  %v1409_v20 = vrot.slane %v7944_v63, 1  ;;  %v2050_v36 = vrot.slane %v7944_v63, 7 }
 0x21f   :  { %1318 = vst.msk [vmem:[#allocation2 + $0x110] sm:$0xff] %vm701_vm5, %v7994_v57  ;;  %1319 = vst.msk [vmem:[#allocation2 + $0x120] sm:$0xff] %vm701_vm5, %v7997_v28  ;;  %v1187_v8 = vadd.f32 %v11436_v0, %v11465_v59  ;;  %v2051_v48 = vrot.slane %v7810_v37, 7  ;;  %2387 = vrot.lane.b32.xlu1 %v7958_v16, %s6516_s29  ;;  %v1729_v0 = vrot.slane %v7944_v63, 2  ;;  %v1411_v29 = vrot.slane %v7810_v37, 1  ;;  %v11466_v31 = vld [vmem:[#allocation19_spill] sm:$0xff] }
 0x220   :  { %1320 = vst.msk [vmem:[#allocation2 + $0x130] sm:$0xff] %vm701_vm5, %v8000_v3  ;;  %3355 = vst.msk [vmem:[#allocation2 + $0xc8] sm:$0xff] %vm701_vm5, %v7991_v49  ;;  %v1413_v26 = vrot.slane %v11466_v31, 1  ;;  %v2805_v58 = vrot.slane %v11466_v31, 6  ;;  %v2053_v63 = vrot.slane %v11466_v31, 7 }
 0x221   :  { %3356 = vst.msk [vmem:[#allocation2 + $0xd8] sm:$0xff] %vm701_vm5, %v7994_v57  ;;  %3357 = vst.msk [vmem:[#allocation2 + $0xe8] sm:$0xff] %vm701_vm5, %v7997_v28  ;;  %v1244_v59 = vmax.f32 %v1187_v8, 0.0 }
 0x222   :  { %3358 = vst.msk [vmem:[#allocation2 + $0xf8] sm:$0xff] %vm701_vm5, %v8000_v3  ;;  %11437 = vst [vmem:[#allocation20_spill] sm:$0xff] %v8077_v47  ;;  %2393 = vrot.lane.b32.xlu0 %v7968_v5, %s6516_s29 }
 0x223   :  { %11438 = vst [vmem:[#allocation21_spill] sm:$0xff] %v8080_v53  ;;  %11439 = vst [vmem:[#allocation22_spill] sm:$0xff] %v8083_v13  ;;  %v1408_v8 = vrot.slane %v1244_v59, 1  ;;  %2391 = vrot.lane.b32.xlu1 %v7966_v4, %s6516_s29 }
 0x224   :  { %11440 = vst [vmem:[#allocation23_spill] sm:$0xff] %v8086_v38  ;;  %1321 = vst.msk [vmem:[#allocation2 + $0x140] sm:$0xff] %vm701_vm5, %v8019_v40 }
 0x225   :  { %1322 = vst.msk [vmem:[#allocation2 + $0x150] sm:$0xff] %vm701_vm5, %v8022_v39  ;;  %1323 = vst.msk [vmem:[#allocation2 + $0x160] sm:$0xff] %vm701_vm5, %v8025_v11 }
 0x226   :  { %1324 = vst.msk [vmem:[#allocation2 + $0x170] sm:$0xff] %vm701_vm5, %v8028_v24  ;;  %3359 = vst.msk [vmem:[#allocation2 + $0x108] sm:$0xff] %vm701_vm5, %v8019_v40  ;;  %2397 = vrot.lane.b32.xlu0 %v7972_v27, %s6516_s29 }
 0x227   :  { %3360 = vst.msk [vmem:[#allocation2 + $0x118] sm:$0xff] %vm701_vm5, %v8022_v39  ;;  %3361 = vst.msk [vmem:[#allocation2 + $0x128] sm:$0xff] %vm701_vm5, %v8025_v11  ;;  %2395 = vrot.lane.b32.xlu1 %v7970_v44, %s6516_s29 }
 0x228   :  { %3362 = vst.msk [vmem:[#allocation2 + $0x138] sm:$0xff] %vm701_vm5, %v8028_v24  ;;  %11441 = vst [vmem:[#allocation24_spill] sm:$0xff] %v8107_v25 }
 0x229   :  { %11442 = vst [vmem:[#allocation25_spill] sm:$0xff] %v8110_v14  ;;  %11443 = vst [vmem:[#allocation26_spill] sm:$0xff] %v8113_v12 }
 0x22a   :  { %11444 = vst [vmem:[#allocation27_spill] sm:$0xff] %v8116_v15  ;;  %1325 = vst.msk [vmem:[#allocation2 + $0x180] sm:$0xff] %vm701_vm5, %v8047_v1  ;;  %2401 = vrot.lane.b32.xlu0 %v7994_v57, %s6516_s29 }
 0x22b   :  { %1326 = vst.msk [vmem:[#allocation2 + $0x190] sm:$0xff] %vm701_vm5, %v8050_v54  ;;  %1327 = vst.msk [vmem:[#allocation2 + $0x1a0] sm:$0xff] %vm701_vm5, %v8053_v9  ;;  %2399 = vrot.lane.b32.xlu1 %v7991_v49, %s6516_s29 }
 0x22c   :  { %1328 = vst.msk [vmem:[#allocation2 + $0x1b0] sm:$0xff] %vm701_vm5, %v8056_v23  ;;  %3363 = vst.msk [vmem:[#allocation2 + $0x148] sm:$0xff] %vm701_vm5, %v8047_v1 }
 0x22d   :  { %3364 = vst.msk [vmem:[#allocation2 + $0x158] sm:$0xff] %vm701_vm5, %v8050_v54  ;;  %3365 = vst.msk [vmem:[#allocation2 + $0x168] sm:$0xff] %vm701_vm5, %v8053_v9 }
 0x22e   :  { %3366 = vst.msk [vmem:[#allocation2 + $0x178] sm:$0xff] %vm701_vm5, %v8056_v23  ;;  %11445 = vst [vmem:[#allocation28_spill] sm:$0xff] %v8135_v17  ;;  %2405 = vrot.lane.b32.xlu0 %v8000_v3, %s6516_s29 }
 0x22f   :  { %11446 = vst [vmem:[#allocation15_spill] sm:$0xff] %v8138_v41  ;;  %11447 = vst [vmem:[#allocation17_spill] sm:$0xff] %v8141_v35  ;;  %2403 = vrot.lane.b32.xlu1 %v7997_v28, %s6516_s29 }
 0x230   :  { %11448 = vst [vmem:[#allocation29_spill] sm:$0xff] %v8144_v6  ;;  %1329 = vst.msk [vmem:[#allocation2 + $0x1c0] sm:$0xff] %vm701_vm5, %v8077_v47 }
 0x231   :  { %1330 = vst.msk [vmem:[#allocation2 + $0x1d0] sm:$0xff] %vm701_vm5, %v8080_v53  ;;  %1331 = vst.msk [vmem:[#allocation2 + $0x1e0] sm:$0xff] %vm701_vm5, %v8083_v13 }
 0x232   :  { %1332 = vst.msk [vmem:[#allocation2 + $0x1f0] sm:$0xff] %vm701_vm5, %v8086_v38  ;;  %3367 = vst.msk [vmem:[#allocation2 + $0x188] sm:$0xff] %vm701_vm5, %v8077_v47  ;;  %2409 = vrot.lane.b32.xlu0 %v8022_v39, %s6516_s29 }
 0x233   :  { %3368 = vst.msk [vmem:[#allocation2 + $0x198] sm:$0xff] %vm701_vm5, %v8080_v53  ;;  %3369 = vst.msk [vmem:[#allocation2 + $0x1a8] sm:$0xff] %vm701_vm5, %v8083_v13  ;;  %2407 = vrot.lane.b32.xlu1 %v8019_v40, %s6516_s29 }
 0x234   :  { %3370 = vst.msk [vmem:[#allocation2 + $0x1b8] sm:$0xff] %vm701_vm5, %v8086_v38  ;;  %11449 = vst [vmem:[#allocation30_spill] sm:$0xff] %v8163_v51 }
 0x235   :  { %11450 = vst [vmem:[#allocation31_spill] sm:$0xff] %v8166_v19  ;;  %11451 = vst [vmem:[#allocation32_spill] sm:$0xff] %v8169_v56 }
 0x236   :  { %11452 = vst [vmem:[#allocation33_spill] sm:$0xff] %v8172_v55  ;;  %1333 = vst.msk [vmem:[#allocation2 + $0x200] sm:$0xff] %vm701_vm5, %v8107_v25  ;;  %2413 = vrot.lane.b32.xlu0 %v8028_v24, %s6516_s29 }
 0x237   :  { %1334 = vst.msk [vmem:[#allocation2 + $0x210] sm:$0xff] %vm701_vm5, %v8110_v14  ;;  %1335 = vst.msk [vmem:[#allocation2 + $0x220] sm:$0xff] %vm701_vm5, %v8113_v12  ;;  %2411 = vrot.lane.b32.xlu1 %v8025_v11, %s6516_s29 }
 0x238   :  { %1336 = vst.msk [vmem:[#allocation2 + $0x230] sm:$0xff] %vm701_vm5, %v8116_v15  ;;  %3371 = vst.msk [vmem:[#allocation2 + $0x1c8] sm:$0xff] %vm701_vm5, %v8107_v25 }
 0x239   :  { %3372 = vst.msk [vmem:[#allocation2 + $0x1d8] sm:$0xff] %vm701_vm5, %v8110_v14  ;;  %3373 = vst.msk [vmem:[#allocation2 + $0x1e8] sm:$0xff] %vm701_vm5, %v8113_v12 }
 0x23a   :  { %3374 = vst.msk [vmem:[#allocation2 + $0x1f8] sm:$0xff] %vm701_vm5, %v8116_v15  ;;  %11453 = vst [vmem:[#allocation34_spill] sm:$0xff] %v8193_v61  ;;  %2417 = vrot.lane.b32.xlu0 %v8050_v54, %s6516_s29 }
 0x23b   :  { %11454 = vst [vmem:[#allocation35_spill] sm:$0xff] %v8196_v2  ;;  %11455 = vst [vmem:[#allocation36_spill] sm:$0xff] %v8199_v10  ;;  %2415 = vrot.lane.b32.xlu1 %v8047_v1, %s6516_s29 }
 0x23c   :  { %11456 = vst [vmem:[#allocation37_spill] sm:$0xff] %v8202_v52  ;;  %1337 = vst.msk [vmem:[#allocation2 + $0x240] sm:$0xff] %vm701_vm5, %v8135_v17 }
 0x23d   :  { %1338 = vst.msk [vmem:[#allocation2 + $0x250] sm:$0xff] %vm701_vm5, %v8138_v41  ;;  %1339 = vst.msk [vmem:[#allocation2 + $0x260] sm:$0xff] %vm701_vm5, %v8141_v35 }
 0x23e   :  { %1340 = vst.msk [vmem:[#allocation2 + $0x270] sm:$0xff] %vm701_vm5, %v8144_v6  ;;  %3375 = vst.msk [vmem:[#allocation2 + $0x208] sm:$0xff] %vm701_vm5, %v8135_v17  ;;  %2421 = vrot.lane.b32.xlu0 %v8056_v23, %s6516_s29 }
 0x23f   :  { %3376 = vst.msk [vmem:[#allocation2 + $0x218] sm:$0xff] %vm701_vm5, %v8138_v41  ;;  %3377 = vst.msk [vmem:[#allocation2 + $0x228] sm:$0xff] %vm701_vm5, %v8141_v35  ;;  %v1739_v35 = vrot.slane %v7948_v33, 2  ;;  %2419 = vrot.lane.b32.xlu1 %v8053_v9, %s6516_s29 }
 0x240   :  { %3378 = vst.msk [vmem:[#allocation2 + $0x238] sm:$0xff] %vm701_vm5, %v8144_v6  ;;  %11457 = vst [vmem:[#allocation38_spill] sm:$0xff] %v8224_v22  ;;  %v1421_v6 = vrot.slane %v7950_v50, 1 }
 0x241   :  { %11458 = vst [vmem:[#allocation39_spill] sm:$0xff] %v8227_v34  ;;  %11459 = vst [vmem:[#allocation40_spill] sm:$0xff] %v8230_v45 }
 0x242   :  { %11460 = vst [vmem:[#allocation41_spill] sm:$0xff] %v8233_v60  ;;  %1341 = vst.msk [vmem:[#allocation2 + $0x280] sm:$0xff] %vm701_vm5, %v8163_v51  ;;  %2425 = vrot.lane.b32.xlu0 %v8080_v53, %s6516_s29  ;;  %v2840_v53 = vrot.slane %v8022_v39, 6 }
 0x243   :  { %1342 = vst.msk [vmem:[#allocation2 + $0x290] sm:$0xff] %vm701_vm5, %v8166_v19  ;;  %1343 = vst.msk [vmem:[#allocation2 + $0x2a0] sm:$0xff] %vm701_vm5, %v8169_v56  ;;  %2423 = vrot.lane.b32.xlu1 %v8077_v47, %s6516_s29 }
 0x244   :  { %1344 = vst.msk [vmem:[#allocation2 + $0x2b0] sm:$0xff] %vm701_vm5, %v8172_v55  ;;  %3379 = vst.msk [vmem:[#allocation2 + $0x248] sm:$0xff] %vm701_vm5, %v8163_v51  ;;  %v2061_v51 = vrot.slane %v7950_v50, 7 }
 0x245   :  { %3380 = vst.msk [vmem:[#allocation2 + $0x258] sm:$0xff] %vm701_vm5, %v8166_v19  ;;  %3381 = vst.msk [vmem:[#allocation2 + $0x268] sm:$0xff] %vm701_vm5, %v8169_v56  ;;  %v1419_v56 = vrot.slane %v7948_v33, 1  ;;  %v2812_v19 = vrot.slane %v7950_v50, 6 }
 0x246   :  { %3382 = vst.msk [vmem:[#allocation2 + $0x278] sm:$0xff] %vm701_vm5, %v8172_v55  ;;  %11461 = vst [vmem:[#allocation42_spill] sm:$0xff] %v8252_v7  ;;  %2429 = vrot.lane.b32.xlu0 %v8086_v38, %s6516_s29  ;;  %v1769_v38 = vrot.slane %v8022_v39, 2 }
 0x247   :  { %11462 = vst [vmem:[#allocation43_spill] sm:$0xff] %v8255_v18  ;;  %11463 = vst [vmem:[#allocation44_spill] sm:$0xff] %v8258_v30  ;;  %2427 = vrot.lane.b32.xlu1 %v8083_v13, %s6516_s29 }
 0x248   :  { %11464 = vst [vmem:[#allocation45_spill] sm:$0xff] %v8261_v43  ;;  %1345 = vst.msk [vmem:[#allocation2 + $0x2c0] sm:$0xff] %vm701_vm5, %v8193_v61 }
 0x249   :  { %1346 = vst.msk [vmem:[#allocation2 + $0x2d0] sm:$0xff] %vm701_vm5, %v8196_v2  ;;  %1347 = vst.msk [vmem:[#allocation2 + $0x2e0] sm:$0xff] %vm701_vm5, %v8199_v10 }
 0x24a   :  { %1348 = vst.msk [vmem:[#allocation2 + $0x2f0] sm:$0xff] %vm701_vm5, %v8202_v52  ;;  %3383 = vst.msk [vmem:[#allocation2 + $0x288] sm:$0xff] %vm701_vm5, %v8193_v61  ;;  %v2057_v61 = vrot.slane %v7942_v42, 7  ;;  %2433 = vrot.lane.b32.xlu0 %v8110_v14, %s6516_s29 }
 0x24b   :  { %3384 = vst.msk [vmem:[#allocation2 + $0x298] sm:$0xff] %vm701_vm5, %v8196_v2  ;;  %3385 = vst.msk [vmem:[#allocation2 + $0x2a8] sm:$0xff] %vm701_vm5, %v8199_v10  ;;  %v1733_v10 = vrot.slane %v11466_v31, 2  ;;  %v2808_v2 = vrot.slane %v7942_v42, 6  ;;  %v2810_v31 = vrot.slane %v7948_v33, 6  ;;  %2431 = vrot.lane.b32.xlu1 %v8107_v25, %s6516_s29 }
 0x24c   :  { %3386 = vst.msk [vmem:[#allocation2 + $0x2b8] sm:$0xff] %vm701_vm5, %v8202_v52  ;;  %1349 = vst.msk [vmem:[#allocation2 + $0x300] sm:$0xff] %vm701_vm5, %v8224_v22  ;;  %v1415_v52 = vrot.slane %v7946_v21, 1 }
 0x24d   :  { %1350 = vst.msk [vmem:[#allocation2 + $0x310] sm:$0xff] %vm701_vm5, %v8227_v34  ;;  %1351 = vst.msk [vmem:[#allocation2 + $0x320] sm:$0xff] %vm701_vm5, %v8230_v45 }
 0x24e   :  { %1352 = vst.msk [vmem:[#allocation2 + $0x330] sm:$0xff] %vm701_vm5, %v8233_v60  ;;  %3387 = vst.msk [vmem:[#allocation2 + $0x2c8] sm:$0xff] %vm701_vm5, %v8224_v22  ;;  %v8346_v22 = vsel %vm2049_vm7, %v2051_v48, %v2053_v63  ;;  %v8359_v55 = vsel %vm1407_vm8, %v1413_v26, %v1415_v52  ;;  %2437 = vrot.lane.b32.xlu0 %v8116_v15, %s6516_s29  ;;  %v2097_v15 = vrot.slane %v8050_v54, 7 }
 0x24f   :  { %3388 = vst.msk [vmem:[#allocation2 + $0x2d8] sm:$0xff] %vm701_vm5, %v8227_v34  ;;  %3389 = vst.msk [vmem:[#allocation2 + $0x2e8] sm:$0xff] %vm701_vm5, %v8230_v45  ;;  %v2055_v45 = vrot.slane %v7946_v21, 7  ;;  %2435 = vrot.lane.b32.xlu1 %v8113_v12, %s6516_s29 }
 0x250   :  { %3390 = vst.msk [vmem:[#allocation2 + $0x2f8] sm:$0xff] %vm701_vm5, %v8233_v60  ;;  %3391 = vst.msk [vmem:[#allocation2 + $0x308] sm:$0xff] %vm701_vm5, %v8252_v7  ;;  %v8327_v60 = vsel %vm1407_vm8, %v1409_v20, %v1411_v29 }
 0x251   :  { %1353 = vst.msk [vmem:[#allocation2 + $0x340] sm:$0x3] %vm813_vm6, %v8252_v7  ;;  %v1731_v7 = vrot.slane %v7810_v37, 2 }
 0x252   :  { %3392 = vst.msk [vmem:[#allocation2 + $0x318] sm:$0xff] %vm701_vm5, %v8255_v18  ;;  %3393 = vst.msk [vmem:[#allocation2 + $0x328] sm:$0xff] %vm701_vm5, %v8258_v30  ;;  %v8319_v18 = vsel %vm2049_vm7, %v2050_v36, %v2051_v48  ;;  %v2806_v30 = vrot.slane %v7946_v21, 6  ;;  %v1728_v36 = vrot.slane %v1244_v59, 2 }
 0x253   :  { %3394 = vst.msk [vmem:[#allocation2 + $0x338] sm:$0xff] %vm701_vm5, %v8261_v43  ;;  %v8324_v43 = vsel %vm1407_vm8, %v1411_v29, %v1413_v26  ;;  %1301 = vst.msk [vmem:[#allocation2] sm:$0xff] %vm701_vm5, %v1244_v59  ;;  %v8338_v37 = vsel %vm1727_vm9, %v1729_v0, %v1731_v7  ;;  %v8343_v29 = vsel %vm2049_vm7, %v2053_v63, %v2055_v45  ;;  %v1417_v63 = vrot.slane %v7942_v42, 1 }
 0x254   :  { %v8335_v34 = vsel %vm2804_vm10, %v2805_v58, %v2806_v30  ;;  %v8351_v59 = vsel %vm1407_vm8, %v1408_v8, %v1409_v20  ;;  %v8354_v58 = vsel %vm1727_vm9, %v1728_v36, %v1729_v0  ;;  %v8362_v48 = vsel %vm1727_vm9, %v1731_v7, %v1733_v10  ;;  %2439 = vrot.lane.b32.xlu1 %v8135_v17, %s6516_s29 }
 0x255   :  { %v8369_v20 = vsel %vm2804_vm10, %v2806_v30, %v2808_v2  ;;  %v8372_v0 = vsel %vm2049_vm7, %v2055_v45, %v2057_v61  ;;  %v1735_v8 = vrot.slane %v7946_v21, 2  ;;  %v2059_v26 = vrot.slane %v7948_v33, 7  ;;  %1513 = vrot.lane.b32.xlu0 %v8351_v59, %s6517_s22 }
 0x256   :  { %v8379_v7 = vsel %vm1407_vm8, %v1415_v52, %v1417_v63  ;;  %v8382_v36 = vsel %vm2804_vm10, %v2808_v2, %v2810_v31  ;;  %v1737_v30 = vrot.slane %v7942_v42, 2  ;;  %v8395_v52 = vsel %vm1407_vm8, %v1417_v63, %v1419_v56 }
 0x257   :  { %v8387_v45 = vsel %vm1727_vm9, %v1733_v10, %v1735_v8  ;;  %v8390_v21 = vsel %vm2049_vm7, %v2057_v61, %v2059_v26  ;;  %v2814_v42 = vrot.slane %v7954_v46, 6  ;;  %v8405_v61 = vsel %vm2804_vm10, %v2810_v31, %v2812_v19 }
 0x258   :  { %v8398_v2 = vsel %vm1727_vm9, %v1735_v8, %v1737_v30  ;;  %11468 = vst [vmem:[#allocation19_spill] sm:$0xff] %v8405_v61  ;;  %v8408_v10 = vsel %vm2049_vm7, %v2059_v26, %v2061_v51  ;;  %v2063_v63 = vrot.slane %v7954_v46, 7  ;;  %v8415_v8 = vsel %vm1407_vm8, %v1419_v56, %v1421_v6  ;;  %2157 = vrot.lane.b32.xlu1 %v8319_v18, %s6519_s30  ;;  %v3519_v18 = vld [vmem:[%s11257_s4 + $0x88] sm:$0xff] }
 0x259   :  { %11467 = vst [vmem:[#allocation18_spill] sm:$0xff] %v8398_v2  ;;  %11469 = vst [vmem:[#allocation46_spill] sm:$0xff] %v8408_v10  ;;  %v8418_v41 = vsel %vm2804_vm10, %v2812_v19, %v2814_v42  ;;  %v1423_v2 = vrot.slane %v7954_v46, 1  ;;  %v1741_v31 = vrot.slane %v7950_v50, 2  ;;  %v8423_v26 = vsel %vm1727_vm9, %v1737_v30, %v1739_v35  ;;  %1833 = vrot.lane.b32.xlu0 %v8354_v58, %s6518_s27 }
 0x25a   :  { %11470 = vst [vmem:[#allocation47_spill] sm:$0xff] %v8418_v41  ;;  %v8426_v33 = vsel %vm2049_vm7, %v2061_v51, %v2063_v63  ;;  %v2816_v10 = vrot.slane %v7956_v62, 6  ;;  %v2065_v61 = vrot.slane %v7956_v62, 7  ;;  %v1425_v41 = vrot.slane %v7956_v62, 1 }
 0x25b   :  { %11471 = vst [vmem:[#allocation48_spill] sm:$0xff] %v8426_v33  ;;  %v8431_v56 = vsel %vm1407_vm8, %v1421_v6, %v1423_v2  ;;  %v8434_v19 = vsel %vm1727_vm9, %v1739_v35, %v1741_v31  ;;  %v2818_v50 = vrot.slane %v7958_v16, 6  ;;  %v1743_v33 = vrot.slane %v7954_v46, 2 }
 0x25c   :  { %11472 = vst [vmem:[#allocation49_spill] sm:$0xff] %v8431_v56  ;;  %11473 = vst [vmem:[#allocation50_spill] sm:$0xff] %v8434_v19  ;;  %v8441_v51 = vsel %vm2804_vm10, %v2814_v42, %v2816_v10  ;;  %v8444_v30 = vsel %vm2049_vm7, %v2063_v63, %v2065_v61  ;;  %v2067_v6 = vrot.slane %v7958_v16, 7  ;;  %v8451_v35 = vsel %vm1407_vm8, %v1423_v2, %v1425_v41 }
 0x25d   :  { %11474 = vst [vmem:[#allocation51_spill] sm:$0xff] %v8441_v51  ;;  %11475 = vst [vmem:[#allocation52_spill] sm:$0xff] %v8444_v30  ;;  %v8454_v19 = vsel %vm2804_vm10, %v2816_v10, %v2818_v50  ;;  %v1427_v56 = vrot.slane %v7958_v16, 1  ;;  %v1745_v42 = vrot.slane %v7956_v62, 2  ;;  %v8459_v63 = vsel %vm1727_vm9, %v1741_v31, %v1743_v33  ;;  %1515 = vrot.lane.b32.xlu0 %v8327_v60, %s6517_s22 }
 0x25e   :  { %11476 = vst [vmem:[#allocation53_spill] sm:$0xff] %v8454_v19  ;;  %v8462_v46 = vsel %vm2049_vm7, %v2065_v61, %v2067_v6  ;;  %v2820_v30 = vrot.slane %v7960_v32, 6  ;;  %v2069_v51 = vrot.slane %v7960_v32, 7  ;;  %v1429_v19 = vrot.slane %v7960_v32, 1  ;;  %2589 = vrot.lane.b32.xlu1 %v8324_v43, %s6520_s20 }
 0x25f   :  { %11477 = vst [vmem:[#allocation54_spill] sm:$0xff] %v8462_v46  ;;  %v8467_v2 = vsel %vm1407_vm8, %v1425_v41, %v1427_v56  ;;  %v8470_v10 = vsel %vm1727_vm9, %v1743_v33, %v1745_v42  ;;  %v2822_v62 = vrot.slane %v7966_v4, 6  ;;  %v1747_v46 = vrot.slane %v7958_v16, 2 }
 0x260   :  { %11478 = vst [vmem:[#allocation55_spill] sm:$0xff] %v8467_v2  ;;  %11479 = vst [vmem:[#allocation56_spill] sm:$0xff] %v8470_v10  ;;  %v8477_v61 = vsel %vm2804_vm10, %v2818_v50, %v2820_v30  ;;  %v8480_v31 = vsel %vm2049_vm7, %v2067_v6, %v2069_v51  ;;  %v2071_v41 = vrot.slane %v7966_v4, 7  ;;  %v8487_v33 = vsel %vm1407_vm8, %v1427_v56, %v1429_v19  ;;  %v11522_v60 = vld [vmem:[#allocation18_spill] sm:$0xff] }
 0x261   :  { %11480 = vst [vmem:[#allocation57_spill] sm:$0xff] %v8477_v61  ;;  %11481 = vst [vmem:[#allocation58_spill] sm:$0xff] %v8480_v31  ;;  %v8490_v10 = vsel %vm2804_vm10, %v2820_v30, %v2822_v62  ;;  %v1431_v2 = vrot.slane %v7966_v4, 1  ;;  %v1749_v50 = vrot.slane %v7960_v32, 2  ;;  %v8495_v6 = vsel %vm1727_vm9, %v1745_v42, %v1747_v46  ;;  %1835 = vrot.lane.b32.xlu0 %v8338_v37, %s6518_s27 }
 0x262   :  { %11482 = vst [vmem:[#allocation59_spill] sm:$0xff] %v8490_v10  ;;  %v8498_v16 = vsel %vm2049_vm7, %v2069_v51, %v2071_v41  ;;  %v2824_v31 = vrot.slane %v7968_v5, 6  ;;  %v2073_v61 = vrot.slane %v7968_v5, 7  ;;  %v1433_v10 = vrot.slane %v7968_v5, 1  ;;  %2910 = vrot.lane.b32.xlu1 %v8335_v34, %s6521_s21  ;;  %v11521_v34 = vld [vmem:[#allocation19_spill] sm:$0xff] }
 0x263   :  { %11483 = vst [vmem:[#allocation60_spill] sm:$0xff] %v8498_v16  ;;  %v8503_v56 = vsel %vm1407_vm8, %v1429_v19, %v1431_v2  ;;  %v8506_v30 = vsel %vm1727_vm9, %v1747_v46, %v1749_v50  ;;  %v2826_v32 = vrot.slane %v7970_v44, 6  ;;  %v1751_v16 = vrot.slane %v7966_v4, 2 }
 0x264   :  { %11484 = vst [vmem:[#allocation61_spill] sm:$0xff] %v8503_v56  ;;  %11485 = vst [vmem:[#allocation62_spill] sm:$0xff] %v8506_v30  ;;  %v8513_v51 = vsel %vm2804_vm10, %v2822_v62, %v2824_v31  ;;  %v8516_v42 = vsel %vm2049_vm7, %v2071_v41, %v2073_v61  ;;  %v2075_v19 = vrot.slane %v7970_v44, 7  ;;  %v8523_v46 = vsel %vm1407_vm8, %v1431_v2, %v1433_v10  ;;  %v3502_v2 = vld [vmem:[%s11257_s4] sm:$0xff] }
 0x265   :  { %11486 = vst [vmem:[#allocation63_spill] sm:$0xff] %v8513_v51  ;;  %11487 = vst [vmem:[#allocation64_spill] sm:$0xff] %v8516_v42  ;;  %v8526_v30 = vsel %vm2804_vm10, %v2824_v31, %v2826_v32  ;;  %v1435_v56 = vrot.slane %v7970_v44, 1  ;;  %v1753_v62 = vrot.slane %v7968_v5, 2  ;;  %v8531_v41 = vsel %vm1727_vm9, %v1749_v50, %v1751_v16  ;;  %v3503_v31 = vld [vmem:[%s11257_s4 + $0x8] sm:$0xff]  ;;  %2159 = vrot.lane.b32.xlu0 %v8346_v22, %s6519_s30 }
 0x266   :  { %11488 = vst [vmem:[#allocation65_spill] sm:$0xff] %v8523_v46  ;;  %11489 = vst [vmem:[#allocation66_spill] sm:$0xff] %v8526_v30  ;;  %v8534_v4 = vsel %vm2049_vm7, %v2073_v61, %v2075_v19  ;;  %v2828_v42 = vrot.slane %v7972_v27, 6  ;;  %v2077_v51 = vrot.slane %v7972_v27, 7  ;;  %v1437_v61 = vrot.slane %v7972_v27, 1  ;;  %3129 = vrot.lane.b32.xlu1 %v8343_v29, %s6522_s23 }
 0x267   :  { %11490 = vst [vmem:[#allocation67_spill] sm:$0xff] %v8531_v41  ;;  %11491 = vst [vmem:[#allocation68_spill] sm:$0xff] %v8534_v4  ;;  %v8545_v5 = vsel %vm1407_vm8, %v1433_v10, %v1435_v56  ;;  %v8548_v50 = vsel %vm1727_vm9, %v1751_v16, %v1753_v62  ;;  %v2830_v4 = vrot.slane %v7991_v49, 6  ;;  %v6299_v30 = vpack.c.bf16 %v3503_v31, %v3502_v2 }
 0x268   :  { %11492 = vst [vmem:[#allocation69_spill] sm:$0xff] %v8545_v5  ;;  %11493 = vst [vmem:[#allocation70_spill] sm:$0xff] %v8548_v50  ;;  %v8555_v41 = vsel %vm2804_vm10, %v2826_v32, %v2828_v42  ;;  %v8558_v46 = vsel %vm2049_vm7, %v2075_v19, %v2077_v51  ;;  %v1755_v10 = vrot.slane %v7970_v44, 2  ;;  %v8564_v16 = vsel %vm1407_vm8, %v1435_v56, %v1437_v61  ;;  %v3504_v56 = vld [vmem:[%s11257_s4 + $0x10] sm:$0xff]  ;;  %v11540_v17 = vld [vmem:[#allocation58_spill] sm:$0xff] }
 0x269   :  { %11494 = vst [vmem:[#allocation71_spill] sm:$0xff] %v8555_v41  ;;  %11495 = vst [vmem:[#allocation72_spill] sm:$0xff] %v8558_v46  ;;  %v8567_v50 = vsel %vm2804_vm10, %v2828_v42, %v2830_v4  ;;  %v2079_v5 = vrot.slane %v7991_v49, 7  ;;  %v1439_v2 = vrot.slane %v7991_v49, 1  ;;  %6300 = vmatpush1.bf16.msra.mxu1 %v6299_v30  ;;  %v1757_v19 = vrot.slane %v7972_v27, 2  ;;  %v3505_v42 = vld [vmem:[%s11257_s4 + $0x18] sm:$0xff]  ;;  %2591 = vrot.lane.b32.xlu0 %v8359_v55, %s6520_s20 }
 0x26a   :  { %11496 = vst [vmem:[#allocation73_spill] sm:$0xff] %v8564_v16  ;;  %11497 = vst [vmem:[#allocation74_spill] sm:$0xff] %v8567_v50  ;;  %v8572_v32 = vsel %vm1727_vm9, %v1753_v62, %v1755_v10  ;;  %v2832_v44 = vrot.slane %v7994_v57, 6  ;;  %v2081_v31 = vrot.slane %v7994_v57, 7  ;;  %v11499_v46 = vmov 0.0|0.0   ;;  %1517 = vrot.lane.b32.xlu1 %v8324_v43, %s6517_s22 }
 0x26b   :  { %11498 = vst [vmem:[#allocation75_spill] sm:$0xff] %v8572_v32  ;;  %6301 = vmatprep.subr.bf16.mxu1 %v11499_v46  ;;  %v8585_v30 = vsel %vm2049_vm7, %v2077_v51, %v2079_v5  ;;  %v8588_v62 = vsel %vm1407_vm8, %v1437_v61, %v1439_v2  ;;  %v1441_v27 = vrot.slane %v7994_v57, 1  ;;  %v2834_v50 = vrot.slane %v7997_v28, 6 }
 0x26c   :  { %11500 = vst [vmem:[#allocation76_spill] sm:$0xff] %v8588_v62  ;;  %v6302_v32 = vpack.c.bf16 %v3505_v42, %v3504_v56  ;;  %v8595_v16 = vsel %vm1727_vm9, %v1755_v10, %v1757_v19  ;;  %v8598_v41 = vsel %vm2804_vm10, %v2830_v4, %v2832_v44  ;;  %v8601_v51 = vsel %vm2049_vm7, %v2079_v5, %v2081_v31 }
 0x26d   :  { %11501 = vst [vmem:[#allocation77_spill] sm:$0xff] %v8595_v16  ;;  %11502 = vst [vmem:[#allocation78_spill] sm:$0xff] %v8598_v41  ;;  %v8606_v61 = vsel %vm1407_vm8, %v1439_v2, %v1441_v27  ;;  %v8609_v62 = vsel %vm2804_vm10, %v2832_v44, %v2834_v50  ;;  %v1759_v56 = vrot.slane %v7991_v49, 2  ;;  %v2083_v10 = vrot.slane %v7997_v28, 7  ;;  %v3506_v2 = vld [vmem:[%s11257_s4 + $0x20] sm:$0xff]  ;;  %v3507_v49 = vld [vmem:[%s11257_s4 + $0x28] sm:$0xff]  ;;  %2912 = vrot.lane.b32.xlu0 %v8369_v20, %s6521_s21  ;;  %v8895_v22 = vpop.permute.xlu0 %2373 }
 0x26e   :  { %11503 = vst [vmem:[#allocation79_spill] sm:$0xff] %v8601_v51  ;;  %11504 = vst [vmem:[#allocation80_spill] sm:$0xff] %v8606_v61  ;;  %6303 = vmatpush1.bf16.msra.mxu1 %v6302_v32  ;;  %v1443_v4 = vrot.slane %v7997_v28, 1  ;;  %v1761_v42 = vrot.slane %v7994_v57, 2  ;;  %v2836_v5 = vrot.slane %v8000_v3, 6  ;;  %v2085_v51 = vrot.slane %v8000_v3, 7  ;;  %1837 = vrot.lane.b32.xlu1 %v8362_v48, %s6518_s27 }
 0x26f   :  { %11505 = vst [vmem:[#allocation81_spill] sm:$0xff] %v8609_v62  ;;  %6304 = vmatprep.subr.bf16.mxu1 %v11499_v46  ;;  %v8625_v32 = vsel %vm1727_vm9, %v1757_v19, %v1759_v56  ;;  %v8628_v44 = vsel %vm2049_vm7, %v2081_v31, %v2083_v10  ;;  %v1445_v57 = vrot.slane %v8000_v3, 1  ;;  %v2838_v62 = vrot.slane %v8019_v40, 6 }
 0x270   :  { %11506 = vst [vmem:[#allocation82_spill] sm:$0xff] %v8628_v44  ;;  %v6305_v61 = vpack.c.bf16 %v3507_v49, %v3506_v2  ;;  %v8635_v16 = vsel %vm1407_vm8, %v1441_v27, %v1443_v4  ;;  %v8638_v41 = vsel %vm1727_vm9, %v1759_v56, %v1761_v42  ;;  %v8641_v19 = vsel %vm2804_vm10, %v2834_v50, %v2836_v5 }
 0x271   :  { %v8646_v31 = vsel %vm2049_vm7, %v2083_v10, %v2085_v51  ;;  %v8649_v44 = vsel %vm1407_vm8, %v1443_v4, %v1445_v57  ;;  %v8652_v2 = vsel %vm2804_vm10, %v2836_v5, %v2838_v62  ;;  %v1763_v27 = vrot.slane %v7997_v28, 2  ;;  %v3508_v10 = vld [vmem:[%s11257_s4 + $0x30] sm:$0xff]  ;;  %v3509_v4 = vld [vmem:[%s11257_s4 + $0x38] sm:$0xff]  ;;  %3131 = vrot.lane.b32.xlu0 %v8372_v0, %s6522_s23 }
 0x272   :  { %11507 = vst [vmem:[#allocation83_spill] sm:$0xff] %v8649_v44  ;;  %11508 = vst [vmem:[#allocation84_spill] sm:$0xff] %v8652_v2  ;;  %6306 = vmatpush1.bf16.msra.mxu1 %v6305_v61  ;;  %v2087_v56 = vrot.slane %v8019_v40, 7  ;;  %v1447_v50 = vrot.slane %v8019_v40, 1  ;;  %v1765_v49 = vrot.slane %v8000_v3, 2  ;;  %v2089_v61 = vrot.slane %v8022_v39, 7  ;;  %2161 = vrot.lane.b32.xlu1 %v8343_v29, %s6519_s30 }
 0x273   :  { %6307 = vmatprep.subr.bf16.mxu1 %v11499_v46  ;;  %v8667_v28 = vsel %vm1727_vm9, %v1761_v42, %v1763_v27  ;;  %v1449_v5 = vrot.slane %v8022_v39, 1  ;;  %v6308_v3 = vpack.c.bf16 %v3509_v4, %v3508_v10  ;;  %v8685_v42 = vsel %vm2804_vm10, %v2838_v62, %v2840_v53  ;;  %v11523_v29 = vld [vmem:[#allocation46_spill] sm:$0xff] }
 0x274   :  { %11509 = vst [vmem:[#allocation85_spill] sm:$0xff] %v8667_v28  ;;  %v8674_v47 = vsel %vm2049_vm7, %v2085_v51, %v2087_v56  ;;  %v8677_v2 = vsel %vm1407_vm8, %v1445_v57, %v1447_v50  ;;  %v8680_v44 = vsel %vm1727_vm9, %v1763_v27, %v1765_v49  ;;  %v8688_v28 = vsel %vm2049_vm7, %v2087_v56, %v2089_v61 }
 0x275   :  { %v8691_v10 = vsel %vm1407_vm8, %v1447_v50, %v1449_v5  ;;  %v2842_v51 = vrot.slane %v8025_v11, 6  ;;  %v1767_v57 = vrot.slane %v8019_v40, 2  ;;  %v2091_v27 = vrot.slane %v8025_v11, 7  ;;  %v3510_v40 = vld [vmem:[%s11257_s4 + $0x40] sm:$0xff]  ;;  %v3511_v50 = vld [vmem:[%s11257_s4 + $0x48] sm:$0xff]  ;;  %1519 = vrot.lane.b32.xlu0 %v8359_v55, %s6517_s22 }
 0x276   :  { %11510 = vst [vmem:[#allocation86_spill] sm:$0xff] %v8691_v10  ;;  %6309 = vmatpush1.bf16.msra.mxu1 %v6308_v3  ;;  %v1451_v4 = vrot.slane %v8025_v11, 1  ;;  %v2844_v56 = vrot.slane %v8028_v24, 6  ;;  %v6311_v14 = vpack.c.bf16 %v3511_v50, %v3510_v40  ;;  %v2093_v10 = vrot.slane %v8028_v24, 7  ;;  %2593 = vrot.lane.b32.xlu1 %v8379_v7, %s6520_s20 }
 0x277   :  { %6310 = vmatprep.subr.bf16.mxu1 %v11499_v46  ;;  %v8700_v62 = vsel %vm2804_vm10, %v2840_v53, %v2842_v51  ;;  %v8712_v39 = vsel %vm1727_vm9, %v1765_v49, %v1767_v57  ;;  %v8715_v3 = vsel %vm2049_vm7, %v2089_v61, %v2091_v27  ;;  %v8721_v13 = vsel %vm1727_vm9, %v1767_v57, %v1769_v38 }
 0x278   :  { %11511 = vst [vmem:[#allocation87_spill] sm:$0xff] %v8700_v62  ;;  %11512 = vst [vmem:[#allocation88_spill] sm:$0xff] %v8715_v3  ;;  %v8718_v53 = vsel %vm1407_vm8, %v1449_v5, %v1451_v4  ;;  %v8726_v62 = vsel %vm2804_vm10, %v2842_v51, %v2844_v56  ;;  %v1453_v49 = vrot.slane %v8028_v24, 1  ;;  %v2846_v61 = vrot.slane %v8047_v1, 6  ;;  %v3512_v51 = vld [vmem:[%s11257_s4 + $0x50] sm:$0xff] }
 0x279   :  { %11513 = vst [vmem:[#allocation89_spill] sm:$0xff] %v8718_v53  ;;  %11514 = vst [vmem:[#allocation90_spill] sm:$0xff] %v8721_v13  ;;  %v1771_v3 = vrot.slane %v8025_v11, 2  ;;  %v2095_v5 = vrot.slane %v8047_v1, 7  ;;  %v1455_v57 = vrot.slane %v8047_v1, 1  ;;  %v1773_v13 = vrot.slane %v8028_v24, 2  ;;  %1839 = vrot.lane.b32.xlu0 %v8387_v45, %s6518_s27  ;;  %v8899_v55 = vpop.permute.xlu1 %2371 }
 0x27a   :  { %11515 = vst [vmem:[#allocation91_spill] sm:$0xff] %v8726_v62  ;;  %6312 = vmatpush1.bf16.msra.mxu1 %v6311_v14  ;;  %v2848_v40 = vrot.slane %v8050_v54, 6  ;;  %v3513_v11 = vld [vmem:[%s11257_s4 + $0x58] sm:$0xff]  ;;  %v8746_v14 = vsel %vm2049_vm7, %v2091_v27, %v2093_v10  ;;  %v8749_v24 = vsel %vm1407_vm8, %v1451_v4, %v1453_v49  ;;  %v8752_v50 = vsel %vm2804_vm10, %v2844_v56, %v2846_v61  ;;  %v11524_v45 = vld [vmem:[#allocation16_spill] sm:$0xff] }
 0x27b   :  { %6313 = vmatprep.subr.bf16.mxu1 %v11499_v46  ;;  %11516 = vst [vmem:[#allocation92_spill] sm:$0xff] %v8752_v50  ;;  %v6314_v25 = vpack.c.bf16 %v3513_v11, %v3512_v51  ;;  %v8758_v62 = vsel %vm1727_vm9, %v1769_v38, %v1771_v3  ;;  %v8761_v53 = vsel %vm2049_vm7, %v2093_v10, %v2095_v5  ;;  %v1457_v51 = vrot.slane %v8050_v54, 1 }
 0x27c   :  { %v8764_v27 = vsel %vm1407_vm8, %v1453_v49, %v1455_v57  ;;  %v8767_v4 = vsel %vm1727_vm9, %v1771_v3, %v1773_v13  ;;  %v8770_v56 = vsel %vm2804_vm10, %v2846_v61, %v2848_v40  ;;  %v8773_v50 = vsel %vm2049_vm7, %v2095_v5, %v2097_v15  ;;  %v3514_v3 = vld [vmem:[%s11257_s4 + $0x60] sm:$0xff]  ;;  %2914 = vrot.lane.b32.xlu1 %v8382_v36, %s6521_s21 }
 0x27d   :  { %11517 = vst [vmem:[#allocation93_spill] sm:$0xff] %v8767_v4  ;;  %11518 = vst [vmem:[#allocation94_spill] sm:$0xff] %v8770_v56  ;;  %v2850_v38 = vrot.slane %v8053_v9, 6  ;;  %v1775_v10 = vrot.slane %v8047_v1, 2  ;;  %v2099_v11 = vrot.slane %v8053_v9, 7  ;;  %v1459_v49 = vrot.slane %v8053_v9, 1  ;;  %2163 = vrot.lane.b32.xlu0 %v8372_v0, %s6519_s30 }
 0x27e   :  { %11519 = vst [vmem:[#allocation95_spill] sm:$0xff] %v8773_v50  ;;  %6315 = vmatpush1.bf16.msra.mxu1 %v6314_v25  ;;  %v3515_v25 = vld [vmem:[%s11257_s4 + $0x68] sm:$0xff]  ;;  %v1777_v1 = vrot.slane %v8050_v54, 2  ;;  %v11381_v61 = vrot.slane %v8056_v23, 6  ;;  %v8795_v12 = vsel %vm1407_vm8, %v1455_v57, %v1457_v51  ;;  %v6487_v36 = vld [vmem:[%s11256_s3] ss:$0 sm:$0xff] }
 0x27f   :  { %6316 = vmatprep.subr.bf16.mxu1 %v11499_v46  ;;  %v6317_v59 = vpack.c.bf16 %v3515_v25, %v3514_v3  ;;  %v8798_v50 = vsel %vm2804_vm10, %v2848_v40, %v2850_v38  ;;  %v8801_v4 = vsel %vm1727_vm9, %v1773_v13, %v1775_v10  ;;  %v8804_v56 = vsel %vm2049_vm7, %v2097_v15, %v2099_v11 }
 0x280   :  { %v8807_v54 = vsel %vm1407_vm8, %v1457_v51, %v1459_v49  ;;  %v8810_v5 = vsel %vm1727_vm9, %v1775_v10, %v1777_v1  ;;  %v8815_v57 = vsel %vm2804_vm10, %v2850_v38, %v11381_v61  ;;  %v11520_v40 = vrot.slane %v8056_v23, 7  ;;  %v3516_v51 = vld [vmem:[%s11257_s4 + $0x70] sm:$0xff]  ;;  %v3517_v38 = vld [vmem:[%s11257_s4 + $0x78] sm:$0xff]  ;;  %3133 = vrot.lane.b32.xlu1 %v8390_v21, %s6522_s23  ;;  %v11535_v61 = vld [vmem:[#allocation55_spill] sm:$0xff] }
 0x281   :  { %v11380_v15 = vrot.slane %v8056_v23, 1  ;;  %v1779_v10 = vrot.slane %v8053_v9, 2  ;;  %v6320_v3 = vpack.c.bf16 %v3517_v38, %v3516_v51  ;;  %v3518_v9 = vld [vmem:[%s11257_s4 + $0x80] sm:$0xff]  ;;  %2595 = vrot.lane.b32.xlu0 %v8395_v52, %s6520_s20  ;;  %v11527_v38 = vld [vmem:[#allocation48_spill] sm:$0xff] }
 0x282   :  { %6318 = vmatpush1.bf16.msra.mxu1 %v6317_v59  ;;  %v8820_v13 = vsel %vm2049_vm7, %v2099_v11, %v11520_v40  ;;  %v11379_v11 = vrot.slane %v8056_v23, 2 }
 0x283   :  { %6319 = vmatprep.subr.bf16.mxu1 %v11499_v46  ;;  %v8839_v58 = vsel %vm1407_vm8, %v1459_v49, %v11380_v15  ;;  %v8842_v25 = vsel %vm1727_vm9, %v1777_v1, %v1779_v10  ;;  %v6323_v49 = vpack.c.bf16 %v3519_v18, %v3518_v9  ;;  %v11526_v1 = vld [vmem:[#allocation47_spill] sm:$0xff] }
 0x284   :  { %v8847_v59 = vsel %vm1727_vm9, %v1779_v10, %v11379_v11  ;;  %1521 = vrot.lane.b32.xlu1 %v8379_v7, %s6517_s22  ;;  %v8905_v43 = vpop.permute.xlu0 %2377 }
 0x285   :  { %2916 = vrot.lane.b32.xlu0 %v11521_v34, %s6521_s21  ;;  %v8907_v37 = vpop.permute.xlu1 %2375  ;;  %v11530_v34 = vld [vmem:[#allocation50_spill] sm:$0xff] }
 0x286   :  { %6321 = vmatpush1.bf16.msra.mxu1 %v6320_v3  ;;  %v11528_v3 = vld [vmem:[#allocation49_spill] sm:$0xff] }
 0x287   :  { %6322 = vmatprep.subr.bf16.mxu1 %v11499_v46 }
 0x288   :  { %1841 = vrot.lane.b32.xlu1 %v11522_v60, %s6518_s27  ;;  %v8913_v48 = vpop.permute.xlu0 %2381 }
 0x289   :  { %3135 = vrot.lane.b32.xlu0 %v11523_v29, %s6522_s23  ;;  %v8915_v20 = vpop.permute.xlu1 %2379 }
 0x28a   :  { %6324 = vmatpush1.bf16.msra.mxu1 %v6323_v49  ;;  %v11529_v49 = vld [vmem:[#allocation51_spill] sm:$0xff] }
 0x28b   :  { %6357 = vmatprep.subr.bf16.mxu1 %v11499_v46  ;;  %v11537_v46 = vld [vmem:[#allocation57_spill] sm:$0xff] }
 0x28c   :  { %2165 = vrot.lane.b32.xlu1 %v8390_v21, %s6519_s30  ;;  %v8921_v0 = vpop.permute.xlu0 %2385  ;;  %v8929_v21 = vadd.f32 %v6487_v36, %v11524_v45  ;;  %v11531_v36 = vld [vmem:[#allocation52_spill] sm:$0xff] }
 0x28d   :  { %1523 = vrot.lane.b32.xlu0 %v8395_v52, %s6517_s22  ;;  %v8923_v7 = vpop.permute.xlu1 %2383 }
 0x28e   :  { %11525 = vst [vmem:[#allocation19_spill] sm:$0xff] %v8929_v21  ;;  %v11378_v52 = vmax.f32 %v8929_v21, 0.0 }
 0x290   :  { %2597 = vrot.lane.b32.xlu1 %v8415_v8, %s6520_s20  ;;  %v8936_v40 = vpop.permute.xlu0 %2389  ;;  %3395 = vst.msk [vmem:[#allocation2 + $0x348] sm:$0x3] %vm813_vm6, %v11378_v52  ;;  %vm4065_vm6 = vcmask 260096  }
 0x291   :  { %1843 = vrot.lane.b32.xlu0 %v8423_v26, %s6518_s27  ;;  %v8938_v51 = vpop.permute.xlu1 %2387 }
 0x294   :  { %2918 = vrot.lane.b32.xlu1 %v11526_v1, %s6521_s21  ;;  %v8947_v26 = vpop.permute.xlu0 %2393 }
 0x295   :  { %2167 = vrot.lane.b32.xlu0 %v11523_v29, %s6519_s30  ;;  %v8949_v10 = vpop.permute.xlu1 %2391 }
 0x298   :  { %3137 = vrot.lane.b32.xlu1 %v11527_v38, %s6522_s23  ;;  %v8955_v9 = vpop.permute.xlu0 %2397 }
 0x299   :  { %2599 = vrot.lane.b32.xlu0 %v11528_v3, %s6520_s20  ;;  %v8957_v18 = vpop.permute.xlu1 %2395 }
 0x29c   :  { %1525 = vrot.lane.b32.xlu1 %v8415_v8, %s6517_s22  ;;  %v8963_v60 = vpop.permute.xlu0 %2401 }
 0x29d   :  { %2920 = vrot.lane.b32.xlu0 %v11529_v49, %s6521_s21  ;;  %v8965_v29 = vpop.permute.xlu1 %2399 }
 0x2a0   :  { %1845 = vrot.lane.b32.xlu1 %v11530_v34, %s6518_s27  ;;  %v8971_v8 = vpop.permute.xlu0 %2405  ;;  %v11532_v34 = vld [vmem:[#allocation53_spill] sm:$0xff] }
 0x2a1   :  { %3139 = vrot.lane.b32.xlu0 %v11531_v36, %s6522_s23  ;;  %v8973_v45 = vpop.permute.xlu1 %2403 }
 0x2a4   :  { %2169 = vrot.lane.b32.xlu1 %v11527_v38, %s6519_s30  ;;  %v8979_v1 = vpop.permute.xlu0 %2409 }
 0x2a5   :  { %1527 = vrot.lane.b32.xlu0 %v11528_v3, %s6517_s22  ;;  %v8981_v49 = vpop.permute.xlu1 %2407  ;;  %v11533_v3 = vld [vmem:[#allocation54_spill] sm:$0xff] }
 0x2a8   :  { %2601 = vrot.lane.b32.xlu1 %v8451_v35, %s6520_s20  ;;  %v8987_v38 = vpop.permute.xlu0 %2413 }
 0x2a9   :  { %1847 = vrot.lane.b32.xlu0 %v8459_v63, %s6518_s27  ;;  %v8989_v52 = vpop.permute.xlu1 %2411 }
 0x2ac   :  { %2922 = vrot.lane.b32.xlu1 %v11532_v34, %s6521_s21  ;;  %v8995_v11 = vpop.permute.xlu0 %2417 }
 0x2ad   :  { %2171 = vrot.lane.b32.xlu0 %v11531_v36, %s6519_s30  ;;  %11534 = vst [vmem:[#allocation18_spill] sm:$0xff] %v8995_v11  ;;  %v8997_v15 = vpop.permute.xlu1 %2415  ;;  %v11538_v36 = vld [vmem:[#allocation56_spill] sm:$0xff] }
 0x2b0   :  { %3141 = vrot.lane.b32.xlu1 %v11533_v3, %s6522_s23  ;;  %v9003_v63 = vpop.permute.xlu0 %2421 }
 0x2b1   :  { %2603 = vrot.lane.b32.xlu0 %v11535_v61, %s6520_s20  ;;  %11536 = vst [vmem:[#allocation46_spill] sm:$0xff] %v9003_v63  ;;  %v9005_v34 = vpop.permute.xlu1 %2419 }
 0x2b4   :  { %1529 = vrot.lane.b32.xlu1 %v8451_v35, %s6517_s22  ;;  %v9011_v21 = vpop.permute.xlu0 %2425 }
 0x2b5   :  { %2924 = vrot.lane.b32.xlu0 %v11537_v46, %s6521_s21  ;;  %11539 = vst [vmem:[#allocation16_spill] sm:$0xff] %v9011_v21  ;;  %v9013_v11 = vpop.permute.xlu1 %2423  ;;  %v11544_v21 = vld [vmem:[#allocation59_spill] sm:$0xff] }
 0x2b8   :  { %1849 = vrot.lane.b32.xlu1 %v11538_v36, %s6518_s27  ;;  %v9019_v35 = vpop.permute.xlu0 %2429 }
 0x2b9   :  { %3143 = vrot.lane.b32.xlu0 %v11540_v17, %s6522_s23  ;;  %11541 = vst [vmem:[#allocation47_spill] sm:$0xff] %v9019_v35  ;;  %v9021_v63 = vpop.permute.xlu1 %2427 }
 0x2ba   :  { %11542 = vst [vmem:[#allocation48_spill] sm:$0xff] %v9021_v63 }
 0x2bc   :  { %2173 = vrot.lane.b32.xlu1 %v11533_v3, %s6519_s30  ;;  %v9027_v46 = vpop.permute.xlu0 %2433 }
 0x2bd   :  { %1531 = vrot.lane.b32.xlu0 %v11535_v61, %s6517_s22  ;;  %11543 = vst [vmem:[#allocation49_spill] sm:$0xff] %v9027_v46  ;;  %v9029_v36 = vpop.permute.xlu1 %2431  ;;  %v11546_v61 = vld [vmem:[#allocation60_spill] sm:$0xff] }
 0x2c0   :  { %2605 = vrot.lane.b32.xlu1 %v8487_v33, %s6520_s20  ;;  %v9035_v3 = vpop.permute.xlu0 %2437 }
 0x2c1   :  { %1851 = vrot.lane.b32.xlu0 %v8495_v6, %s6518_s27  ;;  %11545 = vst [vmem:[#allocation51_spill] sm:$0xff] %v9035_v3  ;;  %v9037_v35 = vpop.permute.xlu1 %2435  ;;  %v11548_v6 = vld [vmem:[#allocation61_spill] sm:$0xff]  ;;  %v11549_v3 = vld [vmem:[#allocation63_spill] sm:$0xff] }
 0x2c4   :  { %2926 = vrot.lane.b32.xlu1 %v11544_v21, %s6521_s21 }
 0x2c5   :  { %2175 = vrot.lane.b32.xlu0 %v11540_v17, %s6519_s30 }
 0x2c6   :  { %v9043_v63 = vpop.permute.xlu1 %2439 }
 0x2c7   :  { %v1514_v46 = vpop.permute.xlu0 %1513  ;;  %11547 = vst [vmem:[#allocation50_spill] sm:$0xff] %v9043_v63 }
 0x2c8   :  { %3145 = vrot.lane.b32.xlu1 %v11546_v61, %s6522_s23  ;;  %1673 = vst.msk [vmem:[#allocation2] sm:$0xff] %vm1672_vm11, %v1514_v46  ;;  %v11550_v46 = vld [vmem:[#allocation62_spill] sm:$0xff] }
 0x2c9   :  { %2607 = vrot.lane.b32.xlu0 %v11548_v6, %s6520_s20 }
 0x2ca   :  { %v2158_v17 = vpop.permute.xlu1 %2157 }
 0x2cb   :  { %v1834_v21 = vpop.permute.xlu0 %1833 }
 0x2cc   :  { %1533 = vrot.lane.b32.xlu1 %v8487_v33, %s6517_s22  ;;  %1993 = vst.msk [vmem:[#allocation2] sm:$0xff] %vm1992_vm12, %v1834_v21  ;;  %v11551_v21 = vld [vmem:[#allocation64_spill] sm:$0xff] }
 0x2cd   :  { %2317 = vst.msk [vmem:[#allocation2] sm:$0xff] %vm2316_vm13, %v2158_v17  ;;  %2928 = vrot.lane.b32.xlu0 %v11549_v3, %s6521_s21 }
 0x2ce   :  { %2531 = vst.msk [vmem:[#allocation2] sm:$0xff] %vm2530_vm14, %v8899_v55  ;;  %v11552_v55 = vld [vmem:[#allocation65_spill] sm:$0xff] }
 0x2cf   :  { %v1516_v63 = vpop.permute.xlu0 %1515 }
 0x2d0   :  { %1853 = vrot.lane.b32.xlu1 %v11550_v46, %s6518_s27  ;;  %v2590_v33 = vpop.permute.xlu1 %2589  ;;  %1674 = vst.msk [vmem:[#allocation2 + $0x10] sm:$0xff] %vm1672_vm11, %v1516_v63 }
 0x2d1   :  { %2749 = vst.msk [vmem:[#allocation2] sm:$0xff] %vm2748_vm15, %v2590_v33  ;;  %3147 = vrot.lane.b32.xlu0 %v11551_v21, %s6522_s23  ;;  %v11554_v33 = vld [vmem:[#allocation66_spill] sm:$0xff] }
 0x2d3   :  { %v1836_v3 = vpop.permute.xlu0 %1835 }
 0x2d4   :  { %2177 = vrot.lane.b32.xlu1 %v11546_v61, %s6519_s30  ;;  %v2911_v17 = vpop.permute.xlu1 %2910  ;;  %1994 = vst.msk [vmem:[#allocation2 + $0x10] sm:$0xff] %vm1992_vm12, %v1836_v3  ;;  %v11553_v61 = vld [vmem:[#allocation67_spill] sm:$0xff] }
 0x2d5   :  { %3070 = vst.msk [vmem:[#allocation2] sm:$0xff] %vm3069_vm2, %v2911_v17  ;;  %1535 = vrot.lane.b32.xlu0 %v11548_v6, %s6517_s22  ;;  %v11555_v17 = vld [vmem:[#allocation68_spill] sm:$0xff] }
 0x2d7   :  { %v2160_v63 = vpop.permute.xlu0 %2159 }
 0x2d8   :  { %2609 = vrot.lane.b32.xlu1 %v11552_v55, %s6520_s20  ;;  %v3130_v46 = vpop.permute.xlu1 %3129  ;;  %2318 = vst.msk [vmem:[#allocation2 + $0x10] sm:$0xff] %vm2316_vm13, %v2160_v63 }
 0x2d9   :  { %3289 = vst.msk [vmem:[#allocation2] sm:$0xff] %vm3288_vm3, %v3130_v46  ;;  %1855 = vrot.lane.b32.xlu0 %v11553_v61, %s6518_s27  ;;  %v11556_v61 = vld [vmem:[#allocation69_spill] sm:$0xff] }
 0x2da   :  { %2532 = vst.msk [vmem:[#allocation2 + $0x10] sm:$0xff] %vm2530_vm14, %v8895_v22 }
 0x2db   :  { %v2592_v6 = vpop.permute.xlu0 %2591 }
 0x2dc   :  { %2930 = vrot.lane.b32.xlu1 %v11554_v33, %s6521_s21  ;;  %v1518_v3 = vpop.permute.xlu1 %1517  ;;  %2750 = vst.msk [vmem:[#allocation2 + $0x10] sm:$0xff] %vm2748_vm15, %v2592_v6  ;;  %v3399_v33 = vld [vmem:[#allocation2 + $0x18] sm:$0xff] }
 0x2dd   :  { %1675 = vst.msk [vmem:[#allocation2 + $0x20] sm:$0xff] %vm1672_vm11, %v1518_v3  ;;  %2179 = vrot.lane.b32.xlu0 %v11551_v21, %s6519_s30  ;;  %v11557_v3 = vld [vmem:[#allocation71_spill] sm:$0xff] }
 0x2df   :  { %v2913_v63 = vpop.permute.xlu0 %2912 }
 0x2e0   :  { %3149 = vrot.lane.b32.xlu1 %v11555_v17, %s6522_s23  ;;  %v1838_v22 = vpop.permute.xlu1 %1837  ;;  %3071 = vst.msk [vmem:[#allocation2 + $0x10] sm:$0xff] %vm3069_vm2, %v2913_v63  ;;  %v3396_v46 = vld [vmem:[#allocation2] sm:$0xff] }
 0x2e1   :  { %1995 = vst.msk [vmem:[#allocation2 + $0x20] sm:$0xff] %vm1992_vm12, %v1838_v22  ;;  %3744 = vmatmul.mubr.f32.vlgmr.msra.gmra.mrb[0].mxu1 %v3396_v46  ;;  %2611 = vrot.lane.b32.xlu0 %v11556_v61, %s6520_s20  ;;  %v11558_v63 = vld [vmem:[#allocation70_spill] sm:$0xff] }
 0x2e2   :  { %5701 = vmatprep.mubr.msk.f32.mxu1 %vm701_vm5, %v3399_v33 }
 0x2e3   :  { %v3132_v21 = vpop.permute.xlu0 %3131 }
 0x2e4   :  { %1537 = vrot.lane.b32.xlu1 %v11552_v55, %s6517_s22  ;;  %v2162_v6 = vpop.permute.xlu1 %2161  ;;  %3290 = vst.msk [vmem:[#allocation2 + $0x10] sm:$0xff] %vm3288_vm3, %v3132_v21  ;;  %v11559_v55 = vld [vmem:[#allocation72_spill] sm:$0xff] }
 0x2e5   :  { %2319 = vst.msk [vmem:[#allocation2 + $0x20] sm:$0xff] %vm2316_vm13, %v2162_v6  ;;  %2932 = vrot.lane.b32.xlu0 %v11557_v3, %s6521_s21  ;;  %v11560_v3 = vld [vmem:[#allocation73_spill] sm:$0xff] }
 0x2e6   :  { %2533 = vst.msk [vmem:[#allocation2 + $0x20] sm:$0xff] %vm2530_vm14, %v8907_v37  ;;  %v3401_v37 = vld [vmem:[#allocation2 + $0x28] sm:$0xff] }
 0x2e7   :  { %v1520_v22 = vpop.permute.xlu0 %1519 }
 0x2e8   :  { %1857 = vrot.lane.b32.xlu1 %v11558_v63, %s6518_s27  ;;  %v2594_v46 = vpop.permute.xlu1 %2593  ;;  %1676 = vst.msk [vmem:[#allocation2 + $0x30] sm:$0xff] %vm1672_vm11, %v1520_v22 }
 0x2e9   :  { %2751 = vst.msk [vmem:[#allocation2 + $0x20] sm:$0xff] %vm2748_vm15, %v2594_v46  ;;  %3151 = vrot.lane.b32.xlu0 %v11559_v55, %s6522_s23  ;;  %v11562_v46 = vld [vmem:[#allocation74_spill] sm:$0xff] }
 0x2eb   :  { %v1840_v33 = vpop.permute.xlu0 %1839  ;;  %v3398_v21 = vld [vmem:[#allocation2 + $0x10] sm:$0xff] }
 0x2ec   :  { %2181 = vrot.lane.b32.xlu1 %v11555_v17, %s6519_s30  ;;  %1996 = vst.msk [vmem:[#allocation2 + $0x30] sm:$0xff] %vm1992_vm12, %v1840_v33  ;;  %3749 = vmatmul.mubr.f32.gmra.mrb[2].mxu1 %v3398_v21  ;;  %v11561_v17 = vld [vmem:[#allocation75_spill] sm:$0xff] }
 0x2ed   :  { %1539 = vrot.lane.b32.xlu0 %v11556_v61, %s6517_s22  ;;  %5702 = vmatprep.mubr.msk.f32.mxu1 %vm701_vm5, %v3401_v37  ;;  %v11563_v37 = vld [vmem:[#allocation76_spill] sm:$0xff] }
 0x2ee   :  { %v2915_v6 = vpop.permute.xlu1 %2914 }
 0x2ef   :  { %3072 = vst.msk [vmem:[#allocation2 + $0x20] sm:$0xff] %vm3069_vm2, %v2915_v6  ;;  %v2164_v63 = vpop.permute.xlu0 %2163 }
 0x2f0   :  { %2613 = vrot.lane.b32.xlu1 %v11560_v3, %s6520_s20  ;;  %2320 = vst.msk [vmem:[#allocation2 + $0x30] sm:$0xff] %vm2316_vm13, %v2164_v63  ;;  %v3403_v63 = vld [vmem:[#allocation2 + $0x38] sm:$0xff] }
 0x2f1   :  { %2534 = vst.msk [vmem:[#allocation2 + $0x30] sm:$0xff] %vm2530_vm14, %v8905_v43  ;;  %1859 = vrot.lane.b32.xlu0 %v11561_v17, %s6518_s27  ;;  %v11564_v17 = vld [vmem:[#allocation78_spill] sm:$0xff] }
 0x2f2   :  { %v3134_v22 = vpop.permute.xlu1 %3133 }
 0x2f3   :  { %3291 = vst.msk [vmem:[#allocation2 + $0x20] sm:$0xff] %vm3288_vm3, %v3134_v22  ;;  %v2596_v61 = vpop.permute.xlu0 %2595 }
 0x2f4   :  { %2934 = vrot.lane.b32.xlu1 %v11562_v46, %s6521_s21  ;;  %2752 = vst.msk [vmem:[#allocation2 + $0x30] sm:$0xff] %vm2748_vm15, %v2596_v61  ;;  %v11565_v46 = vld [vmem:[#allocation77_spill] sm:$0xff] }
 0x2f5   :  { %2183 = vrot.lane.b32.xlu0 %v11559_v55, %s6519_s30 }
 0x2f6   :  { %v1522_v33 = vpop.permute.xlu1 %1521 }
 0x2f7   :  { %1677 = vst.msk [vmem:[#allocation2 + $0x40] sm:$0xff] %vm1672_vm11, %v1522_v33  ;;  %v2917_v21 = vpop.permute.xlu0 %2916 }
 0x2f8   :  { %3153 = vrot.lane.b32.xlu1 %v8585_v30, %s6522_s23  ;;  %3073 = vst.msk [vmem:[#allocation2 + $0x30] sm:$0xff] %vm3069_vm2, %v2917_v21 }
 0x2f9   :  { %2615 = vrot.lane.b32.xlu0 %v11563_v37, %s6520_s20 }
 0x2fa   :  { %v1842_v43 = vpop.permute.xlu1 %1841  ;;  %v3400_v6 = vld [vmem:[#allocation2 + $0x20] sm:$0xff] }
 0x2fb   :  { %1997 = vst.msk [vmem:[#allocation2 + $0x40] sm:$0xff] %vm1992_vm12, %v1842_v43  ;;  %3754 = vmatmul.mubr.f32.gmra.mrb[4].mxu1 %v3400_v6  ;;  %v3136_v55 = vpop.permute.xlu0 %3135 }
 0x2fc   :  { %1541 = vrot.lane.b32.xlu1 %v11560_v3, %s6517_s22  ;;  %5703 = vmatprep.mubr.msk.f32.mxu1 %vm701_vm5, %v3403_v63  ;;  %3292 = vst.msk [vmem:[#allocation2 + $0x30] sm:$0xff] %vm3288_vm3, %v3136_v55  ;;  %v11566_v3 = vld [vmem:[#allocation79_spill] sm:$0xff]  ;;  %v11567_v63 = vld [vmem:[#allocation80_spill] sm:$0xff] }
 0x2fd   :  { %2936 = vrot.lane.b32.xlu0 %v11564_v17, %s6521_s21 }
 0x2fe   :  { %v2166_v22 = vpop.permute.xlu1 %2165 }
 0x2ff   :  { %2321 = vst.msk [vmem:[#allocation2 + $0x40] sm:$0xff] %vm2316_vm13, %v2166_v22  ;;  %v1524_v61 = vpop.permute.xlu0 %1523 }
 0x300   :  { %2535 = vst.msk [vmem:[#allocation2 + $0x40] sm:$0xff] %vm2530_vm14, %v8915_v20  ;;  %1861 = vrot.lane.b32.xlu1 %v11565_v46, %s6518_s27  ;;  %v3405_v20 = vld [vmem:[#allocation2 + $0x48] sm:$0xff]  ;;  %v11569_v46 = vld [vmem:[#allocation82_spill] sm:$0xff] }
 0x301   :  { %1678 = vst.msk [vmem:[#allocation2 + $0x50] sm:$0xff] %vm1672_vm11, %v1524_v61  ;;  %3155 = vrot.lane.b32.xlu0 %v11566_v3, %s6522_s23 }
 0x302   :  { %v2598_v33 = vpop.permute.xlu1 %2597 }
 0x303   :  { %2753 = vst.msk [vmem:[#allocation2 + $0x40] sm:$0xff] %vm2748_vm15, %v2598_v33  ;;  %v1844_v21 = vpop.permute.xlu0 %1843  ;;  %v3402_v43 = vld [vmem:[#allocation2 + $0x30] sm:$0xff]  ;;  %v3407_v33 = vld [vmem:[#allocation2 + $0x58] sm:$0xff] }
 0x304   :  { %2185 = vrot.lane.b32.xlu1 %v8585_v30, %s6519_s30  ;;  %1998 = vst.msk [vmem:[#allocation2 + $0x50] sm:$0xff] %vm1992_vm12, %v1844_v21  ;;  %3759 = vmatmul.mubr.f32.gmra.mrb[6].mxu1 %v3402_v43  ;;  %v11568_v30 = vld [vmem:[#allocation81_spill] sm:$0xff] }
 0x305   :  { %1543 = vrot.lane.b32.xlu0 %v11563_v37, %s6517_s22  ;;  %5704 = vmatprep.mubr.msk.f32.mxu1 %vm701_vm5, %v3405_v20 }
 0x306   :  { %v2919_v6 = vpop.permute.xlu1 %2918 }
 0x307   :  { %3074 = vst.msk [vmem:[#allocation2 + $0x40] sm:$0xff] %vm3069_vm2, %v2919_v6  ;;  %v2168_v55 = vpop.permute.xlu0 %2167 }
 0x308   :  { %2617 = vrot.lane.b32.xlu1 %v11567_v63, %s6520_s20  ;;  %2322 = vst.msk [vmem:[#allocation2 + $0x50] sm:$0xff] %vm2316_vm13, %v2168_v55 }
 0x309   :  { %2536 = vst.msk [vmem:[#allocation2 + $0x50] sm:$0xff] %vm2530_vm14, %v8913_v48  ;;  %1863 = vrot.lane.b32.xlu0 %v8625_v32, %s6518_s27 }
 0x30a   :  { %v3138_v22 = vpop.permute.xlu1 %3137 }
 0x30b   :  { %3293 = vst.msk [vmem:[#allocation2 + $0x40] sm:$0xff] %vm3288_vm3, %v3138_v22  ;;  %v2600_v37 = vpop.permute.xlu0 %2599 }
 0x30c   :  { %2938 = vrot.lane.b32.xlu1 %v11568_v30, %s6521_s21  ;;  %2754 = vst.msk [vmem:[#allocation2 + $0x50] sm:$0xff] %vm2748_vm15, %v2600_v37  ;;  %v11571_v30 = vld [vmem:[#allocation85_spill] sm:$0xff]  ;;  %v11572_v37 = vld [vmem:[#allocation84_spill] sm:$0xff] }
 0x30d   :  { %2187 = vrot.lane.b32.xlu0 %v11566_v3, %s6519_s30 }
 0x30e   :  { %v1526_v17 = vpop.permute.xlu1 %1525 }
 0x30f   :  { %1679 = vst.msk [vmem:[#allocation2 + $0x60] sm:$0xff] %vm1672_vm11, %v1526_v17  ;;  %v2921_v61 = vpop.permute.xlu0 %2920 }
 0x310   :  { %3157 = vrot.lane.b32.xlu1 %v11569_v46, %s6522_s23  ;;  %3075 = vst.msk [vmem:[#allocation2 + $0x50] sm:$0xff] %vm3069_vm2, %v2921_v61 }
 0x311   :  { %2619 = vrot.lane.b32.xlu0 %v8635_v16, %s6520_s20 }
 0x312   :  { %v1846_v48 = vpop.permute.xlu1 %1845  ;;  %v3404_v32 = vld [vmem:[#allocation2 + $0x40] sm:$0xff] }
 0x313   :  { %1999 = vst.msk [vmem:[#allocation2 + $0x60] sm:$0xff] %vm1992_vm12, %v1846_v48  ;;  %3764 = vmatmul.mubr.f32.gmra.mrb[8].mxu1 %v3404_v32  ;;  %v3140_v3 = vpop.permute.xlu0 %3139  ;;  %v3411_v48 = vld [vmem:[#allocation2 + $0x78] sm:$0xff] }
 0x314   :  { %1545 = vrot.lane.b32.xlu1 %v11567_v63, %s6517_s22  ;;  %5705 = vmatprep.mubr.msk.f32.mxu1 %vm701_vm5, %v3407_v33  ;;  %3294 = vst.msk [vmem:[#allocation2 + $0x50] sm:$0xff] %vm3288_vm3, %v3140_v3 }
 0x315   :  { %2940 = vrot.lane.b32.xlu0 %v8641_v19, %s6521_s21 }
 0x316   :  { %v2170_v21 = vpop.permute.xlu1 %2169 }
 0x317   :  { %2323 = vst.msk [vmem:[#allocation2 + $0x60] sm:$0xff] %vm2316_vm13, %v2170_v21  ;;  %v1528_v43 = vpop.permute.xlu0 %1527 }
 0x318   :  { %2537 = vst.msk [vmem:[#allocation2 + $0x60] sm:$0xff] %vm2530_vm14, %v8923_v7  ;;  %1865 = vrot.lane.b32.xlu1 %v8638_v41, %s6518_s27  ;;  %v3409_v7 = vld [vmem:[#allocation2 + $0x68] sm:$0xff] }
 0x319   :  { %1680 = vst.msk [vmem:[#allocation2 + $0x70] sm:$0xff] %vm1672_vm11, %v1528_v43  ;;  %3159 = vrot.lane.b32.xlu0 %v8646_v31, %s6522_s23  ;;  %v11570_v41 = vld [vmem:[#allocation83_spill] sm:$0xff] }
 0x31a   :  { %v2602_v6 = vpop.permute.xlu1 %2601 }
 0x31b   :  { %2755 = vst.msk [vmem:[#allocation2 + $0x60] sm:$0xff] %vm2748_vm15, %v2602_v6  ;;  %v1848_v20 = vpop.permute.xlu0 %1847  ;;  %v3406_v19 = vld [vmem:[#allocation2 + $0x50] sm:$0xff] }
 0x31c   :  { %2189 = vrot.lane.b32.xlu1 %v11569_v46, %s6519_s30  ;;  %2000 = vst.msk [vmem:[#allocation2 + $0x70] sm:$0xff] %vm1992_vm12, %v1848_v20  ;;  %3769 = vmatmul.mubr.f32.gmra.mrb[10].mxu1 %v3406_v19 }
 0x31d   :  { %1547 = vrot.lane.b32.xlu0 %v8635_v16, %s6517_s22  ;;  %5706 = vmatprep.mubr.msk.f32.mxu1 %vm701_vm5, %v3409_v7 }
 0x31e   :  { %v2923_v63 = vpop.permute.xlu1 %2922 }
 0x31f   :  { %3076 = vst.msk [vmem:[#allocation2 + $0x60] sm:$0xff] %vm3069_vm2, %v2923_v63  ;;  %v2172_v55 = vpop.permute.xlu0 %2171  ;;  %v11575_v63 = vld [vmem:[#allocation88_spill] sm:$0xff] }
 0x320   :  { %2621 = vrot.lane.b32.xlu1 %v11570_v41, %s6520_s20  ;;  %2324 = vst.msk [vmem:[#allocation2 + $0x70] sm:$0xff] %vm2316_vm13, %v2172_v55  ;;  %v3415_v55 = vld [vmem:[#allocation2 + $0x98] sm:$0xff] }
 0x321   :  { %2538 = vst.msk [vmem:[#allocation2 + $0x70] sm:$0xff] %vm2530_vm14, %v8921_v0  ;;  %1867 = vrot.lane.b32.xlu0 %v11571_v30, %s6518_s27  ;;  %v11577_v30 = vld [vmem:[#allocation91_spill] sm:$0xff] }
 0x322   :  { %v3142_v22 = vpop.permute.xlu1 %3141 }
 0x323   :  { %3295 = vst.msk [vmem:[#allocation2 + $0x60] sm:$0xff] %vm3288_vm3, %v3142_v22  ;;  %v2604_v16 = vpop.permute.xlu0 %2603 }
 0x324   :  { %2942 = vrot.lane.b32.xlu1 %v11572_v37, %s6521_s21  ;;  %2756 = vst.msk [vmem:[#allocation2 + $0x70] sm:$0xff] %vm2748_vm15, %v2604_v16  ;;  %v11578_v37 = vld [vmem:[#allocation90_spill] sm:$0xff] }
 0x325   :  { %2191 = vrot.lane.b32.xlu0 %v8646_v31, %s6519_s30 }
 0x326   :  { %v1530_v17 = vpop.permute.xlu1 %1529 }
 0x327   :  { %1681 = vst.msk [vmem:[#allocation2 + $0x80] sm:$0xff] %vm1672_vm11, %v1530_v17  ;;  %v2925_v46 = vpop.permute.xlu0 %2924 }
 0x328   :  { %3161 = vrot.lane.b32.xlu1 %v8674_v47, %s6522_s23  ;;  %3077 = vst.msk [vmem:[#allocation2 + $0x70] sm:$0xff] %vm3069_vm2, %v2925_v46 }
 0x329   :  { %2623 = vrot.lane.b32.xlu0 %v8677_v2, %s6520_s20 }
 0x32a   :  { %v1850_v0 = vpop.permute.xlu1 %1849  ;;  %v3408_v61 = vld [vmem:[#allocation2 + $0x60] sm:$0xff] }
 0x32b   :  { %2001 = vst.msk [vmem:[#allocation2 + $0x80] sm:$0xff] %vm1992_vm12, %v1850_v0  ;;  %3774 = vmatmul.mubr.f32.gmra.mrb[12].mxu1 %v3408_v61  ;;  %v3144_v31 = vpop.permute.xlu0 %3143 }
 0x32c   :  { %1549 = vrot.lane.b32.xlu1 %v11570_v41, %s6517_s22  ;;  %5707 = vmatprep.mubr.msk.f32.mxu1 %vm701_vm5, %v3411_v48  ;;  %3296 = vst.msk [vmem:[#allocation2 + $0x70] sm:$0xff] %vm3288_vm3, %v3144_v31  ;;  %v11576_v41 = vld [vmem:[#allocation89_spill] sm:$0xff] }
 0x32d   :  { %2944 = vrot.lane.b32.xlu0 %v8685_v42, %s6521_s21 }
 0x32e   :  { %v2174_v32 = vpop.permute.xlu1 %2173 }
 0x32f   :  { %2325 = vst.msk [vmem:[#allocation2 + $0x80] sm:$0xff] %vm2316_vm13, %v2174_v32  ;;  %v1532_v33 = vpop.permute.xlu0 %1531  ;;  %v11579_v32 = vld [vmem:[#allocation92_spill] sm:$0xff] }
 0x330   :  { %2539 = vst.msk [vmem:[#allocation2 + $0x80] sm:$0xff] %vm2530_vm14, %v8938_v51  ;;  %1869 = vrot.lane.b32.xlu1 %v8680_v44, %s6518_s27  ;;  %v3413_v51 = vld [vmem:[#allocation2 + $0x88] sm:$0xff]  ;;  %v11573_v44 = vld [vmem:[#allocation86_spill] sm:$0xff] }
 0x331   :  { %1682 = vst.msk [vmem:[#allocation2 + $0x90] sm:$0xff] %vm1672_vm11, %v1532_v33  ;;  %3163 = vrot.lane.b32.xlu0 %v8688_v28, %s6522_s23 }
 0x332   :  { %v2606_v3 = vpop.permute.xlu1 %2605 }
 0x333   :  { %2757 = vst.msk [vmem:[#allocation2 + $0x80] sm:$0xff] %vm2748_vm15, %v2606_v3  ;;  %v1852_v21 = vpop.permute.xlu0 %1851  ;;  %v3410_v42 = vld [vmem:[#allocation2 + $0x70] sm:$0xff] }
 0x334   :  { %2193 = vrot.lane.b32.xlu1 %v8674_v47, %s6519_s30  ;;  %2002 = vst.msk [vmem:[#allocation2 + $0x90] sm:$0xff] %vm1992_vm12, %v1852_v21  ;;  %3779 = vmatmul.mubr.f32.gmra.mrb[14].mxu1 %v3410_v42  ;;  %v11574_v47 = vld [vmem:[#allocation87_spill] sm:$0xff]  ;;  %v3419_v42 = vld [vmem:[#allocation2 + $0xb8] sm:$0xff] }
 0x335   :  { %1551 = vrot.lane.b32.xlu0 %v8677_v2, %s6517_s22  ;;  %5708 = vmatprep.mubr.msk.f32.mxu1 %vm701_vm5, %v3413_v51  ;;  %v11580_v51 = vld [vmem:[#allocation94_spill] sm:$0xff] }
 0x336   :  { %v2927_v43 = vpop.permute.xlu1 %2926 }
 0x337   :  { %3078 = vst.msk [vmem:[#allocation2 + $0x80] sm:$0xff] %vm3069_vm2, %v2927_v43  ;;  %v2176_v6 = vpop.permute.xlu0 %2175 }
 0x338   :  { %2625 = vrot.lane.b32.xlu1 %v11573_v44, %s6520_s20  ;;  %2326 = vst.msk [vmem:[#allocation2 + $0x90] sm:$0xff] %vm2316_vm13, %v2176_v6 }
 0x339   :  { %2540 = vst.msk [vmem:[#allocation2 + $0x90] sm:$0xff] %vm2530_vm14, %v8936_v40  ;;  %1871 = vrot.lane.b32.xlu0 %v8712_v39, %s6518_s27 }
 0x33a   :  { %v3146_v20 = vpop.permute.xlu1 %3145 }
 0x33b   :  { %3297 = vst.msk [vmem:[#allocation2 + $0x80] sm:$0xff] %vm3288_vm3, %v3146_v20  ;;  %v2608_v2 = vpop.permute.xlu0 %2607 }
 0x33c   :  { %2946 = vrot.lane.b32.xlu1 %v11574_v47, %s6521_s21  ;;  %2758 = vst.msk [vmem:[#allocation2 + $0x90] sm:$0xff] %vm2748_vm15, %v2608_v2 }
 0x33d   :  { %2195 = vrot.lane.b32.xlu0 %v8688_v28, %s6519_s30 }
 0x33e   :  { %v1534_v19 = vpop.permute.xlu1 %1533 }
 0x33f   :  { %1683 = vst.msk [vmem:[#allocation2 + $0xa0] sm:$0xff] %vm1672_vm11, %v1534_v19  ;;  %v2929_v7 = vpop.permute.xlu0 %2928 }
 0x340   :  { %3165 = vrot.lane.b32.xlu1 %v11575_v63, %s6522_s23  ;;  %3079 = vst.msk [vmem:[#allocation2 + $0x90] sm:$0xff] %vm3069_vm2, %v2929_v7 }
 0x341   :  { %2627 = vrot.lane.b32.xlu0 %v11576_v41, %s6520_s20 }
 0x342   :  { %v1854_v40 = vpop.permute.xlu1 %1853  ;;  %v3412_v39 = vld [vmem:[#allocation2 + $0x80] sm:$0xff] }
 0x343   :  { %2003 = vst.msk [vmem:[#allocation2 + $0xa0] sm:$0xff] %vm1992_vm12, %v1854_v40  ;;  %3784 = vmatmul.mubr.f32.gmra.mrb[16].mxu1 %v3412_v39  ;;  %v3148_v28 = vpop.permute.xlu0 %3147 }
 0x344   :  { %1553 = vrot.lane.b32.xlu1 %v11573_v44, %s6517_s22  ;;  %5709 = vmatprep.mubr.msk.f32.mxu1 %vm701_vm5, %v3415_v55  ;;  %3298 = vst.msk [vmem:[#allocation2 + $0x90] sm:$0xff] %vm3288_vm3, %v3148_v28  ;;  %v11581_v44 = vld [vmem:[#allocation93_spill] sm:$0xff] }
 0x345   :  { %2948 = vrot.lane.b32.xlu0 %v11577_v30, %s6521_s21 }
 0x346   :  { %v2178_v22 = vpop.permute.xlu1 %2177 }
 0x347   :  { %2327 = vst.msk [vmem:[#allocation2 + $0xa0] sm:$0xff] %vm2316_vm13, %v2178_v22  ;;  %v1536_v16 = vpop.permute.xlu0 %1535 }
 0x348   :  { %2541 = vst.msk [vmem:[#allocation2 + $0xa0] sm:$0xff] %vm2530_vm14, %v8949_v10  ;;  %1873 = vrot.lane.b32.xlu1 %v11578_v37, %s6518_s27  ;;  %v3417_v10 = vld [vmem:[#allocation2 + $0xa8] sm:$0xff] }
 0x349   :  { %1684 = vst.msk [vmem:[#allocation2 + $0xb0] sm:$0xff] %vm1672_vm11, %v1536_v16  ;;  %3167 = vrot.lane.b32.xlu0 %v8746_v14, %s6522_s23  ;;  %v11584_v16 = vrot.slane %v8056_v23, 6 }
 0x34a   :  { %v2610_v17 = vpop.permute.xlu1 %2609 }
 0x34b   :  { %2759 = vst.msk [vmem:[#allocation2 + $0xa0] sm:$0xff] %vm2748_vm15, %v2610_v17  ;;  %v1856_v46 = vpop.permute.xlu0 %1855  ;;  %v3414_v0 = vld [vmem:[#allocation2 + $0x90] sm:$0xff] }
 0x34c   :  { %2197 = vrot.lane.b32.xlu1 %v11575_v63, %s6519_s30  ;;  %2004 = vst.msk [vmem:[#allocation2 + $0xb0] sm:$0xff] %vm1992_vm12, %v1856_v46  ;;  %3789 = vmatmul.mubr.f32.gmra.mrb[18].mxu1 %v3414_v0 }
 0x34d   :  { %1555 = vrot.lane.b32.xlu0 %v11576_v41, %s6517_s22  ;;  %5710 = vmatprep.mubr.msk.f32.mxu1 %vm701_vm5, %v3417_v10 }
 0x34e   :  { %v2931_v61 = vpop.permute.xlu1 %2930 }
 0x34f   :  { %3080 = vst.msk [vmem:[#allocation2 + $0xa0] sm:$0xff] %vm3069_vm2, %v2931_v61  ;;  %v2180_v48 = vpop.permute.xlu0 %2179 }
 0x350   :  { %2629 = vrot.lane.b32.xlu1 %v8749_v24, %s6520_s20  ;;  %2328 = vst.msk [vmem:[#allocation2 + $0xb0] sm:$0xff] %vm2316_vm13, %v2180_v48 }
 0x351   :  { %2542 = vst.msk [vmem:[#allocation2 + $0xb0] sm:$0xff] %vm2530_vm14, %v8947_v26  ;;  %1875 = vrot.lane.b32.xlu0 %v8758_v62, %s6518_s27 }
 0x352   :  { %v3150_v31 = vpop.permute.xlu1 %3149 }
 0x353   :  { %3299 = vst.msk [vmem:[#allocation2 + $0xa0] sm:$0xff] %vm3288_vm3, %v3150_v31  ;;  %v2612_v33 = vpop.permute.xlu0 %2611 }
 0x354   :  { %2950 = vrot.lane.b32.xlu1 %v11579_v32, %s6521_s21  ;;  %2760 = vst.msk [vmem:[#allocation2 + $0xb0] sm:$0xff] %vm2748_vm15, %v2612_v33  ;;  %v11586_v32 = vrot.slane %v8056_v23, 1 }
 0x355   :  { %2199 = vrot.lane.b32.xlu0 %v8746_v14, %s6519_s30 }
 0x356   :  { %v1538_v3 = vpop.permute.xlu1 %1537 }
 0x357   :  { %1685 = vst.msk [vmem:[#allocation2 + $0xc0] sm:$0xff] %vm1672_vm11, %v1538_v3  ;;  %v2933_v21 = vpop.permute.xlu0 %2932  ;;  %v11587_v3 = vld [vmem:[#allocation21_spill] sm:$0xff] }
 0x358   :  { %3169 = vrot.lane.b32.xlu1 %v8761_v53, %s6522_s23  ;;  %3081 = vst.msk [vmem:[#allocation2 + $0xb0] sm:$0xff] %vm3069_vm2, %v2933_v21  ;;  %v2856_v21 = vrot.slane %v11587_v3, 6 }
 0x359   :  { %2631 = vrot.lane.b32.xlu0 %v8764_v27, %s6520_s20 }
 0x35a   :  { %v1858_v26 = vpop.permute.xlu1 %1857  ;;  %v3416_v62 = vld [vmem:[#allocation2 + $0xa0] sm:$0xff] }
 0x35b   :  { %2005 = vst.msk [vmem:[#allocation2 + $0xc0] sm:$0xff] %vm1992_vm12, %v1858_v26  ;;  %3794 = vmatmul.mubr.f32.gmra.mrb[20].mxu1 %v3416_v62  ;;  %v3152_v14 = vpop.permute.xlu0 %3151  ;;  %v3427_v26 = vld [vmem:[#allocation2 + $0xf8] sm:$0xff] }
 0x35c   :  { %1557 = vrot.lane.b32.xlu1 %v8749_v24, %s6517_s22  ;;  %5711 = vmatprep.mubr.msk.f32.mxu1 %vm701_vm5, %v3419_v42  ;;  %3300 = vst.msk [vmem:[#allocation2 + $0xb0] sm:$0xff] %vm3288_vm3, %v3152_v14  ;;  %v11582_v24 = vld [vmem:[#allocation95_spill] sm:$0xff]  ;;  %v2105_v14 = vrot.slane %v11587_v3, 7 }
 0x35d   :  { %2952 = vrot.lane.b32.xlu0 %v11580_v51, %s6521_s21 }
 0x35e   :  { %v2182_v43 = vpop.permute.xlu1 %2181 }
 0x35f   :  { %2329 = vst.msk [vmem:[#allocation2 + $0xc0] sm:$0xff] %vm2316_vm13, %v2182_v43  ;;  %v1540_v6 = vpop.permute.xlu0 %1539 }
 0x360   :  { %2543 = vst.msk [vmem:[#allocation2 + $0xc0] sm:$0xff] %vm2530_vm14, %v8957_v18  ;;  %1877 = vrot.lane.b32.xlu1 %v11581_v44, %s6518_s27  ;;  %v3421_v18 = vld [vmem:[#allocation2 + $0xc8] sm:$0xff]  ;;  %v1465_v44 = vrot.slane %v11587_v3, 1 }
 0x361   :  { %1686 = vst.msk [vmem:[#allocation2 + $0xd0] sm:$0xff] %vm1672_vm11, %v1540_v6  ;;  %3171 = vrot.lane.b32.xlu0 %v11582_v24, %s6522_s23 }
 0x362   :  { %v2614_v20 = vpop.permute.xlu1 %2613 }
 0x363   :  { %2761 = vst.msk [vmem:[#allocation2 + $0xc0] sm:$0xff] %vm2748_vm15, %v2614_v20  ;;  %v1860_v47 = vpop.permute.xlu0 %1859  ;;  %v3418_v2 = vld [vmem:[#allocation2 + $0xb0] sm:$0xff] }
 0x364   :  { %2201 = vrot.lane.b32.xlu1 %v8761_v53, %s6519_s30  ;;  %2006 = vst.msk [vmem:[#allocation2 + $0xd0] sm:$0xff] %vm1992_vm12, %v1860_v47  ;;  %3799 = vmatmul.mubr.f32.gmra.mrb[22].mxu1 %v3418_v2  ;;  %v11588_v2 = vld [vmem:[#allocation22_spill] sm:$0xff] }
 0x365   :  { %1559 = vrot.lane.b32.xlu0 %v8764_v27, %s6517_s22  ;;  %5712 = vmatprep.mubr.msk.f32.mxu1 %vm701_vm5, %v3421_v18 }
 0x366   :  { %v2935_v19 = vpop.permute.xlu1 %2934 }
 0x367   :  { %3082 = vst.msk [vmem:[#allocation2 + $0xc0] sm:$0xff] %vm3069_vm2, %v2935_v19  ;;  %v2184_v63 = vpop.permute.xlu0 %2183  ;;  %v2858_v19 = vrot.slane %v11588_v2, 6 }
 0x368   :  { %2633 = vrot.lane.b32.xlu1 %v8795_v12, %s6520_s20  ;;  %2330 = vst.msk [vmem:[#allocation2 + $0xd0] sm:$0xff] %vm2316_vm13, %v2184_v63 }
 0x369   :  { %2544 = vst.msk [vmem:[#allocation2 + $0xd0] sm:$0xff] %vm2530_vm14, %v8955_v9  ;;  %1879 = vrot.lane.b32.xlu0 %v8801_v4, %s6518_s27 }
 0x36a   :  { %v3154_v7 = vpop.permute.xlu1 %3153 }
 0x36b   :  { %3301 = vst.msk [vmem:[#allocation2 + $0xc0] sm:$0xff] %vm3288_vm3, %v3154_v7  ;;  %v2616_v53 = vpop.permute.xlu0 %2615  ;;  %v11589_v7 = vrot.slane %v8056_v23, 2 }
 0x36c   :  { %2954 = vrot.lane.b32.xlu1 %v8798_v50, %s6521_s21  ;;  %2762 = vst.msk [vmem:[#allocation2 + $0xd0] sm:$0xff] %vm2748_vm15, %v2616_v53  ;;  %v3423_v50 = vld [vmem:[#allocation2 + $0xd8] sm:$0xff] }
 0x36d   :  { %2203 = vrot.lane.b32.xlu0 %v11582_v24, %s6519_s30 }
 0x36e   :  { %v1542_v27 = vpop.permute.xlu1 %1541 }
 0x36f   :  { %1687 = vst.msk [vmem:[#allocation2 + $0xe0] sm:$0xff] %vm1672_vm11, %v1542_v27  ;;  %v2937_v40 = vpop.permute.xlu0 %2936  ;;  %v2859_v27 = vsel %vm2804_vm10, %v2856_v21, %v2858_v19 }
 0x370   :  { %3173 = vrot.lane.b32.xlu1 %v8804_v56, %s6522_s23  ;;  %3083 = vst.msk [vmem:[#allocation2 + $0xd0] sm:$0xff] %vm3069_vm2, %v2937_v40  ;;  %v2107_v40 = vrot.slane %v11588_v2, 7 }
 0x371   :  { %2635 = vrot.lane.b32.xlu0 %v8807_v54, %s6520_s20 }
 0x372   :  { %v1862_v9 = vpop.permute.xlu1 %1861  ;;  %v3420_v4 = vld [vmem:[#allocation2 + $0xc0] sm:$0xff] }
 0x373   :  { %2007 = vst.msk [vmem:[#allocation2 + $0xe0] sm:$0xff] %vm1992_vm12, %v1862_v9  ;;  %3804 = vmatmul.mubr.f32.gmra.mrb[24].mxu1 %v3420_v4  ;;  %v3156_v39 = vpop.permute.xlu0 %3155 }
 0x374   :  { %1561 = vrot.lane.b32.xlu1 %v8795_v12, %s6517_s22  ;;  %5713 = vmatprep.mubr.msk.f32.mxu1 %vm701_vm5, %v3423_v50  ;;  %3302 = vst.msk [vmem:[#allocation2 + $0xd0] sm:$0xff] %vm3288_vm3, %v3156_v39  ;;  %v2108_v50 = vsel %vm2049_vm7, %v2105_v14, %v2107_v40 }
 0x375   :  { %2956 = vrot.lane.b32.xlu0 %v8815_v57, %s6521_s21 }
 0x376   :  { %v2186_v41 = vpop.permute.xlu1 %2185 }
 0x377   :  { %2331 = vst.msk [vmem:[#allocation2 + $0xe0] sm:$0xff] %vm2316_vm13, %v2186_v41  ;;  %v1544_v55 = vpop.permute.xlu0 %1543 }
 0x378   :  { %2545 = vst.msk [vmem:[#allocation2 + $0xe0] sm:$0xff] %vm2530_vm14, %v8965_v29  ;;  %1881 = vrot.lane.b32.xlu1 %v8810_v5, %s6518_s27  ;;  %v3425_v29 = vld [vmem:[#allocation2 + $0xe8] sm:$0xff] }
 0x379   :  { %1688 = vst.msk [vmem:[#allocation2 + $0xf0] sm:$0xff] %vm1672_vm11, %v1544_v55  ;;  %3175 = vrot.lane.b32.xlu0 %v8820_v13, %s6522_s23  ;;  %v11583_v5 = vld [vmem:[#allocation20_spill] sm:$0xff] }
 0x37a   :  { %v2618_v28 = vpop.permute.xlu1 %2617  ;;  %v2854_v30 = vrot.slane %v11583_v5, 6  ;;  %v2103_v17 = vrot.slane %v11583_v5, 7  ;;  %v1463_v61 = vrot.slane %v11583_v5, 1  ;;  %v1783_v24 = vrot.slane %v11583_v5, 2 }
 0x37b   :  { %2763 = vst.msk [vmem:[#allocation2 + $0xe0] sm:$0xff] %vm2748_vm15, %v2618_v28  ;;  %v1864_v12 = vpop.permute.xlu0 %1863  ;;  %v3422_v57 = vld [vmem:[#allocation2 + $0xd0] sm:$0xff]  ;;  %v11590_v28 = vld [vmem:[#allocation23_spill] sm:$0xff] }
 0x37c   :  { %2205 = vrot.lane.b32.xlu1 %v8804_v56, %s6519_s30  ;;  %2008 = vst.msk [vmem:[#allocation2 + $0xf0] sm:$0xff] %vm1992_vm12, %v1864_v12  ;;  %3809 = vmatmul.mubr.f32.gmra.mrb[26].mxu1 %v3422_v57  ;;  %v1464_v33 = vsel %vm1407_vm8, %v11586_v32, %v1463_v61  ;;  %v2857_v42 = vsel %vm2804_vm10, %v2854_v30, %v2856_v21  ;;  %v2860_v12 = vrot.slane %v11590_v28, 6  ;;  %v3431_v57 = vld [vmem:[#allocation2 + $0x118] sm:$0xff] }
 0x37d   :  { %1563 = vrot.lane.b32.xlu0 %v8807_v54, %s6517_s22  ;;  %5714 = vmatprep.mubr.msk.f32.mxu1 %vm701_vm5, %v3425_v29  ;;  %v2855_v54 = vsel %vm2804_vm10, %v11584_v16, %v2854_v30  ;;  %v2106_v51 = vsel %vm2049_vm7, %v2103_v17, %v2105_v14  ;;  %v1466_v47 = vsel %vm1407_vm8, %v1463_v61, %v1465_v44 }
 0x37e   :  { %v2939_v22 = vpop.permute.xlu1 %2938  ;;  %v1784_v53 = vsel %vm1727_vm9, %v11589_v7, %v1783_v24  ;;  %v2861_v30 = vsel %vm2804_vm10, %v2858_v19, %v2860_v12 }
 0x37f   :  { %3084 = vst.msk [vmem:[#allocation2 + $0xe0] sm:$0xff] %vm3069_vm2, %v2939_v22  ;;  %v2188_v56 = vpop.permute.xlu0 %2187  ;;  %v1785_v22 = vrot.slane %v11587_v3, 2 }
 0x380   :  { %2637 = vrot.lane.b32.xlu1 %v8839_v58, %s6520_s20  ;;  %2332 = vst.msk [vmem:[#allocation2 + $0xf0] sm:$0xff] %vm2316_vm13, %v2188_v56  ;;  %v2109_v56 = vrot.slane %v11590_v28, 7 }
 0x381   :  { %2546 = vst.msk [vmem:[#allocation2 + $0xf0] sm:$0xff] %vm2530_vm14, %v8963_v60  ;;  %1883 = vrot.lane.b32.xlu0 %v8842_v25, %s6518_s27  ;;  %v11585_v60 = vrot.slane %v8056_v23, 7  ;;  %v1467_v23 = vrot.slane %v11588_v2, 1 }
 0x382   :  { %v3158_v37 = vpop.permute.xlu1 %3157 }
 0x383   :  { %3303 = vst.msk [vmem:[#allocation2 + $0xe0] sm:$0xff] %vm3288_vm3, %v3158_v37  ;;  %v2620_v46 = vpop.permute.xlu0 %2619  ;;  %v2104_v10 = vsel %vm2049_vm7, %v11585_v60, %v2103_v17  ;;  %v1468_v55 = vsel %vm1407_vm8, %v1465_v44, %v1467_v23  ;;  %v1786_v37 = vsel %vm1727_vm9, %v1783_v24, %v1785_v22  ;;  %v2110_v17 = vsel %vm2049_vm7, %v2107_v40, %v2109_v56 }
 0x384   :  { %2958 = vrot.lane.b32.xlu1 %v2855_v54, %s6521_s21  ;;  %2764 = vst.msk [vmem:[#allocation2 + $0xf0] sm:$0xff] %vm2748_vm15, %v2620_v46  ;;  %v1469_v46 = vrot.slane %v11590_v28, 1  ;;  %v1789_v24 = vrot.slane %v11590_v28, 2 }
 0x385   :  { %2207 = vrot.lane.b32.xlu0 %v8820_v13, %s6519_s30 }
 0x386   :  { %v1546_v0 = vpop.permute.xlu1 %1545 }
 0x387   :  { %1689 = vst.msk [vmem:[#allocation2 + $0x100] sm:$0xff] %vm1672_vm11, %v1546_v0  ;;  %v2941_v25 = vpop.permute.xlu0 %2940 }
 0x388   :  { %3177 = vrot.lane.b32.xlu1 %v2104_v10, %s6522_s23  ;;  %3085 = vst.msk [vmem:[#allocation2 + $0xf0] sm:$0xff] %vm3069_vm2, %v2941_v25  ;;  %v1470_v25 = vsel %vm1407_vm8, %v1467_v23, %v1469_v46 }
 0x389   :  { %2639 = vrot.lane.b32.xlu0 %v1464_v33, %s6520_s20 }
 0x38a   :  { %v1866_v48 = vpop.permute.xlu1 %1865  ;;  %v3424_v31 = vld [vmem:[#allocation2 + $0xe0] sm:$0xff] }
 0x38b   :  { %2009 = vst.msk [vmem:[#allocation2 + $0x100] sm:$0xff] %vm1992_vm12, %v1866_v48  ;;  %3814 = vmatmul.mubr.f32.gmra.mrb[28].mxu1 %v3424_v31  ;;  %v3160_v13 = vpop.permute.xlu0 %3159  ;;  %v11591_v48 = vld [vmem:[#allocation24_spill] sm:$0xff] }
 0x38c   :  { %1565 = vrot.lane.b32.xlu1 %v8839_v58, %s6517_s22  ;;  %5715 = vmatprep.mubr.msk.f32.mxu1 %vm701_vm5, %v3427_v26  ;;  %3304 = vst.msk [vmem:[#allocation2 + $0xf0] sm:$0xff] %vm3288_vm3, %v3160_v13  ;;  %v2862_v31 = vrot.slane %v11591_v48, 6  ;;  %v2111_v26 = vrot.slane %v11591_v48, 7  ;;  %v1471_v14 = vrot.slane %v11591_v48, 1 }
 0x38d   :  { %2960 = vrot.lane.b32.xlu0 %v2857_v42, %s6521_s21 }
 0x38e   :  { %v2190_v62 = vpop.permute.xlu1 %2189  ;;  %v2863_v21 = vsel %vm2804_vm10, %v2860_v12, %v2862_v31 }
 0x38f   :  { %2333 = vst.msk [vmem:[#allocation2 + $0x100] sm:$0xff] %vm2316_vm13, %v2190_v62  ;;  %v1548_v58 = vpop.permute.xlu0 %1547 }
 0x390   :  { %2547 = vst.msk [vmem:[#allocation2 + $0x100] sm:$0xff] %vm2530_vm14, %v8973_v45  ;;  %1885 = vrot.lane.b32.xlu1 %v8847_v59, %s6518_s27  ;;  %v3429_v59 = vld [vmem:[#allocation2 + $0x108] sm:$0xff] }
 0x391   :  { %1690 = vst.msk [vmem:[#allocation2 + $0x110] sm:$0xff] %vm1672_vm11, %v1548_v58  ;;  %3179 = vrot.lane.b32.xlu0 %v2106_v51, %s6522_s23  ;;  %v2112_v58 = vsel %vm2049_vm7, %v2109_v56, %v2111_v26 }
 0x392   :  { %v2622_v43 = vpop.permute.xlu1 %2621 }
 0x393   :  { %2765 = vst.msk [vmem:[#allocation2 + $0x100] sm:$0xff] %vm2748_vm15, %v2622_v43  ;;  %v1868_v6 = vpop.permute.xlu0 %1867  ;;  %v3426_v20 = vld [vmem:[#allocation2 + $0xf0] sm:$0xff] }
 0x394   :  { %2209 = vrot.lane.b32.xlu1 %v2104_v10, %s6519_s30  ;;  %2010 = vst.msk [vmem:[#allocation2 + $0x110] sm:$0xff] %vm1992_vm12, %v1868_v6  ;;  %3819 = vmatmul.mubr.f32.gmra.mrb[30].mxu1 %v3426_v20  ;;  %v1787_v10 = vrot.slane %v11588_v2, 2  ;;  %v1472_v6 = vsel %vm1407_vm8, %v1469_v46, %v1471_v14  ;;  %v11592_v20 = vld [vmem:[#allocation25_spill] sm:$0xff] }
 0x395   :  { %1567 = vrot.lane.b32.xlu0 %v1464_v33, %s6517_s22  ;;  %5716 = vmatprep.mubr.msk.f32.mxu1 %vm701_vm5, %v3429_v59  ;;  %v3435_v59 = vld [vmem:[#allocation2 + $0x138] sm:$0xff] }
 0x396   :  { %v2943_v45 = vpop.permute.xlu1 %2942  ;;  %v1788_v3 = vsel %vm1727_vm9, %v1785_v22, %v1787_v10 }
 0x397   :  { %3086 = vst.msk [vmem:[#allocation2 + $0x100] sm:$0xff] %vm3069_vm2, %v2943_v45  ;;  %v2192_v18 = vpop.permute.xlu0 %2191  ;;  %v2864_v45 = vrot.slane %v11592_v20, 6 }
 0x398   :  { %2641 = vrot.lane.b32.xlu1 %v1466_v47, %s6520_s20  ;;  %2334 = vst.msk [vmem:[#allocation2 + $0x110] sm:$0xff] %vm2316_vm13, %v2192_v18  ;;  %v2113_v18 = vrot.slane %v11592_v20, 7 }
 0x399   :  { %2548 = vst.msk [vmem:[#allocation2 + $0x110] sm:$0xff] %vm2530_vm14, %v8971_v8  ;;  %1887 = vrot.lane.b32.xlu0 %v1784_v53, %s6518_s27  ;;  %v2865_v19 = vsel %vm2804_vm10, %v2862_v31, %v2864_v45 }
 0x39a   :  { %v3162_v63 = vpop.permute.xlu1 %3161 }
 0x39b   :  { %3305 = vst.msk [vmem:[#allocation2 + $0x100] sm:$0xff] %vm3288_vm3, %v3162_v63  ;;  %v2624_v9 = vpop.permute.xlu0 %2623  ;;  %v1790_v63 = vsel %vm1727_vm9, %v1787_v10, %v1789_v24 }
 0x39c   :  { %2962 = vrot.lane.b32.xlu1 %v2859_v27, %s6521_s21  ;;  %2766 = vst.msk [vmem:[#allocation2 + $0x110] sm:$0xff] %vm2748_vm15, %v2624_v9  ;;  %v2114_v9 = vsel %vm2049_vm7, %v2111_v26, %v2113_v18 }
 0x39d   :  { %2211 = vrot.lane.b32.xlu0 %v2106_v51, %s6519_s30 }
 0x39e   :  { %v1550_v4 = vpop.permute.xlu1 %1549 }
 0x39f   :  { %1691 = vst.msk [vmem:[#allocation2 + $0x120] sm:$0xff] %vm1672_vm11, %v1550_v4  ;;  %v2945_v8 = vpop.permute.xlu0 %2944  ;;  %v1473_v4 = vrot.slane %v11592_v20, 1 }
 0x3a0   :  { %3181 = vrot.lane.b32.xlu1 %v2108_v50, %s6522_s23  ;;  %3087 = vst.msk [vmem:[#allocation2 + $0x110] sm:$0xff] %vm3069_vm2, %v2945_v8  ;;  %v3437_v8 = vld [vmem:[#allocation2 + $0x148] sm:$0xff] }
 0x3a1   :  { %2643 = vrot.lane.b32.xlu0 %v1468_v55, %s6520_s20 }
 0x3a2   :  { %v1870_v39 = vpop.permute.xlu1 %1869  ;;  %v3428_v41 = vld [vmem:[#allocation2 + $0x100] sm:$0xff] }
 0x3a3   :  { %2011 = vst.msk [vmem:[#allocation2 + $0x120] sm:$0xff] %vm1992_vm12, %v1870_v39  ;;  %3824 = vmatmul.mubr.f32.gmra.mrb[32].mxu1 %v3428_v41  ;;  %v3164_v29 = vpop.permute.xlu0 %3163  ;;  %v1791_v39 = vrot.slane %v11591_v48, 2  ;;  %v1474_v41 = vsel %vm1407_vm8, %v1471_v14, %v1473_v4  ;;  %v1793_v48 = vrot.slane %v11592_v20, 2  ;;  %v11595_v20 = vld [vmem:[#allocation28_spill] sm:$0xff] }
 0x3a4   :  { %1569 = vrot.lane.b32.xlu1 %v1466_v47, %s6517_s22  ;;  %5717 = vmatprep.mubr.msk.f32.mxu1 %vm701_vm5, %v3431_v57  ;;  %3306 = vst.msk [vmem:[#allocation2 + $0x110] sm:$0xff] %vm3288_vm3, %v3164_v29 }
 0x3a5   :  { %2964 = vrot.lane.b32.xlu0 %v2861_v30, %s6521_s21  ;;  %v1792_v29 = vsel %vm1727_vm9, %v1789_v24, %v1791_v39 }
 0x3a6   :  { %v2194_v5 = vpop.permute.xlu1 %2193 }
 0x3a7   :  { %2335 = vst.msk [vmem:[#allocation2 + $0x120] sm:$0xff] %vm2316_vm13, %v2194_v5  ;;  %v1552_v16 = vpop.permute.xlu0 %1551 }
 0x3a8   :  { %2549 = vst.msk [vmem:[#allocation2 + $0x120] sm:$0xff] %vm2530_vm14, %v8981_v49  ;;  %1889 = vrot.lane.b32.xlu1 %v1786_v37, %s6518_s27  ;;  %v3433_v49 = vld [vmem:[#allocation2 + $0x128] sm:$0xff] }
 0x3a9   :  { %1692 = vst.msk [vmem:[#allocation2 + $0x130] sm:$0xff] %vm1672_vm11, %v1552_v16  ;;  %3183 = vrot.lane.b32.xlu0 %v2110_v17, %s6522_s23 }
 0x3aa   :  { %v2626_v54 = vpop.permute.xlu1 %2625 }
 0x3ab   :  { %2767 = vst.msk [vmem:[#allocation2 + $0x120] sm:$0xff] %vm2748_vm15, %v2626_v54  ;;  %v1872_v0 = vpop.permute.xlu0 %1871  ;;  %v3430_v61 = vld [vmem:[#allocation2 + $0x110] sm:$0xff] }
 0x3ac   :  { %2213 = vrot.lane.b32.xlu1 %v2108_v50, %s6519_s30  ;;  %2012 = vst.msk [vmem:[#allocation2 + $0x130] sm:$0xff] %vm1992_vm12, %v1872_v0  ;;  %3829 = vmatmul.mubr.f32.gmra.mrb[34].mxu1 %v3430_v61 }
 0x3ad   :  { %1571 = vrot.lane.b32.xlu0 %v1468_v55, %s6517_s22  ;;  %5718 = vmatprep.mubr.msk.f32.mxu1 %vm701_vm5, %v3433_v49  ;;  %v11593_v55 = vld [vmem:[#allocation26_spill] sm:$0xff]  ;;  %v11594_v49 = vld [vmem:[#allocation27_spill] sm:$0xff] }
 0x3ae   :  { %v2947_v60 = vpop.permute.xlu1 %2946  ;;  %v2866_v28 = vrot.slane %v11593_v55, 6  ;;  %v2115_v30 = vrot.slane %v11593_v55, 7  ;;  %v1475_v54 = vrot.slane %v11593_v55, 1  ;;  %v2868_v10 = vrot.slane %v11594_v49, 6 }
 0x3af   :  { %3088 = vst.msk [vmem:[#allocation2 + $0x120] sm:$0xff] %vm3069_vm2, %v2947_v60  ;;  %v2196_v32 = vpop.permute.xlu0 %2195 }
 0x3b0   :  { %2645 = vrot.lane.b32.xlu1 %v1470_v25, %s6520_s20  ;;  %2336 = vst.msk [vmem:[#allocation2 + $0x130] sm:$0xff] %vm2316_vm13, %v2196_v32  ;;  %v2867_v5 = vsel %vm2804_vm10, %v2864_v45, %v2866_v28  ;;  %v1476_v60 = vsel %vm1407_vm8, %v1473_v4, %v1475_v54  ;;  %v2870_v45 = vrot.slane %v11595_v20, 6 }
 0x3b1   :  { %2550 = vst.msk [vmem:[#allocation2 + $0x130] sm:$0xff] %vm2530_vm14, %v8979_v1  ;;  %1891 = vrot.lane.b32.xlu0 %v1788_v3, %s6518_s27  ;;  %v2117_v3 = vrot.slane %v11594_v49, 7 }
 0x3b2   :  { %v3166_v33 = vpop.permute.xlu1 %3165 }
 0x3b3   :  { %3307 = vst.msk [vmem:[#allocation2 + $0x120] sm:$0xff] %vm3288_vm3, %v3166_v33  ;;  %v2628_v13 = vpop.permute.xlu0 %2627  ;;  %v2869_v33 = vsel %vm2804_vm10, %v2866_v28, %v2868_v10  ;;  %v2118_v14 = vsel %vm2049_vm7, %v2115_v30, %v2117_v3 }
 0x3b4   :  { %2966 = vrot.lane.b32.xlu1 %v2863_v21, %s6521_s21  ;;  %2768 = vst.msk [vmem:[#allocation2 + $0x130] sm:$0xff] %vm2748_vm15, %v2628_v13  ;;  %v3745_v42 = vpop.f32.mrb[0].mxu1  ;;  %v1794_v21 = vsel %vm1727_vm9, %v1791_v39, %v1793_v48 }
 0x3b5   :  { %4010 = vst.msk [vmem:[#allocation3] sm:$0xff] %vm4009_vm4, %v3745_v42  ;;  %v3747_v1 = vpop.f32.mrb[1].mxu1  ;;  %2215 = vrot.lane.b32.xlu0 %v2110_v17, %s6519_s30 }
 0x3b6   :  { %v1554_v62 = vpop.permute.xlu1 %1553  ;;  %v1477_v1 = vrot.slane %v11594_v49, 1 }
 0x3b7   :  { %1693 = vst.msk [vmem:[#allocation2 + $0x140] sm:$0xff] %vm1672_vm11, %v1554_v62  ;;  %v2949_v43 = vpop.permute.xlu0 %2948 }
 0x3b8   :  { %3185 = vrot.lane.b32.xlu1 %v2112_v58, %s6522_s23  ;;  %3089 = vst.msk [vmem:[#allocation2 + $0x130] sm:$0xff] %vm3069_vm2, %v2949_v43 }
 0x3b9   :  { %2647 = vrot.lane.b32.xlu0 %v1472_v6, %s6520_s20 }
 0x3ba   :  { %v1874_v51 = vpop.permute.xlu1 %1873  ;;  %v3432_v44 = vld [vmem:[#allocation2 + $0x120] sm:$0xff] }
 0x3bb   :  { %2013 = vst.msk [vmem:[#allocation2 + $0x140] sm:$0xff] %vm1992_vm12, %v1874_v51  ;;  %3834 = vmatmul.mubr.f32.gmra.mrb[36].mxu1 %v3432_v44  ;;  %v3168_v47 = vpop.permute.xlu0 %3167  ;;  %v3441_v51 = vld [vmem:[#allocation2 + $0x168] sm:$0xff]  ;;  %v1795_v44 = vrot.slane %v11593_v55, 2  ;;  %v1797_v55 = vrot.slane %v11594_v49, 2 }
 0x3bc   :  { %1573 = vrot.lane.b32.xlu1 %v1470_v25, %s6517_s22  ;;  %5719 = vmatprep.mubr.msk.f32.mxu1 %vm701_vm5, %v3435_v59  ;;  %3308 = vst.msk [vmem:[#allocation2 + $0x130] sm:$0xff] %vm3288_vm3, %v3168_v47  ;;  %v3439_v25 = vld [vmem:[#allocation2 + $0x158] sm:$0xff] }
 0x3bd   :  { %2968 = vrot.lane.b32.xlu0 %v2865_v19, %s6521_s21  ;;  %v1796_v47 = vsel %vm1727_vm9, %v1793_v48, %v1795_v44  ;;  %v2871_v19 = vsel %vm2804_vm10, %v2868_v10, %v2870_v45 }
 0x3be   :  { %v2198_v2 = vpop.permute.xlu1 %2197 }
 0x3bf   :  { %2337 = vst.msk [vmem:[#allocation2 + $0x140] sm:$0xff] %vm2316_vm13, %v2198_v2  ;;  %v1556_v7 = vpop.permute.xlu0 %1555  ;;  %v3750_v53 = vpop.f32.mrb[2].mxu1  ;;  %v11596_v2 = vld [vmem:[#allocation18_spill] sm:$0xff] }
 0x3c0   :  { %2551 = vst.msk [vmem:[#allocation2 + $0x140] sm:$0xff] %vm2530_vm14, %v8989_v52  ;;  %1893 = vrot.lane.b32.xlu1 %v1790_v63, %s6518_s27  ;;  %v3752_v40 = vpop.f32.mrb[3].mxu1 }
 0x3c1   :  { %1694 = vst.msk [vmem:[#allocation2 + $0x150] sm:$0xff] %vm1672_vm11, %v1556_v7  ;;  %3187 = vrot.lane.b32.xlu0 %v2114_v9, %s6522_s23 }
 0x3c2   :  { %v2630_v27 = vpop.permute.xlu1 %2629  ;;  %4011 = vst.msk [vmem:[#allocation3 + $0x8] sm:$0xff] %vm4009_vm4, %v3750_v53 }
 0x3c3   :  { %2769 = vst.msk [vmem:[#allocation2 + $0x140] sm:$0xff] %vm2748_vm15, %v2630_v27  ;;  %v1876_v52 = vpop.permute.xlu0 %1875  ;;  %v3434_v23 = vld [vmem:[#allocation2 + $0x130] sm:$0xff]  ;;  %v1479_v27 = vrot.slane %v11595_v20, 1 }
 0x3c4   :  { %2217 = vrot.lane.b32.xlu1 %v2112_v58, %s6519_s30  ;;  %2014 = vst.msk [vmem:[#allocation2 + $0x150] sm:$0xff] %vm1992_vm12, %v1876_v52  ;;  %3839 = vmatmul.mubr.f32.gmra.mrb[38].mxu1 %v3434_v23 }
 0x3c5   :  { %1575 = vrot.lane.b32.xlu0 %v1472_v6, %s6517_s22  ;;  %5720 = vmatprep.mubr.msk.f32.mxu1 %vm701_vm5, %v3437_v8  ;;  %v1478_v6 = vsel %vm1407_vm8, %v1475_v54, %v1477_v1  ;;  %v11597_v8 = vld [vmem:[#allocation15_spill] sm:$0xff] }
 0x3c6   :  { %v2951_v50 = vpop.permute.xlu1 %2950  ;;  %v2872_v39 = vrot.slane %v11597_v8, 6  ;;  %v1481_v54 = vrot.slane %v11597_v8, 1 }
 0x3c7   :  { %3090 = vst.msk [vmem:[#allocation2 + $0x140] sm:$0xff] %vm3069_vm2, %v2951_v50  ;;  %v2200_v57 = vpop.permute.xlu0 %2199  ;;  %v1480_v50 = vsel %vm1407_vm8, %v1477_v1, %v1479_v27 }
 0x3c8   :  { %2649 = vrot.lane.b32.xlu1 %v1474_v41, %s6520_s20  ;;  %2338 = vst.msk [vmem:[#allocation2 + $0x150] sm:$0xff] %vm2316_vm13, %v2200_v57  ;;  %v2873_v57 = vsel %vm2804_vm10, %v2870_v45, %v2872_v39  ;;  %v11600_v45 = vld [vmem:[#allocation29_spill] sm:$0xff] }
 0x3c9   :  { %v4064_v12 = vld [vmem:[#allocation3] ss:$2 sm:$0x7f]  ;;  %2552 = vst.msk [vmem:[#allocation2 + $0x150] sm:$0xff] %vm2530_vm14, %v8987_v38  ;;  %1895 = vrot.lane.b32.xlu0 %v1792_v29, %s6518_s27  ;;  %v2116_v38 = vsel %vm2049_vm7, %v2113_v18, %v2115_v30  ;;  %v2119_v18 = vrot.slane %v11595_v20, 7  ;;  %v1798_v29 = vsel %vm1727_vm9, %v1795_v44, %v1797_v55 }
 0x3ca   :  { %4066 = vst.msk [vmem:[#allocation4] sm:$0x7f] %vm4065_vm6, %v4064_v12  ;;  %v3170_v22 = vpop.permute.xlu1 %3169 }
 0x3cb   :  { %3309 = vst.msk [vmem:[#allocation2 + $0x140] sm:$0xff] %vm3288_vm3, %v3170_v22  ;;  %v2632_v56 = vpop.permute.xlu0 %2631  ;;  %v2121_v22 = vrot.slane %v11597_v8, 7 }
 0x3cc   :  { %2970 = vrot.lane.b32.xlu1 %v2867_v5, %s6521_s21  ;;  %2770 = vst.msk [vmem:[#allocation2 + $0x150] sm:$0xff] %vm2748_vm15, %v2632_v56 }
 0x3cd   :  { %2219 = vrot.lane.b32.xlu0 %v2114_v9, %s6519_s30  ;;  %v2120_v9 = vsel %vm2049_vm7, %v2117_v3, %v2119_v18 }
 0x3ce   :  { %v1558_v37 = vpop.permute.xlu1 %1557  ;;  %v3755_v16 = vpop.f32.mrb[4].mxu1 }
 0x3cf   :  { %1695 = vst.msk [vmem:[#allocation2 + $0x160] sm:$0xff] %vm1672_vm11, %v1558_v37  ;;  %v3757_v17 = vpop.f32.mrb[5].mxu1  ;;  %v2953_v46 = vpop.permute.xlu0 %2952  ;;  %v2122_v16 = vsel %vm2049_vm7, %v2119_v18, %v2121_v22 }
 0x3d0   :  { %3189 = vrot.lane.b32.xlu1 %v2116_v38, %s6522_s23  ;;  %3091 = vst.msk [vmem:[#allocation2 + $0x150] sm:$0xff] %vm3069_vm2, %v2953_v46  ;;  %v3445_v46 = vld [vmem:[#allocation2 + $0x188] sm:$0xff] }
 0x3d1   :  { %2651 = vrot.lane.b32.xlu0 %v1476_v60, %s6520_s20 }
 0x3d2   :  { %v1878_v0 = vpop.permute.xlu1 %1877  ;;  %v3436_v61 = vld [vmem:[#allocation2 + $0x140] sm:$0xff] }
 0x3d3   :  { %2015 = vst.msk [vmem:[#allocation2 + $0x160] sm:$0xff] %vm1992_vm12, %v1878_v0  ;;  %3844 = vmatmul.mubr.f32.gmra.mrb[40].mxu1 %v3436_v61  ;;  %v3172_v31 = vpop.permute.xlu0 %3171  ;;  %v1799_v0 = vrot.slane %v11595_v20, 2  ;;  %v1482_v61 = vsel %vm1407_vm8, %v1479_v27, %v1481_v54 }
 0x3d4   :  { %1577 = vrot.lane.b32.xlu1 %v1474_v41, %s6517_s22  ;;  %5721 = vmatprep.mubr.msk.f32.mxu1 %vm701_vm5, %v3439_v25  ;;  %3310 = vst.msk [vmem:[#allocation2 + $0x150] sm:$0xff] %vm3288_vm3, %v3172_v31  ;;  %v3443_v41 = vld [vmem:[#allocation2 + $0x178] sm:$0xff] }
 0x3d5   :  { %2972 = vrot.lane.b32.xlu0 %v2869_v33, %s6521_s21  ;;  %v1800_v31 = vsel %vm1727_vm9, %v1797_v55, %v1799_v0 }
 0x3d6   :  { %v2202_v32 = vpop.permute.xlu1 %2201 }
 0x3d7   :  { %2339 = vst.msk [vmem:[#allocation2 + $0x160] sm:$0xff] %vm2316_vm13, %v2202_v32  ;;  %v1560_v26 = vpop.permute.xlu0 %1559  ;;  %v3760_v13 = vpop.f32.mrb[6].mxu1  ;;  %v11599_v32 = vld [vmem:[#allocation46_spill] sm:$0xff] }
 0x3d8   :  { %2553 = vst.msk [vmem:[#allocation2 + $0x160] sm:$0xff] %vm2530_vm14, %v8997_v15  ;;  %1897 = vrot.lane.b32.xlu1 %v1794_v21, %s6518_s27  ;;  %v3762_v42 = vpop.f32.mrb[7].mxu1 }
 0x3d9   :  { %1696 = vst.msk [vmem:[#allocation2 + $0x170] sm:$0xff] %vm1672_vm11, %v1560_v26  ;;  %3191 = vrot.lane.b32.xlu0 %v2118_v14, %s6522_s23 }
 0x3da   :  { %v2634_v62 = vpop.permute.xlu1 %2633  ;;  %4013 = vst.msk [vmem:[#allocation3 + $0x18] sm:$0xff] %vm4009_vm4, %v3760_v13 }
 0x3db   :  { %2771 = vst.msk [vmem:[#allocation2 + $0x160] sm:$0xff] %vm2748_vm15, %v2634_v62  ;;  %v1880_v15 = vpop.permute.xlu0 %1879  ;;  %v3438_v58 = vld [vmem:[#allocation2 + $0x150] sm:$0xff] }
 0x3dc   :  { %2221 = vrot.lane.b32.xlu1 %v2116_v38, %s6519_s30  ;;  %2016 = vst.msk [vmem:[#allocation2 + $0x170] sm:$0xff] %vm1992_vm12, %v1880_v15  ;;  %3849 = vmatmul.mubr.f32.gmra.mrb[42].mxu1 %v3438_v58 }
 0x3dd   :  { %1579 = vrot.lane.b32.xlu0 %v1476_v60, %s6517_s22  ;;  %5722 = vmatprep.mubr.msk.f32.mxu1 %vm701_vm5, %v3441_v51  ;;  %v11598_v60 = vld [vmem:[#allocation17_spill] sm:$0xff]  ;;  %v1801_v51 = vrot.slane %v11597_v8, 2 }
 0x3de   :  { %v2955_v43 = vpop.permute.xlu1 %2954  ;;  %v2874_v49 = vrot.slane %v11598_v60, 6  ;;  %v2123_v3 = vrot.slane %v11598_v60, 7  ;;  %v1483_v58 = vrot.slane %v11598_v60, 1 }
 0x3df   :  { %3092 = vst.msk [vmem:[#allocation2 + $0x160] sm:$0xff] %vm3069_vm2, %v2955_v43  ;;  %v2204_v59 = vpop.permute.xlu0 %2203  ;;  %v3447_v43 = vld [vmem:[#allocation2 + $0x198] sm:$0xff] }
 0x3e0   :  { %2653 = vrot.lane.b32.xlu1 %v1478_v6, %s6520_s20  ;;  %2340 = vst.msk [vmem:[#allocation2 + $0x170] sm:$0xff] %vm2316_vm13, %v2204_v59  ;;  %v2875_v33 = vsel %vm2804_vm10, %v2872_v39, %v2874_v49  ;;  %v2124_v42 = vsel %vm2049_vm7, %v2121_v22, %v2123_v3  ;;  %v1484_v20 = vsel %vm1407_vm8, %v1481_v54, %v1483_v58  ;;  %v2876_v59 = vrot.slane %v11600_v45, 6 }
 0x3e1   :  { %2554 = vst.msk [vmem:[#allocation2 + $0x170] sm:$0xff] %vm2530_vm14, %v11596_v2  ;;  %1899 = vrot.lane.b32.xlu0 %v1796_v47, %s6518_s27 }
 0x3e2   :  { %v3174_v24 = vpop.permute.xlu1 %3173 }
 0x3e3   :  { %3311 = vst.msk [vmem:[#allocation2 + $0x160] sm:$0xff] %vm3288_vm3, %v3174_v24  ;;  %v2636_v63 = vpop.permute.xlu0 %2635  ;;  %v1802_v24 = vsel %vm1727_vm9, %v1799_v0, %v1801_v51  ;;  %v1805_v0 = vrot.slane %v11600_v45, 2 }
 0x3e4   :  { %2974 = vrot.lane.b32.xlu1 %v2871_v19, %s6521_s21  ;;  %2772 = vst.msk [vmem:[#allocation2 + $0x170] sm:$0xff] %vm2748_vm15, %v2636_v63  ;;  %v2877_v63 = vsel %vm2804_vm10, %v2874_v49, %v2876_v59 }
 0x3e5   :  { %2223 = vrot.lane.b32.xlu0 %v2118_v14, %s6519_s30 }
 0x3e6   :  { %v1562_v7 = vpop.permute.xlu1 %1561  ;;  %v3765_v53 = vpop.f32.mrb[8].mxu1 }
 0x3e7   :  { %1697 = vst.msk [vmem:[#allocation2 + $0x180] sm:$0xff] %vm1672_vm11, %v1562_v7  ;;  %v3767_v40 = vpop.f32.mrb[9].mxu1  ;;  %v2957_v4 = vpop.permute.xlu0 %2956  ;;  %v2125_v7 = vrot.slane %v11600_v45, 7 }
 0x3e8   :  { %4014 = vst.msk [vmem:[#allocation3 + $0x20] sm:$0xff] %vm4009_vm4, %v3765_v53  ;;  %3193 = vrot.lane.b32.xlu1 %v2120_v9, %s6522_s23 }
 0x3e9   :  { %3093 = vst.msk [vmem:[#allocation2 + $0x170] sm:$0xff] %vm3069_vm2, %v2957_v4  ;;  %2655 = vrot.lane.b32.xlu0 %v1480_v50, %s6520_s20  ;;  %v2126_v40 = vsel %vm2049_vm7, %v2123_v3, %v2125_v7  ;;  %v1485_v4 = vrot.slane %v11600_v45, 1 }
 0x3ea   :  { %v1882_v52 = vpop.permute.xlu1 %1881  ;;  %v3440_v23 = vld [vmem:[#allocation2 + $0x160] sm:$0xff] }
 0x3eb   :  { %2017 = vst.msk [vmem:[#allocation2 + $0x180] sm:$0xff] %vm1992_vm12, %v1882_v52  ;;  %3854 = vmatmul.mubr.f32.gmra.mrb[44].mxu1 %v3440_v23  ;;  %v3176_v28 = vpop.permute.xlu0 %3175  ;;  %v1486_v39 = vsel %vm1407_vm8, %v1483_v58, %v1485_v4 }
 0x3ec   :  { %1581 = vrot.lane.b32.xlu1 %v1478_v6, %s6517_s22  ;;  %5723 = vmatprep.mubr.msk.f32.mxu1 %vm701_vm5, %v3443_v41  ;;  %3312 = vst.msk [vmem:[#allocation2 + $0x170] sm:$0xff] %vm3288_vm3, %v3176_v28  ;;  %v11602_v41 = vld [vmem:[#allocation30_spill] sm:$0xff] }
 0x3ed   :  { %2976 = vrot.lane.b32.xlu0 %v2873_v57, %s6521_s21  ;;  %v2878_v55 = vrot.slane %v11602_v41, 6 }
 0x3ee   :  { %v2206_v12 = vpop.permute.xlu1 %2205 }
 0x3ef   :  { %2341 = vst.msk [vmem:[#allocation2 + $0x180] sm:$0xff] %vm2316_vm13, %v2206_v12  ;;  %v1564_v5 = vpop.permute.xlu0 %1563  ;;  %v3770_v30 = vpop.f32.mrb[10].mxu1 }
 0x3f0   :  { %2555 = vst.msk [vmem:[#allocation2 + $0x180] sm:$0xff] %vm2530_vm14, %v9005_v34  ;;  %1901 = vrot.lane.b32.xlu1 %v1798_v29, %s6518_s27  ;;  %v3772_v37 = vpop.f32.mrb[11].mxu1 }
 0x3f1   :  { %1698 = vst.msk [vmem:[#allocation2 + $0x190] sm:$0xff] %vm1672_vm11, %v1564_v5  ;;  %3195 = vrot.lane.b32.xlu0 %v2122_v16, %s6522_s23  ;;  %v2879_v5 = vsel %vm2804_vm10, %v2876_v59, %v2878_v55 }
 0x3f2   :  { %v2638_v56 = vpop.permute.xlu1 %2637  ;;  %4015 = vst.msk [vmem:[#allocation3 + $0x28] sm:$0xff] %vm4009_vm4, %v3770_v30  ;;  %v2127_v30 = vrot.slane %v11602_v41, 7 }
 0x3f3   :  { %2773 = vst.msk [vmem:[#allocation2 + $0x180] sm:$0xff] %vm2748_vm15, %v2638_v56  ;;  %v1884_v34 = vpop.permute.xlu0 %1883  ;;  %v3442_v17 = vld [vmem:[#allocation2 + $0x170] sm:$0xff] }
 0x3f4   :  { %2225 = vrot.lane.b32.xlu1 %v2120_v9, %s6519_s30  ;;  %2018 = vst.msk [vmem:[#allocation2 + $0x190] sm:$0xff] %vm1992_vm12, %v1884_v34  ;;  %3859 = vmatmul.mubr.f32.gmra.mrb[46].mxu1 %v3442_v17  ;;  %v3449_v9 = vld [vmem:[#allocation2 + $0x1a8] sm:$0xff]  ;;  %v2128_v54 = vsel %vm2049_vm7, %v2125_v7, %v2127_v30  ;;  %v3451_v34 = vld [vmem:[#allocation2 + $0x1b8] sm:$0xff] }
 0x3f5   :  { %1583 = vrot.lane.b32.xlu0 %v1480_v50, %s6517_s22  ;;  %5724 = vmatprep.mubr.msk.f32.mxu1 %vm701_vm5, %v3445_v46  ;;  %v1803_v50 = vrot.slane %v11598_v60, 2  ;;  %v1487_v46 = vrot.slane %v11602_v41, 1 }
 0x3f6   :  { %v2959_v38 = vpop.permute.xlu1 %2958 }
 0x3f7   :  { %3094 = vst.msk [vmem:[#allocation2 + $0x180] sm:$0xff] %vm3069_vm2, %v2959_v38  ;;  %v2208_v25 = vpop.permute.xlu0 %2207  ;;  %v1804_v22 = vsel %vm1727_vm9, %v1801_v51, %v1803_v50 }
 0x3f8   :  { %2657 = vrot.lane.b32.xlu1 %v1482_v61, %s6520_s20  ;;  %2342 = vst.msk [vmem:[#allocation2 + $0x190] sm:$0xff] %vm2316_vm13, %v2208_v25 }
 0x3f9   :  { %v4068_v10 = vld [vmem:[#allocation3 + $0x1e] ss:$2 sm:$0x7f]  ;;  %2556 = vst.msk [vmem:[#allocation2 + $0x190] sm:$0xff] %vm2530_vm14, %v11599_v32  ;;  %1903 = vrot.lane.b32.xlu0 %v1800_v31, %s6518_s27  ;;  %v11604_v31 = vld [vmem:[#allocation31_spill] sm:$0xff] }
 0x3fa   :  { %4069 = vst.msk [vmem:[#allocation4 + $0x7] sm:$0x7f] %vm4065_vm6, %v4068_v10  ;;  %v3178_v48 = vpop.permute.xlu1 %3177  ;;  %v2880_v32 = vrot.slane %v11604_v31, 6  ;;  %v1489_v51 = vrot.slane %v11604_v31, 1 }
 0x3fb   :  { %3313 = vst.msk [vmem:[#allocation2 + $0x180] sm:$0xff] %vm3288_vm3, %v3178_v48  ;;  %v2640_v21 = vpop.permute.xlu0 %2639  ;;  %v1488_v48 = vsel %vm1407_vm8, %v1485_v4, %v1487_v46 }
 0x3fc   :  { %2978 = vrot.lane.b32.xlu1 %v2875_v33, %s6521_s21  ;;  %2774 = vst.msk [vmem:[#allocation2 + $0x190] sm:$0xff] %vm2748_vm15, %v2640_v21  ;;  %v1806_v33 = vsel %vm1727_vm9, %v1803_v50, %v1805_v0 }
 0x3fd   :  { %2227 = vrot.lane.b32.xlu0 %v2122_v16, %s6519_s30 }
 0x3fe   :  { %v1566_v26 = vpop.permute.xlu1 %1565  ;;  %v3775_v13 = vpop.f32.mrb[12].mxu1 }
 0x3ff   :  { %1699 = vst.msk [vmem:[#allocation2 + $0x1a0] sm:$0xff] %vm1672_vm11, %v1566_v26  ;;  %v3777_v62 = vpop.f32.mrb[13].mxu1  ;;  %v2961_v14 = vpop.permute.xlu0 %2960  ;;  %v2881_v13 = vsel %vm2804_vm10, %v2878_v55, %v2880_v32 }
 0x400   :  { %3197 = vrot.lane.b32.xlu1 %v2124_v42, %s6522_s23  ;;  %3095 = vst.msk [vmem:[#allocation2 + $0x190] sm:$0xff] %vm3069_vm2, %v2961_v14  ;;  %v3453_v62 = vld [vmem:[#allocation2 + $0x1c8] sm:$0xff] }
 0x401   :  { %2441 = vrot.lane.b32.xlu0 %v11597_v8, %s6516_s29  ;;  %v11601_v8 = vld [vmem:[#allocation16_spill] sm:$0xff] }
 0x402   :  { %v1886_v1 = vpop.permute.xlu1 %1885  ;;  %v3444_v15 = vld [vmem:[#allocation2 + $0x180] sm:$0xff] }
 0x403   :  { %2019 = vst.msk [vmem:[#allocation2 + $0x1a0] sm:$0xff] %vm1992_vm12, %v1886_v1  ;;  %3864 = vmatmul.mubr.f32.gmra.mrb[48].mxu1 %v3444_v15  ;;  %v3180_v44 = vpop.permute.xlu0 %3179 }
 0x404   :  { %1585 = vrot.lane.b32.xlu1 %v1482_v61, %s6517_s22  ;;  %5725 = vmatprep.mubr.msk.f32.mxu1 %vm701_vm5, %v3447_v43  ;;  %3314 = vst.msk [vmem:[#allocation2 + $0x190] sm:$0xff] %vm3288_vm3, %v3180_v44  ;;  %v11603_v61 = vld [vmem:[#allocation48_spill] sm:$0xff]  ;;  %v11605_v43 = vld [vmem:[#allocation47_spill] sm:$0xff] }
 0x405   :  { %2659 = vrot.lane.b32.xlu0 %v1484_v20, %s6520_s20 }
 0x406   :  { %v2210_v6 = vpop.permute.xlu1 %2209 }
 0x407   :  { %2343 = vst.msk [vmem:[#allocation2 + $0x1a0] sm:$0xff] %vm2316_vm13, %v2210_v6  ;;  %v1568_v47 = vpop.permute.xlu0 %1567  ;;  %v3780_v2 = vpop.f32.mrb[14].mxu1 }
 0x408   :  { %2557 = vst.msk [vmem:[#allocation2 + $0x1a0] sm:$0xff] %vm2530_vm14, %v9013_v11  ;;  %1905 = vrot.lane.b32.xlu1 %v1802_v24, %s6518_s27  ;;  %v3782_v18 = vpop.f32.mrb[15].mxu1  ;;  %v1490_v24 = vsel %vm1407_vm8, %v1487_v46, %v1489_v51 }
 0x409   :  { %1700 = vst.msk [vmem:[#allocation2 + $0x1b0] sm:$0xff] %vm1672_vm11, %v1568_v47  ;;  %2980 = vrot.lane.b32.xlu0 %v2877_v63, %s6521_s21  ;;  %v11606_v47 = vld [vmem:[#allocation32_spill] sm:$0xff] }
 0x40a   :  { %v2642_v19 = vpop.permute.xlu1 %2641  ;;  %4017 = vst.msk [vmem:[#allocation3 + $0x38] sm:$0xff] %vm4009_vm4, %v3780_v2  ;;  %v2882_v2 = vrot.slane %v11606_v47, 6 }
 0x40b   :  { %2775 = vst.msk [vmem:[#allocation2 + $0x1a0] sm:$0xff] %vm2748_vm15, %v2642_v19  ;;  %v1888_v11 = vpop.permute.xlu0 %1887  ;;  %v3446_v53 = vld [vmem:[#allocation2 + $0x190] sm:$0xff] }
 0x40c   :  { %2229 = vrot.lane.b32.xlu1 %v2124_v42, %s6519_s30  ;;  %2020 = vst.msk [vmem:[#allocation2 + $0x1b0] sm:$0xff] %vm1992_vm12, %v1888_v11  ;;  %3869 = vmatmul.mubr.f32.gmra.mrb[50].mxu1 %v3446_v53  ;;  %v2129_v42 = vrot.slane %v11604_v31, 7  ;;  %v2883_v11 = vsel %vm2804_vm10, %v2880_v32, %v2882_v2  ;;  %v3455_v53 = vld [vmem:[#allocation2 + $0x1d8] sm:$0xff] }
 0x40d   :  { %3199 = vrot.lane.b32.xlu0 %v2126_v40, %s6522_s23  ;;  %5726 = vmatprep.mubr.msk.f32.mxu1 %vm701_vm5, %v3449_v9  ;;  %v11609_v32 = vld [vmem:[#allocation34_spill] sm:$0xff] }
 0x40e   :  { %v2963_v27 = vpop.permute.xlu1 %2962  ;;  %v2130_v58 = vsel %vm2049_vm7, %v2127_v30, %v2129_v42 }
 0x40f   :  { %3096 = vst.msk [vmem:[#allocation2 + $0x1a0] sm:$0xff] %vm3069_vm2, %v2963_v27  ;;  %v2212_v52 = vpop.permute.xlu0 %2211  ;;  %v2131_v27 = vrot.slane %v11606_v47, 7 }
 0x410   :  { %2443 = vrot.lane.b32.xlu1 %v11598_v60, %s6516_s29  ;;  %2344 = vst.msk [vmem:[#allocation2 + $0x1b0] sm:$0xff] %vm2316_vm13, %v2212_v52 }
 0x411   :  { %2558 = vst.msk [vmem:[#allocation2 + $0x1b0] sm:$0xff] %vm2530_vm14, %v11601_v8  ;;  %1587 = vrot.lane.b32.xlu0 %v1484_v20, %s6517_s22  ;;  %v2132_v4 = vsel %vm2049_vm7, %v2129_v42, %v2131_v27  ;;  %v2135_v42 = vrot.slane %v11609_v32, 7 }
 0x412   :  { %v3182_v23 = vpop.permute.xlu1 %3181 }
 0x413   :  { %3315 = vst.msk [vmem:[#allocation2 + $0x1a0] sm:$0xff] %vm3288_vm3, %v3182_v23  ;;  %v2644_v28 = vpop.permute.xlu0 %2643 }
 0x414   :  { %2661 = vrot.lane.b32.xlu1 %v1486_v39, %s6520_s20  ;;  %2776 = vst.msk [vmem:[#allocation2 + $0x1b0] sm:$0xff] %vm2748_vm15, %v2644_v28 }
 0x415   :  { %1907 = vrot.lane.b32.xlu0 %v1804_v22, %s6518_s27  ;;  %v11607_v22 = vld [vmem:[#allocation33_spill] sm:$0xff] }
 0x416   :  { %v1570_v12 = vpop.permute.xlu1 %1569  ;;  %v3785_v57 = vpop.f32.mrb[16].mxu1 }
 0x417   :  { %1701 = vst.msk [vmem:[#allocation2 + $0x1c0] sm:$0xff] %vm1672_vm11, %v1570_v12  ;;  %v3787_v29 = vpop.f32.mrb[17].mxu1  ;;  %v2965_v56 = vpop.permute.xlu0 %2964 }
 0x418   :  { %4018 = vst.msk [vmem:[#allocation3 + $0x40] sm:$0xff] %vm4009_vm4, %v3785_v57  ;;  %2982 = vrot.lane.b32.xlu1 %v2879_v5, %s6521_s21  ;;  %v3457_v57 = vld [vmem:[#allocation2 + $0x1e8] sm:$0xff]  ;;  %v2884_v29 = vrot.slane %v11607_v22, 6 }
 0x419   :  { %3097 = vst.msk [vmem:[#allocation2 + $0x1b0] sm:$0xff] %vm3069_vm2, %v2965_v56  ;;  %2231 = vrot.lane.b32.xlu0 %v2126_v40, %s6519_s30 }
 0x41a   :  { %v1890_v37 = vpop.permute.xlu1 %1889  ;;  %v3448_v16 = vld [vmem:[#allocation2 + $0x1a0] sm:$0xff] }
 0x41b   :  { %2021 = vst.msk [vmem:[#allocation2 + $0x1c0] sm:$0xff] %vm1992_vm12, %v1890_v37  ;;  %3874 = vmatmul.mubr.f32.gmra.mrb[52].mxu1 %v3448_v16  ;;  %v3184_v17 = vpop.permute.xlu0 %3183  ;;  %v2885_v37 = vsel %vm2804_vm10, %v2882_v2, %v2884_v29  ;;  %v2133_v16 = vrot.slane %v11607_v22, 7  ;;  %v11610_v2 = vld [vmem:[#allocation35_spill] sm:$0xff] }
 0x41c   :  { %3201 = vrot.lane.b32.xlu1 %v2128_v54, %s6522_s23  ;;  %5727 = vmatprep.mubr.msk.f32.mxu1 %vm701_vm5, %v3451_v34  ;;  %3316 = vst.msk [vmem:[#allocation2 + $0x1b0] sm:$0xff] %vm3288_vm3, %v3184_v17 }
 0x41d   :  { %2445 = vrot.lane.b32.xlu0 %v11600_v45, %s6516_s29  ;;  %v1807_v45 = vrot.slane %v11602_v41, 2  ;;  %v2134_v46 = vsel %vm2049_vm7, %v2131_v27, %v2133_v16 }
 0x41e   :  { %v2214_v38 = vpop.permute.xlu1 %2213 }
 0x41f   :  { %2345 = vst.msk [vmem:[#allocation2 + $0x1c0] sm:$0xff] %vm2316_vm13, %v2214_v38  ;;  %v1572_v60 = vpop.permute.xlu0 %1571  ;;  %v3790_v49 = vpop.f32.mrb[18].mxu1  ;;  %v1808_v7 = vsel %vm1727_vm9, %v1805_v0, %v1807_v45 }
 0x420   :  { %2559 = vst.msk [vmem:[#allocation2 + $0x1c0] sm:$0xff] %vm2530_vm14, %v11603_v61  ;;  %1589 = vrot.lane.b32.xlu1 %v1486_v39, %s6517_s22  ;;  %v3792_v25 = vpop.f32.mrb[19].mxu1  ;;  %v1491_v39 = vrot.slane %v11606_v47, 1  ;;  %v1493_v61 = vrot.slane %v11607_v22, 1 }
 0x421   :  { %1702 = vst.msk [vmem:[#allocation2 + $0x1d0] sm:$0xff] %vm1672_vm11, %v1572_v60  ;;  %2663 = vrot.lane.b32.xlu0 %v1488_v48, %s6520_s20  ;;  %v1811_v25 = vrot.slane %v11606_v47, 2 }
 0x422   :  { %v2646_v10 = vpop.permute.xlu1 %2645  ;;  %4019 = vst.msk [vmem:[#allocation3 + $0x48] sm:$0xff] %vm4009_vm4, %v3790_v49  ;;  %v1492_v12 = vsel %vm1407_vm8, %v1489_v51, %v1491_v39 }
 0x423   :  { %2777 = vst.msk [vmem:[#allocation2 + $0x1c0] sm:$0xff] %vm2748_vm15, %v2646_v10  ;;  %v1892_v3 = vpop.permute.xlu0 %1891  ;;  %v3450_v21 = vld [vmem:[#allocation2 + $0x1b0] sm:$0xff] }
 0x424   :  { %1909 = vrot.lane.b32.xlu1 %v1806_v33, %s6518_s27  ;;  %2022 = vst.msk [vmem:[#allocation2 + $0x1d0] sm:$0xff] %vm1992_vm12, %v1892_v3  ;;  %3879 = vmatmul.mubr.f32.gmra.mrb[54].mxu1 %v3450_v21  ;;  %v2886_v33 = vrot.slane %v11609_v32, 6 }
 0x425   :  { %2984 = vrot.lane.b32.xlu0 %v2881_v13, %s6521_s21  ;;  %5728 = vmatprep.mubr.msk.f32.mxu1 %vm701_vm5, %v3453_v62 }
 0x426   :  { %v2967_v26 = vpop.permute.xlu1 %2966  ;;  %v2887_v62 = vsel %vm2804_vm10, %v2884_v29, %v2886_v33 }
 0x427   :  { %3098 = vst.msk [vmem:[#allocation2 + $0x1c0] sm:$0xff] %vm3069_vm2, %v2967_v26  ;;  %v2216_v1 = vpop.permute.xlu0 %2215 }
 0x428   :  { %2233 = vrot.lane.b32.xlu1 %v2128_v54, %s6519_s30  ;;  %2346 = vst.msk [vmem:[#allocation2 + $0x1d0] sm:$0xff] %vm2316_vm13, %v2216_v1  ;;  %v11608_v54 = vld [vmem:[#allocation49_spill] sm:$0xff] }
 0x429   :  { %v4071_v14 = vld [vmem:[#allocation3 + $0x3c] ss:$2 sm:$0x7f]  ;;  %2560 = vst.msk [vmem:[#allocation2 + $0x1d0] sm:$0xff] %vm2530_vm14, %v11605_v43  ;;  %3203 = vrot.lane.b32.xlu0 %v2130_v58, %s6522_s23  ;;  %v2136_v43 = vsel %vm2049_vm7, %v2133_v16, %v2135_v42 }
 0x42a   :  { %4072 = vst.msk [vmem:[#allocation4 + $0xe] sm:$0x7f] %vm4065_vm6, %v4071_v14  ;;  %v3186_v15 = vpop.permute.xlu1 %3185 }
 0x42b   :  { %3317 = vst.msk [vmem:[#allocation2 + $0x1c0] sm:$0xff] %vm3288_vm3, %v3186_v15  ;;  %v2648_v44 = vpop.permute.xlu0 %2647 }
 0x42c   :  { %2447 = vrot.lane.b32.xlu1 %v11602_v41, %s6516_s29  ;;  %2778 = vst.msk [vmem:[#allocation2 + $0x1d0] sm:$0xff] %vm2748_vm15, %v2648_v44  ;;  %v1809_v41 = vrot.slane %v11604_v31, 2 }
 0x42d   :  { %1591 = vrot.lane.b32.xlu0 %v1488_v48, %s6517_s22  ;;  %v1494_v48 = vsel %vm1407_vm8, %v1491_v39, %v1493_v61  ;;  %v1497_v39 = vrot.slane %v11610_v2, 1 }
 0x42e   :  { %v1574_v6 = vpop.permute.xlu1 %1573  ;;  %v3795_v20 = vpop.f32.mrb[20].mxu1  ;;  %v1810_v5 = vsel %vm1727_vm9, %v1807_v45, %v1809_v41  ;;  %v1812_v13 = vsel %vm1727_vm9, %v1809_v41, %v1811_v25  ;;  %v1813_v45 = vrot.slane %v11607_v22, 2 }
 0x42f   :  { %1703 = vst.msk [vmem:[#allocation2 + $0x1e0] sm:$0xff] %vm1672_vm11, %v1574_v6  ;;  %v3797_v59 = vpop.f32.mrb[21].mxu1  ;;  %v2969_v19 = vpop.permute.xlu0 %2968  ;;  %v1495_v20 = vrot.slane %v11609_v32, 1 }
 0x430   :  { %2665 = vrot.lane.b32.xlu1 %v1490_v24, %s6520_s20  ;;  %3099 = vst.msk [vmem:[#allocation2 + $0x1d0] sm:$0xff] %vm3069_vm2, %v2969_v19  ;;  %v2888_v19 = vrot.slane %v11610_v2, 6 }
 0x431   :  { %1911 = vrot.lane.b32.xlu0 %v1808_v7, %s6518_s27 }
 0x432   :  { %v1894_v18 = vpop.permute.xlu1 %1893  ;;  %v3452_v63 = vld [vmem:[#allocation2 + $0x1c0] sm:$0xff]  ;;  %v2889_v27 = vsel %vm2804_vm10, %v2886_v33, %v2888_v19  ;;  %v11614_v33 = vld [vmem:[#allocation37_spill] sm:$0xff] }
 0x433   :  { %2023 = vst.msk [vmem:[#allocation2 + $0x1e0] sm:$0xff] %vm1992_vm12, %v1894_v18  ;;  %3884 = vmatmul.mubr.f32.gmra.mrb[56].mxu1 %v3452_v63  ;;  %v3188_v40 = vpop.permute.xlu0 %3187  ;;  %v11611_v18 = vld [vmem:[#allocation51_spill] sm:$0xff]  ;;  %v1814_v63 = vsel %vm1727_vm9, %v1811_v25, %v1813_v45 }
 0x434   :  { %2986 = vrot.lane.b32.xlu1 %v2883_v11, %s6521_s21  ;;  %5729 = vmatprep.mubr.msk.f32.mxu1 %vm701_vm5, %v3455_v53  ;;  %3318 = vst.msk [vmem:[#allocation2 + $0x1d0] sm:$0xff] %vm3288_vm3, %v3188_v40  ;;  %v2137_v40 = vrot.slane %v11610_v2, 7 }
 0x435   :  { %2235 = vrot.lane.b32.xlu0 %v2130_v58, %s6519_s30 }
 0x436   :  { %v2218_v9 = vpop.permute.xlu1 %2217 }
 0x437   :  { %2347 = vst.msk [vmem:[#allocation2 + $0x1e0] sm:$0xff] %vm2316_vm13, %v2218_v9  ;;  %v1576_v52 = vpop.permute.xlu0 %1575  ;;  %v3800_v23 = vpop.f32.mrb[22].mxu1 }
 0x438   :  { %2561 = vst.msk [vmem:[#allocation2 + $0x1e0] sm:$0xff] %vm2530_vm14, %v9029_v36  ;;  %3205 = vrot.lane.b32.xlu1 %v2132_v4, %s6522_s23  ;;  %v3802_v8 = vpop.f32.mrb[23].mxu1 }
 0x439   :  { %1704 = vst.msk [vmem:[#allocation2 + $0x1f0] sm:$0xff] %vm1672_vm11, %v1576_v52  ;;  %2449 = vrot.lane.b32.xlu0 %v11604_v31, %s6516_s29  ;;  %v3459_v31 = vld [vmem:[#allocation2 + $0x1f8] sm:$0xff] }
 0x43a   :  { %v2650_v50 = vpop.permute.xlu1 %2649  ;;  %4021 = vst.msk [vmem:[#allocation3 + $0x58] sm:$0xff] %vm4009_vm4, %v3800_v23  ;;  %v3463_v8 = vld [vmem:[#allocation2 + $0x218] sm:$0xff] }
 0x43b   :  { %2779 = vst.msk [vmem:[#allocation2 + $0x1e0] sm:$0xff] %vm2748_vm15, %v2650_v50  ;;  %v1896_v36 = vpop.permute.xlu0 %1895  ;;  %v3454_v55 = vld [vmem:[#allocation2 + $0x1d0] sm:$0xff]  ;;  %v2138_v50 = vsel %vm2049_vm7, %v2135_v42, %v2137_v40 }
 0x43c   :  { %1593 = vrot.lane.b32.xlu1 %v1490_v24, %s6517_s22  ;;  %2024 = vst.msk [vmem:[#allocation2 + $0x1f0] sm:$0xff] %vm1992_vm12, %v1896_v36  ;;  %3889 = vmatmul.mubr.f32.gmra.mrb[58].mxu1 %v3454_v55  ;;  %v1815_v55 = vrot.slane %v11609_v32, 2 }
 0x43d   :  { %2667 = vrot.lane.b32.xlu0 %v1492_v12, %s6520_s20  ;;  %5730 = vmatprep.mubr.msk.f32.mxu1 %vm701_vm5, %v3457_v57 }
 0x43e   :  { %v2971_v28 = vpop.permute.xlu1 %2970 }
 0x43f   :  { %3100 = vst.msk [vmem:[#allocation2 + $0x1e0] sm:$0xff] %vm3069_vm2, %v2971_v28  ;;  %v2220_v30 = vpop.permute.xlu0 %2219  ;;  %v1498_v28 = vsel %vm1407_vm8, %v1495_v20, %v1497_v39 }
 0x440   :  { %1913 = vrot.lane.b32.xlu1 %v1810_v5, %s6518_s27  ;;  %2348 = vst.msk [vmem:[#allocation2 + $0x1f0] sm:$0xff] %vm2316_vm13, %v2220_v30 }
 0x441   :  { %2562 = vst.msk [vmem:[#allocation2 + $0x1f0] sm:$0xff] %vm2530_vm14, %v11608_v54  ;;  %2988 = vrot.lane.b32.xlu0 %v2885_v37, %s6521_s21  ;;  %v1816_v37 = vsel %vm1727_vm9, %v1813_v45, %v1815_v55 }
 0x442   :  { %v3190_v56 = vpop.permute.xlu1 %3189 }
 0x443   :  { %3319 = vst.msk [vmem:[#allocation2 + $0x1e0] sm:$0xff] %vm3288_vm3, %v3190_v56  ;;  %v2652_v34 = vpop.permute.xlu0 %2651 }
 0x444   :  { %2237 = vrot.lane.b32.xlu1 %v2132_v4, %s6519_s30  ;;  %2780 = vst.msk [vmem:[#allocation2 + $0x1f0] sm:$0xff] %vm2748_vm15, %v2652_v34 }
 0x445   :  { %3207 = vrot.lane.b32.xlu0 %v2134_v46, %s6522_s23 }
 0x446   :  { %v1578_v17 = vpop.permute.xlu1 %1577  ;;  %v3805_v38 = vpop.f32.mrb[24].mxu1 }
 0x447   :  { %1705 = vst.msk [vmem:[#allocation2 + $0x200] sm:$0xff] %vm1672_vm11, %v1578_v17  ;;  %v3807_v0 = vpop.f32.mrb[25].mxu1  ;;  %v2973_v60 = vpop.permute.xlu0 %2972 }
 0x448   :  { %4022 = vst.msk [vmem:[#allocation3 + $0x60] sm:$0xff] %vm4009_vm4, %v3805_v38  ;;  %2451 = vrot.lane.b32.xlu1 %v11606_v47, %s6516_s29  ;;  %v1496_v47 = vsel %vm1407_vm8, %v1493_v61, %v1495_v20 }
 0x449   :  { %3101 = vst.msk [vmem:[#allocation2 + $0x1f0] sm:$0xff] %vm3069_vm2, %v2973_v60  ;;  %1595 = vrot.lane.b32.xlu0 %v1492_v12, %s6517_s22  ;;  %v11612_v12 = vld [vmem:[#allocation36_spill] sm:$0xff] }
 0x44a   :  { %v1898_v49 = vpop.permute.xlu1 %1897  ;;  %v3456_v10 = vld [vmem:[#allocation2 + $0x1e0] sm:$0xff]  ;;  %v2890_v57 = vrot.slane %v11612_v12, 6  ;;  %v2139_v54 = vrot.slane %v11612_v12, 7 }
 0x44b   :  { %2025 = vst.msk [vmem:[#allocation2 + $0x200] sm:$0xff] %vm1992_vm12, %v1898_v49  ;;  %3894 = vmatmul.mubr.f32.gmra.mrb[60].mxu1 %v3456_v10  ;;  %v3192_v3 = vpop.permute.xlu0 %3191  ;;  %v1499_v49 = vrot.slane %v11612_v12, 1  ;;  %v1817_v10 = vrot.slane %v11610_v2, 2 }
 0x44c   :  { %2669 = vrot.lane.b32.xlu1 %v1494_v48, %s6520_s20  ;;  %5731 = vmatprep.mubr.msk.f32.mxu1 %vm701_vm5, %v3459_v31  ;;  %3320 = vst.msk [vmem:[#allocation2 + $0x1f0] sm:$0xff] %vm3288_vm3, %v3192_v3  ;;  %v2891_v16 = vsel %vm2804_vm10, %v2888_v19, %v2890_v57  ;;  %v2140_v0 = vsel %vm2049_vm7, %v2137_v40, %v2139_v54  ;;  %v2892_v3 = vrot.slane %v11614_v33, 6 }
 0x44d   :  { %1915 = vrot.lane.b32.xlu0 %v1812_v13, %s6518_s27 }
 0x44e   :  { %v2222_v26 = vpop.permute.xlu1 %2221 }
 0x44f   :  { %v4074_v21 = vld [vmem:[#allocation3 + $0x5a] ss:$2 sm:$0x7f]  ;;  %2349 = vst.msk [vmem:[#allocation2 + $0x200] sm:$0xff] %vm2316_vm13, %v2222_v26  ;;  %v1580_v14 = vpop.permute.xlu0 %1579  ;;  %v3810_v1 = vpop.f32.mrb[26].mxu1  ;;  %v1818_v26 = vsel %vm1727_vm9, %v1815_v55, %v1817_v10 }
 0x450   :  { %4075 = vst.msk [vmem:[#allocation4 + $0x15] sm:$0x7f] %vm4065_vm6, %v4074_v21  ;;  %2990 = vrot.lane.b32.xlu1 %v2887_v62, %s6521_s21  ;;  %v3812_v58 = vpop.f32.mrb[27].mxu1  ;;  %v2141_v1 = vrot.slane %v11614_v33, 7 }
 0x451   :  { %2563 = vst.msk [vmem:[#allocation2 + $0x200] sm:$0xff] %vm2530_vm14, %v9037_v35  ;;  %2239 = vrot.lane.b32.xlu0 %v2134_v46, %s6519_s30  ;;  %v3461_v35 = vld [vmem:[#allocation2 + $0x208] sm:$0xff] }
 0x452   :  { %v2654_v15 = vpop.permute.xlu1 %2653  ;;  %1706 = vst.msk [vmem:[#allocation2 + $0x210] sm:$0xff] %vm1672_vm11, %v1580_v14  ;;  %v3465_v46 = vld [vmem:[#allocation2 + $0x228] sm:$0xff]  ;;  %v2893_v14 = vsel %vm2804_vm10, %v2890_v57, %v2892_v3 }
 0x453   :  { %2781 = vst.msk [vmem:[#allocation2 + $0x200] sm:$0xff] %vm2748_vm15, %v2654_v15  ;;  %v1900_v51 = vpop.permute.xlu0 %1899  ;;  %v3458_v44 = vld [vmem:[#allocation2 + $0x1f0] sm:$0xff]  ;;  %v3467_v15 = vld [vmem:[#allocation2 + $0x238] sm:$0xff]  ;;  %v11616_v57 = vld [vmem:[#allocation39_spill] sm:$0xff] }
 0x454   :  { %3209 = vrot.lane.b32.xlu1 %v2136_v43, %s6522_s23  ;;  %2026 = vst.msk [vmem:[#allocation2 + $0x210] sm:$0xff] %vm1992_vm12, %v1900_v51  ;;  %3899 = vmatmul.mubr.f32.gmra.mrb[62].mxu1 %v3458_v44  ;;  %v2142_v44 = vsel %vm2049_vm7, %v2139_v54, %v2141_v1  ;;  %v3471_v54 = vld [vmem:[#allocation2 + $0x258] sm:$0xff] }
 0x455   :  { %2453 = vrot.lane.b32.xlu0 %v11607_v22, %s6516_s29  ;;  %5732 = vmatprep.mubr.msk.f32.mxu1 %vm701_vm5, %v3461_v35  ;;  %v11613_v22 = vld [vmem:[#allocation50_spill] sm:$0xff] }
 0x456   :  { %v2975_v6 = vpop.permute.xlu1 %2974 }
 0x457   :  { %3102 = vst.msk [vmem:[#allocation2 + $0x200] sm:$0xff] %vm3069_vm2, %v2975_v6  ;;  %v2224_v59 = vpop.permute.xlu0 %2223  ;;  %v1501_v6 = vrot.slane %v11614_v33, 1 }
 0x458   :  { %1597 = vrot.lane.b32.xlu1 %v1494_v48, %s6517_s22  ;;  %2350 = vst.msk [vmem:[#allocation2 + $0x210] sm:$0xff] %vm2316_vm13, %v2224_v59 }
 0x459   :  { %2564 = vst.msk [vmem:[#allocation2 + $0x210] sm:$0xff] %vm2530_vm14, %v11611_v18  ;;  %2671 = vrot.lane.b32.xlu0 %v1496_v47, %s6520_s20 }
 0x45a   :  { %v3194_v24 = vpop.permute.xlu1 %3193 }
 0x45b   :  { %3321 = vst.msk [vmem:[#allocation2 + $0x200] sm:$0xff] %vm3288_vm3, %v3194_v24  ;;  %v2656_v7 = vpop.permute.xlu0 %2655  ;;  %v1819_v24 = vrot.slane %v11612_v12, 2 }
 0x45c   :  { %1917 = vrot.lane.b32.xlu1 %v1814_v63, %s6518_s27  ;;  %2782 = vst.msk [vmem:[#allocation2 + $0x210] sm:$0xff] %vm2748_vm15, %v2656_v7 }
 0x45d   :  { %2992 = vrot.lane.b32.xlu0 %v2889_v27, %s6521_s21  ;;  %v1820_v7 = vsel %vm1727_vm9, %v1817_v10, %v1819_v24 }
 0x45e   :  { %v1582_v11 = vpop.permute.xlu1 %1581  ;;  %v3815_v53 = vpop.f32.mrb[28].mxu1 }
 0x45f   :  { %1707 = vst.msk [vmem:[#allocation2 + $0x220] sm:$0xff] %vm1672_vm11, %v1582_v11  ;;  %v3817_v9 = vpop.f32.mrb[29].mxu1  ;;  %v2977_v4 = vpop.permute.xlu0 %2976 }
 0x460   :  { %2241 = vrot.lane.b32.xlu1 %v2136_v43, %s6519_s30  ;;  %3103 = vst.msk [vmem:[#allocation2 + $0x210] sm:$0xff] %vm3069_vm2, %v2977_v4  ;;  %v3469_v4 = vld [vmem:[#allocation2 + $0x248] sm:$0xff] }
 0x461   :  { %3211 = vrot.lane.b32.xlu0 %v2138_v50, %s6522_s23 }
 0x462   :  { %v1902_v52 = vpop.permute.xlu1 %1901  ;;  %v3460_v23 = vld [vmem:[#allocation2 + $0x200] sm:$0xff] }
 0x463   :  { %2027 = vst.msk [vmem:[#allocation2 + $0x220] sm:$0xff] %vm1992_vm12, %v1902_v52  ;;  %3904 = vmatmul.mubr.f32.gmra.mrb[64].mxu1 %v3460_v23  ;;  %v3196_v41 = vpop.permute.xlu0 %3195 }
 0x464   :  { %2455 = vrot.lane.b32.xlu1 %v11609_v32, %s6516_s29  ;;  %5733 = vmatprep.mubr.msk.f32.mxu1 %vm701_vm5, %v3463_v8  ;;  %3322 = vst.msk [vmem:[#allocation2 + $0x210] sm:$0xff] %vm3288_vm3, %v3196_v41  ;;  %v1500_v32 = vsel %vm1407_vm8, %v1497_v39, %v1499_v49 }
 0x465   :  { %1599 = vrot.lane.b32.xlu0 %v1496_v47, %s6517_s22  ;;  %v1502_v47 = vsel %vm1407_vm8, %v1499_v49, %v1501_v6 }
 0x466   :  { %v2226_v36 = vpop.permute.xlu1 %2225 }
 0x467   :  { %2351 = vst.msk [vmem:[#allocation2 + $0x220] sm:$0xff] %vm2316_vm13, %v2226_v36  ;;  %v1584_v29 = vpop.permute.xlu0 %1583  ;;  %v3820_v5 = vpop.f32.mrb[30].mxu1  ;;  %v1821_v36 = vrot.slane %v11614_v33, 2 }
 0x468   :  { %2565 = vst.msk [vmem:[#allocation2 + $0x220] sm:$0xff] %vm2530_vm14, %v11613_v22  ;;  %2673 = vrot.lane.b32.xlu1 %v1498_v28, %s6520_s20  ;;  %v3822_v56 = vpop.f32.mrb[31].mxu1  ;;  %v2896_v22 = vrot.slane %v11616_v57, 6 }
 0x469   :  { %1708 = vst.msk [vmem:[#allocation2 + $0x230] sm:$0xff] %vm1672_vm11, %v1584_v29  ;;  %1919 = vrot.lane.b32.xlu0 %v1816_v37, %s6518_s27  ;;  %v1822_v29 = vsel %vm1727_vm9, %v1819_v24, %v1821_v36  ;;  %v11618_v24 = vld [vmem:[#allocation41_spill] sm:$0xff] }
 0x46a   :  { %v2658_v30 = vpop.permute.xlu1 %2657  ;;  %4025 = vst.msk [vmem:[#allocation3 + $0x78] sm:$0xff] %vm4009_vm4, %v3820_v5 }
 0x46b   :  { %2783 = vst.msk [vmem:[#allocation2 + $0x220] sm:$0xff] %vm2748_vm15, %v2658_v30  ;;  %v1904_v34 = vpop.permute.xlu0 %1903  ;;  %v3462_v17 = vld [vmem:[#allocation2 + $0x210] sm:$0xff] }
 0x46c   :  { %2994 = vrot.lane.b32.xlu1 %v2891_v16, %s6521_s21  ;;  %2028 = vst.msk [vmem:[#allocation2 + $0x230] sm:$0xff] %vm1992_vm12, %v1904_v34  ;;  %3909 = vmatmul.mubr.f32.gmra.mrb[66].mxu1 %v3462_v17  ;;  %v2145_v16 = vrot.slane %v11616_v57, 7 }
 0x46d   :  { %2243 = vrot.lane.b32.xlu0 %v2138_v50, %s6519_s30  ;;  %5734 = vmatprep.mubr.msk.f32.mxu1 %vm701_vm5, %v3465_v46 }
 0x46e   :  { %v2979_v38 = vpop.permute.xlu1 %2978 }
 0x46f   :  { %3104 = vst.msk [vmem:[#allocation2 + $0x220] sm:$0xff] %vm3069_vm2, %v2979_v38  ;;  %v2228_v61 = vpop.permute.xlu0 %2227 }
 0x470   :  { %3213 = vrot.lane.b32.xlu1 %v2140_v0, %s6522_s23  ;;  %2352 = vst.msk [vmem:[#allocation2 + $0x230] sm:$0xff] %vm2316_vm13, %v2228_v61  ;;  %v1505_v61 = vrot.slane %v11616_v57, 1 }
 0x471   :  { %2457 = vrot.lane.b32.xlu0 %v11610_v2, %s6516_s29  ;;  %v11615_v2 = vld [vmem:[#allocation38_spill] sm:$0xff] }
 0x472   :  { %v3198_v60 = vpop.permute.xlu1 %3197  ;;  %v2894_v19 = vrot.slane %v11615_v2, 6  ;;  %v2143_v53 = vrot.slane %v11615_v2, 7  ;;  %v1503_v39 = vrot.slane %v11615_v2, 1  ;;  %v1823_v10 = vrot.slane %v11615_v2, 2 }
 0x473   :  { %3323 = vst.msk [vmem:[#allocation2 + $0x220] sm:$0xff] %vm3288_vm3, %v3198_v60  ;;  %v2442_v25 = vpop.permute.xlu0 %2441 }
 0x474   :  { %1601 = vrot.lane.b32.xlu1 %v1498_v28, %s6517_s22  ;;  %2566 = vst.msk [vmem:[#allocation2 + $0x230] sm:$0xff] %vm2530_vm14, %v2442_v25  ;;  %v2895_v11 = vsel %vm2804_vm10, %v2892_v3, %v2894_v19  ;;  %v2144_v52 = vsel %vm2049_vm7, %v2141_v1, %v2143_v53  ;;  %v2897_v37 = vsel %vm2804_vm10, %v2894_v19, %v2896_v22  ;;  %v3473_v1 = vld [vmem:[#allocation2 + $0x268] sm:$0xff] }
 0x475   :  { %2675 = vrot.lane.b32.xlu0 %v1500_v32, %s6520_s20  ;;  %v1506_v25 = vsel %vm1407_vm8, %v1503_v39, %v1505_v61  ;;  %v1824_v3 = vsel %vm1727_vm9, %v1821_v36, %v1823_v10  ;;  %v11619_v36 = vld [vmem:[#allocation42_spill] sm:$0xff] }
 0x476   :  { %v1586_v48 = vpop.permute.xlu1 %1585  ;;  %v3825_v31 = vpop.f32.mrb[32].mxu1 }
 0x477   :  { %1709 = vst.msk [vmem:[#allocation2 + $0x240] sm:$0xff] %vm1672_vm11, %v1586_v48  ;;  %v3827_v21 = vpop.f32.mrb[33].mxu1  ;;  %v2660_v13 = vpop.permute.xlu0 %2659  ;;  %v11617_v48 = vld [vmem:[#allocation40_spill] sm:$0xff] }
 0x478   :  { %4026 = vst.msk [vmem:[#allocation3 + $0x80] sm:$0xff] %vm4009_vm4, %v3825_v31  ;;  %1921 = vrot.lane.b32.xlu1 %v1818_v26, %s6518_s27  ;;  %v2898_v31 = vrot.slane %v11617_v48, 6  ;;  %v2147_v26 = vrot.slane %v11617_v48, 7 }
 0x479   :  { %2784 = vst.msk [vmem:[#allocation2 + $0x230] sm:$0xff] %vm2748_vm15, %v2660_v13  ;;  %2996 = vrot.lane.b32.xlu0 %v2893_v14, %s6521_s21 }
 0x47a   :  { %v1906_v62 = vpop.permute.xlu1 %1905  ;;  %v3464_v42 = vld [vmem:[#allocation2 + $0x220] sm:$0xff]  ;;  %v2899_v21 = vsel %vm2804_vm10, %v2896_v22, %v2898_v31 }
 0x47b   :  { %2029 = vst.msk [vmem:[#allocation2 + $0x240] sm:$0xff] %vm1992_vm12, %v1906_v62  ;;  %3914 = vmatmul.mubr.f32.gmra.mrb[68].mxu1 %v3464_v42  ;;  %v2981_v58 = vpop.permute.xlu0 %2980 }
 0x47c   :  { %2245 = vrot.lane.b32.xlu1 %v2140_v0, %s6519_s30  ;;  %5735 = vmatprep.mubr.msk.f32.mxu1 %vm701_vm5, %v3467_v15  ;;  %3105 = vst.msk [vmem:[#allocation2 + $0x230] sm:$0xff] %vm3069_vm2, %v2981_v58  ;;  %v2146_v0 = vsel %vm2049_vm7, %v2143_v53, %v2145_v16  ;;  %v2148_v58 = vsel %vm2049_vm7, %v2145_v16, %v2147_v26 }
 0x47d   :  { %3215 = vrot.lane.b32.xlu0 %v2142_v44, %s6522_s23 }
 0x47e   :  { %v2230_v51 = vpop.permute.xlu1 %2229 }
 0x47f   :  { %v4077_v43 = vld [vmem:[#allocation3 + $0x78] ss:$2 sm:$0x7f]  ;;  %2353 = vst.msk [vmem:[#allocation2 + $0x240] sm:$0xff] %vm2316_vm13, %v2230_v51  ;;  %v3200_v35 = vpop.permute.xlu0 %3199  ;;  %v3830_v20 = vpop.f32.mrb[34].mxu1 }
 0x480   :  { %4078 = vst.msk [vmem:[#allocation4 + $0x1c] sm:$0x7f] %vm4065_vm6, %v4077_v43  ;;  %2459 = vrot.lane.b32.xlu1 %v11612_v12, %s6516_s29  ;;  %v3832_v59 = vpop.f32.mrb[35].mxu1  ;;  %v1504_v12 = vsel %vm1407_vm8, %v1501_v6, %v1503_v39  ;;  %v1825_v6 = vrot.slane %v11616_v57, 2  ;;  %v1827_v39 = vrot.slane %v11617_v48, 2 }
 0x481   :  { %3324 = vst.msk [vmem:[#allocation2 + $0x230] sm:$0xff] %vm3288_vm3, %v3200_v35  ;;  %1603 = vrot.lane.b32.xlu0 %v1500_v32, %s6517_s22 }
 0x482   :  { %v2444_v45 = vpop.permute.xlu1 %2443  ;;  %v1828_v22 = vsel %vm1727_vm9, %v1825_v6, %v1827_v39 }
 0x483   :  { %2567 = vst.msk [vmem:[#allocation2 + $0x240] sm:$0xff] %vm2530_vm14, %v2444_v45  ;;  %v1588_v18 = vpop.permute.xlu0 %1587 }
 0x484   :  { %2677 = vrot.lane.b32.xlu1 %v1502_v47, %s6520_s20  ;;  %1710 = vst.msk [vmem:[#allocation2 + $0x250] sm:$0xff] %vm1672_vm11, %v1588_v18 }
 0x485   :  { %1923 = vrot.lane.b32.xlu0 %v1820_v7, %s6518_s27 }
 0x486   :  { %v2662_v63 = vpop.permute.xlu1 %2661 }
 0x487   :  { %2785 = vst.msk [vmem:[#allocation2 + $0x240] sm:$0xff] %vm2748_vm15, %v2662_v63  ;;  %v1908_v27 = vpop.permute.xlu0 %1907 }
 0x488   :  { %2998 = vrot.lane.b32.xlu1 %v2895_v11, %s6521_s21  ;;  %v3466_v40 = vld [vmem:[#allocation2 + $0x230] sm:$0xff]  ;;  %2030 = vst.msk [vmem:[#allocation2 + $0x250] sm:$0xff] %vm1992_vm12, %v1908_v27  ;;  %v2149_v27 = vrot.slane %v11618_v24, 7 }
 0x489   :  { %3919 = vmatmul.mubr.f32.gmra.mrb[70].mxu1 %v3466_v40  ;;  %2247 = vrot.lane.b32.xlu0 %v2142_v44, %s6519_s30  ;;  %v1507_v44 = vrot.slane %v11617_v48, 1  ;;  %v3475_v40 = vld [vmem:[#allocation2 + $0x278] sm:$0xff] }
 0x48a   :  { %v2983_v9 = vpop.permute.xlu1 %2982  ;;  %5736 = vmatprep.mubr.msk.f32.mxu1 %vm701_vm5, %v3469_v4 }
 0x48b   :  { %3106 = vst.msk [vmem:[#allocation2 + $0x240] sm:$0xff] %vm3069_vm2, %v2983_v9  ;;  %v2232_v23 = vpop.permute.xlu0 %2231  ;;  %v1508_v59 = vsel %vm1407_vm8, %v1505_v61, %v1507_v44 }
 0x48c   :  { %3217 = vrot.lane.b32.xlu1 %v2144_v52, %s6522_s23  ;;  %2354 = vst.msk [vmem:[#allocation2 + $0x250] sm:$0xff] %vm2316_vm13, %v2232_v23  ;;  %v1509_v23 = vrot.slane %v11618_v24, 1 }
 0x48d   :  { %2461 = vrot.lane.b32.xlu0 %v11614_v33, %s6516_s29 }
 0x48e   :  { %v3202_v50 = vpop.permute.xlu1 %3201  ;;  %v3835_v8 = vpop.f32.mrb[36].mxu1 }
 0x48f   :  { %3325 = vst.msk [vmem:[#allocation2 + $0x240] sm:$0xff] %vm3288_vm3, %v3202_v50  ;;  %v3837_v41 = vpop.f32.mrb[37].mxu1  ;;  %v2446_v55 = vpop.permute.xlu0 %2445 }
 0x490   :  { %4028 = vst.msk [vmem:[#allocation3 + $0x90] sm:$0xff] %vm4009_vm4, %v3835_v8  ;;  %1605 = vrot.lane.b32.xlu1 %v1502_v47, %s6517_s22  ;;  %v2900_v47 = vrot.slane %v11618_v24, 6  ;;  %v1510_v41 = vsel %vm1407_vm8, %v1507_v44, %v1509_v23  ;;  %v1831_v44 = vrot.slane %v11619_v36, 2 }
 0x491   :  { %2568 = vst.msk [vmem:[#allocation2 + $0x250] sm:$0xff] %vm2530_vm14, %v2446_v55  ;;  %2679 = vrot.lane.b32.xlu0 %v1504_v12, %s6520_s20  ;;  %v2902_v55 = vrot.slane %v11619_v36, 6 }
 0x492   :  { %v1590_v28 = vpop.permute.xlu1 %1589  ;;  %v2901_v53 = vsel %vm2804_vm10, %v2898_v31, %v2900_v47 }
 0x493   :  { %1711 = vst.msk [vmem:[#allocation2 + $0x260] sm:$0xff] %vm1672_vm11, %v1590_v28  ;;  %v2664_v5 = vpop.permute.xlu0 %2663 }
 0x494   :  { %1925 = vrot.lane.b32.xlu1 %v1822_v29, %s6518_s27  ;;  %2786 = vst.msk [vmem:[#allocation2 + $0x250] sm:$0xff] %vm2748_vm15, %v2664_v5  ;;  %v2903_v5 = vsel %vm2804_vm10, %v2900_v47, %v2902_v55 }
 0x495   :  { %3000 = vrot.lane.b32.xlu0 %v2897_v37, %s6521_s21 }
 0x496   :  { %v1910_v30 = vpop.permute.xlu1 %1909  ;;  %v3468_v56 = vld [vmem:[#allocation2 + $0x240] sm:$0xff] }
 0x497   :  { %2031 = vst.msk [vmem:[#allocation2 + $0x260] sm:$0xff] %vm1992_vm12, %v1910_v30  ;;  %3924 = vmatmul.mubr.f32.gmra.mrb[72].mxu1 %v3468_v56  ;;  %v2985_v34 = vpop.permute.xlu0 %2984  ;;  %v3840_v17 = vpop.f32.mrb[38].mxu1  ;;  %v2151_v30 = vrot.slane %v11619_v36, 7 }
 0x498   :  { %2249 = vrot.lane.b32.xlu1 %v2144_v52, %s6519_s30  ;;  %5737 = vmatprep.mubr.msk.f32.mxu1 %vm701_vm5, %v3471_v54  ;;  %3107 = vst.msk [vmem:[#allocation2 + $0x250] sm:$0xff] %vm3069_vm2, %v2985_v34  ;;  %v3842_v46 = vpop.f32.mrb[39].mxu1  ;;  %v2150_v52 = vsel %vm2049_vm7, %v2147_v26, %v2149_v27  ;;  %v3477_v54 = vld [vmem:[#allocation2 + $0x288] sm:$0xff] }
 0x499   :  { %4029 = vst.msk [vmem:[#allocation3 + $0x98] sm:$0xff] %vm4009_vm4, %v3840_v17  ;;  %3219 = vrot.lane.b32.xlu0 %v2146_v0, %s6522_s23  ;;  %v2152_v34 = vsel %vm2049_vm7, %v2149_v27, %v2151_v30  ;;  %v9998_v46 = vrot.slane %v11619_v36, 1 }
 0x49a   :  { %v2234_v38 = vpop.permute.xlu1 %2233 }
 0x49b   :  { %2355 = vst.msk [vmem:[#allocation2 + $0x260] sm:$0xff] %vm2316_vm13, %v2234_v38  ;;  %v3204_v60 = vpop.permute.xlu0 %3203 }
 0x49c   :  { %2463 = vrot.lane.b32.xlu1 %v11615_v2, %s6516_s29  ;;  %3326 = vst.msk [vmem:[#allocation2 + $0x250] sm:$0xff] %vm3288_vm3, %v3204_v60  ;;  %v1826_v2 = vsel %vm1727_vm9, %v1823_v10, %v1825_v6 }
 0x49d   :  { %1607 = vrot.lane.b32.xlu0 %v1504_v12, %s6517_s22 }
 0x49e   :  { %v2448_v49 = vpop.permute.xlu1 %2447 }
 0x49f   :  { %2569 = vst.msk [vmem:[#allocation2 + $0x260] sm:$0xff] %vm2530_vm14, %v2448_v49  ;;  %v1592_v32 = vpop.permute.xlu0 %1591 }
 0x4a0   :  { %2681 = vrot.lane.b32.xlu1 %v1506_v25, %s6520_s20  ;;  %1712 = vst.msk [vmem:[#allocation2 + $0x270] sm:$0xff] %vm1672_vm11, %v1592_v32 }
 0x4a1   :  { %1927 = vrot.lane.b32.xlu0 %v1824_v3, %s6518_s27 }
 0x4a2   :  { %v2666_v33 = vpop.permute.xlu1 %2665 }
 0x4a3   :  { %2787 = vst.msk [vmem:[#allocation2 + $0x260] sm:$0xff] %vm2748_vm15, %v2666_v33  ;;  %v1912_v13 = vpop.permute.xlu0 %1911  ;;  %v3470_v62 = vld [vmem:[#allocation2 + $0x250] sm:$0xff] }
 0x4a4   :  { %3002 = vrot.lane.b32.xlu1 %v2899_v21, %s6521_s21  ;;  %2032 = vst.msk [vmem:[#allocation2 + $0x270] sm:$0xff] %vm1992_vm12, %v1912_v13  ;;  %3929 = vmatmul.mubr.f32.gmra.mrb[74].mxu1 %v3470_v62  ;;  %v3479_v62 = vld [vmem:[#allocation2 + $0x298] sm:$0xff] }
 0x4a5   :  { %2251 = vrot.lane.b32.xlu0 %v2146_v0, %s6519_s30  ;;  %5738 = vmatprep.mubr.msk.f32.mxu1 %vm701_vm5, %v3473_v1  ;;  %v1829_v0 = vrot.slane %v11618_v24, 2 }
 0x4a6   :  { %v2987_v42 = vpop.permute.xlu1 %2986  ;;  %v3845_v14 = vpop.f32.mrb[40].mxu1 }
 0x4a7   :  { %3108 = vst.msk [vmem:[#allocation2 + $0x260] sm:$0xff] %vm3069_vm2, %v2987_v42  ;;  %v3847_v15 = vpop.f32.mrb[41].mxu1  ;;  %v2236_v43 = vpop.permute.xlu0 %2235  ;;  %v1830_v32 = vsel %vm1727_vm9, %v1827_v39, %v1829_v0  ;;  %v1832_v47 = vsel %vm1727_vm9, %v1829_v0, %v1831_v44 }
 0x4a8   :  { %4030 = vst.msk [vmem:[#allocation3 + $0xa0] sm:$0xff] %vm4009_vm4, %v3845_v14  ;;  %3221 = vrot.lane.b32.xlu1 %v2148_v58, %s6522_s23 }
 0x4a9   :  { %2356 = vst.msk [vmem:[#allocation2 + $0x270] sm:$0xff] %vm2316_vm13, %v2236_v43  ;;  %2465 = vrot.lane.b32.xlu0 %v11616_v57, %s6516_s29 }
 0x4aa   :  { %v3206_v51 = vpop.permute.xlu1 %3205 }
 0x4ab   :  { %3327 = vst.msk [vmem:[#allocation2 + $0x260] sm:$0xff] %vm3288_vm3, %v3206_v51  ;;  %v2450_v35 = vpop.permute.xlu0 %2449 }
 0x4ac   :  { %1609 = vrot.lane.b32.xlu1 %v1506_v25, %s6517_s22  ;;  %2570 = vst.msk [vmem:[#allocation2 + $0x270] sm:$0xff] %vm2530_vm14, %v2450_v35  ;;  %v1512_v25 = vsel %vm1407_vm8, %v1509_v23, %v9998_v46 }
 0x4ad   :  { %2683 = vrot.lane.b32.xlu0 %v1508_v59, %s6520_s20 }
 0x4ae   :  { %v1594_v45 = vpop.permute.xlu1 %1593 }
 0x4af   :  { %v4080_v20 = vld [vmem:[#allocation3 + $0x96] ss:$2 sm:$0x7f]  ;;  %1713 = vst.msk [vmem:[#allocation2 + $0x280] sm:$0xff] %vm1672_vm11, %v1594_v45  ;;  %v2668_v19 = vpop.permute.xlu0 %2667  ;;  %v3850_v18 = vpop.f32.mrb[42].mxu1 }
 0x4b0   :  { %4081 = vst.msk [vmem:[#allocation4 + $0x23] sm:$0x7f] %vm4065_vm6, %v4080_v20  ;;  %1929 = vrot.lane.b32.xlu1 %v1826_v2, %s6518_s27  ;;  %v3852_v7 = vpop.f32.mrb[43].mxu1  ;;  %v11621_v20 = vld [vmem:[#allocation44_spill] sm:$0xff] }
 0x4b1   :  { %2788 = vst.msk [vmem:[#allocation2 + $0x270] sm:$0xff] %vm2748_vm15, %v2668_v19  ;;  %3004 = vrot.lane.b32.xlu0 %v2901_v53, %s6521_s21  ;;  %v2906_v45 = vrot.slane %v11621_v20, 6  ;;  %v2155_v19 = vrot.slane %v11621_v20, 7  ;;  %v3481_v53 = vld [vmem:[#allocation2 + $0x2a8] sm:$0xff]  ;;  %v2587_v23 = vrot.slane %v11621_v20, 1 }
 0x4b2   :  { %v1914_v63 = vpop.permute.xlu1 %1913  ;;  %v3472_v11 = vld [vmem:[#allocation2 + $0x260] sm:$0xff] }
 0x4b3   :  { %2033 = vst.msk [vmem:[#allocation2 + $0x280] sm:$0xff] %vm1992_vm12, %v1914_v63  ;;  %3934 = vmatmul.mubr.f32.gmra.mrb[76].mxu1 %v3472_v11  ;;  %v2989_v9 = vpop.permute.xlu0 %2988 }
 0x4b4   :  { %2253 = vrot.lane.b32.xlu1 %v2148_v58, %s6519_s30  ;;  %5739 = vmatprep.mubr.msk.f32.mxu1 %vm701_vm5, %v3475_v40  ;;  %3109 = vst.msk [vmem:[#allocation2 + $0x270] sm:$0xff] %vm3069_vm2, %v2989_v9 }
 0x4b5   :  { %3223 = vrot.lane.b32.xlu0 %v2150_v52, %s6522_s23 }
 0x4b6   :  { %v2238_v4 = vpop.permute.xlu1 %2237 }
 0x4b7   :  { %2357 = vst.msk [vmem:[#allocation2 + $0x280] sm:$0xff] %vm2316_vm13, %v2238_v4  ;;  %v3208_v50 = vpop.permute.xlu0 %3207 }
 0x4b8   :  { %2467 = vrot.lane.b32.xlu1 %v11617_v48, %s6516_s29  ;;  %3328 = vst.msk [vmem:[#allocation2 + $0x270] sm:$0xff] %vm3288_vm3, %v3208_v50  ;;  %v11620_v48 = vld [vmem:[#allocation43_spill] sm:$0xff] }
 0x4b9   :  { %1611 = vrot.lane.b32.xlu0 %v1508_v59, %s6517_s22  ;;  %v2904_v31 = vrot.slane %v11620_v48, 6  ;;  %v2153_v13 = vrot.slane %v11620_v48, 7  ;;  %v2585_v15 = vrot.slane %v11620_v48, 1 }
 0x4ba   :  { %v2452_v8 = vpop.permute.xlu1 %2451 }
 0x4bb   :  { %2571 = vst.msk [vmem:[#allocation2 + $0x280] sm:$0xff] %vm2530_vm14, %v2452_v8  ;;  %v1596_v28 = vpop.permute.xlu0 %1595  ;;  %v2905_v26 = vsel %vm2804_vm10, %v2902_v55, %v2904_v31  ;;  %v2154_v1 = vsel %vm2049_vm7, %v2151_v30, %v2153_v13  ;;  %v2586_v35 = vsel %vm1407_vm8, %v9998_v46, %v2585_v15  ;;  %v2907_v2 = vsel %vm2804_vm10, %v2904_v31, %v2906_v45 }
 0x4bc   :  { %2685 = vrot.lane.b32.xlu1 %v1510_v41, %s6520_s20  ;;  %1714 = vst.msk [vmem:[#allocation2 + $0x290] sm:$0xff] %vm1672_vm11, %v1596_v28  ;;  %v2156_v27 = vsel %vm2049_vm7, %v2153_v13, %v2155_v19  ;;  %v2588_v39 = vsel %vm1407_vm8, %v2585_v15, %v2587_v23  ;;  %v3487_v15 = vld [vmem:[#allocation2 + $0x2d8] sm:$0xff] }
 0x4bd   :  { %1931 = vrot.lane.b32.xlu0 %v1828_v22, %s6518_s27 }
 0x4be   :  { %v2670_v12 = vpop.permute.xlu1 %2669  ;;  %v3855_v57 = vpop.f32.mrb[44].mxu1 }
 0x4bf   :  { %2789 = vst.msk [vmem:[#allocation2 + $0x280] sm:$0xff] %vm2748_vm15, %v2670_v12  ;;  %v3857_v29 = vpop.f32.mrb[45].mxu1  ;;  %v1916_v56 = vpop.permute.xlu0 %1915  ;;  %v3474_v37 = vld [vmem:[#allocation2 + $0x270] sm:$0xff] }
 0x4c0   :  { %4032 = vst.msk [vmem:[#allocation3 + $0xb0] sm:$0xff] %vm4009_vm4, %v3855_v57  ;;  %3006 = vrot.lane.b32.xlu1 %v2903_v5, %s6521_s21  ;;  %3939 = vmatmul.mubr.f32.gmra.mrb[78].mxu1 %v3474_v37  ;;  %v3483_v29 = vld [vmem:[#allocation2 + $0x2b8] sm:$0xff] }
 0x4c1   :  { %2034 = vst.msk [vmem:[#allocation2 + $0x290] sm:$0xff] %vm1992_vm12, %v1916_v56  ;;  %2255 = vrot.lane.b32.xlu0 %v2150_v52, %s6519_s30  ;;  %5740 = vmatprep.mubr.msk.f32.mxu1 %vm701_vm5, %v3477_v54 }
 0x4c2   :  { %v2991_v16 = vpop.permute.xlu1 %2990 }
 0x4c3   :  { %3110 = vst.msk [vmem:[#allocation2 + $0x280] sm:$0xff] %vm3069_vm2, %v2991_v16  ;;  %v2240_v17 = vpop.permute.xlu0 %2239 }
 0x4c4   :  { %3225 = vrot.lane.b32.xlu1 %v2152_v34, %s6522_s23  ;;  %2358 = vst.msk [vmem:[#allocation2 + $0x290] sm:$0xff] %vm2316_vm13, %v2240_v17  ;;  %v11623_v17 = vld [vmem:[#allocation19_spill] sm:$0xff] }
 0x4c5   :  { %2469 = vrot.lane.b32.xlu0 %v11618_v24, %s6516_s29 }
 0x4c6   :  { %v3210_v38 = vpop.permute.xlu1 %3209 }
 0x4c7   :  { %3329 = vst.msk [vmem:[#allocation2 + $0x280] sm:$0xff] %vm3288_vm3, %v3210_v38  ;;  %v2454_v61 = vpop.permute.xlu0 %2453  ;;  %v3860_v60 = vpop.f32.mrb[46].mxu1  ;;  %v11624_v38 = vmax.f32 %v11623_v17, 0.0 }
 0x4c8   :  { %1613 = vrot.lane.b32.xlu1 %v1510_v41, %s6517_s22  ;;  %2572 = vst.msk [vmem:[#allocation2 + $0x290] sm:$0xff] %vm2530_vm14, %v2454_v61  ;;  %v3862_v10 = vpop.f32.mrb[47].mxu1  ;;  %v11622_v41 = vld [vmem:[#allocation45_spill] sm:$0xff] }
 0x4c9   :  { %4033 = vst.msk [vmem:[#allocation3 + $0xb8] sm:$0xff] %vm4009_vm4, %v3860_v60  ;;  %2687 = vrot.lane.b32.xlu0 %v1512_v25, %s6520_s20  ;;  %v3125_v22 = vrot.slane %v11622_v41, 7 }
 0x4ca   :  { %v1598_v49 = vpop.permute.xlu1 %1597 }
 0x4cb   :  { %1715 = vst.msk [vmem:[#allocation2 + $0x2a0] sm:$0xff] %vm1672_vm11, %v1598_v49  ;;  %v2672_v33 = vpop.permute.xlu0 %2671  ;;  %v3126_v37 = vsel %vm2049_vm7, %v2155_v19, %v3125_v22 }
 0x4cc   :  { %1933 = vrot.lane.b32.xlu1 %v1830_v32, %s6518_s27  ;;  %2790 = vst.msk [vmem:[#allocation2 + $0x290] sm:$0xff] %vm2748_vm15, %v2672_v33  ;;  %v3485_v32 = vld [vmem:[#allocation2 + $0x2c8] sm:$0xff] }
 0x4cd   :  { %3008 = vrot.lane.b32.xlu0 %v2905_v26, %s6521_s21 }
 0x4ce   :  { %v1918_v3 = vpop.permute.xlu1 %1917  ;;  %v3476_v21 = vld [vmem:[#allocation2 + $0x280] sm:$0xff] }
 0x4cf   :  { %2035 = vst.msk [vmem:[#allocation2 + $0x2a0] sm:$0xff] %vm1992_vm12, %v1918_v3  ;;  %3944 = vmatmul.mubr.f32.gmra.mrb[80].mxu1 %v3476_v21  ;;  %v2993_v42 = vpop.permute.xlu0 %2992 }
 0x4d0   :  { %2257 = vrot.lane.b32.xlu1 %v2152_v34, %s6519_s30  ;;  %5741 = vmatprep.mubr.msk.f32.mxu1 %vm701_vm5, %v3479_v62  ;;  %3111 = vst.msk [vmem:[#allocation2 + $0x290] sm:$0xff] %vm3069_vm2, %v2993_v42 }
 0x4d1   :  { %3227 = vrot.lane.b32.xlu0 %v2154_v1, %s6522_s23 }
 0x4d2   :  { %v2242_v14 = vpop.permute.xlu1 %2241 }
 0x4d3   :  { %2359 = vst.msk [vmem:[#allocation2 + $0x2a0] sm:$0xff] %vm2316_vm13, %v2242_v14  ;;  %v3212_v58 = vpop.permute.xlu0 %3211 }
 0x4d4   :  { %2471 = vrot.lane.b32.xlu1 %v11619_v36, %s6516_s29  ;;  %3330 = vst.msk [vmem:[#allocation2 + $0x290] sm:$0xff] %vm3288_vm3, %v3212_v58  ;;  %v2908_v36 = vrot.slane %v11622_v41, 6 }
 0x4d5   :  { %1615 = vrot.lane.b32.xlu0 %v1512_v25, %s6517_s22 }
 0x4d6   :  { %v2456_v43 = vpop.permute.xlu1 %2455  ;;  %v3865_v51 = vpop.f32.mrb[48].mxu1  ;;  %v2909_v57 = vsel %vm2804_vm10, %v2906_v45, %v2908_v36 }
 0x4d7   :  { %2573 = vst.msk [vmem:[#allocation2 + $0x2a0] sm:$0xff] %vm2530_vm14, %v2456_v43  ;;  %v3867_v6 = vpop.f32.mrb[49].mxu1  ;;  %v1600_v59 = vpop.permute.xlu0 %1599 }
 0x4d8   :  { %4034 = vst.msk [vmem:[#allocation3 + $0xc0] sm:$0xff] %vm4009_vm4, %v3865_v51  ;;  %2689 = vrot.lane.b32.xlu1 %v2586_v35, %s6520_s20 }
 0x4d9   :  { %1716 = vst.msk [vmem:[#allocation2 + $0x2b0] sm:$0xff] %vm1672_vm11, %v1600_v59  ;;  %1935 = vrot.lane.b32.xlu0 %v1832_v47, %s6518_s27 }
 0x4da   :  { %v2674_v24 = vpop.permute.xlu1 %2673 }
 0x4db   :  { %2791 = vst.msk [vmem:[#allocation2 + $0x2a0] sm:$0xff] %vm2748_vm15, %v2674_v24  ;;  %v1920_v18 = vpop.permute.xlu0 %1919  ;;  %v3478_v63 = vld [vmem:[#allocation2 + $0x290] sm:$0xff] }
 0x4dc   :  { %3010 = vrot.lane.b32.xlu1 %v2907_v2, %s6521_s21  ;;  %2036 = vst.msk [vmem:[#allocation2 + $0x2b0] sm:$0xff] %vm1992_vm12, %v1920_v18  ;;  %3949 = vmatmul.mubr.f32.gmra.mrb[82].mxu1 %v3478_v63  ;;  %v3489_v2 = vld [vmem:[#allocation2 + $0x2e8] sm:$0xff] }
 0x4dd   :  { %2259 = vrot.lane.b32.xlu0 %v2154_v1, %s6519_s30  ;;  %5742 = vmatprep.mubr.msk.f32.mxu1 %vm701_vm5, %v3481_v53 }
 0x4de   :  { %v2995_v11 = vpop.permute.xlu1 %2994 }
 0x4df   :  { %v4083_v7 = vld [vmem:[#allocation3 + $0xb4] ss:$2 sm:$0x7f]  ;;  %3112 = vst.msk [vmem:[#allocation2 + $0x2a0] sm:$0xff] %vm3069_vm2, %v2995_v11  ;;  %v2244_v40 = vpop.permute.xlu0 %2243  ;;  %v3870_v9 = vpop.f32.mrb[50].mxu1 }
 0x4e0   :  { %4084 = vst.msk [vmem:[#allocation4 + $0x2a] sm:$0x7f] %vm4065_vm6, %v4083_v7  ;;  %3229 = vrot.lane.b32.xlu1 %v2156_v27, %s6522_s23  ;;  %v3872_v52 = vpop.f32.mrb[51].mxu1 }
 0x4e1   :  { %2360 = vst.msk [vmem:[#allocation2 + $0x2b0] sm:$0xff] %vm2316_vm13, %v2244_v40  ;;  %2473 = vrot.lane.b32.xlu0 %v11620_v48, %s6516_s29  ;;  %v3491_v52 = vld [vmem:[#allocation2 + $0x2f8] sm:$0xff] }
 0x4e2   :  { %v3214_v4 = vpop.permute.xlu1 %3213 }
 0x4e3   :  { %3331 = vst.msk [vmem:[#allocation2 + $0x2a0] sm:$0xff] %vm3288_vm3, %v3214_v4  ;;  %v2458_v50 = vpop.permute.xlu0 %2457 }
 0x4e4   :  { %1617 = vrot.lane.b32.xlu1 %v9998_v46, %s6517_s22  ;;  %2574 = vst.msk [vmem:[#allocation2 + $0x2b0] sm:$0xff] %vm2530_vm14, %v2458_v50  ;;  %v3127_v46 = vrot.slane %v11624_v38, 7 }
 0x4e5   :  { %2691 = vrot.lane.b32.xlu0 %v2588_v39, %s6520_s20 }
 0x4e6   :  { %v1602_v8 = vpop.permute.xlu1 %1601  ;;  %v3128_v60 = vsel %vm2049_vm7, %v3125_v22, %v3127_v46  ;;  %v3495_v46 = vld [vmem:[#allocation2 + $0x318] sm:$0xff] }
 0x4e7   :  { %1717 = vst.msk [vmem:[#allocation2 + $0x2c0] sm:$0xff] %vm1672_vm11, %v1602_v8  ;;  %v2676_v55 = vpop.permute.xlu0 %2675 }
 0x4e8   :  { %1937 = vrot.lane.b32.xlu1 %v1831_v44, %s6518_s27  ;;  %2792 = vst.msk [vmem:[#allocation2 + $0x2b0] sm:$0xff] %vm2748_vm15, %v2676_v55 }
 0x4e9   :  { %3012 = vrot.lane.b32.xlu0 %v2909_v57, %s6521_s21 }
 0x4ea   :  { %v1922_v28 = vpop.permute.xlu1 %1921  ;;  %v3480_v12 = vld [vmem:[#allocation2 + $0x2a0] sm:$0xff] }
 0x4eb   :  { %2037 = vst.msk [vmem:[#allocation2 + $0x2c0] sm:$0xff] %vm1992_vm12, %v1922_v28  ;;  %3954 = vmatmul.mubr.f32.gmra.mrb[84].mxu1 %v3480_v12  ;;  %v2997_v5 = vpop.permute.xlu0 %2996 }
 0x4ec   :  { %2261 = vrot.lane.b32.xlu1 %v2156_v27, %s6519_s30  ;;  %5743 = vmatprep.mubr.msk.f32.mxu1 %vm701_vm5, %v3483_v29  ;;  %3113 = vst.msk [vmem:[#allocation2 + $0x2b0] sm:$0xff] %vm3069_vm2, %v2997_v5  ;;  %v3493_v29 = vld [vmem:[#allocation2 + $0x308] sm:$0xff] }
 0x4ed   :  { %3231 = vrot.lane.b32.xlu0 %v3126_v37, %s6522_s23 }
 0x4ee   :  { %v2246_v30 = vpop.permute.xlu1 %2245  ;;  %v3875_v56 = vpop.f32.mrb[52].mxu1 }
 0x4ef   :  { %2361 = vst.msk [vmem:[#allocation2 + $0x2c0] sm:$0xff] %vm2316_vm13, %v2246_v30  ;;  %v3877_v16 = vpop.f32.mrb[53].mxu1  ;;  %v3216_v54 = vpop.permute.xlu0 %3215 }
 0x4f0   :  { %2475 = vrot.lane.b32.xlu1 %v11621_v20, %s6516_s29  ;;  %3332 = vst.msk [vmem:[#allocation2 + $0x2b0] sm:$0xff] %vm3288_vm3, %v3216_v54 }
 0x4f1   :  { %2693 = vrot.lane.b32.xlu0 %v2587_v23, %s6520_s20 }
 0x4f2   :  { %v2460_v34 = vpop.permute.xlu1 %2459 }
 0x4f3   :  { %2575 = vst.msk [vmem:[#allocation2 + $0x2c0] sm:$0xff] %vm2530_vm14, %v2460_v34  ;;  %v1604_v0 = vpop.permute.xlu0 %1603 }
 0x4f4   :  { %3014 = vrot.lane.b32.xlu1 %v2908_v36, %s6521_s21  ;;  %1718 = vst.msk [vmem:[#allocation2 + $0x2d0] sm:$0xff] %vm1672_vm11, %v1604_v0 }
 0x4f5   :  { %3233 = vrot.lane.b32.xlu0 %v3128_v60, %s6522_s23 }
 0x4f6   :  { %v2678_v61 = vpop.permute.xlu1 %2677 }
 0x4f7   :  { %2793 = vst.msk [vmem:[#allocation2 + $0x2c0] sm:$0xff] %vm2748_vm15, %v2678_v61  ;;  %v1924_v49 = vpop.permute.xlu0 %1923  ;;  %v3880_v10 = vpop.f32.mrb[54].mxu1  ;;  %v3482_v25 = vld [vmem:[#allocation2 + $0x2b0] sm:$0xff] }
 0x4f8   :  { %2038 = vst.msk [vmem:[#allocation2 + $0x2d0] sm:$0xff] %vm1992_vm12, %v1924_v49  ;;  %v3882_v31 = vpop.f32.mrb[55].mxu1  ;;  %3959 = vmatmul.mubr.f32.gmra.mrb[86].mxu1 %v3482_v25 }
 0x4f9   :  { %5744 = vmatprep.mubr.msk.f32.mxu1 %vm701_vm5, %v3485_v32 }
 0x4fa   :  { %v2999_v48 = vpop.permute.xlu1 %2998 }
 0x4fb   :  { %3114 = vst.msk [vmem:[#allocation2 + $0x2c0] sm:$0xff] %vm3069_vm2, %v2999_v48  ;;  %v2248_v33 = vpop.permute.xlu0 %2247 }
 0x4fc   :  { %2362 = vst.msk [vmem:[#allocation2 + $0x2d0] sm:$0xff] %vm2316_vm13, %v2248_v33 }
 0x4fe   :  { %v3218_v3 = vpop.permute.xlu1 %3217 }
 0x4ff   :  { %3333 = vst.msk [vmem:[#allocation2 + $0x2c0] sm:$0xff] %vm3288_vm3, %v3218_v3  ;;  %v2462_v21 = vpop.permute.xlu0 %2461 }
 0x500   :  { %2576 = vst.msk [vmem:[#allocation2 + $0x2d0] sm:$0xff] %vm2530_vm14, %v2462_v21 }
 0x502   :  { %v1606_v26 = vpop.permute.xlu1 %1605 }
 0x503   :  { %1719 = vst.msk [vmem:[#allocation2 + $0x2e0] sm:$0xff] %vm1672_vm11, %v1606_v26  ;;  %v2680_v13 = vpop.permute.xlu0 %2679 }
 0x504   :  { %2794 = vst.msk [vmem:[#allocation2 + $0x2d0] sm:$0xff] %vm2748_vm15, %v2680_v13  ;;  %v3497_v13 = vld [vmem:[#allocation2 + $0x328] sm:$0xff] }
 0x506   :  { %v1926_v62 = vpop.permute.xlu1 %1925  ;;  %v3885_v42 = vpop.f32.mrb[56].mxu1  ;;  %v3484_v14 = vld [vmem:[#allocation2 + $0x2c0] sm:$0xff] }
 0x507   :  { %2039 = vst.msk [vmem:[#allocation2 + $0x2e0] sm:$0xff] %vm1992_vm12, %v1926_v62  ;;  %v3887_v1 = vpop.f32.mrb[57].mxu1  ;;  %3964 = vmatmul.mubr.f32.gmra.mrb[88].mxu1 %v3484_v14  ;;  %v3001_v58 = vpop.permute.xlu0 %3000 }
 0x508   :  { %4038 = vst.msk [vmem:[#allocation3 + $0xe0] sm:$0xff] %vm4009_vm4, %v3885_v42  ;;  %5745 = vmatprep.mubr.msk.f32.mxu1 %vm701_vm5, %v3487_v15 }
 0x509   :  { %3115 = vst.msk [vmem:[#allocation2 + $0x2d0] sm:$0xff] %vm3069_vm2, %v3001_v58 }
 0x50a   :  { %v2250_v43 = vpop.permute.xlu1 %2249 }
 0x50b   :  { %2363 = vst.msk [vmem:[#allocation2 + $0x2e0] sm:$0xff] %vm2316_vm13, %v2250_v43  ;;  %v3220_v51 = vpop.permute.xlu0 %3219 }
 0x50c   :  { %3334 = vst.msk [vmem:[#allocation2 + $0x2d0] sm:$0xff] %vm3288_vm3, %v3220_v51 }
 0x50e   :  { %v2464_v44 = vpop.permute.xlu1 %2463 }
 0x50f   :  { %2577 = vst.msk [vmem:[#allocation2 + $0x2e0] sm:$0xff] %vm2530_vm14, %v2464_v44  ;;  %v1608_v6 = vpop.permute.xlu0 %1607  ;;  %v3890_v35 = vpop.f32.mrb[58].mxu1  ;;  %v3499_v44 = vld [vmem:[#allocation2 + $0x338] sm:$0xff] }
 0x510   :  { %1720 = vst.msk [vmem:[#allocation2 + $0x2f0] sm:$0xff] %vm1672_vm11, %v1608_v6  ;;  %v3892_v45 = vpop.f32.mrb[59].mxu1 }
 0x511   :  { %4039 = vst.msk [vmem:[#allocation3 + $0xe8] sm:$0xff] %vm4009_vm4, %v3890_v35 }
 0x512   :  { %v2682_v20 = vpop.permute.xlu1 %2681 }
 0x513   :  { %2795 = vst.msk [vmem:[#allocation2 + $0x2e0] sm:$0xff] %vm2748_vm15, %v2682_v20  ;;  %v1928_v59 = vpop.permute.xlu0 %1927  ;;  %v3486_v24 = vld [vmem:[#allocation2 + $0x2d0] sm:$0xff] }
 0x514   :  { %2040 = vst.msk [vmem:[#allocation2 + $0x2f0] sm:$0xff] %vm1992_vm12, %v1928_v59  ;;  %3969 = vmatmul.mubr.f32.gmra.mrb[90].mxu1 %v3486_v24 }
 0x515   :  { %5746 = vmatprep.mubr.msk.f32.mxu1 %vm701_vm5, %v3489_v2 }
 0x516   :  { %v3003_v47 = vpop.permute.xlu1 %3002 }
 0x517   :  { %3116 = vst.msk [vmem:[#allocation2 + $0x2e0] sm:$0xff] %vm3069_vm2, %v3003_v47  ;;  %v2252_v18 = vpop.permute.xlu0 %2251 }
 0x518   :  { %v4086_v19 = vld [vmem:[#allocation3 + $0xe1] ss:$2 sm:$0x7f]  ;;  %2364 = vst.msk [vmem:[#allocation2 + $0x2f0] sm:$0xff] %vm2316_vm13, %v2252_v18 }
 0x519   :  { %4087 = vst.msk [vmem:[#allocation4 + $0x31] sm:$0x7f] %vm4065_vm6, %v4086_v19 }
 0x51a   :  { %v3222_v63 = vpop.permute.xlu1 %3221 }
 0x51b   :  { %3335 = vst.msk [vmem:[#allocation2 + $0x2e0] sm:$0xff] %vm3288_vm3, %v3222_v63  ;;  %v2466_v7 = vpop.permute.xlu0 %2465 }
 0x51c   :  { %2578 = vst.msk [vmem:[#allocation2 + $0x2f0] sm:$0xff] %vm2530_vm14, %v2466_v7  ;;  %v3501_v7 = vld [vmem:[#allocation2 + $0x348] sm:$0x3] }
 0x51e   :  { %v1610_v11 = vpop.permute.xlu1 %1609  ;;  %v3895_v53 = vpop.f32.mrb[60].mxu1 }
 0x51f   :  { %1721 = vst.msk [vmem:[#allocation2 + $0x300] sm:$0xff] %vm1672_vm11, %v1610_v11  ;;  %v3897_v27 = vpop.f32.mrb[61].mxu1  ;;  %v2684_v40 = vpop.permute.xlu0 %2683 }
 0x520   :  { %2796 = vst.msk [vmem:[#allocation2 + $0x2f0] sm:$0xff] %vm2748_vm15, %v2684_v40  ;;  %v11625_v27 = vmov 0.0  }
 0x522   :  { %v1930_v9 = vpop.permute.xlu1 %1929  ;;  %v3488_v4 = vld [vmem:[#allocation2 + $0x2e0] sm:$0xff] }
 0x523   :  { %2041 = vst.msk [vmem:[#allocation2 + $0x300] sm:$0xff] %vm1992_vm12, %v1930_v9  ;;  %3974 = vmatmul.mubr.f32.gmra.mrb[92].mxu1 %v3488_v4  ;;  %v3005_v23 = vpop.permute.xlu0 %3004 }
 0x524   :  { %5747 = vmatprep.mubr.msk.f32.mxu1 %vm701_vm5, %v3491_v52  ;;  %3117 = vst.msk [vmem:[#allocation2 + $0x2f0] sm:$0xff] %vm3069_vm2, %v3005_v23 }
 0x526   :  { %v2254_v50 = vpop.permute.xlu1 %2253 }
 0x527   :  { %2365 = vst.msk [vmem:[#allocation2 + $0x300] sm:$0xff] %vm2316_vm13, %v2254_v50  ;;  %v3224_v8 = vpop.permute.xlu0 %3223  ;;  %v3900_v39 = vpop.f32.mrb[62].mxu1 }
 0x528   :  { %3336 = vst.msk [vmem:[#allocation2 + $0x2f0] sm:$0xff] %vm3288_vm3, %v3224_v8  ;;  %v3902_v36 = vpop.f32.mrb[63].mxu1 }
 0x529   :  { %4041 = vst.msk [vmem:[#allocation3 + $0xf8] sm:$0xff] %vm4009_vm4, %v3900_v39 }
 0x52a   :  { %v2468_v41 = vpop.permute.xlu1 %2467 }
 0x52b   :  { %2579 = vst.msk [vmem:[#allocation2 + $0x300] sm:$0xff] %vm2530_vm14, %v2468_v41  ;;  %v1612_v55 = vpop.permute.xlu0 %1611 }
 0x52c   :  { %1722 = vst.msk [vmem:[#allocation2 + $0x310] sm:$0xff] %vm1672_vm11, %v1612_v55 }
 0x52e   :  { %v2686_v28 = vpop.permute.xlu1 %2685 }
 0x52f   :  { %2797 = vst.msk [vmem:[#allocation2 + $0x300] sm:$0xff] %vm2748_vm15, %v2686_v28  ;;  %v1932_v12 = vpop.permute.xlu0 %1931  ;;  %v3490_v57 = vld [vmem:[#allocation2 + $0x2f0] sm:$0xff] }
 0x530   :  { %2042 = vst.msk [vmem:[#allocation2 + $0x310] sm:$0xff] %vm1992_vm12, %v1932_v12  ;;  %3979 = vmatmul.mubr.f32.gmra.mrb[94].mxu1 %v3490_v57 }
 0x531   :  { %5748 = vmatprep.mubr.msk.f32.mxu1 %vm701_vm5, %v3493_v29 }
 0x532   :  { %v3007_v22 = vpop.permute.xlu1 %3006 }
 0x533   :  { %3118 = vst.msk [vmem:[#allocation2 + $0x300] sm:$0xff] %vm3069_vm2, %v3007_v22  ;;  %v2256_v5 = vpop.permute.xlu0 %2255 }
 0x534   :  { %2366 = vst.msk [vmem:[#allocation2 + $0x310] sm:$0xff] %vm2316_vm13, %v2256_v5 }
 0x536   :  { %v3226_v30 = vpop.permute.xlu1 %3225  ;;  %v3905_v56 = vpop.f32.mrb[64].mxu1 }
 0x537   :  { %3337 = vst.msk [vmem:[#allocation2 + $0x300] sm:$0xff] %vm3288_vm3, %v3226_v30  ;;  %v3907_v37 = vpop.f32.mrb[65].mxu1  ;;  %v2470_v16 = vpop.permute.xlu0 %2469 }
 0x538   :  { %4042 = vst.msk [vmem:[#allocation3 + $0x100] sm:$0xff] %vm4009_vm4, %v3905_v56 }
 0x539   :  { %2580 = vst.msk [vmem:[#allocation2 + $0x310] sm:$0xff] %vm2530_vm14, %v2470_v16 }
 0x53a   :  { %v1614_v54 = vpop.permute.xlu1 %1613 }
 0x53b   :  { %1723 = vst.msk [vmem:[#allocation2 + $0x320] sm:$0xff] %vm1672_vm11, %v1614_v54  ;;  %v2688_v34 = vpop.permute.xlu0 %2687 }
 0x53c   :  { %2798 = vst.msk [vmem:[#allocation2 + $0x310] sm:$0xff] %vm2748_vm15, %v2688_v34 }
 0x53e   :  { %v1934_v17 = vpop.permute.xlu1 %1933  ;;  %v3492_v38 = vld [vmem:[#allocation2 + $0x300] sm:$0xff] }
 0x53f   :  { %2043 = vst.msk [vmem:[#allocation2 + $0x320] sm:$0xff] %vm1992_vm12, %v1934_v17  ;;  %3984 = vmatmul.mubr.f32.gmra.mrb[96].mxu1 %v3492_v38  ;;  %v3009_v0 = vpop.permute.xlu0 %3008  ;;  %v3910_v61 = vpop.f32.mrb[66].mxu1 }
 0x540   :  { %5749 = vmatprep.mubr.msk.f32.mxu1 %vm701_vm5, %v3495_v46  ;;  %3119 = vst.msk [vmem:[#allocation2 + $0x310] sm:$0xff] %vm3069_vm2, %v3009_v0  ;;  %v3912_v49 = vpop.f32.mrb[67].mxu1  ;;  %v4694_v46 = vld [vmem:[%s11260_s7 + $0x80] sm:$0xff]  ;;  %v4695_v0 = vld [vmem:[%s11260_s7 + $0x88] sm:$0xff] }
 0x541   :  { %4043 = vst.msk [vmem:[#allocation3 + $0x108] sm:$0xff] %vm4009_vm4, %v3910_v61  ;;  %v4678_v61 = vld [vmem:[%s11260_s7] sm:$0xff]  ;;  %v4679_v49 = vld [vmem:[%s11260_s7 + $0x8] sm:$0xff] }
 0x542   :  { %v2258_v60 = vpop.permute.xlu1 %2257 }
 0x543   :  { %2367 = vst.msk [vmem:[#allocation2 + $0x320] sm:$0xff] %vm2316_vm13, %v2258_v60  ;;  %v3228_v10 = vpop.permute.xlu0 %3227  ;;  %v6325_v60 = vpack.c.bf16 %v4695_v0, %v4694_v46 }
 0x544   :  { %3338 = vst.msk [vmem:[#allocation2 + $0x310] sm:$0xff] %vm3288_vm3, %v3228_v10  ;;  %v4710_v10 = vld [vmem:[%s11260_s7 + $0x100] sm:$0xff] }
 0x545   :  { %6326 = vmatprep.subr.bf16.mxu0 %v6325_v60 }
 0x546   :  { %v2472_v25 = vpop.permute.xlu1 %2471 }
 0x547   :  { %2581 = vst.msk [vmem:[#allocation2 + $0x320] sm:$0xff] %vm2530_vm14, %v2472_v25  ;;  %v1616_v31 = vpop.permute.xlu0 %1615  ;;  %v4711_v25 = vld [vmem:[%s11260_s7 + $0x108] sm:$0xff] }
 0x548   :  { %v4089_v48 = vld [vmem:[#allocation3 + $0xff] ss:$2 sm:$0x7f]  ;;  %1724 = vst.msk [vmem:[#allocation2 + $0x330] sm:$0xff] %vm1672_vm11, %v1616_v31  ;;  %vm1725_vm11 = vcmask 255104   ;;  %v6358_v31 = vpack.c.bf16 %v4711_v25, %v4710_v10 }
 0x549   :  { %4090 = vst.msk [vmem:[#allocation4 + $0x38] sm:$0x7f] %vm4065_vm6, %v4089_v48  ;;  %v6327_v48 = vpack.c.bf16 %v4679_v49, %v4678_v61 }
 0x54a   :  { %v2690_v32 = vpop.permute.xlu1 %2689  ;;  %6359 = vmatpush3.bf16.msra.mxu1 %v6358_v31 }
 0x54b   :  { %2799 = vst.msk [vmem:[#allocation2 + $0x320] sm:$0xff] %vm2748_vm15, %v2690_v32  ;;  %v1936_v33 = vpop.permute.xlu0 %1935  ;;  %v3494_v3 = vld [vmem:[#allocation2 + $0x310] sm:$0xff]  ;;  %6328 = vmatpush3.bf16.msra.mxu0 %v6327_v48 }
 0x54c   :  { %2044 = vst.msk [vmem:[#allocation2 + $0x330] sm:$0xff] %vm1992_vm12, %v1936_v33  ;;  %3989 = vmatmul.mubr.f32.gmra.mrb[98].mxu1 %v3494_v3  ;;  %vm2045_vm12 = vcmask 386304   ;;  %v4696_v32 = vld [vmem:[%s11260_s7 + $0x90] sm:$0xff]  ;;  %v4697_v33 = vld [vmem:[%s11260_s7 + $0x98] sm:$0xff] }
 0x54d   :  { %5750 = vmatprep.mubr.msk.f32.mxu1 %vm701_vm5, %v3497_v13  ;;  %v4680_v3 = vld [vmem:[%s11260_s7 + $0x10] sm:$0xff] }
 0x54e   :  { %v3011_v21 = vpop.permute.xlu1 %3010  ;;  %v3915_v26 = vpop.f32.mrb[68].mxu1 }
 0x54f   :  { %3120 = vst.msk [vmem:[#allocation2 + $0x320] sm:$0xff] %vm3069_vm2, %v3011_v21  ;;  %v3917_v62 = vpop.f32.mrb[69].mxu1  ;;  %v2260_v42 = vpop.permute.xlu0 %2259  ;;  %v6329_v21 = vpack.c.bf16 %v4697_v33, %v4696_v32  ;;  %v4681_v26 = vld [vmem:[%s11260_s7 + $0x18] sm:$0xff] }
 0x550   :  { %2368 = vst.msk [vmem:[#allocation2 + $0x330] sm:$0xff] %vm2316_vm13, %v2260_v42  ;;  %vm2369_vm13 = vcmask 517504   ;;  %v6331_v13 = vpack.c.bf16 %v4681_v26, %v4680_v3  ;;  %v11626_v62 = vmov 0.0|0.0   ;;  %v4712_v42 = vld [vmem:[%s11260_s7 + $0x110] sm:$0xff] }
 0x551   :  { %6330 = vmatprep.subr.bf16.mxu0 %v6329_v21  ;;  %6360 = vmatprep.subr.bf16.mxu1 %v11626_v62 }
 0x552   :  { %v3230_v14 = vpop.permute.xlu1 %3229  ;;  %6332 = vmatpush3.bf16.msra.mxu0 %v6331_v13 }
 0x553   :  { %3339 = vst.msk [vmem:[#allocation2 + $0x320] sm:$0xff] %vm3288_vm3, %v3230_v14  ;;  %v2474_v1 = vpop.permute.xlu0 %2473  ;;  %v4713_v14 = vld [vmem:[%s11260_s7 + $0x118] sm:$0xff] }
 0x554   :  { %2582 = vst.msk [vmem:[#allocation2 + $0x330] sm:$0xff] %vm2530_vm14, %v2474_v1  ;;  %vm2583_vm14 = vcmask 648704   ;;  %v4698_v1 = vld [vmem:[%s11260_s7 + $0xa0] sm:$0xff] }
 0x556   :  { %v1618_v15 = vpop.permute.xlu1 %1617 }
 0x557   :  { %1726 = vst.msk [vmem:[#allocation2 + $0x340] sm:$0x3] %vm1725_vm11, %v1618_v15  ;;  %v2692_v58 = vpop.permute.xlu0 %2691  ;;  %vm3122_vm11 = vcmask 911104   ;;  %v6361_v15 = vpack.c.bf16 %v4713_v14, %v4712_v42 }
 0x558   :  { %2800 = vst.msk [vmem:[#allocation2 + $0x330] sm:$0xff] %vm2748_vm15, %v2692_v58  ;;  %vm2801_vm15 = vcmask 779904   ;;  %v4699_v58 = vld [vmem:[%s11260_s7 + $0xa8] sm:$0xff] }
 0x559   :  { %6362 = vmatpush3.bf16.msra.mxu1 %v6361_v15 }
 0x55a   :  { %v1938_v43 = vpop.permute.xlu1 %1937  ;;  %v3496_v51 = vld [vmem:[#allocation2 + $0x320] sm:$0xff] }
 0x55b   :  { %2046 = vst.msk [vmem:[#allocation2 + $0x340] sm:$0x3] %vm2045_vm12, %v1938_v43  ;;  %3994 = vmatmul.mubr.f32.gmra.mrb[100].mxu1 %v3496_v51  ;;  %v3013_v6 = vpop.permute.xlu0 %3012  ;;  %vm3341_vm12 = vcmask 1042304   ;;  %v6333_v43 = vpack.c.bf16 %v4699_v58, %v4698_v1 }
 0x55c   :  { %5751 = vmatprep.mubr.msk.f32.mxu1 %vm701_vm5, %v3499_v44  ;;  %v3920_v35 = vpop.f32.mrb[70].mxu1  ;;  %3121 = vst.msk [vmem:[#allocation2 + $0x330] sm:$0xff] %vm3069_vm2, %v3013_v6  ;;  %v4682_v6 = vld [vmem:[%s11260_s7 + $0x20] sm:$0xff]  ;;  %vm4383_vm2 = vcmask 517376  }
 0x55d   :  { %4045 = vst.msk [vmem:[#allocation3 + $0x118] sm:$0xff] %vm4009_vm4, %v3920_v35  ;;  %v3922_v45 = vpop.f32.mrb[71].mxu1  ;;  %6334 = vmatprep.subr.bf16.mxu0 %v6333_v43  ;;  %v4683_v35 = vld [vmem:[%s11260_s7 + $0x28] sm:$0xff] }
 0x55e   :  { %v2262_v20 = vpop.permute.xlu1 %2261 }
 0x55f   :  { %2370 = vst.msk [vmem:[#allocation2 + $0x340] sm:$0x3] %vm2369_vm13, %v2262_v20  ;;  %v3232_v59 = vpop.permute.xlu0 %3231  ;;  %v6335_v20 = vpack.c.bf16 %v4683_v35, %v4682_v6  ;;  %vm4509_vm13 = vcmask 1048320  }
 0x560   :  { %3340 = vst.msk [vmem:[#allocation2 + $0x330] sm:$0xff] %vm3288_vm3, %v3232_v59  ;;  %vm4372_vm3 = vcmask 523520  }
 0x561   :  { %6336 = vmatpush3.bf16.msra.mxu0 %v6335_v20 }
 0x562   :  { %v2476_v24 = vpop.permute.xlu1 %2475 }
 0x563   :  { %2584 = vst.msk [vmem:[#allocation2 + $0x340] sm:$0x3] %vm2583_vm14, %v2476_v24  ;;  %v2694_v47 = vpop.permute.xlu0 %2693  ;;  %vm4520_vm14 = vcmask 1042176  }
 0x564   :  { %2802 = vst.msk [vmem:[#allocation2 + $0x340] sm:$0x3] %vm2801_vm15, %v2694_v47  ;;  %vm4987_vm15 = vcmask 523264  }
 0x566   :  { %v3015_v2 = vpop.permute.xlu1 %3014 }
 0x567   :  { %3123 = vst.msk [vmem:[#allocation2 + $0x340] sm:$0x3] %vm3122_vm11, %v3015_v2  ;;  %v3234_v19 = vpop.permute.xlu0 %3233  ;;  %v3498_v18 = vld [vmem:[#allocation2 + $0x330] sm:$0xff]  ;;  %vm5001_vm11 = vcmask 518144  }
 0x568   :  { %3342 = vst.msk [vmem:[#allocation2 + $0x340] sm:$0x3] %vm3341_vm12, %v3234_v19  ;;  %3999 = vmatmul.mubr.f32.gmra.mrb[102].mxu1 %v3498_v18  ;;  %v4700_v19 = vld [vmem:[%s11260_s7 + $0xb0] sm:$0xff]  ;;  %v4701_v18 = vld [vmem:[%s11260_s7 + $0xb8] sm:$0xff]  ;;  %vm4998_vm12 = vcmask 517120  }
 0x569   :  { %5752 = vmatprep.mubr.msk.f32.mxu1 %vm701_vm5, %v3501_v7  ;;  %v6337_v7 = vpack.c.bf16 %v4701_v18, %v4700_v19  ;;  %vm4062_vm5 = vcmask 254976  }
 0x56a   :  { %v3925_v63 = vpop.f32.mrb[72].mxu1 }
 0x56b   :  { %4046 = vst.msk [vmem:[#allocation3 + $0x120] sm:$0xff] %vm4009_vm4, %v3925_v63  ;;  %v3927_v11 = vpop.f32.mrb[73].mxu1  ;;  %v4684_v63 = vld [vmem:[%s11260_s7 + $0x30] sm:$0xff]  ;;  %6338 = vmatprep.subr.bf16.mxu0 %v6337_v7  ;;  %v4687_v7 = vld [vmem:[%s11260_s7 + $0x48] sm:$0xff] }
 0x56c   :  { %v4685_v11 = vld [vmem:[%s11260_s7 + $0x38] sm:$0xff] }
 0x56f   :  { %v3500_v53 = vld [vmem:[#allocation2 + $0x340] sm:$0x3] }
 0x570   :  { %4004 = vmatmul.mubr.f32.gmra.mrb[104].mxu1 %v3500_v53  ;;  %v6339_v53 = vpack.c.bf16 %v4685_v11, %v4684_v63 }
 0x571   :  { %6204 = vmatprep.mubr.msk.f32.mxu1 %vm6513_vm1, %v11625_v27 }
 0x572   :  { %6340 = vmatpush3.bf16.msra.mxu0 %v6339_v53 }
 0x577   :  { %v3930_v40 = vpop.f32.mrb[74].mxu1 }
 0x578   :  { %4047 = vst.msk [vmem:[#allocation3 + $0x128] sm:$0xff] %vm4009_vm4, %v3930_v40  ;;  %v3932_v9 = vpop.f32.mrb[75].mxu1  ;;  %v4106_v40 = vld [vmem:[#allocation4] sm:$0xff] }
 0x579   :  { %v4107_v9 = vld [vmem:[#allocation4 + $0x8] sm:$0xff] }
 0x57f   :  { %v4092_v4 = vld [vmem:[#allocation3 + $0x11d] ss:$2 sm:$0x7f] }
 0x580   :  { %4093 = vst.msk [vmem:[#allocation4 + $0x3f] sm:$0x7f] %vm4065_vm6, %v4092_v4  ;;  %v11627_v4 = vld [vmem:[#allocation14_spill] sm:$0xff] }
 0x586   :  { %v3935_v52 = vpop.f32.mrb[76].mxu1 }
 0x587   :  { %v3937_v23 = vpop.f32.mrb[77].mxu1  ;;  %v10232_v52 = vrot.slane %v4106_v40, %v11627_v4  ;;  %v4113_v0 = vld [vmem:[#allocation4 + $0x38] sm:$0xff] }
 0x588   :  { %v4108_v23 = vld [vmem:[#allocation4 + $0x10] sm:$0xff] }
 0x589   :  { %v10281_v26 = vsub.f32 %v4113_v0, %v10232_v52 }
 0x58b   :  { %v4176_v18 = vmul.f32 %v10281_v26, %v10281_v26 }
 0x593   :  { %v3940_v50 = vpop.f32.mrb[78].mxu1 }
 0x594   :  { %4049 = vst.msk [vmem:[#allocation3 + $0x138] sm:$0xff] %vm4009_vm4, %v3940_v50  ;;  %v3942_v8 = vpop.f32.mrb[79].mxu1  ;;  %v10235_v50 = vsub.f32 %v4107_v9, %v10232_v52 }
 0x5a2   :  { %v3945_v39 = vpop.f32.mrb[80].mxu1 }
 0x5a3   :  { %4050 = vst.msk [vmem:[#allocation3 + $0x140] sm:$0xff] %vm4009_vm4, %v3945_v39  ;;  %v3947_v41 = vpop.f32.mrb[81].mxu1  ;;  %v4109_v39 = vld [vmem:[#allocation4 + $0x18] sm:$0xff] }
 0x5a4   :  { %v10238_v41 = vsub.f32 %v4106_v40, %v10232_v52 }
 0x5aa   :  { %v4095_v36 = vld [vmem:[#allocation3 + $0x13b] ss:$2 sm:$0x7f] }
 0x5ab   :  { %4096 = vst.msk [vmem:[#allocation4 + $0x46] sm:$0x7f] %vm4065_vm6, %v4095_v36 }
 0x5af   :  { %v3950_v55 = vpop.f32.mrb[82].mxu1 }
 0x5b0   :  { %v3952_v28 = vpop.f32.mrb[83].mxu1  ;;  %v10242_v55 = vsub.f32 %v4108_v23, %v10232_v52 }
 0x5b1   :  { %v4110_v28 = vld [vmem:[#allocation4 + $0x20] sm:$0xff] }
 0x5b2   :  { %v4114_v32 = vld [vmem:[#allocation4 + $0x40] sm:$0xff] }
 0x5b3   :  { %v10287_v43 = vsub.f32 %v4114_v32, %v10232_v52 }
 0x5be   :  { %v3955_v12 = vpop.f32.mrb[84].mxu1 }
 0x5bf   :  { %v3957_v57 = vpop.f32.mrb[85].mxu1  ;;  %v4111_v12 = vld [vmem:[#allocation4 + $0x28] sm:$0xff] }
 0x5c0   :  { %v10245_v57 = vsub.f32 %v4109_v39, %v10232_v52  ;;  %v4177_v39 = vmul.f32 %v10287_v43, %v10287_v43 }
 0x5c2   :  { %v4143_v10 = vsel %vm4009_vm4, %v10245_v57, 0.0 }
 0x5cb   :  { %v3960_v22 = vpop.f32.mrb[86].mxu1 }
 0x5cc   :  { %4053 = vst.msk [vmem:[#allocation3 + $0x158] sm:$0xff] %vm4009_vm4, %v3960_v22  ;;  %v3962_v29 = vpop.f32.mrb[87].mxu1  ;;  %v4170_v22 = vmul.f32 %v10235_v50, %v10235_v50 }
 0x5cd   :  { %v4169_v29 = vmul.f32 %v10238_v41, %v10238_v41 }
 0x5cf   :  { %v4182_v60 = vsel %vm4009_vm4, %v4169_v29, 0.0 }
 0x5da   :  { %v3965_v5 = vpop.f32.mrb[88].mxu1 }
 0x5db   :  { %4054 = vst.msk [vmem:[#allocation3 + $0x160] sm:$0xff] %vm4009_vm4, %v3965_v5  ;;  %v3967_v30 = vpop.f32.mrb[89].mxu1  ;;  %v10252_v5 = vsub.f32 %v4110_v28, %v10232_v52 }
 0x5dc   :  { %v4139_v30 = vsel %vm4009_vm4, %v10235_v50, 0.0 }
 0x5dd   :  { %v4173_v25 = vmul.f32 %v10252_v5, %v10252_v5  ;;  %v4145_v13 = vsel %vm4009_vm4, %v10252_v5, 0.0 }
 0x5df   :  { %v4189_v6 = vsel %vm4009_vm4, %v4173_v25, 0.0 }
 0x5e2   :  { %v4098_v56 = vld [vmem:[#allocation3 + $0x159] ss:$2 sm:$0x7f] }
 0x5e3   :  { %4099 = vst.msk [vmem:[#allocation4 + $0x4d] sm:$0x7f] %vm4065_vm6, %v4098_v56  ;;  %v4171_v56 = vmul.f32 %v10242_v55, %v10242_v55 }
 0x5e5   :  { %v4185_v48 = vsel %vm4009_vm4, %v4171_v56, 0.0 }
 0x5e7   :  { %v3970_v37 = vpop.f32.mrb[90].mxu1 }
 0x5e8   :  { %v3972_v16 = vpop.f32.mrb[91].mxu1  ;;  %v4112_v37 = vld [vmem:[#allocation4 + $0x30] sm:$0xff] }
 0x5e9   :  { %v10259_v16 = vsub.f32 %v4111_v12, %v10232_v52  ;;  %v10271_v49 = vsub.f32 %v4112_v37, %v10232_v52 }
 0x5ea   :  { %v4115_v14 = vld [vmem:[#allocation4 + $0x48] sm:$0xff] }
 0x5eb   :  { %v4174_v3 = vmul.f32 %v10259_v16, %v10259_v16  ;;  %v4149_v19 = vsel %vm4009_vm4, %v10271_v49, 0.0 }
 0x5f6   :  { %v3975_v54 = vpop.f32.mrb[92].mxu1 }
 0x5f7   :  { %4056 = vst.msk [vmem:[#allocation3 + $0x170] sm:$0xff] %vm4009_vm4, %v3975_v54  ;;  %v3977_v34 = vpop.f32.mrb[93].mxu1  ;;  %v4138_v54 = vsel %vm4009_vm4, %v10238_v41, 0.0 }
 0x5f8   :  { %v4141_v34 = vsel %vm4009_vm4, %v10242_v55, 0.0  ;;  %v4140_v61 = vadd.f32 %v4139_v30, %v4138_v54  ;;  %v4195_v30 = vsel %vm4009_vm4, %v4176_v18, 0.0 }
 0x5fa   :  { %v4142_v33 = vadd.f32 %v4141_v34, %v4140_v61 }
 0x5fc   :  { %v4144_v1 = vadd.f32 %v4143_v10, %v4142_v33 }
 0x5fe   :  { %v4146_v35 = vadd.f32 %v4145_v13, %v4144_v1 }
 0x603   :  { %v3980_v17 = vpop.f32.mrb[94].mxu1 }
 0x604   :  { %4057 = vst.msk [vmem:[#allocation3 + $0x178] sm:$0xff] %vm4009_vm4, %v3980_v17  ;;  %v3982_v38 = vpop.f32.mrb[95].mxu1  ;;  %v4172_v17 = vmul.f32 %v10245_v57, %v10245_v57 }
 0x605   :  { %v4183_v38 = vsel %vm4009_vm4, %v4170_v22, 0.0  ;;  %v4153_v22 = vsel %vm4009_vm4, %v10287_v43, 0.0 }
 0x606   :  { %v4184_v21 = vadd.f32 %v4183_v38, %v4182_v60  ;;  %v4187_v42 = vsel %vm4009_vm4, %v4172_v17, 0.0  ;;  %v4197_v17 = vsel %vm4009_vm4, %v4177_v39, 0.0 }
 0x608   :  { %v4186_v15 = vadd.f32 %v4185_v48, %v4184_v21 }
 0x60a   :  { %v4188_v20 = vadd.f32 %v4187_v42, %v4186_v15 }
 0x60c   :  { %v4190_v40 = vadd.f32 %v4189_v6, %v4188_v20 }
 0x612   :  { %v3985_v51 = vpop.f32.mrb[96].mxu1 }
 0x613   :  { %4058 = vst.msk [vmem:[#allocation3 + $0x180] sm:$0xff] %vm4009_vm4, %v3985_v51  ;;  %v3987_v44 = vpop.f32.mrb[97].mxu1  ;;  %v4147_v51 = vsel %vm4009_vm4, %v10259_v16, 0.0 }
 0x614   :  { %v4175_v44 = vmul.f32 %v10271_v49, %v10271_v49  ;;  %v4148_v53 = vadd.f32 %v4147_v51, %v4146_v35 }
 0x616   :  { %v4150_v28 = vadd.f32 %v4149_v19, %v4148_v53 }
 0x61a   :  { %v4101_v45 = vld [vmem:[#allocation3 + $0x177] ss:$2 sm:$0x7f] }
 0x61b   :  { %4102 = vst.msk [vmem:[#allocation4 + $0x54] sm:$0x7f] %vm4065_vm6, %v4101_v45  ;;  %v4191_v45 = vsel %vm4009_vm4, %v4174_v3, 0.0 }
 0x61c   :  { %v4192_v12 = vadd.f32 %v4191_v45, %v4190_v40  ;;  %v4704_v40 = vld [vmem:[%s11260_s7 + $0xd0] sm:$0xff] }
 0x61f   :  { %v3990_v59 = vpop.f32.mrb[98].mxu1 }
 0x620   :  { %v3992_v24 = vpop.f32.mrb[99].mxu1  ;;  %v4702_v59 = vld [vmem:[%s11260_s7 + $0xc0] sm:$0xff] }
 0x621   :  { %v4703_v24 = vld [vmem:[%s11260_s7 + $0xc8] sm:$0xff] }
 0x622   :  { %v4116_v58 = vld [vmem:[#allocation4 + $0x50] sm:$0xff]  ;;  %v6341_v63 = vpack.c.bf16 %v4703_v24, %v4702_v59 }
 0x623   :  { %v10316_v23 = vsub.f32 %v4116_v58, %v10232_v52 }
 0x624   :  { %6342 = vmatprep.subr.bf16.mxu0 %v6341_v63 }
 0x625   :  { %v4179_v34 = vmul.f32 %v10316_v23, %v10316_v23  ;;  %v4157_v0 = vsel %vm4009_vm4, %v10316_v23, 0.0 }
 0x627   :  { %v4201_v33 = vsel %vm4009_vm4, %v4179_v34, 0.0 }
 0x62e   :  { %v3995_v47 = vpop.f32.mrb[100].mxu1 }
 0x62f   :  { %4060 = vst.msk [vmem:[#allocation3 + $0x190] sm:$0xff] %vm4009_vm4, %v3995_v47  ;;  %v3997_v2 = vpop.f32.mrb[101].mxu1  ;;  %v4686_v47 = vld [vmem:[%s11260_s7 + $0x40] sm:$0xff] }
 0x630   :  { %v10305_v2 = vsub.f32 %v4115_v14, %v10232_v52  ;;  %v6343_v9 = vpack.c.bf16 %v4687_v7, %v4686_v47 }
 0x632   :  { %6344 = vmatpush3.bf16.msra.mxu0 %v6343_v9  ;;  %v4178_v29 = vmul.f32 %v10305_v2, %v10305_v2  ;;  %v4155_v54 = vsel %vm4009_vm4, %v10305_v2, 0.0  ;;  %v4705_v9 = vld [vmem:[%s11260_s7 + $0xd8] sm:$0xff] }
 0x633   :  { %v6345_v39 = vpack.c.bf16 %v4705_v9, %v4704_v40 }
 0x634   :  { %v4199_v61 = vsel %vm4009_vm4, %v4178_v29, 0.0 }
 0x635   :  { %6346 = vmatprep.subr.bf16.mxu0 %v6345_v39 }
 0x63b   :  { %v4000_v8 = vpop.f32.mrb[102].mxu1 }
 0x63c   :  { %4061 = vst.msk [vmem:[#allocation3 + $0x198] sm:$0xff] %vm4009_vm4, %v4000_v8  ;;  %v4002_v36 = vpop.f32.mrb[103].mxu1  ;;  %v4151_v8 = vsel %vm4009_vm4, %v10281_v26, 0.0 }
 0x63d   :  { %v4193_v36 = vsel %vm4009_vm4, %v4175_v44, 0.0  ;;  %v4152_v56 = vadd.f32 %v4151_v8, %v4150_v28  ;;  %v4688_v8 = vld [vmem:[%s11260_s7 + $0x50] sm:$0xff] }
 0x63e   :  { %v4194_v37 = vadd.f32 %v4193_v36, %v4192_v12  ;;  %v4689_v36 = vld [vmem:[%s11260_s7 + $0x58] sm:$0xff] }
 0x63f   :  { %v4154_v38 = vadd.f32 %v4153_v22, %v4152_v56  ;;  %v6347_v22 = vpack.c.bf16 %v4689_v36, %v4688_v8 }
 0x641   :  { %v4156_v25 = vadd.f32 %v4155_v54, %v4154_v38  ;;  %6348 = vmatpush3.bf16.msra.mxu0 %v6347_v22 }
 0x643   :  { %v4005_v46 = vpop.f32.mrb[104].mxu1  ;;  %v4158_v3 = vadd.f32 %v4157_v0, %v4156_v25 }
 0x644   :  { %4063 = vst.msk [vmem:[#allocation3 + $0x1a0] sm:$0x3] %vm4062_vm5, %v4005_v46  ;;  %v4007_v31 = vpop.f32.mrb[105].mxu1  ;;  %v4196_v46 = vadd.f32 %v4195_v30, %v4194_v37 }
 0x646   :  { %v4198_v48 = vadd.f32 %v4197_v17, %v4196_v46 }
 0x648   :  { %v4200_v21 = vadd.f32 %v4199_v61, %v4198_v48  ;;  %v10409_v48 = vld [vmem:[%s11259_s6] ss:$0 sm:$0xff] }
 0x64a   :  { %v4202_v15 = vadd.f32 %v4201_v33, %v4200_v21 }
 0x64b   :  { %v4104_v11 = vld [vmem:[#allocation3 + $0x195] ss:$2 sm:$0x7f] }
 0x64c   :  { %4105 = vst.msk [vmem:[#allocation4 + $0x5b] sm:$0x7f] %vm4065_vm6, %v4104_v11  ;;  %vm4439_vm6 = vcmask 785920  }
 0x653   :  { %v4117_v60 = vld [vmem:[#allocation4 + $0x58] sm:$0xff]  ;;  %v4118_v10 = vld [vmem:[#allocation4 + $0x60] sm:$0x3] }
 0x654   :  { %v10337_v31 = vsub.f32 %v4117_v60, %v10232_v52  ;;  %v10340_v32 = vsub.f32 %v4118_v10, %v10232_v52 }
 0x656   :  { %v4159_v13 = vsel %vm4009_vm4, %v10337_v31, 0.0  ;;  %v4180_v42 = vmul.f32 %v10337_v31, %v10337_v31  ;;  %v4181_v14 = vmul.f32 %v10340_v32, %v10340_v32  ;;  %v4161_v58 = vsel %vm4062_vm5, %v10340_v32, 0.0 }
 0x657   :  { %v4160_v1 = vadd.f32 %v4159_v13, %v4158_v3 }
 0x658   :  { %v4203_v52 = vsel %vm4009_vm4, %v4180_v42, 0.0  ;;  %v4205_v6 = vsel %vm4062_vm5, %v4181_v14, 0.0 }
 0x659   :  { %v4162_v51 = vadd.f32 %v4161_v58, %v4160_v1  ;;  %v4204_v44 = vadd.f32 %v4203_v52, %v4202_v15 }
 0x65b   :  { %v4163_v35 = vrot.slane %v4162_v51, 4  ;;  %v4206_v20 = vadd.f32 %v4205_v6, %v4204_v44 }
 0x65d   :  { %v4164_v45 = vadd.f32 %v4163_v35, %v4162_v51  ;;  %v4207_v59 = vrot.slane %v4206_v20, 4 }
 0x65f   :  { %v4165_v24 = vrot.slane %v4164_v45, 2  ;;  %v4208_v47 = vadd.f32 %v4207_v59, %v4206_v20 }
 0x661   :  { %v4166_v19 = vadd.f32 %v4165_v24, %v4164_v45  ;;  %v4209_v18 = vrot.slane %v4208_v47, 2 }
 0x663   :  { %v4167_v63 = vrot.slane %v4166_v19, 1  ;;  %v4210_v7 = vadd.f32 %v4209_v18, %v4208_v47 }
 0x665   :  { %v4168_v11 = vadd.f32 %v4167_v63, %v4166_v19  ;;  %v4211_v53 = vrot.slane %v4210_v7, 1 }
 0x667   :  { %v4212_v28 = vadd.f32 %v4211_v53, %v4210_v7  ;;  %v10365_v12 = vmul.f32 0.010204081, %v4168_v11 }
 0x669   :  { %v4214_v29 = vmul.f32 0.010204081, %v4212_v28  ;;  %v4215_v30 = vmul.f32 %v10365_v12, %v10365_v12  ;;  %v4219_v54 = vsub.f32 %v10242_v55, %v10365_v12  ;;  %v4220_v34 = vsub.f32 %v10245_v57, %v10365_v12 }
 0x66a   :  { %v4221_v17 = vsub.f32 %v10252_v5, %v10365_v12  ;;  %v4222_v38 = vsub.f32 %v10259_v16, %v10365_v12  ;;  %v4223_v46 = vsub.f32 %v10271_v49, %v10365_v12  ;;  %v4224_v0 = vsub.f32 %v10281_v26, %v10365_v12  ;;  %v10392_v5 = vld [vmem:[%s11258_s5] ss:$0 sm:$0xff] }
 0x66b   :  { %v4216_v56 = vsub.f32 %v4214_v29, %v4215_v30  ;;  %v4225_v61 = vsub.f32 %v10287_v43, %v10365_v12  ;;  %v4226_v55 = vsub.f32 %v10305_v2, %v10365_v12  ;;  %v4227_v57 = vsub.f32 %v10316_v23, %v10365_v12 }
 0x66c   :  { %v4229_v16 = vsub.f32 %v10340_v32, %v10365_v12  ;;  %v4228_v49 = vsub.f32 %v10337_v31, %v10365_v12  ;;  %v4217_v26 = vsub.f32 %v10238_v41, %v10365_v12  ;;  %v4218_v43 = vsub.f32 %v10235_v50, %v10365_v12 }
 0x66d   :  { %v4230_v37 = vadd.f32 1e-05, %v4216_v56 }
 0x66f   :  { %6481 = vrsqrt.f32 %v4230_v37 }
 0x679   :  { %v10387_v60 = vpop.eup %6481 }
 0x67a   :  { %v4234_v2 = vmul.f32 %v10387_v60, %v4219_v54  ;;  %v4235_v23 = vmul.f32 %v10387_v60, %v4220_v34  ;;  %v4236_v10 = vmul.f32 %v10387_v60, %v4221_v17  ;;  %v4237_v25 = vmul.f32 %v10387_v60, %v4222_v38 }
 0x67b   :  { %v4238_v31 = vmul.f32 %v10387_v60, %v4223_v46  ;;  %v4239_v41 = vmul.f32 %v10387_v60, %v4224_v0  ;;  %v4240_v32 = vmul.f32 %v10387_v60, %v4225_v61  ;;  %v4241_v33 = vmul.f32 %v10387_v60, %v4226_v55 }
 0x67c   :  { %v4242_v3 = vmul.f32 %v10387_v60, %v4227_v57  ;;  %v4244_v21 = vmul.f32 %v10387_v60, %v4229_v16  ;;  %v4253_v13 = vmul.f32 %v10392_v5, %v4234_v2  ;;  %v4254_v42 = vmul.f32 %v10392_v5, %v4235_v23 }
 0x67d   :  { %v4255_v14 = vmul.f32 %v10392_v5, %v4236_v10  ;;  %v4256_v1 = vmul.f32 %v10392_v5, %v4237_v25  ;;  %v4257_v15 = vmul.f32 %v10392_v5, %v4238_v31  ;;  %v4258_v58 = vmul.f32 %v10392_v5, %v4239_v41 }
 0x67e   :  { %v4259_v52 = vmul.f32 %v10392_v5, %v4240_v32  ;;  %v4260_v51 = vmul.f32 %v10392_v5, %v4241_v33  ;;  %v4263_v44 = vmul.f32 %v10392_v5, %v4244_v21  ;;  %v4272_v6 = vadd.f32 %v10409_v48, %v4253_v13 }
 0x67f   :  { %v4273_v35 = vadd.f32 %v10409_v48, %v4254_v42  ;;  %v4274_v20 = vadd.f32 %v10409_v48, %v4255_v14  ;;  %v4275_v45 = vadd.f32 %v10409_v48, %v4256_v1  ;;  %v4276_v59 = vadd.f32 %v10409_v48, %v4257_v15 }
 0x680   :  { %v4277_v24 = vadd.f32 %v10409_v48, %v4258_v58  ;;  %v4278_v47 = vadd.f32 %v10409_v48, %v4259_v52  ;;  %v4279_v19 = vadd.f32 %v10409_v48, %v4260_v51  ;;  %v10435_v18 = vadd.f32 %v10409_v48, %v4263_v44 }
 0x681   :  { %v10437_v63 = vmax.f32 %v4272_v6, 0.0  ;;  %v10439_v7 = vmax.f32 %v4273_v35, 0.0  ;;  %v10441_v11 = vmax.f32 %v4274_v20, 0.0  ;;  %v10443_v53 = vmax.f32 %v4275_v45, 0.0 }
 0x682   :  { %v10445_v40 = vmax.f32 %v4276_v59, 0.0  ;;  %v10447_v9 = vmax.f32 %v4277_v24, 0.0  ;;  %v10449_v8 = vmax.f32 %v4278_v47, 0.0  ;;  %v10451_v39 = vmax.f32 %v4279_v19, 0.0 }
 0x683   :  { %v4295_v36 = vmax.f32 %v10435_v18, 0.0  ;;  %4298 = vst.msk [vmem:[#allocation5 + $0x30] sm:$0xff] %vm4009_vm4, %v10437_v63  ;;  %4299 = vst.msk [vmem:[#allocation5 + $0x48] sm:$0xff] %vm4009_vm4, %v10439_v7  ;;  %v4243_v28 = vmul.f32 %v10387_v60, %v4228_v49  ;;  %v4261_v22 = vmul.f32 %v10392_v5, %v4242_v3  ;;  %v4232_v29 = vmul.f32 %v10387_v60, %v4217_v26  ;;  %v4692_v18 = vld [vmem:[%s11260_s7 + $0x70] sm:$0xff] }
 0x684   :  { %4300 = vst.msk [vmem:[#allocation5 + $0x60] sm:$0xff] %vm4009_vm4, %v10441_v11  ;;  %4301 = vst.msk [vmem:[#allocation5 + $0x78] sm:$0xff] %vm4009_vm4, %v10443_v53  ;;  %v4233_v30 = vmul.f32 %v10387_v60, %v4218_v43  ;;  %v4321_v10 = vrot.slane %v10437_v63, 1  ;;  %v4553_v33 = vrot.slane %v10437_v63, 6  ;;  %v4555_v3 = vrot.slane %v10439_v7, 6 }
 0x685   :  { %4523 = vst.msk [vmem:[#allocation5 + $0x20] sm:$0xff] %vm4009_vm4, %v10437_v63  ;;  %4524 = vst.msk [vmem:[#allocation5 + $0x38] sm:$0xff] %vm4009_vm4, %v10439_v7  ;;  %v4262_v56 = vmul.f32 %v10392_v5, %v4243_v28  ;;  %v4280_v37 = vadd.f32 %v10409_v48, %v4261_v22  ;;  %v4251_v54 = vmul.f32 %v10392_v5, %v4232_v29  ;;  %v4456_v13 = vrot.slane %v10437_v63, 7  ;;  %v4706_v29 = vld [vmem:[%s11260_s7 + $0xe0] sm:$0xff] }
 0x686   :  { %4525 = vst.msk [vmem:[#allocation5 + $0x50] sm:$0xff] %vm4009_vm4, %v10441_v11  ;;  %4526 = vst.msk [vmem:[#allocation5 + $0x68] sm:$0xff] %vm4009_vm4, %v10443_v53  ;;  %v4252_v34 = vmul.f32 %v10392_v5, %v4233_v30  ;;  %v4323_v42 = vrot.slane %v10439_v7, 1  ;;  %v4333_v15 = vrot.slane %v10449_v8, 1  ;;  %v4468_v58 = vrot.slane %v10449_v8, 7  ;;  %v4707_v30 = vld [vmem:[%s11260_s7 + $0xe8] sm:$0xff] }
 0x687   :  { %4634 = vst.msk [vmem:[#allocation5 + $0x10] sm:$0xff] %vm4009_vm4, %v10437_v63  ;;  %4635 = vst.msk [vmem:[#allocation5 + $0x28] sm:$0xff] %vm4009_vm4, %v10439_v7  ;;  %v4281_v17 = vadd.f32 %v10409_v48, %v4262_v56  ;;  %v10517_v38 = vmax.f32 %v4280_v37, 0.0  ;;  %v4270_v50 = vadd.f32 %v10409_v48, %v4251_v54  ;;  %v4398_v52 = vrot.slane %v10447_v9, 2 }
 0x688   :  { %4636 = vst.msk [vmem:[#allocation5 + $0x40] sm:$0xff] %vm4009_vm4, %v10441_v11  ;;  %4637 = vst.msk [vmem:[#allocation5 + $0x58] sm:$0xff] %vm4009_vm4, %v10443_v53  ;;  %v4271_v12 = vadd.f32 %v10409_v48, %v4252_v34  ;;  %v4556_v44 = vsel %vm2804_vm10, %v4553_v33, %v4555_v3  ;;  %v4458_v6 = vrot.slane %v10439_v7, 7  ;;  %v4567_v35 = vrot.slane %v10451_v39, 6 }
 0x689   :  { %4302 = vst.msk [vmem:[#allocation5 + $0x90] sm:$0xff] %vm4009_vm4, %v10445_v40  ;;  %4303 = vst.msk [vmem:[#allocation5 + $0xa8] sm:$0xff] %vm4009_vm4, %v10447_v9  ;;  %v10521_v46 = vmax.f32 %v4281_v17, 0.0  ;;  %v10524_v0 = vrot.slane %v10517_v38, 1  ;;  %v4283_v61 = vmax.f32 %v4270_v50, 0.0  ;;  %v4335_v20 = vrot.slane %v10451_v39, 1 }
 0x68a   :  { %4304 = vst.msk [vmem:[#allocation5 + $0xc0] sm:$0xff] %vm4009_vm4, %v10449_v8  ;;  %4305 = vst.msk [vmem:[#allocation5 + $0xd8] sm:$0xff] %vm4009_vm4, %v10451_v39  ;;  %v10532_v55 = vmax.f32 %v4271_v12, 0.0  ;;  %v4470_v45 = vrot.slane %v10451_v39, 7  ;;  %v4400_v59 = vrot.slane %v10449_v8, 2  ;;  %v4569_v24 = vrot.slane %v10517_v38, 6 }
 0x68b   :  { %4527 = vst.msk [vmem:[#allocation5 + $0x80] sm:$0xff] %vm4009_vm4, %v10445_v40  ;;  %4528 = vst.msk [vmem:[#allocation5 + $0x98] sm:$0xff] %vm4009_vm4, %v10447_v9  ;;  %v4533_v60 = vrot.slane %v10521_v46, 1  ;;  %4359 = vrot.lane.b32.xlu0 %v10524_v0, %s6518_s27  ;;  %v4318_v5 = vrot.slane %v4283_v61, 1  ;;  %v4385_v26 = vrot.slane %v4283_v61, 2  ;;  %v4571_v23 = vrot.slane %v10521_v46, 6 }
 0x68c   :  { %4529 = vst.msk [vmem:[#allocation5 + $0xb0] sm:$0xff] %vm4009_vm4, %v10449_v8  ;;  %4530 = vst.msk [vmem:[#allocation5 + $0xc8] sm:$0xff] %vm4009_vm4, %v10451_v39  ;;  %v4319_v16 = vrot.slane %v10532_v55, 1  ;;  %v4386_v43 = vrot.slane %v10532_v55, 2  ;;  %v4453_v48 = vrot.slane %v4283_v61, 7  ;;  %v4454_v31 = vrot.slane %v10532_v55, 7 }
 0x68d   :  { %4638 = vst.msk [vmem:[#allocation5 + $0x70] sm:$0xff] %vm4009_vm4, %v10445_v40  ;;  %4639 = vst.msk [vmem:[#allocation5 + $0x88] sm:$0xff] %vm4009_vm4, %v10447_v9  ;;  %4537 = vrot.lane.b32.xlu1 %v4533_v60, %s6518_s27  ;;  %v4552_v32 = vrot.slane %v10532_v55, 6  ;;  %v4472_v19 = vrot.slane %v10517_v38, 7  ;;  %v4402_v28 = vrot.slane %v10451_v39, 2  ;;  %v10601_v22 = vsel %vm1407_vm8, %v10524_v0, %v4533_v60  ;;  %v4690_v50 = vld [vmem:[%s11260_s7 + $0x60] sm:$0xff] }
 0x68e   :  { %4640 = vst.msk [vmem:[#allocation5 + $0xa0] sm:$0xff] %vm4009_vm4, %v10449_v8  ;;  %4641 = vst.msk [vmem:[#allocation5 + $0xb8] sm:$0xff] %vm4009_vm4, %v10451_v39  ;;  %v4647_v57 = vld [vmem:[#allocation5 + $0x10] sm:$0xff]  ;;  %v4320_v49 = vsel %vm1407_vm8, %v4318_v5, %v4319_v16  ;;  %v4650_v2 = vld [vmem:[#allocation5 + $0x28] sm:$0xff]  ;;  %v4387_v25 = vsel %vm1727_vm9, %v4385_v26, %v4386_v43  ;;  %v4322_v21 = vsel %vm1407_vm8, %v4319_v16, %v4321_v10  ;;  %v4474_v5 = vrot.slane %v10521_v46, 7 }
 0x68f   :  { %4644 = vst.msk [vmem:[#allocation5 + $0x100] sm:$0x3] %vm4062_vm5, %v4295_v36  ;;  %4306 = vst.msk [vmem:[#allocation5 + $0xf0] sm:$0x3] %vm4062_vm5, %v10517_v38  ;;  %6205 = vmatmul.mubr.msk.f32.vlgmr.msra.gmra.mrb[106].mxu1 %vm4009_vm4, %v4647_v57  ;;  %4339 = vrot.lane.b32.xlu0 %v4320_v49, %s6518_s27  ;;  %v4653_v41 = vld [vmem:[#allocation5 + $0x40] sm:$0xff]  ;;  %v4455_v14 = vsel %vm2049_vm7, %v4453_v48, %v4454_v31  ;;  %v4656_v1 = vld [vmem:[#allocation5 + $0x58] sm:$0xff]  ;;  %v4554_v51 = vsel %vm2804_vm10, %v4552_v32, %v4553_v33 }
 0x690   :  { %4531 = vst.msk [vmem:[#allocation5 + $0xe0] sm:$0xff] %vm4009_vm4, %v10517_v38  ;;  %4642 = vst.msk [vmem:[#allocation5 + $0xd0] sm:$0xff] %vm4009_vm4, %v10517_v38  ;;  %6207 = vmatprep.mubr.msk.f32.mxu1 %vm6513_vm1, %v11625_v27  ;;  %v4457_v47 = vsel %vm2049_vm7, %v4454_v31, %v4456_v13  ;;  %v10612_v37 = vsel %vm1407_vm8, %v4333_v15, %v4335_v20  ;;  %v10617_v54 = vsel %vm2049_vm7, %v4468_v58, %v4470_v45  ;;  %v4691_v12 = vld [vmem:[%s11260_s7 + $0x68] sm:$0xff] }
 0x691   :  { %4643 = vst.msk [vmem:[#allocation5 + $0xe8] sm:$0xff] %vm4009_vm4, %v10521_v46  ;;  %4296 = vst.msk [vmem:[#allocation5] sm:$0xff] %vm4009_vm4, %v4283_v61  ;;  %4593 = vrot.lane.b32.xlu1 %v4571_v23, %s6516_s29  ;;  %v10622_v34 = vsel %vm1727_vm9, %v4398_v52, %v4400_v59  ;;  %v10627_v17 = vsel %vm2804_vm10, %v4567_v35, %v4569_v24  ;;  %v10639_v61 = vsel %vm1407_vm8, %v4335_v20, %v10524_v0 }
 0x692   :  { %4532 = vst.msk [vmem:[#allocation5 + $0xf8] sm:$0x3] %vm4062_vm5, %v10521_v46  ;;  %v10642_v57 = vsel %vm2049_vm7, %v4470_v45, %v4472_v19  ;;  %v10645_v60 = vsel %vm1727_vm9, %v4400_v59, %v4402_v28  ;;  %v10651_v16 = vsel %vm2804_vm10, %v4569_v24, %v4571_v23  ;;  %v4404_v49 = vrot.slane %v10517_v38, 2  ;;  %v4709_v46 = vld [vmem:[%s11260_s7 + $0xf8] sm:$0xff] }
 0x693   :  { %4297 = vst.msk [vmem:[#allocation5 + $0x18] sm:$0xff] %vm4009_vm4, %v10532_v55  ;;  %4522 = vst.msk [vmem:[#allocation5 + $0x8] sm:$0xff] %vm4009_vm4, %v10532_v55  ;;  %6208 = vmatmul.mubr.msk.f32.gmra.mrb[108].mxu1 %vm4009_vm4, %v4650_v2  ;;  %4406 = vrot.lane.b32.xlu0 %v4387_v25, %s6516_s29  ;;  %v4618_v0 = vrot.slane %v4295_v36, 7  ;;  %v6349_v26 = vpack.c.bf16 %v4707_v30, %v4706_v29  ;;  %v4708_v2 = vld [vmem:[%s11260_s7 + $0xf0] sm:$0xff]  ;;  %v10664_v25 = vsel %vm2049_vm7, %v4472_v19, %v4474_v5  ;;  %v4693_v36 = vld [vmem:[%s11260_s7 + $0x78] sm:$0xff]  ;;  %vm5112_vm5 = vcmask 1044480  }
 0x694   :  { %6210 = vmatprep.mubr.msk.f32.mxu1 %vm6513_vm1, %v11625_v27  ;;  %v4659_v56 = vld [vmem:[#allocation5 + $0x70] sm:$0xff]  ;;  %v6351_v23 = vpack.c.bf16 %v4691_v12, %v4690_v50  ;;  %v4459_v48 = vsel %vm2049_vm7, %v4456_v13, %v4458_v6  ;;  %v4557_v31 = vrot.slane %v10441_v11, 6  ;;  %v10679_v32 = vsel %vm1727_vm9, %v4402_v28, %v4404_v49  ;;  %s5632_s7 = sshll.u32 %s6523_s1, 4  ;;  %s5633_s7 = int_to_ptr.vmem [resolvable:$true] %s5632_s7 }
 0x695   :  { %4341 = vrot.lane.b32.xlu1 %v4322_v21, %s6518_s27  ;;  %v10682_v33 = vsel %vm2049_vm7, %v4474_v5, %v4618_v0  ;;  %6350 = vmatprep.subr.bf16.mxu0 %v6349_v26  ;;  %v6353_v21 = vpack.c.bf16 %v4709_v46, %v4708_v2  ;;  %v4324_v13 = vsel %vm1407_vm8, %v4321_v10, %v4323_v42  ;;  %v4665_v20 = vld [vmem:[#allocation5 + $0xa0] sm:$0xff]  ;;  %v4325_v10 = vrot.slane %v10441_v11, 1  ;;  %v4668_v59 = vld [vmem:[#allocation5 + $0xb8] sm:$0xff]  ;;  %p6493_p1 = scmp.lt.s32.totalorder %s5633_s7, %s5633_s7 }
 0x696   :  { %6352 = vmatpush3.bf16.msra.mxu0 %v6351_v23  ;;  %v4559_v45 = vrot.slane %v10443_v53, 6  ;;  %v4462_v24 = vrot.slane %v10443_v53, 7  ;;  %v4561_v28 = vrot.slane %v10445_v40, 6  ;;  %v4464_v12 = vrot.slane %v10445_v40, 7  ;;  %v4677_v5 = vld [vmem:[#allocation5 + $0x100] sm:$0x3] }
 0x697   :  { %6211 = vmatmul.mubr.msk.f32.gmra.mrb[110].mxu1 %vm4009_vm4, %v4653_v41  ;;  %4476 = vrot.lane.b32.xlu0 %v4455_v14, %s6521_s21  ;;  %v4662_v41 = vld [vmem:[#allocation5 + $0x88] sm:$0xff]  ;;  %v4388_v14 = vrot.slane %v10437_v63, 2  ;;  %v4326_v55 = vsel %vm1407_vm8, %v4323_v42, %v4325_v10  ;;  %v4327_v42 = vrot.slane %v10443_v53, 1  ;;  %v4329_v26 = vrot.slane %v10445_v40, 1 }
 0x698   :  { %6213 = vmatprep.mubr.msk.f32.mxu1 %vm6513_vm1, %v11625_v27  ;;  %6354 = vmatprep.subr.bf16.mxu0 %v6353_v21  ;;  %v4674_v29 = vld [vmem:[#allocation5 + $0xe8] sm:$0xff]  ;;  %v4562_v50 = vsel %vm2804_vm10, %v4559_v45, %v4561_v28  ;;  %v4563_v2 = vrot.slane %v10447_v9, 6  ;;  %v4394_v23 = vrot.slane %v10443_v53, 2  ;;  %v4565_v21 = vrot.slane %v10449_v8, 6 }
 0x699   :  { %4573 = vrot.lane.b32.xlu1 %v4554_v51, %s6516_s29  ;;  %v4558_v51 = vsel %vm2804_vm10, %v4555_v3, %v4557_v31  ;;  %v4389_v63 = vsel %vm1727_vm9, %v4386_v43, %v4388_v14  ;;  %v4390_v43 = vrot.slane %v10439_v7, 2  ;;  %v4328_v30 = vsel %vm1407_vm8, %v4325_v10, %v4327_v42 }
 0x69a   :  { %v4330_v46 = vsel %vm1407_vm8, %v4327_v42, %v4329_v26 }
 0x69b   :  { %6214 = vmatmul.mubr.msk.f32.gmra.mrb[112].mxu1 %vm4009_vm4, %v4656_v1  ;;  %4575 = vrot.lane.b32.xlu0 %v4556_v44, %s6516_s29  ;;  %v6355_v1 = vpack.c.bf16 %v4693_v36, %v4692_v18  ;;  %v4460_v44 = vrot.slane %v10441_v11, 7  ;;  %v4391_v19 = vsel %vm1727_vm9, %v4388_v14, %v4390_v43  ;;  %v4564_v18 = vsel %vm2804_vm10, %v4561_v28, %v4563_v2 }
 0x69c   :  { %6216 = vmatprep.mubr.msk.f32.mxu1 %vm6513_vm1, %v11625_v27  ;;  %v4466_v36 = vrot.slane %v10447_v9, 7  ;;  %v4566_v14 = vsel %vm2804_vm10, %v4563_v2, %v4565_v21 }
 0x69d   :  { %4478 = vrot.lane.b32.xlu1 %v4457_v47, %s6521_s21  ;;  %6356 = vmatpush3.bf16.msra.mxu0 %v6355_v1  ;;  %v4461_v3 = vsel %vm2049_vm7, %v4458_v6, %v4460_v44  ;;  %v4560_v6 = vsel %vm2804_vm10, %v4557_v31, %v4559_v45  ;;  %v4671_v47 = vld [vmem:[#allocation5 + $0xd0] sm:$0xff]  ;;  %v4463_v7 = vsel %vm2049_vm7, %v4460_v44, %v4462_v24  ;;  %v4331_v31 = vrot.slane %v10447_v9, 1 }
 0x69e   :  { %v4568_v44 = vsel %vm2804_vm10, %v4565_v21, %v4567_v35 }
 0x69f   :  { %6217 = vmatmul.mubr.msk.f32.gmra.mrb[114].mxu1 %vm4009_vm4, %v4659_v56  ;;  %4480 = vrot.lane.b32.xlu0 %v4459_v48, %s6521_s21  ;;  %v4392_v56 = vrot.slane %v10441_v11, 2  ;;  %v4465_v11 = vsel %vm2049_vm7, %v4462_v24, %v4464_v12  ;;  %v4332_v53 = vsel %vm1407_vm8, %v4329_v26, %v4331_v31 }
 0x6a0   :  { %6219 = vmatprep.mubr.msk.f32.mxu1 %vm6513_vm1, %v11625_v27 }
 0x6a1   :  { %4343 = vrot.lane.b32.xlu1 %v4324_v13, %s6518_s27  ;;  %v4393_v0 = vsel %vm1727_vm9, %v4390_v43, %v4392_v56  ;;  %v4395_v48 = vsel %vm1727_vm9, %v4392_v56, %v4394_v23  ;;  %v4396_v13 = vrot.slane %v10445_v40, 2  ;;  %v4334_v40 = vsel %vm1407_vm8, %v4331_v31, %v4333_v15 }
 0x6a3   :  { %6220 = vmatmul.mubr.msk.f32.gmra.mrb[116].mxu1 %vm4009_vm4, %v4662_v41  ;;  %4577 = vrot.lane.b32.xlu0 %v4558_v51, %s6516_s29  ;;  %v4467_v41 = vsel %vm2049_vm7, %v4464_v12, %v4466_v36  ;;  %v4397_v1 = vsel %vm1727_vm9, %v4394_v23, %v4396_v13  ;;  %v4469_v51 = vsel %vm2049_vm7, %v4466_v36, %v4468_v58 }
 0x6a4   :  { %6222 = vmatprep.mubr.msk.f32.mxu1 %vm6513_vm1, %v11625_v27 }
 0x6a5   :  { %4408 = vrot.lane.b32.xlu1 %v4389_v63, %s6516_s29 }
 0x6a7   :  { %6223 = vmatmul.mubr.msk.f32.gmra.mrb[118].mxu1 %vm4009_vm4, %v4665_v20  ;;  %4482 = vrot.lane.b32.xlu0 %v4461_v3, %s6521_s21  ;;  %v4399_v20 = vsel %vm1727_vm9, %v4396_v13, %v4398_v52 }
 0x6a8   :  { %6225 = vmatprep.mubr.msk.f32.mxu1 %vm6513_vm1, %v11625_v27 }
 0x6a9   :  { %4345 = vrot.lane.b32.xlu1 %v4326_v55, %s6518_s27 }
 0x6ab   :  { %6226 = vmatmul.mubr.msk.f32.gmra.mrb[120].mxu1 %vm4009_vm4, %v4668_v59  ;;  %4579 = vrot.lane.b32.xlu0 %v4560_v6, %s6516_s29 }
 0x6ac   :  { %6228 = vmatprep.mubr.msk.f32.mxu1 %vm6513_vm1, %v11625_v27 }
 0x6ad   :  { %4410 = vrot.lane.b32.xlu1 %v4391_v19, %s6516_s29 }
 0x6af   :  { %6229 = vmatmul.mubr.msk.f32.gmra.mrb[122].mxu1 %vm4009_vm4, %v4671_v47  ;;  %4484 = vrot.lane.b32.xlu0 %v4463_v7, %s6521_s21 }
 0x6b0   :  { %6231 = vmatprep.mubr.msk.f32.mxu1 %vm6513_vm1, %v11625_v27 }
 0x6b1   :  { %4347 = vrot.lane.b32.xlu1 %v4328_v30, %s6518_s27 }
 0x6b3   :  { %6232 = vmatmul.mubr.msk.f32.gmra.mrb[124].mxu1 %vm4009_vm4, %v4674_v29  ;;  %4581 = vrot.lane.b32.xlu0 %v4562_v50, %s6516_s29 }
 0x6b4   :  { %6234 = vmatprep.mubr.msk.f32.mxu1 %vm6513_vm1, %v11625_v27 }
 0x6b5   :  { %4412 = vrot.lane.b32.xlu1 %v4393_v0, %s6516_s29 }
 0x6b7   :  { %6235 = vmatmul.mubr.msk.f32.gmra.mrb[126].mxu1 %vm4009_vm4, %v4677_v5  ;;  %4486 = vrot.lane.b32.xlu0 %v4465_v11, %s6521_s21  ;;  %vm4450_vm4 = vcmask 779776  }
 0x6b9   :  { %4349 = vrot.lane.b32.xlu1 %v4330_v46, %s6518_s27 }
 0x6bb   :  { %4583 = vrot.lane.b32.xlu0 %v4564_v18, %s6516_s29 }
 0x6bd   :  { %4414 = vrot.lane.b32.xlu1 %v4395_v48, %s6516_s29 }
 0x6bf   :  { %4488 = vrot.lane.b32.xlu0 %v4467_v41, %s6521_s21 }
 0x6c1   :  { %4351 = vrot.lane.b32.xlu1 %v4332_v53, %s6518_s27 }
 0x6c3   :  { %4585 = vrot.lane.b32.xlu0 %v4566_v14, %s6516_s29 }
 0x6c5   :  { %4416 = vrot.lane.b32.xlu1 %v4397_v1, %s6516_s29 }
 0x6c7   :  { %4490 = vrot.lane.b32.xlu0 %v4469_v51, %s6521_s21 }
 0x6c9   :  { %4353 = vrot.lane.b32.xlu1 %v4334_v40, %s6518_s27 }
 0x6cb   :  { %4587 = vrot.lane.b32.xlu0 %v4568_v44, %s6516_s29 }
 0x6cd   :  { %4418 = vrot.lane.b32.xlu1 %v4399_v20, %s6516_s29 }
 0x6cf   :  { %4492 = vrot.lane.b32.xlu0 %v10617_v54, %s6521_s21 }
 0x6d1   :  { %4355 = vrot.lane.b32.xlu1 %v10612_v37, %s6518_s27 }
 0x6d3   :  { %4589 = vrot.lane.b32.xlu0 %v10627_v17, %s6516_s29 }
 0x6d5   :  { %4420 = vrot.lane.b32.xlu1 %v10622_v34, %s6516_s29 }
 0x6d7   :  { %4494 = vrot.lane.b32.xlu0 %v10642_v57, %s6521_s21 }
 0x6d9   :  { %4357 = vrot.lane.b32.xlu1 %v10639_v61, %s6518_s27 }
 0x6db   :  { %4591 = vrot.lane.b32.xlu0 %v10651_v16, %s6516_s29 }
 0x6dd   :  { %4422 = vrot.lane.b32.xlu1 %v10645_v60, %s6516_s29 }
 0x6df   :  { %4496 = vrot.lane.b32.xlu0 %v10664_v25, %s6521_s21 }
 0x6e1   :  { %4535 = vrot.lane.b32.xlu1 %v10601_v22, %s6518_s27 }
 0x6e3   :  { %4426 = vrot.lane.b32.xlu0 %v4404_v49, %s6516_s29 }
 0x6e5   :  { %4424 = vrot.lane.b32.xlu1 %v10679_v32, %s6516_s29 }
 0x6e9   :  { %4620 = vrot.lane.b32.xlu1 %v10682_v33, %s6521_s21 }
 0x6fd   :  { %v4360_v9 = vpop.permute.xlu0 %4359 }
 0x6fe   :  { %4384 = vst.msk [vmem:[#allocation5 + $0xf0] sm:$0x3] %vm4383_vm2, %v4360_v9 }
 0x6ff   :  { %v4538_v8 = vpop.permute.xlu1 %4537 }
 0x700   :  { %4551 = vst.msk [vmem:[#allocation5 + $0xf8] sm:$0x3] %vm4383_vm2, %v4538_v8 }
 0x701   :  { %v4340_v39 = vpop.permute.xlu0 %4339 }
 0x702   :  { %4373 = vst.msk [vmem:[#allocation5] sm:$0xff] %vm4372_vm3, %v4340_v39 }
 0x703   :  { %v4594_v15 = vpop.permute.xlu1 %4593 }
 0x704   :  { %4616 = vst.msk [vmem:[#allocation5 + $0xf8] sm:$0x3] %vm4450_vm4, %v4594_v15 }
 0x705   :  { %v4407_v38 = vpop.permute.xlu0 %4406 }
 0x706   :  { %4440 = vst.msk [vmem:[#allocation5] sm:$0xff] %vm4439_vm6, %v4407_v38 }
 0x707   :  { %v4342_v58 = vpop.permute.xlu1 %4341 }
 0x708   :  { %4374 = vst.msk [vmem:[#allocation5 + $0x18] sm:$0xff] %vm4372_vm3, %v4342_v58  ;;  %4541 = vst.msk [vmem:[#allocation5 + $0x8] sm:$0xff] %vm4372_vm3, %v4342_v58 }
 0x709   :  { %v4477_v52 = vpop.permute.xlu0 %4476 }
 0x70a   :  { %4510 = vst.msk [vmem:[#allocation5] sm:$0xff] %vm4509_vm13, %v4477_v52 }
 0x70b   :  { %v4574_v35 = vpop.permute.xlu1 %4573 }
 0x70c   :  { %4606 = vst.msk [vmem:[#allocation5 + $0x8] sm:$0xff] %vm4439_vm6, %v4574_v35 }
 0x70d   :  { %v4576_v22 = vpop.permute.xlu0 %4575 }
 0x70f   :  { %v4479_v37 = vpop.permute.xlu1 %4478 }
 0x710   :  { %4623 = vst.msk [vmem:[#allocation5 + $0x8] sm:$0xff] %vm4509_vm13, %v4479_v37 }
 0x711   :  { %v4481_v54 = vpop.permute.xlu0 %4480  ;;  %v4645_v60 = vld [vmem:[#allocation5] sm:$0xff] }
 0x713   :  { %v4344_v34 = vpop.permute.xlu1 %4343 }
 0x714   :  { %4375 = vst.msk [vmem:[#allocation5 + $0x30] sm:$0xff] %vm4372_vm3, %v4344_v34  ;;  %4542 = vst.msk [vmem:[#allocation5 + $0x20] sm:$0xff] %vm4372_vm3, %v4344_v34 }
 0x715   :  { %4607 = vst.msk [vmem:[#allocation5 + $0x20] sm:$0xff] %vm4439_vm6, %v4576_v22  ;;  %v4578_v17 = vpop.permute.xlu0 %4577 }
 0x716   :  { %4624 = vst.msk [vmem:[#allocation5 + $0x20] sm:$0xff] %vm4509_vm13, %v4481_v54 }
 0x717   :  { %v4409_v61 = vpop.permute.xlu1 %4408  ;;  %v4646_v57 = vld [vmem:[#allocation5 + $0x8] sm:$0xff] }
 0x718   :  { %4441 = vst.msk [vmem:[#allocation5 + $0x18] sm:$0xff] %vm4439_vm6, %v4409_v61  ;;  %4811 = vmatprep.mubr.f32.mxu0 %v4646_v57 }
 0x719   :  { %4511 = vst.msk [vmem:[#allocation5 + $0x18] sm:$0xff] %vm4509_vm13, %v4479_v37  ;;  %4812 = vmatmul.mubr.f32.vlgmr.msra.gmra.mrb[114].mxu0 %v4645_v60  ;;  %v4483_v16 = vpop.permute.xlu0 %4482 }
 0x71b   :  { %v4346_v49 = vpop.permute.xlu1 %4345 }
 0x71c   :  { %4376 = vst.msk [vmem:[#allocation5 + $0x48] sm:$0xff] %vm4372_vm3, %v4346_v49  ;;  %4543 = vst.msk [vmem:[#allocation5 + $0x38] sm:$0xff] %vm4372_vm3, %v4346_v49 }
 0x71d   :  { %4608 = vst.msk [vmem:[#allocation5 + $0x38] sm:$0xff] %vm4439_vm6, %v4578_v17  ;;  %v4649_v25 = vld [vmem:[#allocation5 + $0x20] sm:$0xff]  ;;  %v4580_v32 = vpop.permute.xlu0 %4579 }
 0x71e   :  { %4625 = vst.msk [vmem:[#allocation5 + $0x38] sm:$0xff] %vm4509_vm13, %v4483_v16  ;;  %4816 = vmatprep.mubr.f32.mxu0 %v4649_v25 }
 0x71f   :  { %v4411_v33 = vpop.permute.xlu1 %4410 }
 0x720   :  { %4442 = vst.msk [vmem:[#allocation5 + $0x30] sm:$0xff] %vm4439_vm6, %v4411_v33  ;;  %v4648_v63 = vld [vmem:[#allocation5 + $0x18] sm:$0xff] }
 0x721   :  { %4512 = vst.msk [vmem:[#allocation5 + $0x30] sm:$0xff] %vm4509_vm13, %v4481_v54  ;;  %4817 = vmatmul.mubr.f32.gmra.mrb[116].mxu0 %v4648_v63  ;;  %v4485_v10 = vpop.permute.xlu0 %4484 }
 0x723   :  { %v4348_v3 = vpop.permute.xlu1 %4347 }
 0x724   :  { %4377 = vst.msk [vmem:[#allocation5 + $0x60] sm:$0xff] %vm4372_vm3, %v4348_v3  ;;  %4544 = vst.msk [vmem:[#allocation5 + $0x50] sm:$0xff] %vm4372_vm3, %v4348_v3 }
 0x725   :  { %4609 = vst.msk [vmem:[#allocation5 + $0x50] sm:$0xff] %vm4439_vm6, %v4580_v32  ;;  %v4652_v45 = vld [vmem:[#allocation5 + $0x38] sm:$0xff]  ;;  %v4582_v59 = vpop.permute.xlu0 %4581 }
 0x726   :  { %4626 = vst.msk [vmem:[#allocation5 + $0x50] sm:$0xff] %vm4509_vm13, %v4485_v10  ;;  %4821 = vmatprep.mubr.f32.mxu0 %v4652_v45 }
 0x727   :  { %v4413_v55 = vpop.permute.xlu1 %4412 }
 0x728   :  { %4443 = vst.msk [vmem:[#allocation5 + $0x48] sm:$0xff] %vm4439_vm6, %v4413_v55  ;;  %v4651_v43 = vld [vmem:[#allocation5 + $0x30] sm:$0xff] }
 0x729   :  { %4513 = vst.msk [vmem:[#allocation5 + $0x48] sm:$0xff] %vm4509_vm13, %v4483_v16  ;;  %4822 = vmatmul.mubr.f32.gmra.mrb[118].mxu0 %v4651_v43  ;;  %v4487_v6 = vpop.permute.xlu0 %4486 }
 0x72b   :  { %v4350_v24 = vpop.permute.xlu1 %4349 }
 0x72c   :  { %4378 = vst.msk [vmem:[#allocation5 + $0x78] sm:$0xff] %vm4372_vm3, %v4350_v24  ;;  %4545 = vst.msk [vmem:[#allocation5 + $0x68] sm:$0xff] %vm4372_vm3, %v4350_v24 }
 0x72d   :  { %4610 = vst.msk [vmem:[#allocation5 + $0x68] sm:$0xff] %vm4439_vm6, %v4582_v59  ;;  %v4655_v47 = vld [vmem:[#allocation5 + $0x50] sm:$0xff]  ;;  %v4584_v19 = vpop.permute.xlu0 %4583 }
 0x72e   :  { %4627 = vst.msk [vmem:[#allocation5 + $0x68] sm:$0xff] %vm4509_vm13, %v4487_v6  ;;  %4826 = vmatprep.mubr.f32.mxu0 %v4655_v47 }
 0x72f   :  { %v4415_v42 = vpop.permute.xlu1 %4414 }
 0x730   :  { %4444 = vst.msk [vmem:[#allocation5 + $0x60] sm:$0xff] %vm4439_vm6, %v4415_v42  ;;  %v4654_v7 = vld [vmem:[#allocation5 + $0x48] sm:$0xff] }
 0x731   :  { %4514 = vst.msk [vmem:[#allocation5 + $0x60] sm:$0xff] %vm4509_vm13, %v4485_v10  ;;  %4827 = vmatmul.mubr.f32.gmra.mrb[120].mxu0 %v4654_v7  ;;  %v4489_v28 = vpop.permute.xlu0 %4488 }
 0x733   :  { %v4352_v29 = vpop.permute.xlu1 %4351 }
 0x734   :  { %4379 = vst.msk [vmem:[#allocation5 + $0x90] sm:$0xff] %vm4372_vm3, %v4352_v29  ;;  %4546 = vst.msk [vmem:[#allocation5 + $0x80] sm:$0xff] %vm4372_vm3, %v4352_v29 }
 0x735   :  { %4611 = vst.msk [vmem:[#allocation5 + $0x80] sm:$0xff] %vm4439_vm6, %v4584_v19  ;;  %v4658_v30 = vld [vmem:[#allocation5 + $0x68] sm:$0xff]  ;;  %v4586_v56 = vpop.permute.xlu0 %4585 }
 0x736   :  { %4628 = vst.msk [vmem:[#allocation5 + $0x80] sm:$0xff] %vm4509_vm13, %v4489_v28  ;;  %4831 = vmatprep.mubr.f32.mxu0 %v4658_v30 }
 0x737   :  { %v4417_v50 = vpop.permute.xlu1 %4416 }
 0x738   :  { %4445 = vst.msk [vmem:[#allocation5 + $0x78] sm:$0xff] %vm4439_vm6, %v4417_v50  ;;  %v4657_v12 = vld [vmem:[#allocation5 + $0x60] sm:$0xff] }
 0x739   :  { %4515 = vst.msk [vmem:[#allocation5 + $0x78] sm:$0xff] %vm4509_vm13, %v4487_v6  ;;  %4832 = vmatmul.mubr.f32.gmra.mrb[122].mxu0 %v4657_v12  ;;  %v4491_v5 = vpop.permute.xlu0 %4490 }
 0x73b   :  { %v4354_v0 = vpop.permute.xlu1 %4353 }
 0x73c   :  { %4380 = vst.msk [vmem:[#allocation5 + $0xa8] sm:$0xff] %vm4372_vm3, %v4354_v0  ;;  %4547 = vst.msk [vmem:[#allocation5 + $0x98] sm:$0xff] %vm4372_vm3, %v4354_v0 }
 0x73d   :  { %4612 = vst.msk [vmem:[#allocation5 + $0x98] sm:$0xff] %vm4439_vm6, %v4586_v56  ;;  %v4661_v26 = vld [vmem:[#allocation5 + $0x80] sm:$0xff]  ;;  %v4588_v11 = vpop.permute.xlu0 %4587 }
 0x73e   :  { %4629 = vst.msk [vmem:[#allocation5 + $0x98] sm:$0xff] %vm4509_vm13, %v4491_v5  ;;  %4836 = vmatprep.mubr.f32.mxu0 %v4661_v26 }
 0x73f   :  { %v4419_v2 = vpop.permute.xlu1 %4418 }
 0x740   :  { %4446 = vst.msk [vmem:[#allocation5 + $0x90] sm:$0xff] %vm4439_vm6, %v4419_v2  ;;  %v4660_v46 = vld [vmem:[#allocation5 + $0x78] sm:$0xff] }
 0x741   :  { %4516 = vst.msk [vmem:[#allocation5 + $0x90] sm:$0xff] %vm4509_vm13, %v4489_v28  ;;  %4837 = vmatmul.mubr.f32.gmra.mrb[124].mxu0 %v4660_v46  ;;  %v4493_v23 = vpop.permute.xlu0 %4492 }
 0x743   :  { %v4356_v18 = vpop.permute.xlu1 %4355 }
 0x744   :  { %4381 = vst.msk [vmem:[#allocation5 + $0xc0] sm:$0xff] %vm4372_vm3, %v4356_v18  ;;  %4548 = vst.msk [vmem:[#allocation5 + $0xb0] sm:$0xff] %vm4372_vm3, %v4356_v18 }
 0x745   :  { %4613 = vst.msk [vmem:[#allocation5 + $0xb0] sm:$0xff] %vm4439_vm6, %v4588_v11  ;;  %v4664_v36 = vld [vmem:[#allocation5 + $0x98] sm:$0xff]  ;;  %v4590_v48 = vpop.permute.xlu0 %4589 }
 0x746   :  { %4630 = vst.msk [vmem:[#allocation5 + $0xb0] sm:$0xff] %vm4509_vm13, %v4493_v23  ;;  %4841 = vmatprep.mubr.f32.mxu0 %v4664_v36  ;;  %v5192_v36 = vld [vmem:[%s11263_s10 + $0x80] sm:$0xff] }
 0x747   :  { %v4421_v31 = vpop.permute.xlu1 %4420 }
 0x748   :  { %4447 = vst.msk [vmem:[#allocation5 + $0xa8] sm:$0xff] %vm4439_vm6, %v4421_v31  ;;  %v4663_v41 = vld [vmem:[#allocation5 + $0x90] sm:$0xff]  ;;  %v5176_v31 = vld [vmem:[%s11263_s10] sm:$0xff] }
 0x749   :  { %4517 = vst.msk [vmem:[#allocation5 + $0xa8] sm:$0xff] %vm4509_vm13, %v4491_v5  ;;  %4842 = vmatmul.mubr.f32.gmra.mrb[126].mxu0 %v4663_v41  ;;  %v4495_v21 = vpop.permute.xlu0 %4494 }
 0x74b   :  { %v4358_v53 = vpop.permute.xlu1 %4357 }
 0x74c   :  { %4382 = vst.msk [vmem:[#allocation5 + $0xd8] sm:$0xff] %vm4372_vm3, %v4358_v53  ;;  %4549 = vst.msk [vmem:[#allocation5 + $0xc8] sm:$0xff] %vm4372_vm3, %v4358_v53  ;;  %v5177_v53 = vld [vmem:[%s11263_s10 + $0x8] sm:$0xff] }
 0x74d   :  { %4614 = vst.msk [vmem:[#allocation5 + $0xc8] sm:$0xff] %vm4439_vm6, %v4590_v48  ;;  %v4667_v13 = vld [vmem:[#allocation5 + $0xb0] sm:$0xff]  ;;  %v4592_v14 = vpop.permute.xlu0 %4591  ;;  %v5193_v48 = vld [vmem:[%s11263_s10 + $0x88] sm:$0xff] }
 0x74e   :  { %4631 = vst.msk [vmem:[#allocation5 + $0xc8] sm:$0xff] %vm4509_vm13, %v4495_v21  ;;  %4846 = vmatprep.mubr.f32.mxu0 %v4667_v13  ;;  %v5194_v13 = vld [vmem:[%s11263_s10 + $0x90] sm:$0xff] }
 0x74f   :  { %v4423_v1 = vpop.permute.xlu1 %4422 }
 0x750   :  { %4448 = vst.msk [vmem:[#allocation5 + $0xc0] sm:$0xff] %vm4439_vm6, %v4423_v1  ;;  %v4666_v51 = vld [vmem:[#allocation5 + $0xa8] sm:$0xff] }
 0x751   :  { %4518 = vst.msk [vmem:[#allocation5 + $0xc0] sm:$0xff] %vm4509_vm13, %v4493_v23  ;;  %4847 = vmatmul.mubr.f32.gmra.mrb[128].mxu0 %v4666_v51  ;;  %v4497_v40 = vpop.permute.xlu0 %4496  ;;  %v6365_v51 = vpack.c.bf16 %v5177_v53, %v5176_v31  ;;  %v5232_v31 = vld [vmem:[%s11263_s10 + $0x1c0] sm:$0xff]  ;;  %v5202_v53 = vld [vmem:[%s11263_s10 + $0xd0] sm:$0xff] }
 0x753   :  { %v4536_v44 = vpop.permute.xlu1 %4535 }
 0x754   :  { %4550 = vst.msk [vmem:[#allocation5 + $0xe0] sm:$0xff] %vm4372_vm3, %v4536_v44  ;;  %v5178_v44 = vld [vmem:[%s11263_s10 + $0x10] sm:$0xff] }
 0x755   :  { %4615 = vst.msk [vmem:[#allocation5 + $0xe0] sm:$0xff] %vm4439_vm6, %v4592_v14  ;;  %v4670_v20 = vld [vmem:[#allocation5 + $0xc8] sm:$0xff]  ;;  %v4427_v9 = vpop.permute.xlu0 %4426  ;;  %v5195_v14 = vld [vmem:[%s11263_s10 + $0x98] sm:$0xff] }
 0x756   :  { %4632 = vst.msk [vmem:[#allocation5 + $0xe0] sm:$0xff] %vm4509_vm13, %v4497_v40  ;;  %4851 = vmatprep.mubr.f32.mxu0 %v4670_v20  ;;  %v5179_v20 = vld [vmem:[%s11263_s10 + $0x18] sm:$0xff] }
 0x757   :  { %4451 = vst.msk [vmem:[#allocation5 + $0xf0] sm:$0x3] %vm4450_vm4, %v4427_v9  ;;  %v4425_v8 = vpop.permute.xlu1 %4424  ;;  %v5224_v9 = vld [vmem:[%s11263_s10 + $0x180] sm:$0xff] }
 0x758   :  { %4521 = vst.msk [vmem:[#allocation5 + $0xf0] sm:$0x3] %vm4520_vm14, %v4497_v40  ;;  %v4669_v39 = vld [vmem:[#allocation5 + $0xc0] sm:$0xff]  ;;  %v6367_v40 = vpack.c.bf16 %v5195_v14, %v5194_v13  ;;  %v5203_v13 = vld [vmem:[%s11263_s10 + $0xd8] sm:$0xff] }
 0x759   :  { %4449 = vst.msk [vmem:[#allocation5 + $0xd8] sm:$0xff] %vm4439_vm6, %v4425_v8  ;;  %4852 = vmatmul.mubr.f32.gmra.mrb[130].mxu0 %v4669_v39  ;;  %v5225_v39 = vld [vmem:[%s11263_s10 + $0x188] sm:$0xff] }
 0x75a   :  { %4519 = vst.msk [vmem:[#allocation5 + $0xd8] sm:$0xff] %vm4509_vm13, %v4495_v21  ;;  %v6363_v21 = vpack.c.bf16 %v5193_v48, %v5192_v36  ;;  %v5185_v48 = vld [vmem:[%s11263_s10 + $0x48] sm:$0xff] }
 0x75b   :  { %v4621_v15 = vpop.permute.xlu1 %4620 }
 0x75c   :  { %4633 = vst.msk [vmem:[#allocation5 + $0xf8] sm:$0x3] %vm4520_vm14, %v4621_v15  ;;  %6364 = vmatprep.subr.bf16.mxu0 %v6363_v21  ;;  %v5208_v15 = vld [vmem:[%s11263_s10 + $0x100] sm:$0xff] }
 0x75d   :  { %v4673_v38 = vld [vmem:[#allocation5 + $0xe0] sm:$0xff]  ;;  %6366 = vmatpush3.bf16.msra.mxu0 %v6365_v51  ;;  %v5186_v51 = vld [vmem:[%s11263_s10 + $0x50] sm:$0xff] }
 0x75e   :  { %4856 = vmatprep.mubr.f32.mxu0 %v4673_v38  ;;  %v5209_v38 = vld [vmem:[%s11263_s10 + $0x108] sm:$0xff]  ;;  %6368 = vmatprep.subr.bf16.mxu0 %v6367_v40 }
 0x75f   :  { %v4675_v34 = vld [vmem:[#allocation5 + $0xf0] sm:$0x3] }
 0x761   :  { %v4672_v35 = vld [vmem:[#allocation5 + $0xd8] sm:$0xff] }
 0x762   :  { %v4933_v58 = vpop.f32.mrb[106].mxu1  ;;  %4857 = vmatmul.mubr.f32.gmra.mrb[132].mxu0 %v4672_v35  ;;  %v6397_v35 = vpack.c.bf16 %v5209_v38, %v5208_v15  ;;  %v5234_v15 = vld [vmem:[%s11263_s10 + $0x1d0] sm:$0xff]  ;;  %v5235_v38 = vld [vmem:[%s11263_s10 + $0x1d8] sm:$0xff] }
 0x763   :  { %v6206_v52 = vpop.f32.mrb[107].mxu1  ;;  %v4676_v37 = vld [vmem:[#allocation5 + $0xf8] sm:$0x3] }
 0x764   :  { %4861 = vmatprep.mubr.f32.mxu0 %v4676_v37  ;;  %v6395_v52 = vpack.c.bf16 %v5225_v39, %v5224_v9  ;;  %v5197_v37 = vld [vmem:[%s11263_s10 + $0xa8] sm:$0xff]  ;;  %v5187_v39 = vld [vmem:[%s11263_s10 + $0x58] sm:$0xff] }
 0x766   :  { %v4938_v22 = vpop.f32.mrb[108].mxu1  ;;  %4862 = vmatmul.mubr.f32.gmra.mrb[134].mxu0 %v4675_v34  ;;  %6396 = vmatprep.subr.bf16.mxu1 %v6395_v52  ;;  %v5204_v52 = vld [vmem:[%s11263_s10 + $0xe0] sm:$0xff] }
 0x767   :  { %v6209_v54 = vpop.f32.mrb[109].mxu1  ;;  %6398 = vmatpush3.bf16.msra.mxu1 %v6397_v35  ;;  %v5205_v35 = vld [vmem:[%s11263_s10 + $0xe8] sm:$0xff] }
 0x768   :  { %v5180_v54 = vld [vmem:[%s11263_s10 + $0x20] sm:$0xff] }
 0x76a   :  { %v4943_v17 = vpop.f32.mrb[110].mxu1 }
 0x76b   :  { %v6212_v61 = vpop.f32.mrb[111].mxu1 }
 0x76c   :  { %v5181_v61 = vld [vmem:[%s11263_s10 + $0x28] sm:$0xff] }
 0x76e   :  { %v4948_v57 = vpop.f32.mrb[112].mxu1 }
 0x76f   :  { %v6215_v60 = vpop.f32.mrb[113].mxu1 }
 0x770   :  { %v5227_v60 = vld [vmem:[%s11263_s10 + $0x198] sm:$0xff] }
 0x772   :  { %v10873_v16 = vpop.f32.mrb[114].mxu1 }
 0x773   :  { %v6218_v49 = vpop.f32.mrb[115].mxu1 }
 0x776   :  { %v4958_v25 = vpop.f32.mrb[116].mxu1 }
 0x777   :  { %v6221_v32 = vpop.f32.mrb[117].mxu1  ;;  %v5211_v25 = vld [vmem:[%s11263_s10 + $0x118] sm:$0xff] }
 0x778   :  { %v5198_v32 = vld [vmem:[%s11263_s10 + $0xb0] sm:$0xff] }
 0x77a   :  { %v10875_v33 = vpop.f32.mrb[118].mxu1 }
 0x77b   :  { %v6224_v63 = vpop.f32.mrb[119].mxu1 }
 0x77e   :  { %v10877_v10 = vpop.f32.mrb[120].mxu1 }
 0x77f   :  { %v6227_v3 = vpop.f32.mrb[121].mxu1 }
 0x780   :  { %v5199_v3 = vld [vmem:[%s11263_s10 + $0xb8] sm:$0xff] }
 0x782   :  { %v10879_v45 = vpop.f32.mrb[122].mxu1 }
 0x783   :  { %v6230_v59 = vpop.f32.mrb[123].mxu1 }
 0x784   :  { %v6373_v59 = vpack.c.bf16 %v5181_v61, %v5180_v54  ;;  %v6385_v54 = vpack.c.bf16 %v5187_v39, %v5186_v51  ;;  %v6387_v61 = vpack.c.bf16 %v5205_v35, %v5204_v52 }
 0x786   :  { %v10881_v55 = vpop.f32.mrb[124].mxu1 }
 0x787   :  { %v6233_v43 = vpop.f32.mrb[125].mxu1 }
 0x788   :  { %v5228_v43 = vld [vmem:[%s11263_s10 + $0x1a0] sm:$0xff] }
 0x78a   :  { %v10883_v6 = vpop.f32.mrb[126].mxu1 }
 0x78b   :  { %v6236_v24 = vpop.f32.mrb[127].mxu1 }
 0x78c   :  { %v5229_v24 = vld [vmem:[%s11263_s10 + $0x1a8] sm:$0xff] }
 0x7ec   :  { %v5866_v47 = vpop.f32.mrb[114].mxu0 }
 0x7ed   :  { %v5867_v19 = vpop.f32.mrb[115].mxu0 }
 0x7ee   :  { %v5868_v42 = vadd.f32 %v5867_v19, %v5866_v47  ;;  %v5212_v47 = vld [vmem:[%s11263_s10 + $0x120] sm:$0xff] }
 0x7f0   :  { %v4934_v7 = vadd.f32 %v5868_v42, %v4933_v58  ;;  %v6369_v58 = vpack.c.bf16 %v5179_v20, %v5178_v44  ;;  %v6375_v42 = vpack.c.bf16 %v5199_v3, %v5198_v32  ;;  %v5216_v44 = vld [vmem:[%s11263_s10 + $0x140] sm:$0xff]  ;;  %v5217_v20 = vld [vmem:[%s11263_s10 + $0x148] sm:$0xff] }
 0x7f2   :  { %4988 = vst.msk [vmem:[#allocation6] sm:$0xff] %vm4987_vm15, %v4934_v7  ;;  %6370 = vmatpush3.bf16.msra.mxu0 %v6369_v58  ;;  %v5182_v7 = vld [vmem:[%s11263_s10 + $0x30] sm:$0xff] }
 0x7f4   :  { %v5869_v28 = vpop.f32.mrb[116].mxu0 }
 0x7f5   :  { %v5870_v29 = vpop.f32.mrb[117].mxu0 }
 0x7f6   :  { %v5871_v30 = vadd.f32 %v5870_v29, %v5869_v28  ;;  %v5183_v28 = vld [vmem:[%s11263_s10 + $0x38] sm:$0xff]  ;;  %v6403_v29 = vpack.c.bf16 %v5229_v24, %v5228_v43 }
 0x7f8   :  { %v4939_v56 = vadd.f32 %v5871_v30, %v4938_v22  ;;  %v5196_v22 = vld [vmem:[%s11263_s10 + $0xa0] sm:$0xff]  ;;  %v5213_v30 = vld [vmem:[%s11263_s10 + $0x128] sm:$0xff] }
 0x7f9   :  { %v5000_v50 = vld [vmem:[#allocation6] ss:$2 sm:$0x7] }
 0x7fa   :  { %5002 = vst.msk [vmem:[#allocation7] sm:$0x7] %vm5001_vm11, %v5000_v50  ;;  %v5200_v50 = vld [vmem:[%s11263_s10 + $0xc0] sm:$0xff] }
 0x7fb   :  { %4989 = vst.msk [vmem:[#allocation6 + $0x8] sm:$0xff] %vm4987_vm15, %v4939_v56 }
 0x7fc   :  { %v5872_v12 = vpop.f32.mrb[118].mxu0 }
 0x7fd   :  { %v5873_v5 = vpop.f32.mrb[119].mxu0 }
 0x7fe   :  { %v5874_v0 = vadd.f32 %v5873_v5, %v5872_v12  ;;  %v5201_v12 = vld [vmem:[%s11263_s10 + $0xc8] sm:$0xff]  ;;  %v5230_v5 = vld [vmem:[%s11263_s10 + $0x1b0] sm:$0xff] }
 0x7ff   :  { %v6379_v36 = vpack.c.bf16 %v5201_v12, %v5200_v50 }
 0x800   :  { %v4944_v26 = vadd.f32 %v5874_v0, %v4943_v17  ;;  %v6371_v17 = vpack.c.bf16 %v5197_v37, %v5196_v22  ;;  %v6405_v0 = vpack.c.bf16 %v5213_v30, %v5212_v47  ;;  %v6413_v37 = vpack.c.bf16 %v5217_v20, %v5216_v44 }
 0x802   :  { %4990 = vst.msk [vmem:[#allocation6 + $0x10] sm:$0xff] %vm4987_vm15, %v4944_v26  ;;  %6372 = vmatprep.subr.bf16.mxu0 %v6371_v17  ;;  %v5231_v26 = vld [vmem:[%s11263_s10 + $0x1b8] sm:$0xff] }
 0x803   :  { %6374 = vmatpush3.bf16.msra.mxu0 %v6373_v59 }
 0x804   :  { %v5875_v11 = vpop.f32.mrb[120].mxu0  ;;  %6376 = vmatprep.subr.bf16.mxu0 %v6375_v42 }
 0x805   :  { %v5876_v2 = vpop.f32.mrb[121].mxu0 }
 0x806   :  { %v5877_v46 = vadd.f32 %v5876_v2, %v5875_v11  ;;  %v6377_v11 = vpack.c.bf16 %v5183_v28, %v5182_v7  ;;  %v5184_v2 = vld [vmem:[%s11263_s10 + $0x40] sm:$0xff] }
 0x808   :  { %v4949_v23 = vadd.f32 %v5877_v46, %v4948_v57  ;;  %v5226_v57 = vld [vmem:[%s11263_s10 + $0x190] sm:$0xff]  ;;  %v6407_v46 = vpack.c.bf16 %v5231_v26, %v5230_v5  ;;  %6378 = vmatpush3.bf16.msra.mxu0 %v6377_v11 }
 0x809   :  { %v5004_v18 = vld [vmem:[#allocation6 + $0xe] ss:$2 sm:$0x7]  ;;  %v6399_v49 = vpack.c.bf16 %v5227_v60, %v5226_v57  ;;  %6380 = vmatprep.subr.bf16.mxu0 %v6379_v36  ;;  %v5188_v57 = vld [vmem:[%s11263_s10 + $0x60] sm:$0xff]  ;;  %v5189_v60 = vld [vmem:[%s11263_s10 + $0x68] sm:$0xff] }
 0x80a   :  { %5005 = vst.msk [vmem:[#allocation7 + $0x3] sm:$0x7] %vm5001_vm11, %v5004_v18  ;;  %v5215_v18 = vld [vmem:[%s11263_s10 + $0x138] sm:$0xff] }
 0x80b   :  { %4991 = vst.msk [vmem:[#allocation6 + $0x18] sm:$0xff] %vm4987_vm15, %v4949_v23  ;;  %6400 = vmatprep.subr.bf16.mxu1 %v6399_v49  ;;  %v5214_v23 = vld [vmem:[%s11263_s10 + $0x130] sm:$0xff]  ;;  %v6389_v49 = vpack.c.bf16 %v5189_v60, %v5188_v57 }
 0x80c   :  { %v5878_v41 = vpop.f32.mrb[122].mxu0  ;;  %v6409_v14 = vpack.c.bf16 %v5215_v18, %v5214_v23  ;;  %v5218_v60 = vld [vmem:[%s11263_s10 + $0x150] sm:$0xff] }
 0x80d   :  { %v5879_v1 = vpop.f32.mrb[123].mxu0 }
 0x80e   :  { %v5880_v8 = vadd.f32 %v5879_v1, %v5878_v41  ;;  %v5233_v41 = vld [vmem:[%s11263_s10 + $0x1c8] sm:$0xff]  ;;  %v6381_v1 = vpack.c.bf16 %v5185_v48, %v5184_v2 }
 0x80f   :  { %v6411_v40 = vpack.c.bf16 %v5233_v41, %v5232_v31 }
 0x810   :  { %v4954_v34 = vadd.f32 %v5880_v8, %v10873_v16  ;;  %v5210_v16 = vld [vmem:[%s11263_s10 + $0x110] sm:$0xff]  ;;  %v6383_v8 = vpack.c.bf16 %v5203_v13, %v5202_v53  ;;  %6382 = vmatpush3.bf16.msra.mxu0 %v6381_v1 }
 0x811   :  { %v6401_v63 = vpack.c.bf16 %v5211_v25, %v5210_v16 }
 0x812   :  { %4992 = vst.msk [vmem:[#allocation6 + $0x20] sm:$0xff] %vm4987_vm15, %v4954_v34  ;;  %v6415_v34 = vpack.c.bf16 %v5235_v38, %v5234_v15  ;;  %6384 = vmatprep.subr.bf16.mxu0 %v6383_v8 }
 0x813   :  { %6402 = vmatpush3.bf16.msra.mxu1 %v6401_v63 }
 0x814   :  { %v5881_v19 = vpop.f32.mrb[124].mxu0  ;;  %6404 = vmatprep.subr.bf16.mxu1 %v6403_v29  ;;  %6386 = vmatpush3.bf16.msra.mxu0 %v6385_v54 }
 0x815   :  { %v5882_v56 = vpop.f32.mrb[125].mxu0  ;;  %6388 = vmatprep.subr.bf16.mxu0 %v6387_v61 }
 0x817   :  { %6406 = vmatpush3.bf16.msra.mxu1 %v6405_v0 }
 0x818   :  { %6408 = vmatprep.subr.bf16.mxu1 %v6407_v46  ;;  %6390 = vmatpush3.bf16.msra.mxu0 %v6389_v49  ;;  %v5219_v49 = vld [vmem:[%s11263_s10 + $0x158] sm:$0xff] }
 0x819   :  { %v5007_v21 = vld [vmem:[#allocation6 + $0x1c] ss:$2 sm:$0x7] }
 0x81a   :  { %5008 = vst.msk [vmem:[#allocation7 + $0x6] sm:$0x7] %vm5001_vm11, %v5007_v21 }
 0x81b   :  { %6410 = vmatpush3.bf16.msra.mxu1 %v6409_v14 }
 0x81c   :  { %v5884_v9 = vpop.f32.mrb[126].mxu0  ;;  %6412 = vmatprep.subr.bf16.mxu1 %v6411_v40 }
 0x81d   :  { %v5885_v58 = vpop.f32.mrb[127].mxu0 }
 0x81e   :  { %v5886_v22 = vadd.f32 %v5885_v58, %v5884_v9 }
 0x81f   :  { %6414 = vmatpush3.bf16.msra.mxu1 %v6413_v37 }
 0x820   :  { %v4964_v17 = vadd.f32 %v5886_v22, %v10875_v33  ;;  %6416 = vmatprep.subr.bf16.mxu1 %v6415_v34 }
 0x822   :  { %4994 = vst.msk [vmem:[#allocation6 + $0x30] sm:$0xff] %vm4987_vm15, %v4964_v17 }
 0x824   :  { %v5887_v16 = vpop.f32.mrb[128].mxu0 }
 0x825   :  { %v5888_v25 = vpop.f32.mrb[129].mxu0 }
 0x826   :  { %v5889_v33 = vadd.f32 %v5888_v25, %v5887_v16  ;;  %v5206_v16 = vld [vmem:[%s11263_s10 + $0xf0] sm:$0xff] }
 0x828   :  { %v4969_v32 = vadd.f32 %v5889_v33, %v10877_v10  ;;  %v5766_v33 = vld [vmem:[%s11261_s8] ss:$0 sm:$0xff] }
 0x829   :  { %v5010_v63 = vld [vmem:[#allocation6 + $0x31] ss:$2 sm:$0x7] }
 0x82a   :  { %5011 = vst.msk [vmem:[#allocation7 + $0x9] sm:$0x7] %vm5001_vm11, %v5010_v63  ;;  %v5207_v63 = vld [vmem:[%s11263_s10 + $0xf8] sm:$0xff] }
 0x82b   :  { %4995 = vst.msk [vmem:[#allocation6 + $0x38] sm:$0xff] %vm4987_vm15, %v4969_v32  ;;  %v6417_v32 = vpack.c.bf16 %v5219_v49, %v5218_v60 }
 0x82c   :  { %v5890_v3 = vpop.f32.mrb[130].mxu0 }
 0x82d   :  { %v5891_v59 = vpop.f32.mrb[131].mxu0  ;;  %6418 = vmatpush3.bf16.msra.mxu1 %v6417_v32  ;;  %v5242_v32 = vld [vmem:[%s11263_s10 + $0x210] sm:$0xff] }
 0x82e   :  { %v5892_v43 = vadd.f32 %v5891_v59, %v5890_v3 }
 0x830   :  { %v4974_v24 = vadd.f32 %v5892_v43, %v10879_v45  ;;  %v5018_v45 = vld [vmem:[#allocation7] sm:$0xff] }
 0x831   :  { %v5026_v12 = vrot.slane %v5018_v45, %v11627_v4 }
 0x832   :  { %4996 = vst.msk [vmem:[#allocation6 + $0x40] sm:$0xff] %vm4987_vm15, %v4974_v24  ;;  %v6391_v24 = vpack.c.bf16 %v5207_v63, %v5206_v16  ;;  %v5243_v63 = vld [vmem:[%s11263_s10 + $0x218] sm:$0xff] }
 0x834   :  { %6392 = vmatprep.subr.bf16.mxu0 %v6391_v24 }
 0x835   :  { %v5893_v47 = vpop.f32.mrb[132].mxu0 }
 0x836   :  { %v5894_v19 = vpop.f32.mrb[133].mxu0 }
 0x837   :  { %v5895_v42 = vadd.f32 %v5894_v19, %v5893_v47  ;;  %v5767_v47 = vld [vmem:[%s11262_s9] ss:$0 sm:$0xff] }
 0x839   :  { %v4979_v7 = vadd.f32 %v5895_v42, %v10881_v55  ;;  %v5896_v28 = vpop.f32.mrb[134].mxu0  ;;  %v5013_v29 = vld [vmem:[#allocation6 + $0x3f] ss:$2 sm:$0x7]  ;;  %v5027_v55 = vsub.f32 %v5018_v45, %v5026_v12 }
 0x83a   :  { %v5897_v10 = vpop.f32.mrb[135].mxu0  ;;  %5014 = vst.msk [vmem:[#allocation7 + $0xc] sm:$0x7] %vm5001_vm11, %v5013_v29  ;;  %v5191_v29 = vld [vmem:[%s11263_s10 + $0x78] sm:$0xff]  ;;  %v5220_v45 = vld [vmem:[%s11263_s10 + $0x160] sm:$0xff] }
 0x83b   :  { %4997 = vst.msk [vmem:[#allocation6 + $0x48] sm:$0xff] %vm4987_vm15, %v4979_v7  ;;  %v5898_v30 = vadd.f32 %v5897_v10, %v5896_v28  ;;  %v5041_v2 = vmul.f32 %v5027_v55, %v5027_v55  ;;  %v5030_v46 = vsel %vm4987_vm15, %v5027_v55, 0.0  ;;  %v5190_v28 = vld [vmem:[%s11263_s10 + $0x70] sm:$0xff]  ;;  %v5236_v10 = vld [vmem:[%s11263_s10 + $0x1e0] sm:$0xff] }
 0x83d   :  { %v4984_v56 = vadd.f32 %v5898_v30, %v10883_v6  ;;  %v5044_v31 = vsel %vm4987_vm15, %v5041_v2, 0.0  ;;  %v6393_v30 = vpack.c.bf16 %v5191_v29, %v5190_v28 }
 0x83f   :  { %4999 = vst.msk [vmem:[#allocation6 + $0x50] sm:$0x3] %vm4998_vm12, %v4984_v56  ;;  %v5237_v56 = vld [vmem:[%s11263_s10 + $0x1e8] sm:$0xff]  ;;  %6394 = vmatpush3.bf16.msra.mxu0 %v6393_v30 }
 0x846   :  { %v5016_v50 = vld [vmem:[#allocation6 + $0x4d] ss:$2 sm:$0x7] }
 0x847   :  { %5017 = vst.msk [vmem:[#allocation7 + $0xf] sm:$0x7] %vm5001_vm11, %v5016_v50  ;;  %v5221_v50 = vld [vmem:[%s11263_s10 + $0x168] sm:$0xff] }
 0x84e   :  { %v5019_v5 = vld [vmem:[#allocation7 + $0x8] sm:$0xff]  ;;  %v5020_v0 = vld [vmem:[#allocation7 + $0x10] sm:$0x3] }
 0x84f   :  { %v5028_v26 = vsub.f32 %v5019_v5, %v5026_v12  ;;  %v5029_v11 = vsub.f32 %v5020_v0, %v5026_v12  ;;  %v6419_v0 = vpack.c.bf16 %v5237_v56, %v5236_v10  ;;  %v5246_v56 = vld [vmem:[%s11263_s10 + $0x230] sm:$0xff] }
 0x851   :  { %v5031_v23 = vsel %vm4987_vm15, %v5028_v26, 0.0  ;;  %v5042_v18 = vmul.f32 %v5028_v26, %v5028_v26  ;;  %v5043_v6 = vmul.f32 %v5029_v11, %v5029_v11  ;;  %v5033_v48 = vsel %vm4998_vm12, %v5029_v11, 0.0  ;;  %6420 = vmatprep.subr.bf16.mxu1 %v6419_v0 }
 0x852   :  { %v5032_v36 = vadd.f32 %v5031_v23, %v5030_v46  ;;  %v5240_v23 = vld [vmem:[%s11263_s10 + $0x200] sm:$0xff] }
 0x853   :  { %v5045_v41 = vsel %vm4987_vm15, %v5042_v18, 0.0  ;;  %v5047_v13 = vsel %vm4998_vm12, %v5043_v6, 0.0  ;;  %v5241_v18 = vld [vmem:[%s11263_s10 + $0x208] sm:$0xff] }
 0x854   :  { %v5034_v21 = vadd.f32 %v5033_v48, %v5032_v36  ;;  %v5046_v53 = vadd.f32 %v5045_v41, %v5044_v31  ;;  %v11106_v6 = vpack.c.bf16 %v5241_v18, %v5240_v23  ;;  %v5533_v23 = vld [vmem:[%s11266_s13 + $0x10] sm:$0xff] }
 0x856   :  { %v5035_v14 = vrot.slane %v5034_v21, 4  ;;  %v5048_v1 = vadd.f32 %v5047_v13, %v5046_v53  ;;  %6428 = vmatprep.subr.bf16.mxu0 %v11106_v6 }
 0x858   :  { %v5036_v51 = vadd.f32 %v5035_v14, %v5034_v21  ;;  %v5049_v40 = vrot.slane %v5048_v1, 4  ;;  %v5238_v14 = vld [vmem:[%s11263_s10 + $0x1f0] sm:$0xff] }
 0x85a   :  { %v5037_v44 = vrot.slane %v5036_v51, 2  ;;  %v5050_v20 = vadd.f32 %v5049_v40, %v5048_v1 }
 0x85c   :  { %v5038_v9 = vadd.f32 %v5037_v44, %v5036_v51  ;;  %v5051_v8 = vrot.slane %v5050_v20, 2 }
 0x85e   :  { %v5039_v39 = vrot.slane %v5038_v9, 1  ;;  %v5052_v15 = vadd.f32 %v5051_v8, %v5050_v20  ;;  %v5239_v20 = vld [vmem:[%s11263_s10 + $0x1f8] sm:$0xff] }
 0x85f   :  { %v5223_v8 = vld [vmem:[%s11263_s10 + $0x178] sm:$0xff] }
 0x860   :  { %v5040_v38 = vadd.f32 %v5039_v39, %v5038_v9  ;;  %v5053_v58 = vrot.slane %v5052_v15, 1  ;;  %v5222_v9 = vld [vmem:[%s11263_s10 + $0x170] sm:$0xff] }
 0x862   :  { %v5054_v52 = vadd.f32 %v5053_v58, %v5052_v15  ;;  %v5055_v35 = vmul.f32 0.055555556, %v5040_v38 }
 0x864   :  { %v5056_v22 = vmul.f32 0.055555556, %v5054_v52  ;;  %v5057_v37 = vmul.f32 %v5055_v35, %v5055_v35  ;;  %v5060_v17 = vsub.f32 %v5028_v26, %v5055_v35  ;;  %v5059_v61 = vsub.f32 %v5027_v55, %v5055_v35 }
 0x865   :  { %v5061_v57 = vsub.f32 %v5029_v11, %v5055_v35  ;;  %v6421_v26 = vpack.c.bf16 %v5221_v50, %v5220_v45  ;;  %v5247_v45 = vld [vmem:[%s11263_s10 + $0x238] sm:$0xff] }
 0x866   :  { %v5058_v54 = vsub.f32 %v5056_v22, %v5057_v37  ;;  %v6423_v37 = vpack.c.bf16 %v5239_v20, %v5238_v14  ;;  %v5540_v14 = vld [vmem:[%s11266_s13 + $0x48] sm:$0xff]  ;;  %v5543_v20 = vld [vmem:[%s11266_s13 + $0x60] sm:$0xff] }
 0x867   :  { %6422 = vmatpush3.bf16.msra.mxu1 %v6421_v26 }
 0x868   :  { %v5062_v34 = vadd.f32 1e-05, %v5058_v54  ;;  %v6425_v54 = vpack.c.bf16 %v5223_v8, %v5222_v9  ;;  %6424 = vmatprep.subr.bf16.mxu1 %v6423_v37  ;;  %v5544_v9 = vld [vmem:[%s11266_s13 + $0x68] sm:$0xff] }
 0x869   :  { %v6462_v8 = vpack.c.bf16 %v5544_v9, %v5543_v20 }
 0x86a   :  { %6483 = vrsqrt.f32 %v5062_v34 }
 0x86b   :  { %6426 = vmatpush3.bf16.msra.mxu1 %v6425_v54 }
 0x86c   :  { %6443 = vmatprep.subr.bf16.mxu1 %v11626_v62 }
 0x874   :  { %v6484_v25 = vpop.eup %6483 }
 0x875   :  { %v5064_v3 = vmul.f32 %v6484_v25, %v5059_v61  ;;  %v5065_v59 = vmul.f32 %v6484_v25, %v5060_v17  ;;  %v5066_v43 = vmul.f32 %v6484_v25, %v5061_v57 }
 0x877   :  { %v5073_v19 = vmul.f32 %v5766_v33, %v5064_v3  ;;  %v5074_v42 = vmul.f32 %v5766_v33, %v5065_v59  ;;  %v5075_v7 = vmul.f32 %v5766_v33, %v5066_v43 }
 0x879   :  { %v5082_v12 = vadd.f32 %v5767_v47, %v5073_v19  ;;  %v5083_v55 = vadd.f32 %v5767_v47, %v5074_v42  ;;  %v5084_v5 = vadd.f32 %v5767_v47, %v5075_v7  ;;  %v6431_v47 = vpack.c.bf16 %v5243_v63, %v5242_v32  ;;  %v5244_v19 = vld [vmem:[%s11263_s10 + $0x220] sm:$0xff]  ;;  %v5245_v42 = vld [vmem:[%s11263_s10 + $0x228] sm:$0xff] }
 0x87a   :  { %v6435_v30 = vpack.c.bf16 %v5245_v42, %v5244_v19 }
 0x87b   :  { %v5085_v11 = vmax.f32 %v5082_v12, 0.0  ;;  %v5086_v2 = vmax.f32 %v5083_v55, 0.0  ;;  %v5087_v46 = vmax.f32 %v5084_v5, 0.0  ;;  %v6439_v55 = vpack.c.bf16 %v5247_v45, %v5246_v56 }
 0x87d   :  { %v5113_v36 = vrot.slane %v5085_v11, 3  ;;  %v5114_v48 = vrot.slane %v5086_v2, 3  ;;  %5088 = vst.msk [vmem:[#allocation8] sm:$0xff] %vm4987_vm15, %v5085_v11  ;;  %5164 = vst.msk [vmem:[#allocation8 + $0x20] sm:$0xff] %vm4987_vm15, %v5086_v2  ;;  %v5092_v31 = vrot.slane %v5085_v11, 1  ;;  %v5093_v41 = vrot.slane %v5086_v2, 1 }
 0x87e   :  { %5089 = vst.msk [vmem:[#allocation8 + $0x28] sm:$0x3] %vm4998_vm12, %v5086_v2  ;;  %5165 = vst.msk [vmem:[#allocation8 + $0x48] sm:$0x3] %vm4998_vm12, %v5087_v46  ;;  %v5151_v21 = vrot.slane %v5085_v11, 7  ;;  %v5152_v53 = vrot.slane %v5086_v2, 7 }
 0x87f   :  { %v5132_v13 = vrot.slane %v5085_v11, 5  ;;  %v5115_v1 = vsel %vm5112_vm5, %v5113_v36, %v5114_v48  ;;  %v5094_v51 = vsel %vm1407_vm8, %v5092_v31, %v5093_v41  ;;  %v5133_v40 = vrot.slane %v5086_v2, 5  ;;  %v5535_v36 = vld [vmem:[%s11266_s13 + $0x20] sm:$0xff] }
 0x880   :  { %v5106_v44 = vrot.slane %v5086_v2, 2  ;;  %5116 = vrot.lane.b32.xlu0 %v5115_v1, %s6516_s29  ;;  %5095 = vrot.lane.b32.xlu1 %v5094_v51, %s6516_s29  ;;  %v5105_v39 = vrot.slane %v5085_v11, 2  ;;  %v5143_v15 = vrot.slane %v5085_v11, 6  ;;  %vm5124_vm8 = vcmask 1043456   ;;  %v5541_v51 = vld [vmem:[%s11266_s13 + $0x50] sm:$0xff] }
 0x881   :  { %v5144_v38 = vrot.slane %v5086_v2, 6  ;;  %v5125_v58 = vrot.slane %v5085_v11, 4  ;;  %v5126_v52 = vrot.slane %v5086_v2, 4  ;;  %v5154_v35 = vrot.slane %v5087_v46, 7  ;;  %v5531_v2 = vld [vmem:[%s11266_s13] sm:$0xff]  ;;  %v5532_v46 = vld [vmem:[%s11266_s13 + $0x8] sm:$0xff] }
 0x882   :  { %5111 = vst.msk [vmem:[#allocation8 + $0x30] sm:$0x3] %vm4998_vm12, %v5106_v44  ;;  %v5107_v22 = vsel %vm1727_vm9, %v5105_v39, %v5106_v44  ;;  %v5153_v34 = vsel %vm2049_vm7, %v5151_v21, %v5152_v53  ;;  %v5134_v17 = vsel %vm284_vm0, %v5132_v13, %v5133_v40  ;;  %vm5101_vm0 = vcmask 1048064   ;;  %v5538_v21 = vld [vmem:[%s11266_s13 + $0x38] sm:$0xff]  ;;  %v5539_v13 = vld [vmem:[%s11266_s13 + $0x40] sm:$0xff]  ;;  %v5545_v39 = vld [vmem:[%s11266_s13 + $0x70] sm:$0xff] }
 0x883   :  { %5110 = vst.msk [vmem:[#allocation8 + $0x8] sm:$0xff] %vm4987_vm15, %v5107_v22  ;;  %v5145_v61 = vsel %vm2804_vm10, %v5143_v15, %v5144_v38  ;;  %v5127_v57 = vsel %vm5124_vm8, %v5125_v58, %v5126_v52  ;;  %v5155_v60 = vsel %vm2049_vm7, %v5152_v53, %v5154_v35  ;;  %vm5103_vm7 = vcmask 1041920   ;;  %v5546_v15 = vld [vmem:[%s11266_s13 + $0x78] sm:$0xff] }
 0x884   :  { %5149 = vst.msk [vmem:[#allocation8 + $0x40] sm:$0x3] %vm4998_vm12, %v5144_v38  ;;  %5131 = vst.msk [vmem:[#allocation8 + $0x38] sm:$0x3] %vm4998_vm12, %v5126_v52  ;;  %5156 = vrot.lane.b32.xlu0 %v5153_v34, %s6516_s29  ;;  %5135 = vrot.lane.b32.xlu1 %v5134_v17, %s6516_s29  ;;  %v5170_v26 = vld [vmem:[#allocation8 + $0x20] sm:$0xff]  ;;  %v6444_v18 = vpack.c.bf16 %v5532_v46, %v5531_v2  ;;  %v6456_v1 = vpack.c.bf16 %v5540_v14, %v5539_v13 }
 0x885   :  { %5148 = vst.msk [vmem:[#allocation8 + $0x18] sm:$0xff] %vm4987_vm15, %v5145_v61  ;;  %5130 = vst.msk [vmem:[#allocation8 + $0x10] sm:$0xff] %vm4987_vm15, %v5127_v57  ;;  %v5175_v11 = vld [vmem:[#allocation8 + $0x48] sm:$0x3]  ;;  %v6465_v38 = vpack.c.bf16 %v5546_v15, %v5545_v39 }
 0x888   :  { %5118 = vrot.lane.b32.xlu0 %v5114_v48, %s6516_s29  ;;  %5158 = vrot.lane.b32.xlu1 %v5155_v60, %s6516_s29  ;;  %v5536_v48 = vld [vmem:[%s11266_s13 + $0x28] sm:$0xff] }
 0x889   :  { %v6450_v31 = vpack.c.bf16 %v5536_v48, %v5535_v36  ;;  %v5771_v48 = vld [vmem:[%s11265_s12] ss:$0 sm:$0xff] }
 0x88c   :  { %5097 = vrot.lane.b32.xlu0 %v5093_v41, %s6516_s29  ;;  %5137 = vrot.lane.b32.xlu1 %v5133_v40, %s6516_s29  ;;  %v5537_v41 = vld [vmem:[%s11266_s13 + $0x30] sm:$0xff]  ;;  %v5542_v40 = vld [vmem:[%s11266_s13 + $0x58] sm:$0xff] }
 0x88d   :  { %v6453_v53 = vpack.c.bf16 %v5538_v21, %v5537_v41  ;;  %v6459_v44 = vpack.c.bf16 %v5542_v40, %v5541_v51 }
 0x8f2   :  { %v5117_v49 = vpop.permute.xlu0 %5116  ;;  %v5096_v16 = vpop.permute.xlu1 %5095 }
 0x8f3   :  { %5122 = vst.msk [vmem:[#allocation8 + $0x8] sm:$0xff] %vm5101_vm0, %v5117_v49  ;;  %5102 = vst.msk [vmem:[#allocation8] sm:$0xff] %vm5101_vm0, %v5096_v16 }
 0x8f6   :  { %v5157_v25 = vpop.permute.xlu0 %5156  ;;  %v5136_v33 = vpop.permute.xlu1 %5135 }
 0x8f7   :  { %5162 = vst.msk [vmem:[#allocation8 + $0x18] sm:$0xff] %vm5101_vm0, %v5157_v25  ;;  %5141 = vst.msk [vmem:[#allocation8 + $0x10] sm:$0xff] %vm5101_vm0, %v5136_v33 }
 0x8fa   :  { %v5119_v3 = vpop.permute.xlu0 %5118  ;;  %v5159_v59 = vpop.permute.xlu1 %5158  ;;  %v5167_v43 = vld [vmem:[#allocation8 + $0x8] sm:$0xff]  ;;  %v5166_v24 = vld [vmem:[#allocation8] sm:$0xff] }
 0x8fb   :  { %5123 = vst.msk [vmem:[#allocation8 + $0x30] sm:$0x3] %vm5103_vm7, %v5119_v3  ;;  %5163 = vst.msk [vmem:[#allocation8 + $0x40] sm:$0x3] %vm5103_vm7, %v5159_v59  ;;  %5318 = vmatprep.mubr.f32.mxu0 %v5167_v43 }
 0x8fc   :  { %5319 = vmatmul.mubr.f32.vlgmr.msra.gmra.mrb[136].mxu0 %v5166_v24 }
 0x8fd   :  { %6430 = vmatpush3.bf16.msra.mxu0 %v11106_v6 }
 0x8fe   :  { %v5098_v7 = vpop.permute.xlu0 %5097  ;;  %v5138_v28 = vpop.permute.xlu1 %5137  ;;  %v5169_v29 = vld [vmem:[#allocation8 + $0x18] sm:$0xff]  ;;  %6432 = vmatprep.subr.bf16.mxu0 %v6431_v47  ;;  %v5168_v10 = vld [vmem:[#allocation8 + $0x10] sm:$0xff] }
 0x8ff   :  { %5104 = vst.msk [vmem:[#allocation8 + $0x28] sm:$0x3] %vm5103_vm7, %v5098_v7  ;;  %5142 = vst.msk [vmem:[#allocation8 + $0x38] sm:$0x3] %vm5103_vm7, %v5138_v28  ;;  %5393 = vmatprep.mubr.f32.mxu1 %v5169_v29 }
 0x900   :  { %5394 = vmatmul.mubr.f32.vlgmr.msra.gmra.mrb[128].mxu1 %v5168_v10 }
 0x901   :  { %6434 = vmatpush3.bf16.msra.mxu0 %v6431_v47  ;;  %6445 = vmatpush3.bf16.msra.mxu1 %v6444_v18 }
 0x902   :  { %v5172_v50 = vld [vmem:[#allocation8 + $0x30] sm:$0x3]  ;;  %v5174_v12 = vld [vmem:[#allocation8 + $0x40] sm:$0x3]  ;;  %6436 = vmatprep.subr.bf16.mxu0 %v6435_v30  ;;  %6446 = vmatprep.subr.bf16.mxu1 %v11626_v62 }
 0x903   :  { %5323 = vmatprep.mubr.f32.mxu0 %v5172_v50  ;;  %5398 = vmatprep.mubr.f32.mxu1 %v5174_v12 }
 0x905   :  { %6438 = vmatpush3.bf16.msra.mxu0 %v6435_v30 }
 0x906   :  { %v5171_v5 = vld [vmem:[#allocation8 + $0x28] sm:$0x3]  ;;  %v5173_v0 = vld [vmem:[#allocation8 + $0x38] sm:$0x3]  ;;  %6440 = vmatprep.subr.bf16.mxu0 %v6439_v55 }
 0x907   :  { %5324 = vmatmul.mubr.f32.gmra.mrb[138].mxu0 %v5171_v5  ;;  %5399 = vmatmul.mubr.f32.gmra.mrb[130].mxu1 %v5173_v0 }
 0x908   :  { %6253 = vmatprep.mubr.msk.f32.mxu0 %vm4987_vm15, %v5170_v26  ;;  %6288 = vmatprep.mubr.msk.f32.mxu1 %vm6513_vm1, %v11625_v27  ;;  %v5534_v27 = vld [vmem:[%s11266_s13 + $0x18] sm:$0xff]  ;;  %vm5624_vm1 = vcmask 74752  }
 0x909   :  { %6442 = vmatpush3.bf16.msra.mxu0 %v6439_v55  ;;  %v6447_v6 = vpack.c.bf16 %v5534_v27, %v5533_v23 }
 0x90b   :  { %6448 = vmatpush3.bf16.msra.mxu1 %v6447_v6  ;;  %v5770_v6 = vld [vmem:[%s11264_s11] ss:$0 sm:$0xff]  ;;  %s6488_s11 = scalar_lea.vmem %s5633_s7, 32 }
 0x90c   :  { %6254 = vmatmul.mubr.msk.f32.vlgmr.msra.gmra.mrb[140].mxu0 %vm4987_vm15, %v5175_v11  ;;  %6449 = vmatprep.subr.bf16.mxu1 %v11626_v62  ;;  %p6489_p0 = scmp.ne.s32.totalorder %s5633_s7, %s6488_s11  ;;  %p6494_p2 = scmp.lt.s32.totalorder %s6488_s11, %s6488_s11 }
 0x90e   :  { %p6495_p3 = por %p6494_p2, %p6493_p1 }
 0x90f   :  { %6451 = vmatpush3.bf16.msra.mxu1 %v6450_v31 }
 0x910   :  { %6452 = vmatprep.subr.bf16.mxu1 %v11626_v62  ;;  %p6496_p4 = pnand %p6495_p3, %p6489_p0 }
 0x913   :  { %6454 = vmatpush3.bf16.msra.mxu1 %v6453_v53  ;;  %v5772_v53 = vld [vmem:[%s11267_s14] ss:$0 sm:$0xff] }
 0x914   :  { %6455 = vmatprep.subr.bf16.mxu1 %v11626_v62 }
 0x917   :  { %6457 = vmatpush3.bf16.msra.mxu1 %v6456_v1 }
 0x918   :  { %6458 = vmatprep.subr.bf16.mxu1 %v11626_v62 }
 0x91b   :  { %6460 = vmatpush3.bf16.msra.mxu1 %v6459_v44 }
 0x91c   :  { %6461 = vmatprep.subr.bf16.mxu1 %v11626_v62 }
 0x91f   :  { %6463 = vmatpush3.bf16.msra.mxu1 %v6462_v8 }
 0x920   :  { %6464 = vmatprep.subr.bf16.mxu1 %v11626_v62 }
 0x923   :  { %6466 = vmatpush3.bf16.msra.mxu1 %v6465_v38 }
 0x9cf   :  { %v5946_v58 = vpop.f32.mrb[136].mxu0 }
 0x9d0   :  { %v5947_v52 = vpop.f32.mrb[137].mxu0 }
 0x9d1   :  { %v5948_v35 = vadd.f32 %v5947_v52, %v5946_v58 }
 0x9d3   :  { %v5984_v22 = vpop.f32.mrb[128].mxu1 }
 0x9d4   :  { %v5985_v37 = vpop.f32.mrb[129].mxu1 }
 0x9d5   :  { %v5986_v54 = vadd.f32 %v5985_v37, %v5984_v22 }
 0x9d7   :  { %v5396_v34 = vadd.f32 %v5986_v54, %v5948_v35 }
 0x9da   :  { %v5949_v17 = vpop.f32.mrb[138].mxu0  ;;  %v5987_v61 = vpop.f32.mrb[130].mxu1 }
 0x9db   :  { %v5950_v57 = vpop.f32.mrb[139].mxu0  ;;  %v5988_v60 = vpop.f32.mrb[131].mxu1 }
 0x9dc   :  { %v5951_v49 = vadd.f32 %v5950_v57, %v5949_v17  ;;  %v5989_v16 = vadd.f32 %v5988_v60, %v5987_v61 }
 0x9de   :  { %v5401_v25 = vadd.f32 %v5989_v16, %v5951_v49 }
 0x9df   :  { %v6255_v33 = vpop.f32.mrb[140].mxu0 }
 0x9e0   :  { %v5476_v32 = vadd.f32 %v6255_v33, %v5401_v25  ;;  %v5470_v63 = vpop.f32.mrb[141].mxu0 }
 0x9e1   :  { %v5471_v3 = vadd.f32 %v5470_v63, %v5396_v34 }
 0x9e2   :  { %5480 = vst [vmem:[#allocation9 + $0x8] sm:$0x3] %v5476_v32 }
 0x9e3   :  { %5479 = vst [vmem:[#allocation9] sm:$0xff] %v5471_v3 }
 0x9e9   :  { %v5483_v62 = vld [vmem:[#allocation9 + $0x9] sm:$0x1] }
 0x9ea   :  { %5484 = vst [vmem:[#allocation10 + $0x1] sm:$0x1] %v5483_v62  ;;  %v5481_v59 = vld [vmem:[#allocation9] sm:$0x1] }
 0x9eb   :  { %5482 = vst [vmem:[#allocation10] sm:$0x1] %v5481_v59 }
 0x9f2   :  { %v5485_v43 = vld [vmem:[#allocation10] sm:$0x3] }
 0x9f3   :  { %v5491_v24 = vrot.slane %v5485_v43, %v11627_v4 }
 0x9f5   :  { %v5492_v47 = vsub.f32 %v5485_v43, %v5491_v24 }
 0x9f7   :  { %v5493_v19 = vsel %vm2804_vm10, %v5492_v47, 0.0  ;;  %v5500_v42 = vmul.f32 %v5492_v47, %v5492_v47 }
 0x9f8   :  { %v5494_v7 = vrot.slane %v5493_v19, 4 }
 0x9f9   :  { %v5501_v28 = vsel %vm2804_vm10, %v5500_v42, 0.0 }
 0x9fa   :  { %v5495_v29 = vadd.f32 %v5494_v7, %v5493_v19  ;;  %v5502_v10 = vrot.slane %v5501_v28, 4 }
 0x9fc   :  { %v5496_v30 = vrot.slane %v5495_v29, 2  ;;  %v5503_v56 = vadd.f32 %v5502_v10, %v5501_v28 }
 0x9fe   :  { %v5497_v45 = vadd.f32 %v5496_v30, %v5495_v29  ;;  %v5504_v50 = vrot.slane %v5503_v56, 2 }
 0xa00   :  { %v5498_v12 = vrot.slane %v5497_v45, 1  ;;  %v5505_v55 = vadd.f32 %v5504_v50, %v5503_v56 }
 0xa02   :  { %v5499_v5 = vadd.f32 %v5498_v12, %v5497_v45  ;;  %v5506_v0 = vrot.slane %v5505_v55, 1 }
 0xa04   :  { %v5507_v26 = vadd.f32 %v5506_v0, %v5505_v55  ;;  %v5508_v11 = vmul.f32 0.5, %v5499_v5 }
 0xa06   :  { %v5509_v4 = vmul.f32 0.5, %v5507_v26  ;;  %v5510_v2 = vmul.f32 %v5508_v11, %v5508_v11  ;;  %v5512_v18 = vsub.f32 %v5492_v47, %v5508_v11 }
 0xa08   :  { %v5511_v46 = vsub.f32 %v5509_v4, %v5510_v2 }
 0xa0a   :  { %v5513_v23 = vadd.f32 1e-05, %v5511_v46 }
 0xa0c   :  { %6485 = vrsqrt.f32 %v5513_v23 }
 0xa16   :  { %v6486_v27 = vpop.eup %6485 }
 0xa17   :  { %v5515_v36 = vmul.f32 %v6486_v27, %v5512_v18 }
 0xa19   :  { %v5522_v31 = vmul.f32 %v5770_v6, %v5515_v36 }
 0xa1b   :  { %v5529_v41 = vadd.f32 %v5771_v48, %v5522_v31 }
 0xa1d   :  { %v5530_v21 = vmax.f32 %v5529_v41, 0.0 }
 0xa1f   :  { %6289 = vmatmul.mubr.f32.vlgmr.msra.gmra.mrb[132].mxu1 %v5530_v21 }
 0xaf2   :  { %v5620_v13 = vpop.f32.mrb[132].mxu1 }
 0xaf3   :  { %v5621_v14 = vadd.f32 %v5772_v53, %v5620_v13  ;;  %v6290_v1 = vpop.f32.mrb[133].mxu1 }
 0xaf5   :  { %5625 = vst.msk [vmem:[#allocation11] sm:$0x3] %vm5624_vm1, %v5621_v14 }
 0xaf6   :  { %6499 = shalt.err (!%p6496_p4)
}
 0xaf7   :  { %s6500_s21 = scalar_lea.hbm %s11268_s15, 32 }
 0xaf8   :  { %p6501_p5 = scmp.ne.s32.totalorder %s11268_s15, %s6500_s21  ;;  %p6504_p6 = scmp.lt.u32.totalorder %s6500_s21, %s11268_s15 }
 0xafa   :  { %p6506_p7 = pnand %p6504_p6, %p6501_p5 }
 0xafc   :  { %6509 = shalt.err (!%p6506_p7)
}
 0xafd   :  { %5635 = dma.vmem_to_hbm [thread:$0]  %s5633_s7, 32, %s11268_s15, [#allocation12]  }
 0xafe   :  { %6510 = dma.done.wait [#allocation12], 32  }
 0xaff   :  { %6511 = vsyncadd [#allocation12], 4294967264 }
 0xb00   :  { %5639 = vsyncpa [#allocation12], 1 }

</bundles_post_ra>
